<compile_context>
chip_gen: v6e
topology: v6e:2x2x1
jax: 0.10.0
libtpu: 0.0.40
codegen_flags: <defaults>
</compile_context>

<pallas_src>
import functools
import math

import jax
import jax.numpy as jnp
from jax.experimental import pallas as pl
from jax.experimental.pallas import tpu as pltpu

LEAK = 0.1          # WideResNet default leakiness
BN_EPS = 1e-5       # PyTorch BatchNorm2d default eps
VMEM_LIMIT = 48 * 1024 * 1024   # explicit scoped-VMEM limit; safe on v5e/v6e/v7x


def _cp(c):
    """Pad a channel count up to a lane-dense multiple of 128."""
    return max(128, ((c + 127) // 128) * 128)


def _row_tile(n, cap):
    """Largest power-of-two divisor of n that is <= cap (cap is a power of 2)."""
    t = math.gcd(n, cap)
    return t if t >= 8 else n


# ------------------------- fused 3x3 conv kernel ---------------------------- #

def _conv3x3_kernel(a_ref, w_ref, s_ref, b_ref, *rest, width, hw, act, leak,
                    has_res):
    # a_ref : (1, 3, (H+2)*W, Cin_p) bf16 -- 3 width-shifted column views
    # w_ref : (9, Cin_p, Cout_p)     bf16 -- packed taps
    # s_ref, b_ref : (1, Cout_p)     f32  -- fused BN affine (identity if unused)
    # rest  : [res_ref,] o_ref
    if has_res:
        res_ref, o_ref = rest
    else:
        (o_ref,) = rest
    cout = w_ref.shape[2]
    acc = jnp.zeros((hw, cout), jnp.float32)
    for kh in range(3):
        for kw in range(3):
            # tap (kh, kw): rows m..m+hw of the kw-shifted column view,
            # shifted by kh*width -> exactly x_pad[i+kh, j+kw, :] for output (i, j)
            patch = a_ref[0, kw, kh * width:kh * width + hw, :]
            acc = acc + jnp.dot(patch, w_ref[kh * 3 + kw],
                                preferred_element_type=jnp.float32)
    if has_res:
        acc = acc + res_ref[0].astype(jnp.float32)
    y = acc * s_ref[...] + b_ref[...]
    if act:
        y = jnp.where(y >= 0.0, y, y * leak)
    o_ref[0] = y.astype(o_ref.dtype)


def conv3x3(x, H, W, w9, scale, shift, *, act, leak, stride=1, residual=None):
    """Fused 3x3 conv (padding=1, no bias) + optional residual + BN affine + act.

    x        : (N, H*W, Cin_p)  bf16 (channel-padded, spatially flattened NHWC)
    w9       : (9, Cin_p, Cout_p) bf16
    scale, shift : (1, Cout_p) f32   (applied AFTER the optional residual add)
    residual : (N, H*W, Cout_p) bf16 or None
    returns  : (N, Ho*Wo, Cout_p) bf16
    """
    assert stride == 1 or residual is None
    N, hw, cin_p = x.shape
    cout_p = w9.shape[2]
    hw_pad = (H + 2) * W

    xp = jnp.pad(x.reshape(N, H, W, cin_p), ((0, 0), (1, 1), (1, 1), (0, 0)))
    cols = [xp[:, :, kw:kw + W, :] for kw in range(3)]        # (N, H+2, W, Cin_p)
    a = jnp.stack(cols, axis=1).reshape(N, 3, hw_pad, cin_p)

    inputs = [a, w9, scale, shift]
    in_specs = [
        pl.BlockSpec((1, 3, hw_pad, cin_p), lambda n: (n, 0, 0, 0)),
        pl.BlockSpec((9, cin_p, cout_p), lambda n: (0, 0, 0)),
        pl.BlockSpec((1, cout_p), lambda n: (0, 0)),
        pl.BlockSpec((1, cout_p), lambda n: (0, 0)),
    ]
    has_res = residual is not None
    if has_res:
        inputs.append(residual)
        in_specs.append(pl.BlockSpec((1, hw, cout_p), lambda n: (n, 0, 0)))

    out = pl.pallas_call(
        functools.partial(_conv3x3_kernel, width=W, hw=hw, act=act, leak=leak,
                          has_res=has_res),
        grid=(N,),
        in_specs=in_specs,
        out_specs=pl.BlockSpec((1, hw, cout_p), lambda n: (n, 0, 0)),
        out_shape=jax.ShapeDtypeStruct((N, hw, cout_p), jnp.bfloat16),
        compiler_params=pltpu.CompilerParams(
            dimension_semantics=("parallel",),
            vmem_limit_bytes=VMEM_LIMIT),
    )(*inputs)

    if stride != 1:
        # TODO(synk): stride-2 3x3 convs are computed at stride 1 and subsampled
        # (exact for kernel=3/padding=1); negligible extra FLOPs at these sizes.
        Ho, Wo = H // stride, W // stride
        out = out.reshape(N, H, W, cout_p)[:, ::stride, ::stride, :]
        out = out.reshape(N, Ho * Wo, cout_p)
    return out


# ----------------------- tiled matmul (1x1 shortcut) ------------------------ #

def _matmul_kernel(a_ref, b_ref, o_ref, acc_ref):
    @pl.when(pl.program_id(2) == 0)
    def _():
        acc_ref[...] = jnp.zeros_like(acc_ref)

    acc_ref[...] += jnp.dot(a_ref[...], b_ref[...],
                            preferred_element_type=jnp.float32)

    @pl.when(pl.program_id(2) == pl.num_programs(2) - 1)
    def _():
        o_ref[...] = acc_ref[...].astype(o_ref.dtype)


def pallas_matmul(a, b, out_dtype=jnp.bfloat16):
    M, K = a.shape
    _, Nc = b.shape
    tm = _row_tile(M, 256)
    tn = _row_tile(Nc, 256)
    tk = _row_tile(K, 512)
    return pl.pallas_call(
        _matmul_kernel,
        grid=(M // tm, Nc // tn, K // tk),
        in_specs=[pl.BlockSpec((tm, tk), lambda i, j, k: (i, k)),
                  pl.BlockSpec((tk, tn), lambda i, j, k: (k, j))],
        out_specs=pl.BlockSpec((tm, tn), lambda i, j, k: (i, j)),
        out_shape=jax.ShapeDtypeStruct((M, Nc), out_dtype),
        scratch_shapes=[pltpu.VMEM((tm, tn), jnp.float32)],
        compiler_params=pltpu.CompilerParams(
            dimension_semantics=("parallel", "parallel", "arbitrary"),
            vmem_limit_bytes=VMEM_LIMIT),
    )(a, b)


def conv1x1(x, H, W, w, stride):
    """1x1 conv (no bias) on flat NHWC; stride handled via exact JAX subsample."""
    N, hw, cin_p = x.shape
    if stride != 1:
        x = x.reshape(N, H, W, cin_p)[:, ::stride, ::stride, :]
        Ho, Wo = H // stride, W // stride
        x = x.reshape(N, Ho * Wo, cin_p)
    else:
        Ho, Wo = H, W
    cout_p = w.shape[1]
    out = pallas_matmul(x.reshape(N * Ho * Wo, cin_p), w)
    return out.reshape(N, Ho * Wo, cout_p)


# ------------------- standalone BN(eval) + LeakyReLU ------------------------ #

def _affine_act_kernel(x_ref, s_ref, b_ref, o_ref, *, leak):
    t = x_ref[...].astype(jnp.float32) * s_ref[...] + b_ref[...]
    o_ref[...] = jnp.where(t >= 0.0, t, t * leak).astype(o_ref.dtype)


def affine_act(x, scale, shift, leak):
    """x: (N, HW, Cp) bf16. Lane-dense, row-tiled fused affine + LeakyReLU."""
    N, hw, cp = x.shape
    rows = N * hw
    tr = _row_tile(rows, 1024)
    out = pl.pallas_call(
        functools.partial(_affine_act_kernel, leak=leak),
        grid=(rows // tr,),
        in_specs=[pl.BlockSpec((tr, cp), lambda i: (i, 0)),
                  pl.BlockSpec((1, cp), lambda i: (0, 0)),
                  pl.BlockSpec((1, cp), lambda i: (0, 0))],
        out_specs=pl.BlockSpec((tr, cp), lambda i: (i, 0)),
        out_shape=jax.ShapeDtypeStruct((rows, cp), jnp.bfloat16),
        compiler_params=pltpu.CompilerParams(
            dimension_semantics=("parallel",),
            vmem_limit_bytes=VMEM_LIMIT),
    )(x.reshape(rows, cp), scale, shift)
    return out.reshape(N, hw, cp)


# --------------------- global average pool + Linear ------------------------- #

def _pool_fc_kernel(x_ref, w_ref, b_ref, o_ref, *, inv_hw):
    pooled = jnp.sum(x_ref[...].astype(jnp.float32), axis=1) * inv_hw   # (N, Cp)
    o_ref[...] = jnp.dot(pooled, w_ref[...],
                         preferred_element_type=jnp.float32) + b_ref[...]


def pool_fc(x, fc_w, fc_b):
    """x: (N, HW, Cp) bf16; fc_w: (Cp, n_out_p) f32; fc_b: (1, n_out_p) f32."""
    # TODO(synk): tile the HW reduction for large images / batches; the final
    #             feature map here is tiny (N, 16, 128) so a single block is fine.
    N, hw, _ = x.shape
    n_out_p = fc_w.shape[1]
    vspec = pl.BlockSpec(memory_space=pltpu.MemorySpace.VMEM)
    return pl.pallas_call(
        functools.partial(_pool_fc_kernel, inv_hw=1.0 / hw),
        in_specs=[vspec, vspec, vspec],
        out_specs=vspec,
        out_shape=jax.ShapeDtypeStruct((N, n_out_p), jnp.float32),
        compiler_params=pltpu.CompilerParams(vmem_limit_bytes=VMEM_LIMIT),
    )(x, fc_w, fc_b)


# ------------------------------ model forward ------------------------------ #

def res_layer(x, H, W, p, *, skip_bn1, final_scale, final_shift, leak):
    """Matches _ResLayer.forward (nn.Conv2d variant) with fused epilogues."""
    stride = p["stride"]
    h = x if skip_bn1 else affine_act(x, p["bn1_scale"], p["bn1_shift"], leak)

    # conv1 (stride) with its following bn2 + LeakyReLU fused into the epilogue.
    out = conv3x3(h, H, W, p["w1"], p["bn2_scale"], p["bn2_shift"],
                  act=True, leak=leak, stride=stride)
    Ho, Wo = H // stride, W // stride

    if p["has_shortcut"]:
        src = h if p["is_act_before_res"] else x
        res = conv1x1(src, H, W, p["sc_w"], stride)
    else:
        res = x                      # in == out  =>  stride == 1 in this net

    cout_p = p["w2"].shape[2]
    if final_scale is not None:
        # last layer: fuse residual + final BN + LeakyReLU into conv2's epilogue.
        y = conv3x3(out, Ho, Wo, p["w2"], final_scale, final_shift,
                    act=True, leak=leak, residual=res)
    else:
        # fuse only the residual add (identity affine, no activation).
        y = conv3x3(out, Ho, Wo, p["w2"],
                    jnp.ones((1, cout_p), jnp.float32),
                    jnp.zeros((1, cout_p), jnp.float32),
                    act=False, leak=leak, residual=res)
    return y, Ho, Wo


def wideresnet_forward(x_nchw, params, leak=LEAK):
    N, C, H, W = x_nchw.shape
    cp0 = _cp(C)
    x = jnp.transpose(x_nchw, (0, 2, 3, 1)).astype(jnp.float32)       # NCHW->NHWC
    x = jnp.pad(x, ((0, 0), (0, 0), (0, 0), (0, cp0 - C)))
    x = x.astype(jnp.bfloat16).reshape(N, H * W, cp0)

    layers = [p for blk in ("block1", "block2", "block3") for p in params[blk]]
    assert layers[0]["is_act_before_res"]
    # stem conv, with block1.layer1's bn1 + LeakyReLU fused into its epilogue.
    out = conv3x3(x, H, W, params["conv_w"],
                  layers[0]["bn1_scale"], layers[0]["bn1_shift"],
                  act=True, leak=leak)
    ch, cw = H, W
    for li, p in enumerate(layers):
        is_last = li == len(layers) - 1
        out, ch, cw = res_layer(
            out, ch, cw, p,
            skip_bn1=(li == 0),
            final_scale=params["bn_scale"] if is_last else None,
            final_shift=params["bn_shift"] if is_last else None,
            leak=leak)
    logits = pool_fc(out, params["fc_w"], params["fc_b"])
    return logits[:, :params["n_out"]]


# ----------------------------- parameter init ------------------------------ #

def _conv_weight(key, cout, cin, k):
    fan_in = cin * k * k
    std = math.sqrt(2.0 / fan_in)
    return std * jax.random.normal(key, (cout, cin, k, k), dtype=jnp.float32)


def _pack_conv3(w, cin_p, cout_p):
    # (Cout, Cin, 3, 3) torch layout -> padded (9, Cin_p, Cout_p) bf16.
    cout, cin = w.shape[0], w.shape[1]
    wt = jnp.transpose(w, (2, 3, 1, 0)).reshape(9, cin, cout)
    wt = jnp.pad(wt, ((0, 0), (0, cin_p - cin), (0, cout_p - cout)))
    return wt.astype(jnp.bfloat16)


def _pack_conv1(w, cin_p, cout_p):
    # (Cout, Cin, 1, 1) -> padded (Cin_p, Cout_p) bf16.
    cout, cin = w.shape[0], w.shape[1]
    wt = jnp.pad(w[:, :, 0, 0].T, ((0, cin_p - cin), (0, cout_p - cout)))
    return wt.astype(jnp.bfloat16)


def _bn_fold(gamma, beta, cp):
    # TODO(synk): eval-mode BN with default running stats (mean=0, var=1) only.
    scale = gamma / jnp.sqrt(1.0 + BN_EPS)
    shift = beta
    scale = jnp.pad(scale, (0, cp - scale.shape[0])).reshape(1, cp)
    shift = jnp.pad(shift, (0, cp - shift.shape[0])).reshape(1, cp)
    return scale.astype(jnp.float32), shift.astype(jnp.float32)


def _init_res_layer(key, cin, cout, stride, is_act_before_res):
    k1, k2, k3 = jax.random.split(key, 3)
    cin_p, cout_p = _cp(cin), _cp(cout)
    p = dict(stride=stride, is_act_before_res=is_act_before_res,
             has_shortcut=(cin != cout))
    p["bn1_scale"], p["bn1_shift"] = _bn_fold(
        jnp.ones((cin,), jnp.float32), jnp.zeros((cin,), jnp.float32), cin_p)
    p["w1"] = _pack_conv3(_conv_weight(k1, cout, cin, 3), cin_p, cout_p)
    p["bn2_scale"], p["bn2_shift"] = _bn_fold(
        jnp.ones((cout,), jnp.float32), jnp.zeros((cout,), jnp.float32), cout_p)
    p["w2"] = _pack_conv3(_conv_weight(k2, cout, cout, 3), cout_p, cout_p)
    if cin != cout:
        p["sc_w"] = _pack_conv1(_conv_weight(k3, cout, cin, 1), cin_p, cout_p)
    return p


def _init_block(key, n_layers, cin, cout, stride, is_act_before_res):
    keys = jax.random.split(key, n_layers)
    layers = [_init_res_layer(keys[0], cin, cout, stride, is_act_before_res)]
    for i in range(1, n_layers):
        layers.append(_init_res_layer(keys[i], cout, cout, 1, False))
    return layers


def init_params(key, x_shape, n_out, n_res_unit=2, widen_factor=2):
    c0 = x_shape[0]
    n_chan = [c0, 16, 16 * widen_factor, 32 * widen_factor, 64 * widen_factor]
    k0, k1, k2, k3, k4 = jax.random.split(key, 5)
    params = dict(n_out=n_out)
    params["conv_w"] = _pack_conv3(_conv_weight(k0, n_chan[1], n_chan[0], 3),
                                   _cp(n_chan[0]), _cp(n_chan[1]))
    params["block1"] = _init_block(k1, n_res_unit, n_chan[1], n_chan[2], 1, True)
    params["block2"] = _init_block(k2, n_res_unit, n_chan[2], n_chan[3], 2, False)
    params["block3"] = _init_block(k3, n_res_unit, n_chan[3], n_chan[4], 2, False)
    cfin, cfin_p = n_chan[4], _cp(n_chan[4])
    params["bn_scale"], params["bn_shift"] = _bn_fold(
        jnp.ones((cfin,), jnp.float32), jnp.zeros((cfin,), jnp.float32), cfin_p)
    kf_w, kf_b = jax.random.split(k4)
    bound = 1.0 / math.sqrt(cfin)
    fcw = jax.random.uniform(kf_w, (cfin, n_out), minval=-bound, maxval=bound,
                             dtype=jnp.float32)
    fcb = jax.random.uniform(kf_b, (n_out,), minval=-bound, maxval=bound,
                             dtype=jnp.float32)
    n_out_p = _cp(n_out)
    params["fc_w"] = jnp.pad(fcw, ((0, cfin_p - cfin), (0, n_out_p - n_out)))
    params["fc_b"] = jnp.pad(fcb, (0, n_out_p - n_out)).reshape(1, n_out_p)
    return params


# ---------------------------------- main ----------------------------------- #

if __name__ == "__main__":
    key = jax.random.PRNGKey(0)
    kp, kx = jax.random.split(key)

    x_shape = (3, 16, 16)       # (C, H, W), min_width=16
    batch = 2
    n_out = 10
    n_res_unit = 2              # small for the demo (paper default is 4)
    widen_factor = 2

    params = init_params(kp, x_shape, n_out, n_res_unit=n_res_unit,
                         widen_factor=widen_factor)
    x = jax.random.normal(kx, (batch,) + x_shape, dtype=jnp.float32)

    fwd = jax.jit(lambda inp: wideresnet_forward(inp, params))
    out = jax.block_until_ready(fwd(x))
    assert out.shape == (batch, n_out), out.shape
    assert bool(jnp.all(jnp.isfinite(out)))
    print("KERNEL_OK")
</pallas_src>

<mosaic_0001>
module attributes {stable_mosaic.version = 11 : i64} {
  func.func @_conv3x3_kernel(%arg0: i32, %arg1: memref<1x3x288x128xbf16, #tpu.memory_space<vmem>>, %arg2: memref<9x128x128xbf16, #tpu.memory_space<vmem>>, %arg3: memref<1x128xf32, #tpu.memory_space<vmem>>, %arg4: memref<1x128xf32, #tpu.memory_space<vmem>>, %arg5: memref<1x256x128xbf16, #tpu.memory_space<vmem>>) attributes {dimension_semantics = [#tpu.dimension_semantics<parallel>], iteration_bounds = array<i64: 2>, scalar_prefetch = 0 : i64, scratch_operands = 0 : i64, tpu.core_type = #tpu.core_type<tc>, window_params = [{transform_indices = @transform_0, window_bounds = array<i64: 1, 3, 288, 128>}, {pipeline_mode = #tpu.pipeline_mode<synchronous>, transform_indices = @transform_1, window_bounds = array<i64: 9, 128, 128>}, {pipeline_mode = #tpu.pipeline_mode<synchronous>, transform_indices = @transform_2, window_bounds = array<i64: 1, 128>}, {pipeline_mode = #tpu.pipeline_mode<synchronous>, transform_indices = @transform_3, window_bounds = array<i64: 1, 128>}, {transform_indices = @transform_4, window_bounds = array<i64: 1, 256, 128>}]} {
    %cst = arith.constant 0.000000e+00 : f32
    %0 = vector.broadcast %cst : f32 to vector<256x128xf32>
    %c0 = arith.constant 0 : index
    %c0_0 = arith.constant 0 : index
    %c0_1 = arith.constant 0 : index
    %c0_2 = arith.constant 0 : index
    %1 = vector.load %arg1[%c0, %c0_0, %c0_1, %c0_2] : memref<1x3x288x128xbf16, #tpu.memory_space<vmem>>, vector<1x1x256x128xbf16>
    %2 = vector.shape_cast %1 : vector<1x1x256x128xbf16> to vector<256x128xbf16>
    %c0_3 = arith.constant 0 : index
    %c0_4 = arith.constant 0 : index
    %c0_5 = arith.constant 0 : index
    %3 = vector.load %arg2[%c0_3, %c0_4, %c0_5] : memref<9x128x128xbf16, #tpu.memory_space<vmem>>, vector<1x128x128xbf16>
    %4 = vector.shape_cast %3 : vector<1x128x128xbf16> to vector<128x128xbf16>
    %cst_6 = arith.constant dense<0.000000e+00> : vector<256x128xf32>
    %5 = tpu.matmul %2, %4, %cst_6 {dimension_numbers = #tpu.dot_dimension_numbers<[1], [0], [0], [1], [0, 0, 1, 1], [], []>} : vector<256x128xbf16>, vector<128x128xbf16>, vector<256x128xf32> -> vector<256x128xf32>
    %6 = arith.addf %0, %5 : vector<256x128xf32>
    %c0_7 = arith.constant 0 : index
    %c1 = arith.constant 1 : index
    %c0_8 = arith.constant 0 : index
    %c0_9 = arith.constant 0 : index
    %7 = vector.load %arg1[%c0_7, %c1, %c0_8, %c0_9] : memref<1x3x288x128xbf16, #tpu.memory_space<vmem>>, vector<1x1x256x128xbf16>
    %8 = vector.shape_cast %7 : vector<1x1x256x128xbf16> to vector<256x128xbf16>
    %c1_10 = arith.constant 1 : index
    %c0_11 = arith.constant 0 : index
    %c0_12 = arith.constant 0 : index
    %9 = vector.load %arg2[%c1_10, %c0_11, %c0_12] : memref<9x128x128xbf16, #tpu.memory_space<vmem>>, vector<1x128x128xbf16>
    %10 = vector.shape_cast %9 : vector<1x128x128xbf16> to vector<128x128xbf16>
    %cst_13 = arith.constant dense<0.000000e+00> : vector<256x128xf32>
    %11 = tpu.matmul %8, %10, %cst_13 {dimension_numbers = #tpu.dot_dimension_numbers<[1], [0], [0], [1], [0, 0, 1, 1], [], []>} : vector<256x128xbf16>, vector<128x128xbf16>, vector<256x128xf32> -> vector<256x128xf32>
    %12 = arith.addf %6, %11 : vector<256x128xf32>
    %c0_14 = arith.constant 0 : index
    %c2 = arith.constant 2 : index
    %c0_15 = arith.constant 0 : index
    %c0_16 = arith.constant 0 : index
    %13 = vector.load %arg1[%c0_14, %c2, %c0_15, %c0_16] : memref<1x3x288x128xbf16, #tpu.memory_space<vmem>>, vector<1x1x256x128xbf16>
    %14 = vector.shape_cast %13 : vector<1x1x256x128xbf16> to vector<256x128xbf16>
    %c2_17 = arith.constant 2 : index
    %c0_18 = arith.constant 0 : index
    %c0_19 = arith.constant 0 : index
    %15 = vector.load %arg2[%c2_17, %c0_18, %c0_19] : memref<9x128x128xbf16, #tpu.memory_space<vmem>>, vector<1x128x128xbf16>
    %16 = vector.shape_cast %15 : vector<1x128x128xbf16> to vector<128x128xbf16>
    %cst_20 = arith.constant dense<0.000000e+00> : vector<256x128xf32>
    %17 = tpu.matmul %14, %16, %cst_20 {dimension_numbers = #tpu.dot_dimension_numbers<[1], [0], [0], [1], [0, 0, 1, 1], [], []>} : vector<256x128xbf16>, vector<128x128xbf16>, vector<256x128xf32> -> vector<256x128xf32>
    %18 = arith.addf %12, %17 : vector<256x128xf32>
    %c0_21 = arith.constant 0 : index
    %c0_22 = arith.constant 0 : index
    %c16 = arith.constant 16 : index
    %c0_23 = arith.constant 0 : index
    %19 = vector.load %arg1[%c0_21, %c0_22, %c16, %c0_23] : memref<1x3x288x128xbf16, #tpu.memory_space<vmem>>, vector<1x1x256x128xbf16>
    %20 = vector.shape_cast %19 : vector<1x1x256x128xbf16> to vector<256x128xbf16>
    %c3 = arith.constant 3 : index
    %c0_24 = arith.constant 0 : index
    %c0_25 = arith.constant 0 : index
    %21 = vector.load %arg2[%c3, %c0_24, %c0_25] : memref<9x128x128xbf16, #tpu.memory_space<vmem>>, vector<1x128x128xbf16>
    %22 = vector.shape_cast %21 : vector<1x128x128xbf16> to vector<128x128xbf16>
    %cst_26 = arith.constant dense<0.000000e+00> : vector<256x128xf32>
    %23 = tpu.matmul %20, %22, %cst_26 {dimension_numbers = #tpu.dot_dimension_numbers<[1], [0], [0], [1], [0, 0, 1, 1], [], []>} : vector<256x128xbf16>, vector<128x128xbf16>, vector<256x128xf32> -> vector<256x128xf32>
    %24 = arith.addf %18, %23 : vector<256x128xf32>
    %c0_27 = arith.constant 0 : index
    %c1_28 = arith.constant 1 : index
    %c16_29 = arith.constant 16 : index
    %c0_30 = arith.constant 0 : index
    %25 = vector.load %arg1[%c0_27, %c1_28, %c16_29, %c0_30] : memref<1x3x288x128xbf16, #tpu.memory_space<vmem>>, vector<1x1x256x128xbf16>
    %26 = vector.shape_cast %25 : vector<1x1x256x128xbf16> to vector<256x128xbf16>
    %c4 = arith.constant 4 : index
    %c0_31 = arith.constant 0 : index
    %c0_32 = arith.constant 0 : index
    %27 = vector.load %arg2[%c4, %c0_31, %c0_32] : memref<9x128x128xbf16, #tpu.memory_space<vmem>>, vector<1x128x128xbf16>
    %28 = vector.shape_cast %27 : vector<1x128x128xbf16> to vector<128x128xbf16>
    %cst_33 = arith.constant dense<0.000000e+00> : vector<256x128xf32>
    %29 = tpu.matmul %26, %28, %cst_33 {dimension_numbers = #tpu.dot_dimension_numbers<[1], [0], [0], [1], [0, 0, 1, 1], [], []>} : vector<256x128xbf16>, vector<128x128xbf16>, vector<256x128xf32> -> vector<256x128xf32>
    %30 = arith.addf %24, %29 : vector<256x128xf32>
    %c0_34 = arith.constant 0 : index
    %c2_35 = arith.constant 2 : index
    %c16_36 = arith.constant 16 : index
    %c0_37 = arith.constant 0 : index
    %31 = vector.load %arg1[%c0_34, %c2_35, %c16_36, %c0_37] : memref<1x3x288x128xbf16, #tpu.memory_space<vmem>>, vector<1x1x256x128xbf16>
    %32 = vector.shape_cast %31 : vector<1x1x256x128xbf16> to vector<256x128xbf16>
    %c5 = arith.constant 5 : index
    %c0_38 = arith.constant 0 : index
    %c0_39 = arith.constant 0 : index
    %33 = vector.load %arg2[%c5, %c0_38, %c0_39] : memref<9x128x128xbf16, #tpu.memory_space<vmem>>, vector<1x128x128xbf16>
    %34 = vector.shape_cast %33 : vector<1x128x128xbf16> to vector<128x128xbf16>
    %cst_40 = arith.constant dense<0.000000e+00> : vector<256x128xf32>
    %35 = tpu.matmul %32, %34, %cst_40 {dimension_numbers = #tpu.dot_dimension_numbers<[1], [0], [0], [1], [0, 0, 1, 1], [], []>} : vector<256x128xbf16>, vector<128x128xbf16>, vector<256x128xf32> -> vector<256x128xf32>
    %36 = arith.addf %30, %35 : vector<256x128xf32>
    %c0_41 = arith.constant 0 : index
    %c0_42 = arith.constant 0 : index
    %c32 = arith.constant 32 : index
    %c0_43 = arith.constant 0 : index
    %37 = vector.load %arg1[%c0_41, %c0_42, %c32, %c0_43] : memref<1x3x288x128xbf16, #tpu.memory_space<vmem>>, vector<1x1x256x128xbf16>
    %38 = vector.shape_cast %37 : vector<1x1x256x128xbf16> to vector<256x128xbf16>
    %c6 = arith.constant 6 : index
    %c0_44 = arith.constant 0 : index
    %c0_45 = arith.constant 0 : index
    %39 = vector.load %arg2[%c6, %c0_44, %c0_45] : memref<9x128x128xbf16, #tpu.memory_space<vmem>>, vector<1x128x128xbf16>
    %40 = vector.shape_cast %39 : vector<1x128x128xbf16> to vector<128x128xbf16>
    %cst_46 = arith.constant dense<0.000000e+00> : vector<256x128xf32>
    %41 = tpu.matmul %38, %40, %cst_46 {dimension_numbers = #tpu.dot_dimension_numbers<[1], [0], [0], [1], [0, 0, 1, 1], [], []>} : vector<256x128xbf16>, vector<128x128xbf16>, vector<256x128xf32> -> vector<256x128xf32>
    %42 = arith.addf %36, %41 : vector<256x128xf32>
    %c0_47 = arith.constant 0 : index
    %c1_48 = arith.constant 1 : index
    %c32_49 = arith.constant 32 : index
    %c0_50 = arith.constant 0 : index
    %43 = vector.load %arg1[%c0_47, %c1_48, %c32_49, %c0_50] : memref<1x3x288x128xbf16, #tpu.memory_space<vmem>>, vector<1x1x256x128xbf16>
    %44 = vector.shape_cast %43 : vector<1x1x256x128xbf16> to vector<256x128xbf16>
    %c7 = arith.constant 7 : index
    %c0_51 = arith.constant 0 : index
    %c0_52 = arith.constant 0 : index
    %45 = vector.load %arg2[%c7, %c0_51, %c0_52] : memref<9x128x128xbf16, #tpu.memory_space<vmem>>, vector<1x128x128xbf16>
    %46 = vector.shape_cast %45 : vector<1x128x128xbf16> to vector<128x128xbf16>
    %cst_53 = arith.constant dense<0.000000e+00> : vector<256x128xf32>
    %47 = tpu.matmul %44, %46, %cst_53 {dimension_numbers = #tpu.dot_dimension_numbers<[1], [0], [0], [1], [0, 0, 1, 1], [], []>} : vector<256x128xbf16>, vector<128x128xbf16>, vector<256x128xf32> -> vector<256x128xf32>
    %48 = arith.addf %42, %47 : vector<256x128xf32>
    %c0_54 = arith.constant 0 : index
    %c2_55 = arith.constant 2 : index
    %c32_56 = arith.constant 32 : index
    %c0_57 = arith.constant 0 : index
    %49 = vector.load %arg1[%c0_54, %c2_55, %c32_56, %c0_57] : memref<1x3x288x128xbf16, #tpu.memory_space<vmem>>, vector<1x1x256x128xbf16>
    %50 = vector.shape_cast %49 : vector<1x1x256x128xbf16> to vector<256x128xbf16>
    %c8 = arith.constant 8 : index
    %c0_58 = arith.constant 0 : index
    %c0_59 = arith.constant 0 : index
    %51 = vector.load %arg2[%c8, %c0_58, %c0_59] : memref<9x128x128xbf16, #tpu.memory_space<vmem>>, vector<1x128x128xbf16>
    %52 = vector.shape_cast %51 : vector<1x128x128xbf16> to vector<128x128xbf16>
    %cst_60 = arith.constant dense<0.000000e+00> : vector<256x128xf32>
    %53 = tpu.matmul %50, %52, %cst_60 {dimension_numbers = #tpu.dot_dimension_numbers<[1], [0], [0], [1], [0, 0, 1, 1], [], []>} : vector<256x128xbf16>, vector<128x128xbf16>, vector<256x128xf32> -> vector<256x128xf32>
    %54 = arith.addf %48, %53 : vector<256x128xf32>
    %c0_61 = arith.constant 0 : index
    %c0_62 = arith.constant 0 : index
    %55 = vector.load %arg3[%c0_61, %c0_62] : memref<1x128xf32, #tpu.memory_space<vmem>>, vector<1x128xf32>
    %56 = vector.broadcast %55 : vector<1x128xf32> to vector<256x128xf32>
    %57 = arith.mulf %54, %56 : vector<256x128xf32>
    %c0_63 = arith.constant 0 : index
    %c0_64 = arith.constant 0 : index
    %58 = vector.load %arg4[%c0_63, %c0_64] : memref<1x128xf32, #tpu.memory_space<vmem>>, vector<1x128xf32>
    %59 = vector.broadcast %58 : vector<1x128xf32> to vector<256x128xf32>
    %60 = arith.addf %57, %59 : vector<256x128xf32>
    %cst_65 = arith.constant 0.000000e+00 : f32
    %61 = vector.broadcast %cst_65 : f32 to vector<256x128xf32>
    %62 = arith.cmpf oge, %60, %61 : vector<256x128xf32>
    %cst_66 = arith.constant 1.000000e-01 : f32
    %63 = vector.broadcast %cst_66 : f32 to vector<256x128xf32>
    %64 = arith.mulf %60, %63 : vector<256x128xf32>
    %65 = arith.select %62, %60, %64 : vector<256x128xi1>, vector<256x128xf32>
    %66 = arith.truncf %65 : vector<256x128xf32> to vector<256x128xbf16>
    %c0_67 = arith.constant 0 : index
    %c0_68 = arith.constant 0 : index
    %c0_69 = arith.constant 0 : index
    %67 = vector.load %arg5[%c0_67, %c0_68, %c0_69] : memref<1x256x128xbf16, #tpu.memory_space<vmem>>, vector<1x256x128xbf16>
    %68 = vector.shape_cast %67 : vector<1x256x128xbf16> to vector<256x128xbf16>
    %69 = vector.shape_cast %66 : vector<256x128xbf16> to vector<1x256x128xbf16>
    tpu.vector_store %arg5[%c0_67, %c0_68, %c0_69], %69 {strides = array<i32>} : memref<1x256x128xbf16, #tpu.memory_space<vmem>>, vector<1x256x128xbf16>,
    return
  }
  func.func @transform_0(%arg0: i32) -> (i32, i32, i32, i32) {
    %c0_i32 = arith.constant 0 : i32
    %c0_i32_0 = arith.constant 0 : i32
    %c0_i32_1 = arith.constant 0 : i32
    %c0_i32_2 = arith.constant 0 : i32
    return %arg0, %c0_i32, %c0_i32_0, %c0_i32_1 : i32, i32, i32, i32
  }
  func.func @transform_1(%arg0: i32) -> (i32, i32, i32) {
    %c0_i32 = arith.constant 0 : i32
    %c0_i32_0 = arith.constant 0 : i32
    %c0_i32_1 = arith.constant 0 : i32
    %c0_i32_2 = arith.constant 0 : i32
    return %c0_i32, %c0_i32_0, %c0_i32_1 : i32, i32, i32
  }
  func.func @transform_2(%arg0: i32) -> (i32, i32) {
    %c0_i32 = arith.constant 0 : i32
    %c0_i32_0 = arith.constant 0 : i32
    %c0_i32_1 = arith.constant 0 : i32
    return %c0_i32, %c0_i32_0 : i32, i32
  }
  func.func @transform_3(%arg0: i32) -> (i32, i32) {
    %c0_i32 = arith.constant 0 : i32
    %c0_i32_0 = arith.constant 0 : i32
    %c0_i32_1 = arith.constant 0 : i32
    return %c0_i32, %c0_i32_0 : i32, i32
  }
  func.func @transform_4(%arg0: i32) -> (i32, i32, i32) {
    %c0_i32 = arith.constant 0 : i32
    %c0_i32_0 = arith.constant 0 : i32
    %c0_i32_1 = arith.constant 0 : i32
    return %arg0, %c0_i32, %c0_i32_0 : i32, i32, i32
  }
}

module attributes {stable_mosaic.version = 11 : i64} {
  func.func @_matmul_kernel(%arg0: i32, %arg1: i32, %arg2: i32, %arg3: memref<256x128xbf16, #tpu.memory_space<vmem>>, %arg4: memref<128x128xbf16, #tpu.memory_space<vmem>>, %arg5: memref<256x128xbf16, #tpu.memory_space<vmem>>, %arg6: memref<256x128xf32, #tpu.memory_space<vmem>>) attributes {dimension_semantics = [#tpu.dimension_semantics<parallel>, #tpu.dimension_semantics<parallel>, #tpu.dimension_semantics<arbitrary>], iteration_bounds = array<i64: 2, 1, 1>, scalar_prefetch = 0 : i64, scratch_operands = 1 : i64, tpu.core_type = #tpu.core_type<tc>, window_params = [{transform_indices = @transform_0, window_bounds = array<i64: 256, 128>}, {transform_indices = @transform_1, window_bounds = array<i64: 128, 128>}, {transform_indices = @transform_2, window_bounds = array<i64: 256, 128>}]} {
    %c0_i32 = arith.constant 0 : i32
    %0 = arith.cmpi eq, %arg2, %c0_i32 : i32
    %1 = arith.extui %0 : i1 to i32
    %c0_i32_0 = arith.constant 0 : i32
    %2 = arith.cmpi ne, %1, %c0_i32_0 : i32
    scf.if %2 {
      %cst_10 = arith.constant 0.000000e+00 : f32
      %12 = vector.broadcast %cst_10 : f32 to vector<256x128xf32>
      %c0_11 = arith.constant 0 : index
      %c0_12 = arith.constant 0 : index
      %13 = vector.load %arg6[%c0_11, %c0_12] : memref<256x128xf32, #tpu.memory_space<vmem>>, vector<256x128xf32>
      tpu.vector_store %arg6[%c0_11, %c0_12], %12 {strides = array<i32>} : memref<256x128xf32, #tpu.memory_space<vmem>>, vector<256x128xf32>,
    } else {
    }
    %c0 = arith.constant 0 : index
    %c0_1 = arith.constant 0 : index
    %3 = vector.load %arg6[%c0, %c0_1] : memref<256x128xf32, #tpu.memory_space<vmem>>, vector<256x128xf32>
    %c0_2 = arith.constant 0 : index
    %c0_3 = arith.constant 0 : index
    %4 = vector.load %arg3[%c0_2, %c0_3] : memref<256x128xbf16, #tpu.memory_space<vmem>>, vector<256x128xbf16>
    %c0_4 = arith.constant 0 : index
    %c0_5 = arith.constant 0 : index
    %5 = vector.load %arg4[%c0_4, %c0_5] : memref<128x128xbf16, #tpu.memory_space<vmem>>, vector<128x128xbf16>
    %cst = arith.constant dense<0.000000e+00> : vector<256x128xf32>
    %6 = tpu.matmul %4, %5, %cst {dimension_numbers = #tpu.dot_dimension_numbers<[1], [0], [0], [1], [0, 0, 1, 1], [], []>} : vector<256x128xbf16>, vector<128x128xbf16>, vector<256x128xf32> -> vector<256x128xf32>
    %7 = arith.addf %3, %6 : vector<256x128xf32>
    %c0_6 = arith.constant 0 : index
    %c0_7 = arith.constant 0 : index
    %8 = vector.load %arg6[%c0_6, %c0_7] : memref<256x128xf32, #tpu.memory_space<vmem>>, vector<256x128xf32>
    tpu.vector_store %arg6[%c0_6, %c0_7], %7 {strides = array<i32>} : memref<256x128xf32, #tpu.memory_space<vmem>>, vector<256x128xf32>,
    %c0_i32_8 = arith.constant 0 : i32
    %9 = arith.cmpi eq, %arg2, %c0_i32_8 : i32
    %10 = arith.extui %9 : i1 to i32
    %c0_i32_9 = arith.constant 0 : i32
    %11 = arith.cmpi ne, %10, %c0_i32_9 : i32
    scf.if %11 {
      %c0_10 = arith.constant 0 : index
      %c0_11 = arith.constant 0 : index
      %12 = vector.load %arg6[%c0_10, %c0_11] : memref<256x128xf32, #tpu.memory_space<vmem>>, vector<256x128xf32>
      %13 = arith.truncf %12 : vector<256x128xf32> to vector<256x128xbf16>
      %c0_12 = arith.constant 0 : index
      %c0_13 = arith.constant 0 : index
      %14 = vector.load %arg5[%c0_12, %c0_13] : memref<256x128xbf16, #tpu.memory_space<vmem>>, vector<256x128xbf16>
      tpu.vector_store %arg5[%c0_12, %c0_13], %13 {strides = array<i32>} : memref<256x128xbf16, #tpu.memory_space<vmem>>, vector<256x128xbf16>,
    } else {
    }
    return
  }
  func.func @transform_0(%arg0: i32, %arg1: i32, %arg2: i32) -> (i32, i32) {
    %c0_i32 = arith.constant 0 : i32
    return %arg0, %arg2 : i32, i32
  }
  func.func @transform_1(%arg0: i32, %arg1: i32, %arg2: i32) -> (i32, i32) {
    %c0_i32 = arith.constant 0 : i32
    return %arg2, %arg1 : i32, i32
  }
  func.func @transform_2(%arg0: i32, %arg1: i32, %arg2: i32) -> (i32, i32) {
    %c0_i32 = arith.constant 0 : i32
    return %arg0, %arg1 : i32, i32
  }
}

module attributes {stable_mosaic.version = 11 : i64} {
  func.func @_conv3x3_kernel(%arg0: i32, %arg1: memref<1x3x288x128xbf16, #tpu.memory_space<vmem>>, %arg2: memref<9x128x128xbf16, #tpu.memory_space<vmem>>, %arg3: memref<1x128xf32, #tpu.memory_space<vmem>>, %arg4: memref<1x128xf32, #tpu.memory_space<vmem>>, %arg5: memref<1x256x128xbf16, #tpu.memory_space<vmem>>, %arg6: memref<1x256x128xbf16, #tpu.memory_space<vmem>>) attributes {dimension_semantics = [#tpu.dimension_semantics<parallel>], iteration_bounds = array<i64: 2>, scalar_prefetch = 0 : i64, scratch_operands = 0 : i64, tpu.core_type = #tpu.core_type<tc>, window_params = [{transform_indices = @transform_0, window_bounds = array<i64: 1, 3, 288, 128>}, {pipeline_mode = #tpu.pipeline_mode<synchronous>, transform_indices = @transform_1, window_bounds = array<i64: 9, 128, 128>}, {pipeline_mode = #tpu.pipeline_mode<synchronous>, transform_indices = @transform_2, window_bounds = array<i64: 1, 128>}, {pipeline_mode = #tpu.pipeline_mode<synchronous>, transform_indices = @transform_3, window_bounds = array<i64: 1, 128>}, {transform_indices = @transform_4, window_bounds = array<i64: 1, 256, 128>}, {transform_indices = @transform_5, window_bounds = array<i64: 1, 256, 128>}]} {
    %cst = arith.constant 0.000000e+00 : f32
    %0 = vector.broadcast %cst : f32 to vector<256x128xf32>
    %c0 = arith.constant 0 : index
    %c0_0 = arith.constant 0 : index
    %c0_1 = arith.constant 0 : index
    %c0_2 = arith.constant 0 : index
    %1 = vector.load %arg1[%c0, %c0_0, %c0_1, %c0_2] : memref<1x3x288x128xbf16, #tpu.memory_space<vmem>>, vector<1x1x256x128xbf16>
    %2 = vector.shape_cast %1 : vector<1x1x256x128xbf16> to vector<256x128xbf16>
    %c0_3 = arith.constant 0 : index
    %c0_4 = arith.constant 0 : index
    %c0_5 = arith.constant 0 : index
    %3 = vector.load %arg2[%c0_3, %c0_4, %c0_5] : memref<9x128x128xbf16, #tpu.memory_space<vmem>>, vector<1x128x128xbf16>
    %4 = vector.shape_cast %3 : vector<1x128x128xbf16> to vector<128x128xbf16>
    %cst_6 = arith.constant dense<0.000000e+00> : vector<256x128xf32>
    %5 = tpu.matmul %2, %4, %cst_6 {dimension_numbers = #tpu.dot_dimension_numbers<[1], [0], [0], [1], [0, 0, 1, 1], [], []>} : vector<256x128xbf16>, vector<128x128xbf16>, vector<256x128xf32> -> vector<256x128xf32>
    %6 = arith.addf %0, %5 : vector<256x128xf32>
    %c0_7 = arith.constant 0 : index
    %c1 = arith.constant 1 : index
    %c0_8 = arith.constant 0 : index
    %c0_9 = arith.constant 0 : index
    %7 = vector.load %arg1[%c0_7, %c1, %c0_8, %c0_9] : memref<1x3x288x128xbf16, #tpu.memory_space<vmem>>, vector<1x1x256x128xbf16>
    %8 = vector.shape_cast %7 : vector<1x1x256x128xbf16> to vector<256x128xbf16>
    %c1_10 = arith.constant 1 : index
    %c0_11 = arith.constant 0 : index
    %c0_12 = arith.constant 0 : index
    %9 = vector.load %arg2[%c1_10, %c0_11, %c0_12] : memref<9x128x128xbf16, #tpu.memory_space<vmem>>, vector<1x128x128xbf16>
    %10 = vector.shape_cast %9 : vector<1x128x128xbf16> to vector<128x128xbf16>
    %cst_13 = arith.constant dense<0.000000e+00> : vector<256x128xf32>
    %11 = tpu.matmul %8, %10, %cst_13 {dimension_numbers = #tpu.dot_dimension_numbers<[1], [0], [0], [1], [0, 0, 1, 1], [], []>} : vector<256x128xbf16>, vector<128x128xbf16>, vector<256x128xf32> -> vector<256x128xf32>
    %12 = arith.addf %6, %11 : vector<256x128xf32>
    %c0_14 = arith.constant 0 : index
    %c2 = arith.constant 2 : index
    %c0_15 = arith.constant 0 : index
    %c0_16 = arith.constant 0 : index
    %13 = vector.load %arg1[%c0_14, %c2, %c0_15, %c0_16] : memref<1x3x288x128xbf16, #tpu.memory_space<vmem>>, vector<1x1x256x128xbf16>
    %14 = vector.shape_cast %13 : vector<1x1x256x128xbf16> to vector<256x128xbf16>
    %c2_17 = arith.constant 2 : index
    %c0_18 = arith.constant 0 : index
    %c0_19 = arith.constant 0 : index
    %15 = vector.load %arg2[%c2_17, %c0_18, %c0_19] : memref<9x128x128xbf16, #tpu.memory_space<vmem>>, vector<1x128x128xbf16>
    %16 = vector.shape_cast %15 : vector<1x128x128xbf16> to vector<128x128xbf16>
    %cst_20 = arith.constant dense<0.000000e+00> : vector<256x128xf32>
    %17 = tpu.matmul %14, %16, %cst_20 {dimension_numbers = #tpu.dot_dimension_numbers<[1], [0], [0], [1], [0, 0, 1, 1], [], []>} : vector<256x128xbf16>, vector<128x128xbf16>, vector<256x128xf32> -> vector<256x128xf32>
    %18 = arith.addf %12, %17 : vector<256x128xf32>
    %c0_21 = arith.constant 0 : index
    %c0_22 = arith.constant 0 : index
    %c16 = arith.constant 16 : index
    %c0_23 = arith.constant 0 : index
    %19 = vector.load %arg1[%c0_21, %c0_22, %c16, %c0_23] : memref<1x3x288x128xbf16, #tpu.memory_space<vmem>>, vector<1x1x256x128xbf16>
    %20 = vector.shape_cast %19 : vector<1x1x256x128xbf16> to vector<256x128xbf16>
    %c3 = arith.constant 3 : index
    %c0_24 = arith.constant 0 : index
    %c0_25 = arith.constant 0 : index
    %21 = vector.load %arg2[%c3, %c0_24, %c0_25] : memref<9x128x128xbf16, #tpu.memory_space<vmem>>, vector<1x128x128xbf16>
    %22 = vector.shape_cast %21 : vector<1x128x128xbf16> to vector<128x128xbf16>
    %cst_26 = arith.constant dense<0.000000e+00> : vector<256x128xf32>
    %23 = tpu.matmul %20, %22, %cst_26 {dimension_numbers = #tpu.dot_dimension_numbers<[1], [0], [0], [1], [0, 0, 1, 1], [], []>} : vector<256x128xbf16>, vector<128x128xbf16>, vector<256x128xf32> -> vector<256x128xf32>
    %24 = arith.addf %18, %23 : vector<256x128xf32>
    %c0_27 = arith.constant 0 : index
    %c1_28 = arith.constant 1 : index
    %c16_29 = arith.constant 16 : index
    %c0_30 = arith.constant 0 : index
    %25 = vector.load %arg1[%c0_27, %c1_28, %c16_29, %c0_30] : memref<1x3x288x128xbf16, #tpu.memory_space<vmem>>, vector<1x1x256x128xbf16>
    %26 = vector.shape_cast %25 : vector<1x1x256x128xbf16> to vector<256x128xbf16>
    %c4 = arith.constant 4 : index
    %c0_31 = arith.constant 0 : index
    %c0_32 = arith.constant 0 : index
    %27 = vector.load %arg2[%c4, %c0_31, %c0_32] : memref<9x128x128xbf16, #tpu.memory_space<vmem>>, vector<1x128x128xbf16>
    %28 = vector.shape_cast %27 : vector<1x128x128xbf16> to vector<128x128xbf16>
    %cst_33 = arith.constant dense<0.000000e+00> : vector<256x128xf32>
    %29 = tpu.matmul %26, %28, %cst_33 {dimension_numbers = #tpu.dot_dimension_numbers<[1], [0], [0], [1], [0, 0, 1, 1], [], []>} : vector<256x128xbf16>, vector<128x128xbf16>, vector<256x128xf32> -> vector<256x128xf32>
    %30 = arith.addf %24, %29 : vector<256x128xf32>
    %c0_34 = arith.constant 0 : index
    %c2_35 = arith.constant 2 : index
    %c16_36 = arith.constant 16 : index
    %c0_37 = arith.constant 0 : index
    %31 = vector.load %arg1[%c0_34, %c2_35, %c16_36, %c0_37] : memref<1x3x288x128xbf16, #tpu.memory_space<vmem>>, vector<1x1x256x128xbf16>
    %32 = vector.shape_cast %31 : vector<1x1x256x128xbf16> to vector<256x128xbf16>
    %c5 = arith.constant 5 : index
    %c0_38 = arith.constant 0 : index
    %c0_39 = arith.constant 0 : index
    %33 = vector.load %arg2[%c5, %c0_38, %c0_39] : memref<9x128x128xbf16, #tpu.memory_space<vmem>>, vector<1x128x128xbf16>
    %34 = vector.shape_cast %33 : vector<1x128x128xbf16> to vector<128x128xbf16>
    %cst_40 = arith.constant dense<0.000000e+00> : vector<256x128xf32>
    %35 = tpu.matmul %32, %34, %cst_40 {dimension_numbers = #tpu.dot_dimension_numbers<[1], [0], [0], [1], [0, 0, 1, 1], [], []>} : vector<256x128xbf16>, vector<128x128xbf16>, vector<256x128xf32> -> vector<256x128xf32>
    %36 = arith.addf %30, %35 : vector<256x128xf32>
    %c0_41 = arith.constant 0 : index
    %c0_42 = arith.constant 0 : index
    %c32 = arith.constant 32 : index
    %c0_43 = arith.constant 0 : index
    %37 = vector.load %arg1[%c0_41, %c0_42, %c32, %c0_43] : memref<1x3x288x128xbf16, #tpu.memory_space<vmem>>, vector<1x1x256x128xbf16>
    %38 = vector.shape_cast %37 : vector<1x1x256x128xbf16> to vector<256x128xbf16>
    %c6 = arith.constant 6 : index
    %c0_44 = arith.constant 0 : index
    %c0_45 = arith.constant 0 : index
    %39 = vector.load %arg2[%c6, %c0_44, %c0_45] : memref<9x128x128xbf16, #tpu.memory_space<vmem>>, vector<1x128x128xbf16>
    %40 = vector.shape_cast %39 : vector<1x128x128xbf16> to vector<128x128xbf16>
    %cst_46 = arith.constant dense<0.000000e+00> : vector<256x128xf32>
    %41 = tpu.matmul %38, %40, %cst_46 {dimension_numbers = #tpu.dot_dimension_numbers<[1], [0], [0], [1], [0, 0, 1, 1], [], []>} : vector<256x128xbf16>, vector<128x128xbf16>, vector<256x128xf32> -> vector<256x128xf32>
    %42 = arith.addf %36, %41 : vector<256x128xf32>
    %c0_47 = arith.constant 0 : index
    %c1_48 = arith.constant 1 : index
    %c32_49 = arith.constant 32 : index
    %c0_50 = arith.constant 0 : index
    %43 = vector.load %arg1[%c0_47, %c1_48, %c32_49, %c0_50] : memref<1x3x288x128xbf16, #tpu.memory_space<vmem>>, vector<1x1x256x128xbf16>
    %44 = vector.shape_cast %43 : vector<1x1x256x128xbf16> to vector<256x128xbf16>
    %c7 = arith.constant 7 : index
    %c0_51 = arith.constant 0 : index
    %c0_52 = arith.constant 0 : index
    %45 = vector.load %arg2[%c7, %c0_51, %c0_52] : memref<9x128x128xbf16, #tpu.memory_space<vmem>>, vector<1x128x128xbf16>
    %46 = vector.shape_cast %45 : vector<1x128x128xbf16> to vector<128x128xbf16>
    %cst_53 = arith.constant dense<0.000000e+00> : vector<256x128xf32>
    %47 = tpu.matmul %44, %46, %cst_53 {dimension_numbers = #tpu.dot_dimension_numbers<[1], [0], [0], [1], [0, 0, 1, 1], [], []>} : vector<256x128xbf16>, vector<128x128xbf16>, vector<256x128xf32> -> vector<256x128xf32>
    %48 = arith.addf %42, %47 : vector<256x128xf32>
    %c0_54 = arith.constant 0 : index
    %c2_55 = arith.constant 2 : index
    %c32_56 = arith.constant 32 : index
    %c0_57 = arith.constant 0 : index
    %49 = vector.load %arg1[%c0_54, %c2_55, %c32_56, %c0_57] : memref<1x3x288x128xbf16, #tpu.memory_space<vmem>>, vector<1x1x256x128xbf16>
    %50 = vector.shape_cast %49 : vector<1x1x256x128xbf16> to vector<256x128xbf16>
    %c8 = arith.constant 8 : index
    %c0_58 = arith.constant 0 : index
    %c0_59 = arith.constant 0 : index
    %51 = vector.load %arg2[%c8, %c0_58, %c0_59] : memref<9x128x128xbf16, #tpu.memory_space<vmem>>, vector<1x128x128xbf16>
    %52 = vector.shape_cast %51 : vector<1x128x128xbf16> to vector<128x128xbf16>
    %cst_60 = arith.constant dense<0.000000e+00> : vector<256x128xf32>
    %53 = tpu.matmul %50, %52, %cst_60 {dimension_numbers = #tpu.dot_dimension_numbers<[1], [0], [0], [1], [0, 0, 1, 1], [], []>} : vector<256x128xbf16>, vector<128x128xbf16>, vector<256x128xf32> -> vector<256x128xf32>
    %54 = arith.addf %48, %53 : vector<256x128xf32>
    %c0_61 = arith.constant 0 : index
    %c0_62 = arith.constant 0 : index
    %c0_63 = arith.constant 0 : index
    %55 = vector.load %arg5[%c0_61, %c0_62, %c0_63] : memref<1x256x128xbf16, #tpu.memory_space<vmem>>, vector<1x256x128xbf16>
    %56 = vector.shape_cast %55 : vector<1x256x128xbf16> to vector<256x128xbf16>
    %57 = arith.extf %56 : vector<256x128xbf16> to vector<256x128xf32>
    %58 = arith.addf %54, %57 : vector<256x128xf32>
    %c0_64 = arith.constant 0 : index
    %c0_65 = arith.constant 0 : index
    %59 = vector.load %arg3[%c0_64, %c0_65] : memref<1x128xf32, #tpu.memory_space<vmem>>, vector<1x128xf32>
    %60 = vector.broadcast %59 : vector<1x128xf32> to vector<256x128xf32>
    %61 = arith.mulf %58, %60 : vector<256x128xf32>
    %c0_66 = arith.constant 0 : index
    %c0_67 = arith.constant 0 : index
    %62 = vector.load %arg4[%c0_66, %c0_67] : memref<1x128xf32, #tpu.memory_space<vmem>>, vector<1x128xf32>
    %63 = vector.broadcast %62 : vector<1x128xf32> to vector<256x128xf32>
    %64 = arith.addf %61, %63 : vector<256x128xf32>
    %65 = arith.truncf %64 : vector<256x128xf32> to vector<256x128xbf16>
    %c0_68 = arith.constant 0 : index
    %c0_69 = arith.constant 0 : index
    %c0_70 = arith.constant 0 : index
    %66 = vector.load %arg6[%c0_68, %c0_69, %c0_70] : memref<1x256x128xbf16, #tpu.memory_space<vmem>>, vector<1x256x128xbf16>
    %67 = vector.shape_cast %66 : vector<1x256x128xbf16> to vector<256x128xbf16>
    %68 = vector.shape_cast %65 : vector<256x128xbf16> to vector<1x256x128xbf16>
    tpu.vector_store %arg6[%c0_68, %c0_69, %c0_70], %68 {strides = array<i32>} : memref<1x256x128xbf16, #tpu.memory_space<vmem>>, vector<1x256x128xbf16>,
    return
  }
  func.func @transform_0(%arg0: i32) -> (i32, i32, i32, i32) {
    %c0_i32 = arith.constant 0 : i32
    %c0_i32_0 = arith.constant 0 : i32
    %c0_i32_1 = arith.constant 0 : i32
    %c0_i32_2 = arith.constant 0 : i32
    return %arg0, %c0_i32, %c0_i32_0, %c0_i32_1 : i32, i32, i32, i32
  }
  func.func @transform_1(%arg0: i32) -> (i32, i32, i32) {
    %c0_i32 = arith.constant 0 : i32
    %c0_i32_0 = arith.constant 0 : i32
    %c0_i32_1 = arith.constant 0 : i32
    %c0_i32_2 = arith.constant 0 : i32
    return %c0_i32, %c0_i32_0, %c0_i32_1 : i32, i32, i32
  }
  func.func @transform_2(%arg0: i32) -> (i32, i32) {
    %c0_i32 = arith.constant 0 : i32
    %c0_i32_0 = arith.constant 0 : i32
    %c0_i32_1 = arith.constant 0 : i32
    return %c0_i32, %c0_i32_0 : i32, i32
  }
  func.func @transform_3(%arg0: i32) -> (i32, i32) {
    %c0_i32 = arith.constant 0 : i32
    %c0_i32_0 = arith.constant 0 : i32
    %c0_i32_1 = arith.constant 0 : i32
    return %c0_i32, %c0_i32_0 : i32, i32
  }
  func.func @transform_4(%arg0: i32) -> (i32, i32, i32) {
    %c0_i32 = arith.constant 0 : i32
    %c0_i32_0 = arith.constant 0 : i32
    %c0_i32_1 = arith.constant 0 : i32
    return %arg0, %c0_i32, %c0_i32_0 : i32, i32, i32
  }
  func.func @transform_5(%arg0: i32) -> (i32, i32, i32) {
    %c0_i32 = arith.constant 0 : i32
    %c0_i32_0 = arith.constant 0 : i32
    %c0_i32_1 = arith.constant 0 : i32
    return %arg0, %c0_i32, %c0_i32_0 : i32, i32, i32
  }
}

module attributes {stable_mosaic.version = 11 : i64} {
  func.func @_affine_act_kernel(%arg0: i32, %arg1: memref<512x128xbf16, #tpu.memory_space<vmem>>, %arg2: memref<1x128xf32, #tpu.memory_space<vmem>>, %arg3: memref<1x128xf32, #tpu.memory_space<vmem>>, %arg4: memref<512x128xbf16, #tpu.memory_space<vmem>>) attributes {dimension_semantics = [#tpu.dimension_semantics<parallel>], iteration_bounds = array<i64: 1>, scalar_prefetch = 0 : i64, scratch_operands = 0 : i64, tpu.core_type = #tpu.core_type<tc>, window_params = [{transform_indices = @transform_0, window_bounds = array<i64: 512, 128>}, {pipeline_mode = #tpu.pipeline_mode<synchronous>, transform_indices = @transform_1, window_bounds = array<i64: 1, 128>}, {pipeline_mode = #tpu.pipeline_mode<synchronous>, transform_indices = @transform_2, window_bounds = array<i64: 1, 128>}, {transform_indices = @transform_3, window_bounds = array<i64: 512, 128>}]} {
    %c0 = arith.constant 0 : index
    %c0_0 = arith.constant 0 : index
    %0 = vector.load %arg1[%c0, %c0_0] : memref<512x128xbf16, #tpu.memory_space<vmem>>, vector<512x128xbf16>
    %1 = arith.extf %0 : vector<512x128xbf16> to vector<512x128xf32>
    %c0_1 = arith.constant 0 : index
    %c0_2 = arith.constant 0 : index
    %2 = vector.load %arg2[%c0_1, %c0_2] : memref<1x128xf32, #tpu.memory_space<vmem>>, vector<1x128xf32>
    %3 = vector.broadcast %2 : vector<1x128xf32> to vector<512x128xf32>
    %4 = arith.mulf %1, %3 : vector<512x128xf32>
    %c0_3 = arith.constant 0 : index
    %c0_4 = arith.constant 0 : index
    %5 = vector.load %arg3[%c0_3, %c0_4] : memref<1x128xf32, #tpu.memory_space<vmem>>, vector<1x128xf32>
    %6 = vector.broadcast %5 : vector<1x128xf32> to vector<512x128xf32>
    %7 = arith.addf %4, %6 : vector<512x128xf32>
    %cst = arith.constant 0.000000e+00 : f32
    %8 = vector.broadcast %cst : f32 to vector<512x128xf32>
    %9 = arith.cmpf oge, %7, %8 : vector<512x128xf32>
    %cst_5 = arith.constant 1.000000e-01 : f32
    %10 = vector.broadcast %cst_5 : f32 to vector<512x128xf32>
    %11 = arith.mulf %7, %10 : vector<512x128xf32>
    %12 = arith.select %9, %7, %11 : vector<512x128xi1>, vector<512x128xf32>
    %13 = arith.truncf %12 : vector<512x128xf32> to vector<512x128xbf16>
    %c0_6 = arith.constant 0 : index
    %c0_7 = arith.constant 0 : index
    %14 = vector.load %arg4[%c0_6, %c0_7] : memref<512x128xbf16, #tpu.memory_space<vmem>>, vector<512x128xbf16>
    tpu.vector_store %arg4[%c0_6, %c0_7], %13 {strides = array<i32>} : memref<512x128xbf16, #tpu.memory_space<vmem>>, vector<512x128xbf16>,
    return
  }
  func.func @transform_0(%arg0: i32) -> (i32, i32) {
    %c0_i32 = arith.constant 0 : i32
    %c0_i32_0 = arith.constant 0 : i32
    return %arg0, %c0_i32 : i32, i32
  }
  func.func @transform_1(%arg0: i32) -> (i32, i32) {
    %c0_i32 = arith.constant 0 : i32
    %c0_i32_0 = arith.constant 0 : i32
    %c0_i32_1 = arith.constant 0 : i32
    return %c0_i32, %c0_i32_0 : i32, i32
  }
  func.func @transform_2(%arg0: i32) -> (i32, i32) {
    %c0_i32 = arith.constant 0 : i32
    %c0_i32_0 = arith.constant 0 : i32
    %c0_i32_1 = arith.constant 0 : i32
    return %c0_i32, %c0_i32_0 : i32, i32
  }
  func.func @transform_3(%arg0: i32) -> (i32, i32) {
    %c0_i32 = arith.constant 0 : i32
    %c0_i32_0 = arith.constant 0 : i32
    return %arg0, %c0_i32 : i32, i32
  }
}

module attributes {stable_mosaic.version = 11 : i64} {
  func.func @_matmul_kernel(%arg0: i32, %arg1: i32, %arg2: i32, %arg3: memref<128x128xbf16, #tpu.memory_space<vmem>>, %arg4: memref<128x128xbf16, #tpu.memory_space<vmem>>, %arg5: memref<128x128xbf16, #tpu.memory_space<vmem>>, %arg6: memref<128x128xf32, #tpu.memory_space<vmem>>) attributes {dimension_semantics = [#tpu.dimension_semantics<parallel>, #tpu.dimension_semantics<parallel>, #tpu.dimension_semantics<arbitrary>], iteration_bounds = array<i64: 1, 1, 1>, scalar_prefetch = 0 : i64, scratch_operands = 1 : i64, tpu.core_type = #tpu.core_type<tc>, window_params = [{transform_indices = @transform_0, window_bounds = array<i64: 128, 128>}, {transform_indices = @transform_1, window_bounds = array<i64: 128, 128>}, {transform_indices = @transform_2, window_bounds = array<i64: 128, 128>}]} {
    %c0_i32 = arith.constant 0 : i32
    %0 = arith.cmpi eq, %arg2, %c0_i32 : i32
    %1 = arith.extui %0 : i1 to i32
    %c0_i32_0 = arith.constant 0 : i32
    %2 = arith.cmpi ne, %1, %c0_i32_0 : i32
    scf.if %2 {
      %cst_10 = arith.constant 0.000000e+00 : f32
      %12 = vector.broadcast %cst_10 : f32 to vector<128x128xf32>
      %c0_11 = arith.constant 0 : index
      %c0_12 = arith.constant 0 : index
      %13 = vector.load %arg6[%c0_11, %c0_12] : memref<128x128xf32, #tpu.memory_space<vmem>>, vector<128x128xf32>
      tpu.vector_store %arg6[%c0_11, %c0_12], %12 {strides = array<i32>} : memref<128x128xf32, #tpu.memory_space<vmem>>, vector<128x128xf32>,
    } else {
    }
    %c0 = arith.constant 0 : index
    %c0_1 = arith.constant 0 : index
    %3 = vector.load %arg6[%c0, %c0_1] : memref<128x128xf32, #tpu.memory_space<vmem>>, vector<128x128xf32>
    %c0_2 = arith.constant 0 : index
    %c0_3 = arith.constant 0 : index
    %4 = vector.load %arg3[%c0_2, %c0_3] : memref<128x128xbf16, #tpu.memory_space<vmem>>, vector<128x128xbf16>
    %c0_4 = arith.constant 0 : index
    %c0_5 = arith.constant 0 : index
    %5 = vector.load %arg4[%c0_4, %c0_5] : memref<128x128xbf16, #tpu.memory_space<vmem>>, vector<128x128xbf16>
    %cst = arith.constant dense<0.000000e+00> : vector<128x128xf32>
    %6 = tpu.matmul %4, %5, %cst {dimension_numbers = #tpu.dot_dimension_numbers<[1], [0], [0], [1], [0, 0, 1, 1], [], []>} : vector<128x128xbf16>, vector<128x128xbf16>, vector<128x128xf32> -> vector<128x128xf32>
    %7 = arith.addf %3, %6 : vector<128x128xf32>
    %c0_6 = arith.constant 0 : index
    %c0_7 = arith.constant 0 : index
    %8 = vector.load %arg6[%c0_6, %c0_7] : memref<128x128xf32, #tpu.memory_space<vmem>>, vector<128x128xf32>
    tpu.vector_store %arg6[%c0_6, %c0_7], %7 {strides = array<i32>} : memref<128x128xf32, #tpu.memory_space<vmem>>, vector<128x128xf32>,
    %c0_i32_8 = arith.constant 0 : i32
    %9 = arith.cmpi eq, %arg2, %c0_i32_8 : i32
    %10 = arith.extui %9 : i1 to i32
    %c0_i32_9 = arith.constant 0 : i32
    %11 = arith.cmpi ne, %10, %c0_i32_9 : i32
    scf.if %11 {
      %c0_10 = arith.constant 0 : index
      %c0_11 = arith.constant 0 : index
      %12 = vector.load %arg6[%c0_10, %c0_11] : memref<128x128xf32, #tpu.memory_space<vmem>>, vector<128x128xf32>
      %13 = arith.truncf %12 : vector<128x128xf32> to vector<128x128xbf16>
      %c0_12 = arith.constant 0 : index
      %c0_13 = arith.constant 0 : index
      %14 = vector.load %arg5[%c0_12, %c0_13] : memref<128x128xbf16, #tpu.memory_space<vmem>>, vector<128x128xbf16>
      tpu.vector_store %arg5[%c0_12, %c0_13], %13 {strides = array<i32>} : memref<128x128xbf16, #tpu.memory_space<vmem>>, vector<128x128xbf16>,
    } else {
    }
    return
  }
  func.func @transform_0(%arg0: i32, %arg1: i32, %arg2: i32) -> (i32, i32) {
    %c0_i32 = arith.constant 0 : i32
    return %arg0, %arg2 : i32, i32
  }
  func.func @transform_1(%arg0: i32, %arg1: i32, %arg2: i32) -> (i32, i32) {
    %c0_i32 = arith.constant 0 : i32
    return %arg2, %arg1 : i32, i32
  }
  func.func @transform_2(%arg0: i32, %arg1: i32, %arg2: i32) -> (i32, i32) {
    %c0_i32 = arith.constant 0 : i32
    return %arg0, %arg1 : i32, i32
  }
}

module attributes {stable_mosaic.version = 11 : i64} {
  func.func @_conv3x3_kernel(%arg0: i32, %arg1: memref<1x3x80x128xbf16, #tpu.memory_space<vmem>>, %arg2: memref<9x128x128xbf16, #tpu.memory_space<vmem>>, %arg3: memref<1x128xf32, #tpu.memory_space<vmem>>, %arg4: memref<1x128xf32, #tpu.memory_space<vmem>>, %arg5: memref<1x64x128xbf16, #tpu.memory_space<vmem>>, %arg6: memref<1x64x128xbf16, #tpu.memory_space<vmem>>) attributes {dimension_semantics = [#tpu.dimension_semantics<parallel>], iteration_bounds = array<i64: 2>, scalar_prefetch = 0 : i64, scratch_operands = 0 : i64, tpu.core_type = #tpu.core_type<tc>, window_params = [{transform_indices = @transform_0, window_bounds = array<i64: 1, 3, 80, 128>}, {pipeline_mode = #tpu.pipeline_mode<synchronous>, transform_indices = @transform_1, window_bounds = array<i64: 9, 128, 128>}, {pipeline_mode = #tpu.pipeline_mode<synchronous>, transform_indices = @transform_2, window_bounds = array<i64: 1, 128>}, {pipeline_mode = #tpu.pipeline_mode<synchronous>, transform_indices = @transform_3, window_bounds = array<i64: 1, 128>}, {transform_indices = @transform_4, window_bounds = array<i64: 1, 64, 128>}, {transform_indices = @transform_5, window_bounds = array<i64: 1, 64, 128>}]} {
    %cst = arith.constant 0.000000e+00 : f32
    %0 = vector.broadcast %cst : f32 to vector<64x128xf32>
    %c0 = arith.constant 0 : index
    %c0_0 = arith.constant 0 : index
    %c0_1 = arith.constant 0 : index
    %c0_2 = arith.constant 0 : index
    %1 = vector.load %arg1[%c0, %c0_0, %c0_1, %c0_2] : memref<1x3x80x128xbf16, #tpu.memory_space<vmem>>, vector<1x1x64x128xbf16>
    %2 = vector.shape_cast %1 : vector<1x1x64x128xbf16> to vector<64x128xbf16>
    %c0_3 = arith.constant 0 : index
    %c0_4 = arith.constant 0 : index
    %c0_5 = arith.constant 0 : index
    %3 = vector.load %arg2[%c0_3, %c0_4, %c0_5] : memref<9x128x128xbf16, #tpu.memory_space<vmem>>, vector<1x128x128xbf16>
    %4 = vector.shape_cast %3 : vector<1x128x128xbf16> to vector<128x128xbf16>
    %cst_6 = arith.constant dense<0.000000e+00> : vector<64x128xf32>
    %5 = tpu.matmul %2, %4, %cst_6 {dimension_numbers = #tpu.dot_dimension_numbers<[1], [0], [0], [1], [0, 0, 1, 1], [], []>} : vector<64x128xbf16>, vector<128x128xbf16>, vector<64x128xf32> -> vector<64x128xf32>
    %6 = arith.addf %0, %5 : vector<64x128xf32>
    %c0_7 = arith.constant 0 : index
    %c1 = arith.constant 1 : index
    %c0_8 = arith.constant 0 : index
    %c0_9 = arith.constant 0 : index
    %7 = vector.load %arg1[%c0_7, %c1, %c0_8, %c0_9] : memref<1x3x80x128xbf16, #tpu.memory_space<vmem>>, vector<1x1x64x128xbf16>
    %8 = vector.shape_cast %7 : vector<1x1x64x128xbf16> to vector<64x128xbf16>
    %c1_10 = arith.constant 1 : index
    %c0_11 = arith.constant 0 : index
    %c0_12 = arith.constant 0 : index
    %9 = vector.load %arg2[%c1_10, %c0_11, %c0_12] : memref<9x128x128xbf16, #tpu.memory_space<vmem>>, vector<1x128x128xbf16>
    %10 = vector.shape_cast %9 : vector<1x128x128xbf16> to vector<128x128xbf16>
    %cst_13 = arith.constant dense<0.000000e+00> : vector<64x128xf32>
    %11 = tpu.matmul %8, %10, %cst_13 {dimension_numbers = #tpu.dot_dimension_numbers<[1], [0], [0], [1], [0, 0, 1, 1], [], []>} : vector<64x128xbf16>, vector<128x128xbf16>, vector<64x128xf32> -> vector<64x128xf32>
    %12 = arith.addf %6, %11 : vector<64x128xf32>
    %c0_14 = arith.constant 0 : index
    %c2 = arith.constant 2 : index
    %c0_15 = arith.constant 0 : index
    %c0_16 = arith.constant 0 : index
    %13 = vector.load %arg1[%c0_14, %c2, %c0_15, %c0_16] : memref<1x3x80x128xbf16, #tpu.memory_space<vmem>>, vector<1x1x64x128xbf16>
    %14 = vector.shape_cast %13 : vector<1x1x64x128xbf16> to vector<64x128xbf16>
    %c2_17 = arith.constant 2 : index
    %c0_18 = arith.constant 0 : index
    %c0_19 = arith.constant 0 : index
    %15 = vector.load %arg2[%c2_17, %c0_18, %c0_19] : memref<9x128x128xbf16, #tpu.memory_space<vmem>>, vector<1x128x128xbf16>
    %16 = vector.shape_cast %15 : vector<1x128x128xbf16> to vector<128x128xbf16>
    %cst_20 = arith.constant dense<0.000000e+00> : vector<64x128xf32>
    %17 = tpu.matmul %14, %16, %cst_20 {dimension_numbers = #tpu.dot_dimension_numbers<[1], [0], [0], [1], [0, 0, 1, 1], [], []>} : vector<64x128xbf16>, vector<128x128xbf16>, vector<64x128xf32> -> vector<64x128xf32>
    %18 = arith.addf %12, %17 : vector<64x128xf32>
    %c0_21 = arith.constant 0 : index
    %c0_22 = arith.constant 0 : index
    %c8 = arith.constant 8 : index
    %c0_23 = arith.constant 0 : index
    %19 = vector.load %arg1[%c0_21, %c0_22, %c8, %c0_23] : memref<1x3x80x128xbf16, #tpu.memory_space<vmem>>, vector<1x1x64x128xbf16>
    %20 = vector.shape_cast %19 : vector<1x1x64x128xbf16> to vector<64x128xbf16>
    %c3 = arith.constant 3 : index
    %c0_24 = arith.constant 0 : index
    %c0_25 = arith.constant 0 : index
    %21 = vector.load %arg2[%c3, %c0_24, %c0_25] : memref<9x128x128xbf16, #tpu.memory_space<vmem>>, vector<1x128x128xbf16>
    %22 = vector.shape_cast %21 : vector<1x128x128xbf16> to vector<128x128xbf16>
    %cst_26 = arith.constant dense<0.000000e+00> : vector<64x128xf32>
    %23 = tpu.matmul %20, %22, %cst_26 {dimension_numbers = #tpu.dot_dimension_numbers<[1], [0], [0], [1], [0, 0, 1, 1], [], []>} : vector<64x128xbf16>, vector<128x128xbf16>, vector<64x128xf32> -> vector<64x128xf32>
    %24 = arith.addf %18, %23 : vector<64x128xf32>
    %c0_27 = arith.constant 0 : index
    %c1_28 = arith.constant 1 : index
    %c8_29 = arith.constant 8 : index
    %c0_30 = arith.constant 0 : index
    %25 = vector.load %arg1[%c0_27, %c1_28, %c8_29, %c0_30] : memref<1x3x80x128xbf16, #tpu.memory_space<vmem>>, vector<1x1x64x128xbf16>
    %26 = vector.shape_cast %25 : vector<1x1x64x128xbf16> to vector<64x128xbf16>
    %c4 = arith.constant 4 : index
    %c0_31 = arith.constant 0 : index
    %c0_32 = arith.constant 0 : index
    %27 = vector.load %arg2[%c4, %c0_31, %c0_32] : memref<9x128x128xbf16, #tpu.memory_space<vmem>>, vector<1x128x128xbf16>
    %28 = vector.shape_cast %27 : vector<1x128x128xbf16> to vector<128x128xbf16>
    %cst_33 = arith.constant dense<0.000000e+00> : vector<64x128xf32>
    %29 = tpu.matmul %26, %28, %cst_33 {dimension_numbers = #tpu.dot_dimension_numbers<[1], [0], [0], [1], [0, 0, 1, 1], [], []>} : vector<64x128xbf16>, vector<128x128xbf16>, vector<64x128xf32> -> vector<64x128xf32>
    %30 = arith.addf %24, %29 : vector<64x128xf32>
    %c0_34 = arith.constant 0 : index
    %c2_35 = arith.constant 2 : index
    %c8_36 = arith.constant 8 : index
    %c0_37 = arith.constant 0 : index
    %31 = vector.load %arg1[%c0_34, %c2_35, %c8_36, %c0_37] : memref<1x3x80x128xbf16, #tpu.memory_space<vmem>>, vector<1x1x64x128xbf16>
    %32 = vector.shape_cast %31 : vector<1x1x64x128xbf16> to vector<64x128xbf16>
    %c5 = arith.constant 5 : index
    %c0_38 = arith.constant 0 : index
    %c0_39 = arith.constant 0 : index
    %33 = vector.load %arg2[%c5, %c0_38, %c0_39] : memref<9x128x128xbf16, #tpu.memory_space<vmem>>, vector<1x128x128xbf16>
    %34 = vector.shape_cast %33 : vector<1x128x128xbf16> to vector<128x128xbf16>
    %cst_40 = arith.constant dense<0.000000e+00> : vector<64x128xf32>
    %35 = tpu.matmul %32, %34, %cst_40 {dimension_numbers = #tpu.dot_dimension_numbers<[1], [0], [0], [1], [0, 0, 1, 1], [], []>} : vector<64x128xbf16>, vector<128x128xbf16>, vector<64x128xf32> -> vector<64x128xf32>
    %36 = arith.addf %30, %35 : vector<64x128xf32>
    %c0_41 = arith.constant 0 : index
    %c0_42 = arith.constant 0 : index
    %c16 = arith.constant 16 : index
    %c0_43 = arith.constant 0 : index
    %37 = vector.load %arg1[%c0_41, %c0_42, %c16, %c0_43] : memref<1x3x80x128xbf16, #tpu.memory_space<vmem>>, vector<1x1x64x128xbf16>
    %38 = vector.shape_cast %37 : vector<1x1x64x128xbf16> to vector<64x128xbf16>
    %c6 = arith.constant 6 : index
    %c0_44 = arith.constant 0 : index
    %c0_45 = arith.constant 0 : index
    %39 = vector.load %arg2[%c6, %c0_44, %c0_45] : memref<9x128x128xbf16, #tpu.memory_space<vmem>>, vector<1x128x128xbf16>
    %40 = vector.shape_cast %39 : vector<1x128x128xbf16> to vector<128x128xbf16>
    %cst_46 = arith.constant dense<0.000000e+00> : vector<64x128xf32>
    %41 = tpu.matmul %38, %40, %cst_46 {dimension_numbers = #tpu.dot_dimension_numbers<[1], [0], [0], [1], [0, 0, 1, 1], [], []>} : vector<64x128xbf16>, vector<128x128xbf16>, vector<64x128xf32> -> vector<64x128xf32>
    %42 = arith.addf %36, %41 : vector<64x128xf32>
    %c0_47 = arith.constant 0 : index
    %c1_48 = arith.constant 1 : index
    %c16_49 = arith.constant 16 : index
    %c0_50 = arith.constant 0 : index
    %43 = vector.load %arg1[%c0_47, %c1_48, %c16_49, %c0_50] : memref<1x3x80x128xbf16, #tpu.memory_space<vmem>>, vector<1x1x64x128xbf16>
    %44 = vector.shape_cast %43 : vector<1x1x64x128xbf16> to vector<64x128xbf16>
    %c7 = arith.constant 7 : index
    %c0_51 = arith.constant 0 : index
    %c0_52 = arith.constant 0 : index
    %45 = vector.load %arg2[%c7, %c0_51, %c0_52] : memref<9x128x128xbf16, #tpu.memory_space<vmem>>, vector<1x128x128xbf16>
    %46 = vector.shape_cast %45 : vector<1x128x128xbf16> to vector<128x128xbf16>
    %cst_53 = arith.constant dense<0.000000e+00> : vector<64x128xf32>
    %47 = tpu.matmul %44, %46, %cst_53 {dimension_numbers = #tpu.dot_dimension_numbers<[1], [0], [0], [1], [0, 0, 1, 1], [], []>} : vector<64x128xbf16>, vector<128x128xbf16>, vector<64x128xf32> -> vector<64x128xf32>
    %48 = arith.addf %42, %47 : vector<64x128xf32>
    %c0_54 = arith.constant 0 : index
    %c2_55 = arith.constant 2 : index
    %c16_56 = arith.constant 16 : index
    %c0_57 = arith.constant 0 : index
    %49 = vector.load %arg1[%c0_54, %c2_55, %c16_56, %c0_57] : memref<1x3x80x128xbf16, #tpu.memory_space<vmem>>, vector<1x1x64x128xbf16>
    %50 = vector.shape_cast %49 : vector<1x1x64x128xbf16> to vector<64x128xbf16>
    %c8_58 = arith.constant 8 : index
    %c0_59 = arith.constant 0 : index
    %c0_60 = arith.constant 0 : index
    %51 = vector.load %arg2[%c8_58, %c0_59, %c0_60] : memref<9x128x128xbf16, #tpu.memory_space<vmem>>, vector<1x128x128xbf16>
    %52 = vector.shape_cast %51 : vector<1x128x128xbf16> to vector<128x128xbf16>
    %cst_61 = arith.constant dense<0.000000e+00> : vector<64x128xf32>
    %53 = tpu.matmul %50, %52, %cst_61 {dimension_numbers = #tpu.dot_dimension_numbers<[1], [0], [0], [1], [0, 0, 1, 1], [], []>} : vector<64x128xbf16>, vector<128x128xbf16>, vector<64x128xf32> -> vector<64x128xf32>
    %54 = arith.addf %48, %53 : vector<64x128xf32>
    %c0_62 = arith.constant 0 : index
    %c0_63 = arith.constant 0 : index
    %c0_64 = arith.constant 0 : index
    %55 = vector.load %arg5[%c0_62, %c0_63, %c0_64] : memref<1x64x128xbf16, #tpu.memory_space<vmem>>, vector<1x64x128xbf16>
    %56 = vector.shape_cast %55 : vector<1x64x128xbf16> to vector<64x128xbf16>
    %57 = arith.extf %56 : vector<64x128xbf16> to vector<64x128xf32>
    %58 = arith.addf %54, %57 : vector<64x128xf32>
    %c0_65 = arith.constant 0 : index
    %c0_66 = arith.constant 0 : index
    %59 = vector.load %arg3[%c0_65, %c0_66] : memref<1x128xf32, #tpu.memory_space<vmem>>, vector<1x128xf32>
    %60 = vector.broadcast %59 : vector<1x128xf32> to vector<64x128xf32>
    %61 = arith.mulf %58, %60 : vector<64x128xf32>
    %c0_67 = arith.constant 0 : index
    %c0_68 = arith.constant 0 : index
    %62 = vector.load %arg4[%c0_67, %c0_68] : memref<1x128xf32, #tpu.memory_space<vmem>>, vector<1x128xf32>
    %63 = vector.broadcast %62 : vector<1x128xf32> to vector<64x128xf32>
    %64 = arith.addf %61, %63 : vector<64x128xf32>
    %65 = arith.truncf %64 : vector<64x128xf32> to vector<64x128xbf16>
    %c0_69 = arith.constant 0 : index
    %c0_70 = arith.constant 0 : index
    %c0_71 = arith.constant 0 : index
    %66 = vector.load %arg6[%c0_69, %c0_70, %c0_71] : memref<1x64x128xbf16, #tpu.memory_space<vmem>>, vector<1x64x128xbf16>
    %67 = vector.shape_cast %66 : vector<1x64x128xbf16> to vector<64x128xbf16>
    %68 = vector.shape_cast %65 : vector<64x128xbf16> to vector<1x64x128xbf16>
    tpu.vector_store %arg6[%c0_69, %c0_70, %c0_71], %68 {strides = array<i32>} : memref<1x64x128xbf16, #tpu.memory_space<vmem>>, vector<1x64x128xbf16>,
    return
  }
  func.func @transform_0(%arg0: i32) -> (i32, i32, i32, i32) {
    %c0_i32 = arith.constant 0 : i32
    %c0_i32_0 = arith.constant 0 : i32
    %c0_i32_1 = arith.constant 0 : i32
    %c0_i32_2 = arith.constant 0 : i32
    return %arg0, %c0_i32, %c0_i32_0, %c0_i32_1 : i32, i32, i32, i32
  }
  func.func @transform_1(%arg0: i32) -> (i32, i32, i32) {
    %c0_i32 = arith.constant 0 : i32
    %c0_i32_0 = arith.constant 0 : i32
    %c0_i32_1 = arith.constant 0 : i32
    %c0_i32_2 = arith.constant 0 : i32
    return %c0_i32, %c0_i32_0, %c0_i32_1 : i32, i32, i32
  }
  func.func @transform_2(%arg0: i32) -> (i32, i32) {
    %c0_i32 = arith.constant 0 : i32
    %c0_i32_0 = arith.constant 0 : i32
    %c0_i32_1 = arith.constant 0 : i32
    return %c0_i32, %c0_i32_0 : i32, i32
  }
  func.func @transform_3(%arg0: i32) -> (i32, i32) {
    %c0_i32 = arith.constant 0 : i32
    %c0_i32_0 = arith.constant 0 : i32
    %c0_i32_1 = arith.constant 0 : i32
    return %c0_i32, %c0_i32_0 : i32, i32
  }
  func.func @transform_4(%arg0: i32) -> (i32, i32, i32) {
    %c0_i32 = arith.constant 0 : i32
    %c0_i32_0 = arith.constant 0 : i32
    %c0_i32_1 = arith.constant 0 : i32
    return %arg0, %c0_i32, %c0_i32_0 : i32, i32, i32
  }
  func.func @transform_5(%arg0: i32) -> (i32, i32, i32) {
    %c0_i32 = arith.constant 0 : i32
    %c0_i32_0 = arith.constant 0 : i32
    %c0_i32_1 = arith.constant 0 : i32
    return %arg0, %c0_i32, %c0_i32_0 : i32, i32, i32
  }
}

module attributes {stable_mosaic.version = 11 : i64} {
  func.func @_affine_act_kernel(%arg0: i32, %arg1: memref<128x128xbf16, #tpu.memory_space<vmem>>, %arg2: memref<1x128xf32, #tpu.memory_space<vmem>>, %arg3: memref<1x128xf32, #tpu.memory_space<vmem>>, %arg4: memref<128x128xbf16, #tpu.memory_space<vmem>>) attributes {dimension_semantics = [#tpu.dimension_semantics<parallel>], iteration_bounds = array<i64: 1>, scalar_prefetch = 0 : i64, scratch_operands = 0 : i64, tpu.core_type = #tpu.core_type<tc>, window_params = [{transform_indices = @transform_0, window_bounds = array<i64: 128, 128>}, {pipeline_mode = #tpu.pipeline_mode<synchronous>, transform_indices = @transform_1, window_bounds = array<i64: 1, 128>}, {pipeline_mode = #tpu.pipeline_mode<synchronous>, transform_indices = @transform_2, window_bounds = array<i64: 1, 128>}, {transform_indices = @transform_3, window_bounds = array<i64: 128, 128>}]} {
    %c0 = arith.constant 0 : index
    %c0_0 = arith.constant 0 : index
    %0 = vector.load %arg1[%c0, %c0_0] : memref<128x128xbf16, #tpu.memory_space<vmem>>, vector<128x128xbf16>
    %1 = arith.extf %0 : vector<128x128xbf16> to vector<128x128xf32>
    %c0_1 = arith.constant 0 : index
    %c0_2 = arith.constant 0 : index
    %2 = vector.load %arg2[%c0_1, %c0_2] : memref<1x128xf32, #tpu.memory_space<vmem>>, vector<1x128xf32>
    %3 = vector.broadcast %2 : vector<1x128xf32> to vector<128x128xf32>
    %4 = arith.mulf %1, %3 : vector<128x128xf32>
    %c0_3 = arith.constant 0 : index
    %c0_4 = arith.constant 0 : index
    %5 = vector.load %arg3[%c0_3, %c0_4] : memref<1x128xf32, #tpu.memory_space<vmem>>, vector<1x128xf32>
    %6 = vector.broadcast %5 : vector<1x128xf32> to vector<128x128xf32>
    %7 = arith.addf %4, %6 : vector<128x128xf32>
    %cst = arith.constant 0.000000e+00 : f32
    %8 = vector.broadcast %cst : f32 to vector<128x128xf32>
    %9 = arith.cmpf oge, %7, %8 : vector<128x128xf32>
    %cst_5 = arith.constant 1.000000e-01 : f32
    %10 = vector.broadcast %cst_5 : f32 to vector<128x128xf32>
    %11 = arith.mulf %7, %10 : vector<128x128xf32>
    %12 = arith.select %9, %7, %11 : vector<128x128xi1>, vector<128x128xf32>
    %13 = arith.truncf %12 : vector<128x128xf32> to vector<128x128xbf16>
    %c0_6 = arith.constant 0 : index
    %c0_7 = arith.constant 0 : index
    %14 = vector.load %arg4[%c0_6, %c0_7] : memref<128x128xbf16, #tpu.memory_space<vmem>>, vector<128x128xbf16>
    tpu.vector_store %arg4[%c0_6, %c0_7], %13 {strides = array<i32>} : memref<128x128xbf16, #tpu.memory_space<vmem>>, vector<128x128xbf16>,
    return
  }
  func.func @transform_0(%arg0: i32) -> (i32, i32) {
    %c0_i32 = arith.constant 0 : i32
    %c0_i32_0 = arith.constant 0 : i32
    return %arg0, %c0_i32 : i32, i32
  }
  func.func @transform_1(%arg0: i32) -> (i32, i32) {
    %c0_i32 = arith.constant 0 : i32
    %c0_i32_0 = arith.constant 0 : i32
    %c0_i32_1 = arith.constant 0 : i32
    return %c0_i32, %c0_i32_0 : i32, i32
  }
  func.func @transform_2(%arg0: i32) -> (i32, i32) {
    %c0_i32 = arith.constant 0 : i32
    %c0_i32_0 = arith.constant 0 : i32
    %c0_i32_1 = arith.constant 0 : i32
    return %c0_i32, %c0_i32_0 : i32, i32
  }
  func.func @transform_3(%arg0: i32) -> (i32, i32) {
    %c0_i32 = arith.constant 0 : i32
    %c0_i32_0 = arith.constant 0 : i32
    return %arg0, %c0_i32 : i32, i32
  }
}

module attributes {stable_mosaic.version = 11 : i64} {
  func.func @_conv3x3_kernel(%arg0: i32, %arg1: memref<1x3x80x128xbf16, #tpu.memory_space<vmem>>, %arg2: memref<9x128x128xbf16, #tpu.memory_space<vmem>>, %arg3: memref<1x128xf32, #tpu.memory_space<vmem>>, %arg4: memref<1x128xf32, #tpu.memory_space<vmem>>, %arg5: memref<1x64x128xbf16, #tpu.memory_space<vmem>>) attributes {dimension_semantics = [#tpu.dimension_semantics<parallel>], iteration_bounds = array<i64: 2>, scalar_prefetch = 0 : i64, scratch_operands = 0 : i64, tpu.core_type = #tpu.core_type<tc>, window_params = [{transform_indices = @transform_0, window_bounds = array<i64: 1, 3, 80, 128>}, {pipeline_mode = #tpu.pipeline_mode<synchronous>, transform_indices = @transform_1, window_bounds = array<i64: 9, 128, 128>}, {pipeline_mode = #tpu.pipeline_mode<synchronous>, transform_indices = @transform_2, window_bounds = array<i64: 1, 128>}, {pipeline_mode = #tpu.pipeline_mode<synchronous>, transform_indices = @transform_3, window_bounds = array<i64: 1, 128>}, {transform_indices = @transform_4, window_bounds = array<i64: 1, 64, 128>}]} {
    %cst = arith.constant 0.000000e+00 : f32
    %0 = vector.broadcast %cst : f32 to vector<64x128xf32>
    %c0 = arith.constant 0 : index
    %c0_0 = arith.constant 0 : index
    %c0_1 = arith.constant 0 : index
    %c0_2 = arith.constant 0 : index
    %1 = vector.load %arg1[%c0, %c0_0, %c0_1, %c0_2] : memref<1x3x80x128xbf16, #tpu.memory_space<vmem>>, vector<1x1x64x128xbf16>
    %2 = vector.shape_cast %1 : vector<1x1x64x128xbf16> to vector<64x128xbf16>
    %c0_3 = arith.constant 0 : index
    %c0_4 = arith.constant 0 : index
    %c0_5 = arith.constant 0 : index
    %3 = vector.load %arg2[%c0_3, %c0_4, %c0_5] : memref<9x128x128xbf16, #tpu.memory_space<vmem>>, vector<1x128x128xbf16>
    %4 = vector.shape_cast %3 : vector<1x128x128xbf16> to vector<128x128xbf16>
    %cst_6 = arith.constant dense<0.000000e+00> : vector<64x128xf32>
    %5 = tpu.matmul %2, %4, %cst_6 {dimension_numbers = #tpu.dot_dimension_numbers<[1], [0], [0], [1], [0, 0, 1, 1], [], []>} : vector<64x128xbf16>, vector<128x128xbf16>, vector<64x128xf32> -> vector<64x128xf32>
    %6 = arith.addf %0, %5 : vector<64x128xf32>
    %c0_7 = arith.constant 0 : index
    %c1 = arith.constant 1 : index
    %c0_8 = arith.constant 0 : index
    %c0_9 = arith.constant 0 : index
    %7 = vector.load %arg1[%c0_7, %c1, %c0_8, %c0_9] : memref<1x3x80x128xbf16, #tpu.memory_space<vmem>>, vector<1x1x64x128xbf16>
    %8 = vector.shape_cast %7 : vector<1x1x64x128xbf16> to vector<64x128xbf16>
    %c1_10 = arith.constant 1 : index
    %c0_11 = arith.constant 0 : index
    %c0_12 = arith.constant 0 : index
    %9 = vector.load %arg2[%c1_10, %c0_11, %c0_12] : memref<9x128x128xbf16, #tpu.memory_space<vmem>>, vector<1x128x128xbf16>
    %10 = vector.shape_cast %9 : vector<1x128x128xbf16> to vector<128x128xbf16>
    %cst_13 = arith.constant dense<0.000000e+00> : vector<64x128xf32>
    %11 = tpu.matmul %8, %10, %cst_13 {dimension_numbers = #tpu.dot_dimension_numbers<[1], [0], [0], [1], [0, 0, 1, 1], [], []>} : vector<64x128xbf16>, vector<128x128xbf16>, vector<64x128xf32> -> vector<64x128xf32>
    %12 = arith.addf %6, %11 : vector<64x128xf32>
    %c0_14 = arith.constant 0 : index
    %c2 = arith.constant 2 : index
    %c0_15 = arith.constant 0 : index
    %c0_16 = arith.constant 0 : index
    %13 = vector.load %arg1[%c0_14, %c2, %c0_15, %c0_16] : memref<1x3x80x128xbf16, #tpu.memory_space<vmem>>, vector<1x1x64x128xbf16>
    %14 = vector.shape_cast %13 : vector<1x1x64x128xbf16> to vector<64x128xbf16>
    %c2_17 = arith.constant 2 : index
    %c0_18 = arith.constant 0 : index
    %c0_19 = arith.constant 0 : index
    %15 = vector.load %arg2[%c2_17, %c0_18, %c0_19] : memref<9x128x128xbf16, #tpu.memory_space<vmem>>, vector<1x128x128xbf16>
    %16 = vector.shape_cast %15 : vector<1x128x128xbf16> to vector<128x128xbf16>
    %cst_20 = arith.constant dense<0.000000e+00> : vector<64x128xf32>
    %17 = tpu.matmul %14, %16, %cst_20 {dimension_numbers = #tpu.dot_dimension_numbers<[1], [0], [0], [1], [0, 0, 1, 1], [], []>} : vector<64x128xbf16>, vector<128x128xbf16>, vector<64x128xf32> -> vector<64x128xf32>
    %18 = arith.addf %12, %17 : vector<64x128xf32>
    %c0_21 = arith.constant 0 : index
    %c0_22 = arith.constant 0 : index
    %c8 = arith.constant 8 : index
    %c0_23 = arith.constant 0 : index
    %19 = vector.load %arg1[%c0_21, %c0_22, %c8, %c0_23] : memref<1x3x80x128xbf16, #tpu.memory_space<vmem>>, vector<1x1x64x128xbf16>
    %20 = vector.shape_cast %19 : vector<1x1x64x128xbf16> to vector<64x128xbf16>
    %c3 = arith.constant 3 : index
    %c0_24 = arith.constant 0 : index
    %c0_25 = arith.constant 0 : index
    %21 = vector.load %arg2[%c3, %c0_24, %c0_25] : memref<9x128x128xbf16, #tpu.memory_space<vmem>>, vector<1x128x128xbf16>
    %22 = vector.shape_cast %21 : vector<1x128x128xbf16> to vector<128x128xbf16>
    %cst_26 = arith.constant dense<0.000000e+00> : vector<64x128xf32>
    %23 = tpu.matmul %20, %22, %cst_26 {dimension_numbers = #tpu.dot_dimension_numbers<[1], [0], [0], [1], [0, 0, 1, 1], [], []>} : vector<64x128xbf16>, vector<128x128xbf16>, vector<64x128xf32> -> vector<64x128xf32>
    %24 = arith.addf %18, %23 : vector<64x128xf32>
    %c0_27 = arith.constant 0 : index
    %c1_28 = arith.constant 1 : index
    %c8_29 = arith.constant 8 : index
    %c0_30 = arith.constant 0 : index
    %25 = vector.load %arg1[%c0_27, %c1_28, %c8_29, %c0_30] : memref<1x3x80x128xbf16, #tpu.memory_space<vmem>>, vector<1x1x64x128xbf16>
    %26 = vector.shape_cast %25 : vector<1x1x64x128xbf16> to vector<64x128xbf16>
    %c4 = arith.constant 4 : index
    %c0_31 = arith.constant 0 : index
    %c0_32 = arith.constant 0 : index
    %27 = vector.load %arg2[%c4, %c0_31, %c0_32] : memref<9x128x128xbf16, #tpu.memory_space<vmem>>, vector<1x128x128xbf16>
    %28 = vector.shape_cast %27 : vector<1x128x128xbf16> to vector<128x128xbf16>
    %cst_33 = arith.constant dense<0.000000e+00> : vector<64x128xf32>
    %29 = tpu.matmul %26, %28, %cst_33 {dimension_numbers = #tpu.dot_dimension_numbers<[1], [0], [0], [1], [0, 0, 1, 1], [], []>} : vector<64x128xbf16>, vector<128x128xbf16>, vector<64x128xf32> -> vector<64x128xf32>
    %30 = arith.addf %24, %29 : vector<64x128xf32>
    %c0_34 = arith.constant 0 : index
    %c2_35 = arith.constant 2 : index
    %c8_36 = arith.constant 8 : index
    %c0_37 = arith.constant 0 : index
    %31 = vector.load %arg1[%c0_34, %c2_35, %c8_36, %c0_37] : memref<1x3x80x128xbf16, #tpu.memory_space<vmem>>, vector<1x1x64x128xbf16>
    %32 = vector.shape_cast %31 : vector<1x1x64x128xbf16> to vector<64x128xbf16>
    %c5 = arith.constant 5 : index
    %c0_38 = arith.constant 0 : index
    %c0_39 = arith.constant 0 : index
    %33 = vector.load %arg2[%c5, %c0_38, %c0_39] : memref<9x128x128xbf16, #tpu.memory_space<vmem>>, vector<1x128x128xbf16>
    %34 = vector.shape_cast %33 : vector<1x128x128xbf16> to vector<128x128xbf16>
    %cst_40 = arith.constant dense<0.000000e+00> : vector<64x128xf32>
    %35 = tpu.matmul %32, %34, %cst_40 {dimension_numbers = #tpu.dot_dimension_numbers<[1], [0], [0], [1], [0, 0, 1, 1], [], []>} : vector<64x128xbf16>, vector<128x128xbf16>, vector<64x128xf32> -> vector<64x128xf32>
    %36 = arith.addf %30, %35 : vector<64x128xf32>
    %c0_41 = arith.constant 0 : index
    %c0_42 = arith.constant 0 : index
    %c16 = arith.constant 16 : index
    %c0_43 = arith.constant 0 : index
    %37 = vector.load %arg1[%c0_41, %c0_42, %c16, %c0_43] : memref<1x3x80x128xbf16, #tpu.memory_space<vmem>>, vector<1x1x64x128xbf16>
    %38 = vector.shape_cast %37 : vector<1x1x64x128xbf16> to vector<64x128xbf16>
    %c6 = arith.constant 6 : index
    %c0_44 = arith.constant 0 : index
    %c0_45 = arith.constant 0 : index
    %39 = vector.load %arg2[%c6, %c0_44, %c0_45] : memref<9x128x128xbf16, #tpu.memory_space<vmem>>, vector<1x128x128xbf16>
    %40 = vector.shape_cast %39 : vector<1x128x128xbf16> to vector<128x128xbf16>
    %cst_46 = arith.constant dense<0.000000e+00> : vector<64x128xf32>
    %41 = tpu.matmul %38, %40, %cst_46 {dimension_numbers = #tpu.dot_dimension_numbers<[1], [0], [0], [1], [0, 0, 1, 1], [], []>} : vector<64x128xbf16>, vector<128x128xbf16>, vector<64x128xf32> -> vector<64x128xf32>
    %42 = arith.addf %36, %41 : vector<64x128xf32>
    %c0_47 = arith.constant 0 : index
    %c1_48 = arith.constant 1 : index
    %c16_49 = arith.constant 16 : index
    %c0_50 = arith.constant 0 : index
    %43 = vector.load %arg1[%c0_47, %c1_48, %c16_49, %c0_50] : memref<1x3x80x128xbf16, #tpu.memory_space<vmem>>, vector<1x1x64x128xbf16>
    %44 = vector.shape_cast %43 : vector<1x1x64x128xbf16> to vector<64x128xbf16>
    %c7 = arith.constant 7 : index
    %c0_51 = arith.constant 0 : index
    %c0_52 = arith.constant 0 : index
    %45 = vector.load %arg2[%c7, %c0_51, %c0_52] : memref<9x128x128xbf16, #tpu.memory_space<vmem>>, vector<1x128x128xbf16>
    %46 = vector.shape_cast %45 : vector<1x128x128xbf16> to vector<128x128xbf16>
    %cst_53 = arith.constant dense<0.000000e+00> : vector<64x128xf32>
    %47 = tpu.matmul %44, %46, %cst_53 {dimension_numbers = #tpu.dot_dimension_numbers<[1], [0], [0], [1], [0, 0, 1, 1], [], []>} : vector<64x128xbf16>, vector<128x128xbf16>, vector<64x128xf32> -> vector<64x128xf32>
    %48 = arith.addf %42, %47 : vector<64x128xf32>
    %c0_54 = arith.constant 0 : index
    %c2_55 = arith.constant 2 : index
    %c16_56 = arith.constant 16 : index
    %c0_57 = arith.constant 0 : index
    %49 = vector.load %arg1[%c0_54, %c2_55, %c16_56, %c0_57] : memref<1x3x80x128xbf16, #tpu.memory_space<vmem>>, vector<1x1x64x128xbf16>
    %50 = vector.shape_cast %49 : vector<1x1x64x128xbf16> to vector<64x128xbf16>
    %c8_58 = arith.constant 8 : index
    %c0_59 = arith.constant 0 : index
    %c0_60 = arith.constant 0 : index
    %51 = vector.load %arg2[%c8_58, %c0_59, %c0_60] : memref<9x128x128xbf16, #tpu.memory_space<vmem>>, vector<1x128x128xbf16>
    %52 = vector.shape_cast %51 : vector<1x128x128xbf16> to vector<128x128xbf16>
    %cst_61 = arith.constant dense<0.000000e+00> : vector<64x128xf32>
    %53 = tpu.matmul %50, %52, %cst_61 {dimension_numbers = #tpu.dot_dimension_numbers<[1], [0], [0], [1], [0, 0, 1, 1], [], []>} : vector<64x128xbf16>, vector<128x128xbf16>, vector<64x128xf32> -> vector<64x128xf32>
    %54 = arith.addf %48, %53 : vector<64x128xf32>
    %c0_62 = arith.constant 0 : index
    %c0_63 = arith.constant 0 : index
    %55 = vector.load %arg3[%c0_62, %c0_63] : memref<1x128xf32, #tpu.memory_space<vmem>>, vector<1x128xf32>
    %56 = vector.broadcast %55 : vector<1x128xf32> to vector<64x128xf32>
    %57 = arith.mulf %54, %56 : vector<64x128xf32>
    %c0_64 = arith.constant 0 : index
    %c0_65 = arith.constant 0 : index
    %58 = vector.load %arg4[%c0_64, %c0_65] : memref<1x128xf32, #tpu.memory_space<vmem>>, vector<1x128xf32>
    %59 = vector.broadcast %58 : vector<1x128xf32> to vector<64x128xf32>
    %60 = arith.addf %57, %59 : vector<64x128xf32>
    %cst_66 = arith.constant 0.000000e+00 : f32
    %61 = vector.broadcast %cst_66 : f32 to vector<64x128xf32>
    %62 = arith.cmpf oge, %60, %61 : vector<64x128xf32>
    %cst_67 = arith.constant 1.000000e-01 : f32
    %63 = vector.broadcast %cst_67 : f32 to vector<64x128xf32>
    %64 = arith.mulf %60, %63 : vector<64x128xf32>
    %65 = arith.select %62, %60, %64 : vector<64x128xi1>, vector<64x128xf32>
    %66 = arith.truncf %65 : vector<64x128xf32> to vector<64x128xbf16>
    %c0_68 = arith.constant 0 : index
    %c0_69 = arith.constant 0 : index
    %c0_70 = arith.constant 0 : index
    %67 = vector.load %arg5[%c0_68, %c0_69, %c0_70] : memref<1x64x128xbf16, #tpu.memory_space<vmem>>, vector<1x64x128xbf16>
    %68 = vector.shape_cast %67 : vector<1x64x128xbf16> to vector<64x128xbf16>
    %69 = vector.shape_cast %66 : vector<64x128xbf16> to vector<1x64x128xbf16>
    tpu.vector_store %arg5[%c0_68, %c0_69, %c0_70], %69 {strides = array<i32>} : memref<1x64x128xbf16, #tpu.memory_space<vmem>>, vector<1x64x128xbf16>,
    return
  }
  func.func @transform_0(%arg0: i32) -> (i32, i32, i32, i32) {
    %c0_i32 = arith.constant 0 : i32
    %c0_i32_0 = arith.constant 0 : i32
    %c0_i32_1 = arith.constant 0 : i32
    %c0_i32_2 = arith.constant 0 : i32
    return %arg0, %c0_i32, %c0_i32_0, %c0_i32_1 : i32, i32, i32, i32
  }
  func.func @transform_1(%arg0: i32) -> (i32, i32, i32) {
    %c0_i32 = arith.constant 0 : i32
    %c0_i32_0 = arith.constant 0 : i32
    %c0_i32_1 = arith.constant 0 : i32
    %c0_i32_2 = arith.constant 0 : i32
    return %c0_i32, %c0_i32_0, %c0_i32_1 : i32, i32, i32
  }
  func.func @transform_2(%arg0: i32) -> (i32, i32) {
    %c0_i32 = arith.constant 0 : i32
    %c0_i32_0 = arith.constant 0 : i32
    %c0_i32_1 = arith.constant 0 : i32
    return %c0_i32, %c0_i32_0 : i32, i32
  }
  func.func @transform_3(%arg0: i32) -> (i32, i32) {
    %c0_i32 = arith.constant 0 : i32
    %c0_i32_0 = arith.constant 0 : i32
    %c0_i32_1 = arith.constant 0 : i32
    return %c0_i32, %c0_i32_0 : i32, i32
  }
  func.func @transform_4(%arg0: i32) -> (i32, i32, i32) {
    %c0_i32 = arith.constant 0 : i32
    %c0_i32_0 = arith.constant 0 : i32
    %c0_i32_1 = arith.constant 0 : i32
    return %arg0, %c0_i32, %c0_i32_0 : i32, i32, i32
  }
}

module attributes {stable_mosaic.version = 11 : i64} {
  func.func @_conv3x3_kernel(%arg0: i32, %arg1: memref<1x3x24x128xbf16, #tpu.memory_space<vmem>>, %arg2: memref<9x128x128xbf16, #tpu.memory_space<vmem>>, %arg3: memref<1x128xf32, #tpu.memory_space<vmem>>, %arg4: memref<1x128xf32, #tpu.memory_space<vmem>>, %arg5: memref<1x16x128xbf16, #tpu.memory_space<vmem>>, %arg6: memref<1x16x128xbf16, #tpu.memory_space<vmem>>) attributes {dimension_semantics = [#tpu.dimension_semantics<parallel>], iteration_bounds = array<i64: 2>, scalar_prefetch = 0 : i64, scratch_operands = 0 : i64, tpu.core_type = #tpu.core_type<tc>, window_params = [{transform_indices = @transform_0, window_bounds = array<i64: 1, 3, 24, 128>}, {pipeline_mode = #tpu.pipeline_mode<synchronous>, transform_indices = @transform_1, window_bounds = array<i64: 9, 128, 128>}, {pipeline_mode = #tpu.pipeline_mode<synchronous>, transform_indices = @transform_2, window_bounds = array<i64: 1, 128>}, {pipeline_mode = #tpu.pipeline_mode<synchronous>, transform_indices = @transform_3, window_bounds = array<i64: 1, 128>}, {transform_indices = @transform_4, window_bounds = array<i64: 1, 16, 128>}, {transform_indices = @transform_5, window_bounds = array<i64: 1, 16, 128>}]} {
    %cst = arith.constant 0.000000e+00 : f32
    %0 = vector.broadcast %cst : f32 to vector<16x128xf32>
    %c0 = arith.constant 0 : index
    %c0_0 = arith.constant 0 : index
    %c0_1 = arith.constant 0 : index
    %c0_2 = arith.constant 0 : index
    %1 = vector.load %arg1[%c0, %c0_0, %c0_1, %c0_2] : memref<1x3x24x128xbf16, #tpu.memory_space<vmem>>, vector<1x1x16x128xbf16>
    %2 = vector.shape_cast %1 : vector<1x1x16x128xbf16> to vector<16x128xbf16>
    %c0_3 = arith.constant 0 : index
    %c0_4 = arith.constant 0 : index
    %c0_5 = arith.constant 0 : index
    %3 = vector.load %arg2[%c0_3, %c0_4, %c0_5] : memref<9x128x128xbf16, #tpu.memory_space<vmem>>, vector<1x128x128xbf16>
    %4 = vector.shape_cast %3 : vector<1x128x128xbf16> to vector<128x128xbf16>
    %cst_6 = arith.constant dense<0.000000e+00> : vector<16x128xf32>
    %5 = tpu.matmul %2, %4, %cst_6 {dimension_numbers = #tpu.dot_dimension_numbers<[1], [0], [0], [1], [0, 0, 1, 1], [], []>} : vector<16x128xbf16>, vector<128x128xbf16>, vector<16x128xf32> -> vector<16x128xf32>
    %6 = arith.addf %0, %5 : vector<16x128xf32>
    %c0_7 = arith.constant 0 : index
    %c1 = arith.constant 1 : index
    %c0_8 = arith.constant 0 : index
    %c0_9 = arith.constant 0 : index
    %7 = vector.load %arg1[%c0_7, %c1, %c0_8, %c0_9] : memref<1x3x24x128xbf16, #tpu.memory_space<vmem>>, vector<1x1x16x128xbf16>
    %8 = vector.shape_cast %7 : vector<1x1x16x128xbf16> to vector<16x128xbf16>
    %c1_10 = arith.constant 1 : index
    %c0_11 = arith.constant 0 : index
    %c0_12 = arith.constant 0 : index
    %9 = vector.load %arg2[%c1_10, %c0_11, %c0_12] : memref<9x128x128xbf16, #tpu.memory_space<vmem>>, vector<1x128x128xbf16>
    %10 = vector.shape_cast %9 : vector<1x128x128xbf16> to vector<128x128xbf16>
    %cst_13 = arith.constant dense<0.000000e+00> : vector<16x128xf32>
    %11 = tpu.matmul %8, %10, %cst_13 {dimension_numbers = #tpu.dot_dimension_numbers<[1], [0], [0], [1], [0, 0, 1, 1], [], []>} : vector<16x128xbf16>, vector<128x128xbf16>, vector<16x128xf32> -> vector<16x128xf32>
    %12 = arith.addf %6, %11 : vector<16x128xf32>
    %c0_14 = arith.constant 0 : index
    %c2 = arith.constant 2 : index
    %c0_15 = arith.constant 0 : index
    %c0_16 = arith.constant 0 : index
    %13 = vector.load %arg1[%c0_14, %c2, %c0_15, %c0_16] : memref<1x3x24x128xbf16, #tpu.memory_space<vmem>>, vector<1x1x16x128xbf16>
    %14 = vector.shape_cast %13 : vector<1x1x16x128xbf16> to vector<16x128xbf16>
    %c2_17 = arith.constant 2 : index
    %c0_18 = arith.constant 0 : index
    %c0_19 = arith.constant 0 : index
    %15 = vector.load %arg2[%c2_17, %c0_18, %c0_19] : memref<9x128x128xbf16, #tpu.memory_space<vmem>>, vector<1x128x128xbf16>
    %16 = vector.shape_cast %15 : vector<1x128x128xbf16> to vector<128x128xbf16>
    %cst_20 = arith.constant dense<0.000000e+00> : vector<16x128xf32>
    %17 = tpu.matmul %14, %16, %cst_20 {dimension_numbers = #tpu.dot_dimension_numbers<[1], [0], [0], [1], [0, 0, 1, 1], [], []>} : vector<16x128xbf16>, vector<128x128xbf16>, vector<16x128xf32> -> vector<16x128xf32>
    %18 = arith.addf %12, %17 : vector<16x128xf32>
    %c0_21 = arith.constant 0 : index
    %c0_22 = arith.constant 0 : index
    %c4 = arith.constant 4 : index
    %c0_23 = arith.constant 0 : index
    %19 = vector.load %arg1[%c0_21, %c0_22, %c4, %c0_23] : memref<1x3x24x128xbf16, #tpu.memory_space<vmem>>, vector<1x1x16x128xbf16>
    %20 = vector.shape_cast %19 : vector<1x1x16x128xbf16> to vector<16x128xbf16>
    %c3 = arith.constant 3 : index
    %c0_24 = arith.constant 0 : index
    %c0_25 = arith.constant 0 : index
    %21 = vector.load %arg2[%c3, %c0_24, %c0_25] : memref<9x128x128xbf16, #tpu.memory_space<vmem>>, vector<1x128x128xbf16>
    %22 = vector.shape_cast %21 : vector<1x128x128xbf16> to vector<128x128xbf16>
    %cst_26 = arith.constant dense<0.000000e+00> : vector<16x128xf32>
    %23 = tpu.matmul %20, %22, %cst_26 {dimension_numbers = #tpu.dot_dimension_numbers<[1], [0], [0], [1], [0, 0, 1, 1], [], []>} : vector<16x128xbf16>, vector<128x128xbf16>, vector<16x128xf32> -> vector<16x128xf32>
    %24 = arith.addf %18, %23 : vector<16x128xf32>
    %c0_27 = arith.constant 0 : index
    %c1_28 = arith.constant 1 : index
    %c4_29 = arith.constant 4 : index
    %c0_30 = arith.constant 0 : index
    %25 = vector.load %arg1[%c0_27, %c1_28, %c4_29, %c0_30] : memref<1x3x24x128xbf16, #tpu.memory_space<vmem>>, vector<1x1x16x128xbf16>
    %26 = vector.shape_cast %25 : vector<1x1x16x128xbf16> to vector<16x128xbf16>
    %c4_31 = arith.constant 4 : index
    %c0_32 = arith.constant 0 : index
    %c0_33 = arith.constant 0 : index
    %27 = vector.load %arg2[%c4_31, %c0_32, %c0_33] : memref<9x128x128xbf16, #tpu.memory_space<vmem>>, vector<1x128x128xbf16>
    %28 = vector.shape_cast %27 : vector<1x128x128xbf16> to vector<128x128xbf16>
    %cst_34 = arith.constant dense<0.000000e+00> : vector<16x128xf32>
    %29 = tpu.matmul %26, %28, %cst_34 {dimension_numbers = #tpu.dot_dimension_numbers<[1], [0], [0], [1], [0, 0, 1, 1], [], []>} : vector<16x128xbf16>, vector<128x128xbf16>, vector<16x128xf32> -> vector<16x128xf32>
    %30 = arith.addf %24, %29 : vector<16x128xf32>
    %c0_35 = arith.constant 0 : index
    %c2_36 = arith.constant 2 : index
    %c4_37 = arith.constant 4 : index
    %c0_38 = arith.constant 0 : index
    %31 = vector.load %arg1[%c0_35, %c2_36, %c4_37, %c0_38] : memref<1x3x24x128xbf16, #tpu.memory_space<vmem>>, vector<1x1x16x128xbf16>
    %32 = vector.shape_cast %31 : vector<1x1x16x128xbf16> to vector<16x128xbf16>
    %c5 = arith.constant 5 : index
    %c0_39 = arith.constant 0 : index
    %c0_40 = arith.constant 0 : index
    %33 = vector.load %arg2[%c5, %c0_39, %c0_40] : memref<9x128x128xbf16, #tpu.memory_space<vmem>>, vector<1x128x128xbf16>
    %34 = vector.shape_cast %33 : vector<1x128x128xbf16> to vector<128x128xbf16>
    %cst_41 = arith.constant dense<0.000000e+00> : vector<16x128xf32>
    %35 = tpu.matmul %32, %34, %cst_41 {dimension_numbers = #tpu.dot_dimension_numbers<[1], [0], [0], [1], [0, 0, 1, 1], [], []>} : vector<16x128xbf16>, vector<128x128xbf16>, vector<16x128xf32> -> vector<16x128xf32>
    %36 = arith.addf %30, %35 : vector<16x128xf32>
    %c0_42 = arith.constant 0 : index
    %c0_43 = arith.constant 0 : index
    %c8 = arith.constant 8 : index
    %c0_44 = arith.constant 0 : index
    %37 = vector.load %arg1[%c0_42, %c0_43, %c8, %c0_44] : memref<1x3x24x128xbf16, #tpu.memory_space<vmem>>, vector<1x1x16x128xbf16>
    %38 = vector.shape_cast %37 : vector<1x1x16x128xbf16> to vector<16x128xbf16>
    %c6 = arith.constant 6 : index
    %c0_45 = arith.constant 0 : index
    %c0_46 = arith.constant 0 : index
    %39 = vector.load %arg2[%c6, %c0_45, %c0_46] : memref<9x128x128xbf16, #tpu.memory_space<vmem>>, vector<1x128x128xbf16>
    %40 = vector.shape_cast %39 : vector<1x128x128xbf16> to vector<128x128xbf16>
    %cst_47 = arith.constant dense<0.000000e+00> : vector<16x128xf32>
    %41 = tpu.matmul %38, %40, %cst_47 {dimension_numbers = #tpu.dot_dimension_numbers<[1], [0], [0], [1], [0, 0, 1, 1], [], []>} : vector<16x128xbf16>, vector<128x128xbf16>, vector<16x128xf32> -> vector<16x128xf32>
    %42 = arith.addf %36, %41 : vector<16x128xf32>
    %c0_48 = arith.constant 0 : index
    %c1_49 = arith.constant 1 : index
    %c8_50 = arith.constant 8 : index
    %c0_51 = arith.constant 0 : index
    %43 = vector.load %arg1[%c0_48, %c1_49, %c8_50, %c0_51] : memref<1x3x24x128xbf16, #tpu.memory_space<vmem>>, vector<1x1x16x128xbf16>
    %44 = vector.shape_cast %43 : vector<1x1x16x128xbf16> to vector<16x128xbf16>
    %c7 = arith.constant 7 : index
    %c0_52 = arith.constant 0 : index
    %c0_53 = arith.constant 0 : index
    %45 = vector.load %arg2[%c7, %c0_52, %c0_53] : memref<9x128x128xbf16, #tpu.memory_space<vmem>>, vector<1x128x128xbf16>
    %46 = vector.shape_cast %45 : vector<1x128x128xbf16> to vector<128x128xbf16>
    %cst_54 = arith.constant dense<0.000000e+00> : vector<16x128xf32>
    %47 = tpu.matmul %44, %46, %cst_54 {dimension_numbers = #tpu.dot_dimension_numbers<[1], [0], [0], [1], [0, 0, 1, 1], [], []>} : vector<16x128xbf16>, vector<128x128xbf16>, vector<16x128xf32> -> vector<16x128xf32>
    %48 = arith.addf %42, %47 : vector<16x128xf32>
    %c0_55 = arith.constant 0 : index
    %c2_56 = arith.constant 2 : index
    %c8_57 = arith.constant 8 : index
    %c0_58 = arith.constant 0 : index
    %49 = vector.load %arg1[%c0_55, %c2_56, %c8_57, %c0_58] : memref<1x3x24x128xbf16, #tpu.memory_space<vmem>>, vector<1x1x16x128xbf16>
    %50 = vector.shape_cast %49 : vector<1x1x16x128xbf16> to vector<16x128xbf16>
    %c8_59 = arith.constant 8 : index
    %c0_60 = arith.constant 0 : index
    %c0_61 = arith.constant 0 : index
    %51 = vector.load %arg2[%c8_59, %c0_60, %c0_61] : memref<9x128x128xbf16, #tpu.memory_space<vmem>>, vector<1x128x128xbf16>
    %52 = vector.shape_cast %51 : vector<1x128x128xbf16> to vector<128x128xbf16>
    %cst_62 = arith.constant dense<0.000000e+00> : vector<16x128xf32>
    %53 = tpu.matmul %50, %52, %cst_62 {dimension_numbers = #tpu.dot_dimension_numbers<[1], [0], [0], [1], [0, 0, 1, 1], [], []>} : vector<16x128xbf16>, vector<128x128xbf16>, vector<16x128xf32> -> vector<16x128xf32>
    %54 = arith.addf %48, %53 : vector<16x128xf32>
    %c0_63 = arith.constant 0 : index
    %c0_64 = arith.constant 0 : index
    %c0_65 = arith.constant 0 : index
    %55 = vector.load %arg5[%c0_63, %c0_64, %c0_65] : memref<1x16x128xbf16, #tpu.memory_space<vmem>>, vector<1x16x128xbf16>
    %56 = vector.shape_cast %55 : vector<1x16x128xbf16> to vector<16x128xbf16>
    %57 = arith.extf %56 : vector<16x128xbf16> to vector<16x128xf32>
    %58 = arith.addf %54, %57 : vector<16x128xf32>
    %c0_66 = arith.constant 0 : index
    %c0_67 = arith.constant 0 : index
    %59 = vector.load %arg3[%c0_66, %c0_67] : memref<1x128xf32, #tpu.memory_space<vmem>>, vector<1x128xf32>
    %60 = vector.broadcast %59 : vector<1x128xf32> to vector<16x128xf32>
    %61 = arith.mulf %58, %60 : vector<16x128xf32>
    %c0_68 = arith.constant 0 : index
    %c0_69 = arith.constant 0 : index
    %62 = vector.load %arg4[%c0_68, %c0_69] : memref<1x128xf32, #tpu.memory_space<vmem>>, vector<1x128xf32>
    %63 = vector.broadcast %62 : vector<1x128xf32> to vector<16x128xf32>
    %64 = arith.addf %61, %63 : vector<16x128xf32>
    %65 = arith.truncf %64 : vector<16x128xf32> to vector<16x128xbf16>
    %c0_70 = arith.constant 0 : index
    %c0_71 = arith.constant 0 : index
    %c0_72 = arith.constant 0 : index
    %66 = vector.load %arg6[%c0_70, %c0_71, %c0_72] : memref<1x16x128xbf16, #tpu.memory_space<vmem>>, vector<1x16x128xbf16>
    %67 = vector.shape_cast %66 : vector<1x16x128xbf16> to vector<16x128xbf16>
    %68 = vector.shape_cast %65 : vector<16x128xbf16> to vector<1x16x128xbf16>
    tpu.vector_store %arg6[%c0_70, %c0_71, %c0_72], %68 {strides = array<i32>} : memref<1x16x128xbf16, #tpu.memory_space<vmem>>, vector<1x16x128xbf16>,
    return
  }
  func.func @transform_0(%arg0: i32) -> (i32, i32, i32, i32) {
    %c0_i32 = arith.constant 0 : i32
    %c0_i32_0 = arith.constant 0 : i32
    %c0_i32_1 = arith.constant 0 : i32
    %c0_i32_2 = arith.constant 0 : i32
    return %arg0, %c0_i32, %c0_i32_0, %c0_i32_1 : i32, i32, i32, i32
  }
  func.func @transform_1(%arg0: i32) -> (i32, i32, i32) {
    %c0_i32 = arith.constant 0 : i32
    %c0_i32_0 = arith.constant 0 : i32
    %c0_i32_1 = arith.constant 0 : i32
    %c0_i32_2 = arith.constant 0 : i32
    return %c0_i32, %c0_i32_0, %c0_i32_1 : i32, i32, i32
  }
  func.func @transform_2(%arg0: i32) -> (i32, i32) {
    %c0_i32 = arith.constant 0 : i32
    %c0_i32_0 = arith.constant 0 : i32
    %c0_i32_1 = arith.constant 0 : i32
    return %c0_i32, %c0_i32_0 : i32, i32
  }
  func.func @transform_3(%arg0: i32) -> (i32, i32) {
    %c0_i32 = arith.constant 0 : i32
    %c0_i32_0 = arith.constant 0 : i32
    %c0_i32_1 = arith.constant 0 : i32
    return %c0_i32, %c0_i32_0 : i32, i32
  }
  func.func @transform_4(%arg0: i32) -> (i32, i32, i32) {
    %c0_i32 = arith.constant 0 : i32
    %c0_i32_0 = arith.constant 0 : i32
    %c0_i32_1 = arith.constant 0 : i32
    return %arg0, %c0_i32, %c0_i32_0 : i32, i32, i32
  }
  func.func @transform_5(%arg0: i32) -> (i32, i32, i32) {
    %c0_i32 = arith.constant 0 : i32
    %c0_i32_0 = arith.constant 0 : i32
    %c0_i32_1 = arith.constant 0 : i32
    return %arg0, %c0_i32, %c0_i32_0 : i32, i32, i32
  }
}

module attributes {stable_mosaic.version = 11 : i64} {
  func.func @_affine_act_kernel(%arg0: i32, %arg1: memref<32x128xbf16, #tpu.memory_space<vmem>>, %arg2: memref<1x128xf32, #tpu.memory_space<vmem>>, %arg3: memref<1x128xf32, #tpu.memory_space<vmem>>, %arg4: memref<32x128xbf16, #tpu.memory_space<vmem>>) attributes {dimension_semantics = [#tpu.dimension_semantics<parallel>], iteration_bounds = array<i64: 1>, scalar_prefetch = 0 : i64, scratch_operands = 0 : i64, tpu.core_type = #tpu.core_type<tc>, window_params = [{transform_indices = @transform_0, window_bounds = array<i64: 32, 128>}, {pipeline_mode = #tpu.pipeline_mode<synchronous>, transform_indices = @transform_1, window_bounds = array<i64: 1, 128>}, {pipeline_mode = #tpu.pipeline_mode<synchronous>, transform_indices = @transform_2, window_bounds = array<i64: 1, 128>}, {transform_indices = @transform_3, window_bounds = array<i64: 32, 128>}]} {
    %c0 = arith.constant 0 : index
    %c0_0 = arith.constant 0 : index
    %0 = vector.load %arg1[%c0, %c0_0] : memref<32x128xbf16, #tpu.memory_space<vmem>>, vector<32x128xbf16>
    %1 = arith.extf %0 : vector<32x128xbf16> to vector<32x128xf32>
    %c0_1 = arith.constant 0 : index
    %c0_2 = arith.constant 0 : index
    %2 = vector.load %arg2[%c0_1, %c0_2] : memref<1x128xf32, #tpu.memory_space<vmem>>, vector<1x128xf32>
    %3 = vector.broadcast %2 : vector<1x128xf32> to vector<32x128xf32>
    %4 = arith.mulf %1, %3 : vector<32x128xf32>
    %c0_3 = arith.constant 0 : index
    %c0_4 = arith.constant 0 : index
    %5 = vector.load %arg3[%c0_3, %c0_4] : memref<1x128xf32, #tpu.memory_space<vmem>>, vector<1x128xf32>
    %6 = vector.broadcast %5 : vector<1x128xf32> to vector<32x128xf32>
    %7 = arith.addf %4, %6 : vector<32x128xf32>
    %cst = arith.constant 0.000000e+00 : f32
    %8 = vector.broadcast %cst : f32 to vector<32x128xf32>
    %9 = arith.cmpf oge, %7, %8 : vector<32x128xf32>
    %cst_5 = arith.constant 1.000000e-01 : f32
    %10 = vector.broadcast %cst_5 : f32 to vector<32x128xf32>
    %11 = arith.mulf %7, %10 : vector<32x128xf32>
    %12 = arith.select %9, %7, %11 : vector<32x128xi1>, vector<32x128xf32>
    %13 = arith.truncf %12 : vector<32x128xf32> to vector<32x128xbf16>
    %c0_6 = arith.constant 0 : index
    %c0_7 = arith.constant 0 : index
    %14 = vector.load %arg4[%c0_6, %c0_7] : memref<32x128xbf16, #tpu.memory_space<vmem>>, vector<32x128xbf16>
    tpu.vector_store %arg4[%c0_6, %c0_7], %13 {strides = array<i32>} : memref<32x128xbf16, #tpu.memory_space<vmem>>, vector<32x128xbf16>,
    return
  }
  func.func @transform_0(%arg0: i32) -> (i32, i32) {
    %c0_i32 = arith.constant 0 : i32
    %c0_i32_0 = arith.constant 0 : i32
    return %arg0, %c0_i32 : i32, i32
  }
  func.func @transform_1(%arg0: i32) -> (i32, i32) {
    %c0_i32 = arith.constant 0 : i32
    %c0_i32_0 = arith.constant 0 : i32
    %c0_i32_1 = arith.constant 0 : i32
    return %c0_i32, %c0_i32_0 : i32, i32
  }
  func.func @transform_2(%arg0: i32) -> (i32, i32) {
    %c0_i32 = arith.constant 0 : i32
    %c0_i32_0 = arith.constant 0 : i32
    %c0_i32_1 = arith.constant 0 : i32
    return %c0_i32, %c0_i32_0 : i32, i32
  }
  func.func @transform_3(%arg0: i32) -> (i32, i32) {
    %c0_i32 = arith.constant 0 : i32
    %c0_i32_0 = arith.constant 0 : i32
    return %arg0, %c0_i32 : i32, i32
  }
}

module attributes {stable_mosaic.version = 11 : i64} {
  func.func @_matmul_kernel(%arg0: i32, %arg1: i32, %arg2: i32, %arg3: memref<32x128xbf16, #tpu.memory_space<vmem>>, %arg4: memref<128x128xbf16, #tpu.memory_space<vmem>>, %arg5: memref<32x128xbf16, #tpu.memory_space<vmem>>, %arg6: memref<32x128xf32, #tpu.memory_space<vmem>>) attributes {dimension_semantics = [#tpu.dimension_semantics<parallel>, #tpu.dimension_semantics<parallel>, #tpu.dimension_semantics<arbitrary>], iteration_bounds = array<i64: 1, 1, 1>, scalar_prefetch = 0 : i64, scratch_operands = 1 : i64, tpu.core_type = #tpu.core_type<tc>, window_params = [{transform_indices = @transform_0, window_bounds = array<i64: 32, 128>}, {transform_indices = @transform_1, window_bounds = array<i64: 128, 128>}, {transform_indices = @transform_2, window_bounds = array<i64: 32, 128>}]} {
    %c0_i32 = arith.constant 0 : i32
    %0 = arith.cmpi eq, %arg2, %c0_i32 : i32
    %1 = arith.extui %0 : i1 to i32
    %c0_i32_0 = arith.constant 0 : i32
    %2 = arith.cmpi ne, %1, %c0_i32_0 : i32
    scf.if %2 {
      %cst_10 = arith.constant 0.000000e+00 : f32
      %12 = vector.broadcast %cst_10 : f32 to vector<32x128xf32>
      %c0_11 = arith.constant 0 : index
      %c0_12 = arith.constant 0 : index
      %13 = vector.load %arg6[%c0_11, %c0_12] : memref<32x128xf32, #tpu.memory_space<vmem>>, vector<32x128xf32>
      tpu.vector_store %arg6[%c0_11, %c0_12], %12 {strides = array<i32>} : memref<32x128xf32, #tpu.memory_space<vmem>>, vector<32x128xf32>,
    } else {
    }
    %c0 = arith.constant 0 : index
    %c0_1 = arith.constant 0 : index
    %3 = vector.load %arg6[%c0, %c0_1] : memref<32x128xf32, #tpu.memory_space<vmem>>, vector<32x128xf32>
    %c0_2 = arith.constant 0 : index
    %c0_3 = arith.constant 0 : index
    %4 = vector.load %arg3[%c0_2, %c0_3] : memref<32x128xbf16, #tpu.memory_space<vmem>>, vector<32x128xbf16>
    %c0_4 = arith.constant 0 : index
    %c0_5 = arith.constant 0 : index
    %5 = vector.load %arg4[%c0_4, %c0_5] : memref<128x128xbf16, #tpu.memory_space<vmem>>, vector<128x128xbf16>
    %cst = arith.constant dense<0.000000e+00> : vector<32x128xf32>
    %6 = tpu.matmul %4, %5, %cst {dimension_numbers = #tpu.dot_dimension_numbers<[1], [0], [0], [1], [0, 0, 1, 1], [], []>} : vector<32x128xbf16>, vector<128x128xbf16>, vector<32x128xf32> -> vector<32x128xf32>
    %7 = arith.addf %3, %6 : vector<32x128xf32>
    %c0_6 = arith.constant 0 : index
    %c0_7 = arith.constant 0 : index
    %8 = vector.load %arg6[%c0_6, %c0_7] : memref<32x128xf32, #tpu.memory_space<vmem>>, vector<32x128xf32>
    tpu.vector_store %arg6[%c0_6, %c0_7], %7 {strides = array<i32>} : memref<32x128xf32, #tpu.memory_space<vmem>>, vector<32x128xf32>,
    %c0_i32_8 = arith.constant 0 : i32
    %9 = arith.cmpi eq, %arg2, %c0_i32_8 : i32
    %10 = arith.extui %9 : i1 to i32
    %c0_i32_9 = arith.constant 0 : i32
    %11 = arith.cmpi ne, %10, %c0_i32_9 : i32
    scf.if %11 {
      %c0_10 = arith.constant 0 : index
      %c0_11 = arith.constant 0 : index
      %12 = vector.load %arg6[%c0_10, %c0_11] : memref<32x128xf32, #tpu.memory_space<vmem>>, vector<32x128xf32>
      %13 = arith.truncf %12 : vector<32x128xf32> to vector<32x128xbf16>
      %c0_12 = arith.constant 0 : index
      %c0_13 = arith.constant 0 : index
      %14 = vector.load %arg5[%c0_12, %c0_13] : memref<32x128xbf16, #tpu.memory_space<vmem>>, vector<32x128xbf16>
      tpu.vector_store %arg5[%c0_12, %c0_13], %13 {strides = array<i32>} : memref<32x128xbf16, #tpu.memory_space<vmem>>, vector<32x128xbf16>,
    } else {
    }
    return
  }
  func.func @transform_0(%arg0: i32, %arg1: i32, %arg2: i32) -> (i32, i32) {
    %c0_i32 = arith.constant 0 : i32
    return %arg0, %arg2 : i32, i32
  }
  func.func @transform_1(%arg0: i32, %arg1: i32, %arg2: i32) -> (i32, i32) {
    %c0_i32 = arith.constant 0 : i32
    return %arg2, %arg1 : i32, i32
  }
  func.func @transform_2(%arg0: i32, %arg1: i32, %arg2: i32) -> (i32, i32) {
    %c0_i32 = arith.constant 0 : i32
    return %arg0, %arg1 : i32, i32
  }
}

module attributes {stable_mosaic.version = 11 : i64} {
  func.func @_conv3x3_kernel(%arg0: i32, %arg1: memref<1x3x24x128xbf16, #tpu.memory_space<vmem>>, %arg2: memref<9x128x128xbf16, #tpu.memory_space<vmem>>, %arg3: memref<1x128xf32, #tpu.memory_space<vmem>>, %arg4: memref<1x128xf32, #tpu.memory_space<vmem>>, %arg5: memref<1x16x128xbf16, #tpu.memory_space<vmem>>) attributes {dimension_semantics = [#tpu.dimension_semantics<parallel>], iteration_bounds = array<i64: 2>, scalar_prefetch = 0 : i64, scratch_operands = 0 : i64, tpu.core_type = #tpu.core_type<tc>, window_params = [{transform_indices = @transform_0, window_bounds = array<i64: 1, 3, 24, 128>}, {pipeline_mode = #tpu.pipeline_mode<synchronous>, transform_indices = @transform_1, window_bounds = array<i64: 9, 128, 128>}, {pipeline_mode = #tpu.pipeline_mode<synchronous>, transform_indices = @transform_2, window_bounds = array<i64: 1, 128>}, {pipeline_mode = #tpu.pipeline_mode<synchronous>, transform_indices = @transform_3, window_bounds = array<i64: 1, 128>}, {transform_indices = @transform_4, window_bounds = array<i64: 1, 16, 128>}]} {
    %cst = arith.constant 0.000000e+00 : f32
    %0 = vector.broadcast %cst : f32 to vector<16x128xf32>
    %c0 = arith.constant 0 : index
    %c0_0 = arith.constant 0 : index
    %c0_1 = arith.constant 0 : index
    %c0_2 = arith.constant 0 : index
    %1 = vector.load %arg1[%c0, %c0_0, %c0_1, %c0_2] : memref<1x3x24x128xbf16, #tpu.memory_space<vmem>>, vector<1x1x16x128xbf16>
    %2 = vector.shape_cast %1 : vector<1x1x16x128xbf16> to vector<16x128xbf16>
    %c0_3 = arith.constant 0 : index
    %c0_4 = arith.constant 0 : index
    %c0_5 = arith.constant 0 : index
    %3 = vector.load %arg2[%c0_3, %c0_4, %c0_5] : memref<9x128x128xbf16, #tpu.memory_space<vmem>>, vector<1x128x128xbf16>
    %4 = vector.shape_cast %3 : vector<1x128x128xbf16> to vector<128x128xbf16>
    %cst_6 = arith.constant dense<0.000000e+00> : vector<16x128xf32>
    %5 = tpu.matmul %2, %4, %cst_6 {dimension_numbers = #tpu.dot_dimension_numbers<[1], [0], [0], [1], [0, 0, 1, 1], [], []>} : vector<16x128xbf16>, vector<128x128xbf16>, vector<16x128xf32> -> vector<16x128xf32>
    %6 = arith.addf %0, %5 : vector<16x128xf32>
    %c0_7 = arith.constant 0 : index
    %c1 = arith.constant 1 : index
    %c0_8 = arith.constant 0 : index
    %c0_9 = arith.constant 0 : index
    %7 = vector.load %arg1[%c0_7, %c1, %c0_8, %c0_9] : memref<1x3x24x128xbf16, #tpu.memory_space<vmem>>, vector<1x1x16x128xbf16>
    %8 = vector.shape_cast %7 : vector<1x1x16x128xbf16> to vector<16x128xbf16>
    %c1_10 = arith.constant 1 : index
    %c0_11 = arith.constant 0 : index
    %c0_12 = arith.constant 0 : index
    %9 = vector.load %arg2[%c1_10, %c0_11, %c0_12] : memref<9x128x128xbf16, #tpu.memory_space<vmem>>, vector<1x128x128xbf16>
    %10 = vector.shape_cast %9 : vector<1x128x128xbf16> to vector<128x128xbf16>
    %cst_13 = arith.constant dense<0.000000e+00> : vector<16x128xf32>
    %11 = tpu.matmul %8, %10, %cst_13 {dimension_numbers = #tpu.dot_dimension_numbers<[1], [0], [0], [1], [0, 0, 1, 1], [], []>} : vector<16x128xbf16>, vector<128x128xbf16>, vector<16x128xf32> -> vector<16x128xf32>
    %12 = arith.addf %6, %11 : vector<16x128xf32>
    %c0_14 = arith.constant 0 : index
    %c2 = arith.constant 2 : index
    %c0_15 = arith.constant 0 : index
    %c0_16 = arith.constant 0 : index
    %13 = vector.load %arg1[%c0_14, %c2, %c0_15, %c0_16] : memref<1x3x24x128xbf16, #tpu.memory_space<vmem>>, vector<1x1x16x128xbf16>
    %14 = vector.shape_cast %13 : vector<1x1x16x128xbf16> to vector<16x128xbf16>
    %c2_17 = arith.constant 2 : index
    %c0_18 = arith.constant 0 : index
    %c0_19 = arith.constant 0 : index
    %15 = vector.load %arg2[%c2_17, %c0_18, %c0_19] : memref<9x128x128xbf16, #tpu.memory_space<vmem>>, vector<1x128x128xbf16>
    %16 = vector.shape_cast %15 : vector<1x128x128xbf16> to vector<128x128xbf16>
    %cst_20 = arith.constant dense<0.000000e+00> : vector<16x128xf32>
    %17 = tpu.matmul %14, %16, %cst_20 {dimension_numbers = #tpu.dot_dimension_numbers<[1], [0], [0], [1], [0, 0, 1, 1], [], []>} : vector<16x128xbf16>, vector<128x128xbf16>, vector<16x128xf32> -> vector<16x128xf32>
    %18 = arith.addf %12, %17 : vector<16x128xf32>
    %c0_21 = arith.constant 0 : index
    %c0_22 = arith.constant 0 : index
    %c4 = arith.constant 4 : index
    %c0_23 = arith.constant 0 : index
    %19 = vector.load %arg1[%c0_21, %c0_22, %c4, %c0_23] : memref<1x3x24x128xbf16, #tpu.memory_space<vmem>>, vector<1x1x16x128xbf16>
    %20 = vector.shape_cast %19 : vector<1x1x16x128xbf16> to vector<16x128xbf16>
    %c3 = arith.constant 3 : index
    %c0_24 = arith.constant 0 : index
    %c0_25 = arith.constant 0 : index
    %21 = vector.load %arg2[%c3, %c0_24, %c0_25] : memref<9x128x128xbf16, #tpu.memory_space<vmem>>, vector<1x128x128xbf16>
    %22 = vector.shape_cast %21 : vector<1x128x128xbf16> to vector<128x128xbf16>
    %cst_26 = arith.constant dense<0.000000e+00> : vector<16x128xf32>
    %23 = tpu.matmul %20, %22, %cst_26 {dimension_numbers = #tpu.dot_dimension_numbers<[1], [0], [0], [1], [0, 0, 1, 1], [], []>} : vector<16x128xbf16>, vector<128x128xbf16>, vector<16x128xf32> -> vector<16x128xf32>
    %24 = arith.addf %18, %23 : vector<16x128xf32>
    %c0_27 = arith.constant 0 : index
    %c1_28 = arith.constant 1 : index
    %c4_29 = arith.constant 4 : index
    %c0_30 = arith.constant 0 : index
    %25 = vector.load %arg1[%c0_27, %c1_28, %c4_29, %c0_30] : memref<1x3x24x128xbf16, #tpu.memory_space<vmem>>, vector<1x1x16x128xbf16>
    %26 = vector.shape_cast %25 : vector<1x1x16x128xbf16> to vector<16x128xbf16>
    %c4_31 = arith.constant 4 : index
    %c0_32 = arith.constant 0 : index
    %c0_33 = arith.constant 0 : index
    %27 = vector.load %arg2[%c4_31, %c0_32, %c0_33] : memref<9x128x128xbf16, #tpu.memory_space<vmem>>, vector<1x128x128xbf16>
    %28 = vector.shape_cast %27 : vector<1x128x128xbf16> to vector<128x128xbf16>
    %cst_34 = arith.constant dense<0.000000e+00> : vector<16x128xf32>
    %29 = tpu.matmul %26, %28, %cst_34 {dimension_numbers = #tpu.dot_dimension_numbers<[1], [0], [0], [1], [0, 0, 1, 1], [], []>} : vector<16x128xbf16>, vector<128x128xbf16>, vector<16x128xf32> -> vector<16x128xf32>
    %30 = arith.addf %24, %29 : vector<16x128xf32>
    %c0_35 = arith.constant 0 : index
    %c2_36 = arith.constant 2 : index
    %c4_37 = arith.constant 4 : index
    %c0_38 = arith.constant 0 : index
    %31 = vector.load %arg1[%c0_35, %c2_36, %c4_37, %c0_38] : memref<1x3x24x128xbf16, #tpu.memory_space<vmem>>, vector<1x1x16x128xbf16>
    %32 = vector.shape_cast %31 : vector<1x1x16x128xbf16> to vector<16x128xbf16>
    %c5 = arith.constant 5 : index
    %c0_39 = arith.constant 0 : index
    %c0_40 = arith.constant 0 : index
    %33 = vector.load %arg2[%c5, %c0_39, %c0_40] : memref<9x128x128xbf16, #tpu.memory_space<vmem>>, vector<1x128x128xbf16>
    %34 = vector.shape_cast %33 : vector<1x128x128xbf16> to vector<128x128xbf16>
    %cst_41 = arith.constant dense<0.000000e+00> : vector<16x128xf32>
    %35 = tpu.matmul %32, %34, %cst_41 {dimension_numbers = #tpu.dot_dimension_numbers<[1], [0], [0], [1], [0, 0, 1, 1], [], []>} : vector<16x128xbf16>, vector<128x128xbf16>, vector<16x128xf32> -> vector<16x128xf32>
    %36 = arith.addf %30, %35 : vector<16x128xf32>
    %c0_42 = arith.constant 0 : index
    %c0_43 = arith.constant 0 : index
    %c8 = arith.constant 8 : index
    %c0_44 = arith.constant 0 : index
    %37 = vector.load %arg1[%c0_42, %c0_43, %c8, %c0_44] : memref<1x3x24x128xbf16, #tpu.memory_space<vmem>>, vector<1x1x16x128xbf16>
    %38 = vector.shape_cast %37 : vector<1x1x16x128xbf16> to vector<16x128xbf16>
    %c6 = arith.constant 6 : index
    %c0_45 = arith.constant 0 : index
    %c0_46 = arith.constant 0 : index
    %39 = vector.load %arg2[%c6, %c0_45, %c0_46] : memref<9x128x128xbf16, #tpu.memory_space<vmem>>, vector<1x128x128xbf16>
    %40 = vector.shape_cast %39 : vector<1x128x128xbf16> to vector<128x128xbf16>
    %cst_47 = arith.constant dense<0.000000e+00> : vector<16x128xf32>
    %41 = tpu.matmul %38, %40, %cst_47 {dimension_numbers = #tpu.dot_dimension_numbers<[1], [0], [0], [1], [0, 0, 1, 1], [], []>} : vector<16x128xbf16>, vector<128x128xbf16>, vector<16x128xf32> -> vector<16x128xf32>
    %42 = arith.addf %36, %41 : vector<16x128xf32>
    %c0_48 = arith.constant 0 : index
    %c1_49 = arith.constant 1 : index
    %c8_50 = arith.constant 8 : index
    %c0_51 = arith.constant 0 : index
    %43 = vector.load %arg1[%c0_48, %c1_49, %c8_50, %c0_51] : memref<1x3x24x128xbf16, #tpu.memory_space<vmem>>, vector<1x1x16x128xbf16>
    %44 = vector.shape_cast %43 : vector<1x1x16x128xbf16> to vector<16x128xbf16>
    %c7 = arith.constant 7 : index
    %c0_52 = arith.constant 0 : index
    %c0_53 = arith.constant 0 : index
    %45 = vector.load %arg2[%c7, %c0_52, %c0_53] : memref<9x128x128xbf16, #tpu.memory_space<vmem>>, vector<1x128x128xbf16>
    %46 = vector.shape_cast %45 : vector<1x128x128xbf16> to vector<128x128xbf16>
    %cst_54 = arith.constant dense<0.000000e+00> : vector<16x128xf32>
    %47 = tpu.matmul %44, %46, %cst_54 {dimension_numbers = #tpu.dot_dimension_numbers<[1], [0], [0], [1], [0, 0, 1, 1], [], []>} : vector<16x128xbf16>, vector<128x128xbf16>, vector<16x128xf32> -> vector<16x128xf32>
    %48 = arith.addf %42, %47 : vector<16x128xf32>
    %c0_55 = arith.constant 0 : index
    %c2_56 = arith.constant 2 : index
    %c8_57 = arith.constant 8 : index
    %c0_58 = arith.constant 0 : index
    %49 = vector.load %arg1[%c0_55, %c2_56, %c8_57, %c0_58] : memref<1x3x24x128xbf16, #tpu.memory_space<vmem>>, vector<1x1x16x128xbf16>
    %50 = vector.shape_cast %49 : vector<1x1x16x128xbf16> to vector<16x128xbf16>
    %c8_59 = arith.constant 8 : index
    %c0_60 = arith.constant 0 : index
    %c0_61 = arith.constant 0 : index
    %51 = vector.load %arg2[%c8_59, %c0_60, %c0_61] : memref<9x128x128xbf16, #tpu.memory_space<vmem>>, vector<1x128x128xbf16>
    %52 = vector.shape_cast %51 : vector<1x128x128xbf16> to vector<128x128xbf16>
    %cst_62 = arith.constant dense<0.000000e+00> : vector<16x128xf32>
    %53 = tpu.matmul %50, %52, %cst_62 {dimension_numbers = #tpu.dot_dimension_numbers<[1], [0], [0], [1], [0, 0, 1, 1], [], []>} : vector<16x128xbf16>, vector<128x128xbf16>, vector<16x128xf32> -> vector<16x128xf32>
    %54 = arith.addf %48, %53 : vector<16x128xf32>
    %c0_63 = arith.constant 0 : index
    %c0_64 = arith.constant 0 : index
    %55 = vector.load %arg3[%c0_63, %c0_64] : memref<1x128xf32, #tpu.memory_space<vmem>>, vector<1x128xf32>
    %56 = vector.broadcast %55 : vector<1x128xf32> to vector<16x128xf32>
    %57 = arith.mulf %54, %56 : vector<16x128xf32>
    %c0_65 = arith.constant 0 : index
    %c0_66 = arith.constant 0 : index
    %58 = vector.load %arg4[%c0_65, %c0_66] : memref<1x128xf32, #tpu.memory_space<vmem>>, vector<1x128xf32>
    %59 = vector.broadcast %58 : vector<1x128xf32> to vector<16x128xf32>
    %60 = arith.addf %57, %59 : vector<16x128xf32>
    %cst_67 = arith.constant 0.000000e+00 : f32
    %61 = vector.broadcast %cst_67 : f32 to vector<16x128xf32>
    %62 = arith.cmpf oge, %60, %61 : vector<16x128xf32>
    %cst_68 = arith.constant 1.000000e-01 : f32
    %63 = vector.broadcast %cst_68 : f32 to vector<16x128xf32>
    %64 = arith.mulf %60, %63 : vector<16x128xf32>
    %65 = arith.select %62, %60, %64 : vector<16x128xi1>, vector<16x128xf32>
    %66 = arith.truncf %65 : vector<16x128xf32> to vector<16x128xbf16>
    %c0_69 = arith.constant 0 : index
    %c0_70 = arith.constant 0 : index
    %c0_71 = arith.constant 0 : index
    %67 = vector.load %arg5[%c0_69, %c0_70, %c0_71] : memref<1x16x128xbf16, #tpu.memory_space<vmem>>, vector<1x16x128xbf16>
    %68 = vector.shape_cast %67 : vector<1x16x128xbf16> to vector<16x128xbf16>
    %69 = vector.shape_cast %66 : vector<16x128xbf16> to vector<1x16x128xbf16>
    tpu.vector_store %arg5[%c0_69, %c0_70, %c0_71], %69 {strides = array<i32>} : memref<1x16x128xbf16, #tpu.memory_space<vmem>>, vector<1x16x128xbf16>,
    return
  }
  func.func @transform_0(%arg0: i32) -> (i32, i32, i32, i32) {
    %c0_i32 = arith.constant 0 : i32
    %c0_i32_0 = arith.constant 0 : i32
    %c0_i32_1 = arith.constant 0 : i32
    %c0_i32_2 = arith.constant 0 : i32
    return %arg0, %c0_i32, %c0_i32_0, %c0_i32_1 : i32, i32, i32, i32
  }
  func.func @transform_1(%arg0: i32) -> (i32, i32, i32) {
    %c0_i32 = arith.constant 0 : i32
    %c0_i32_0 = arith.constant 0 : i32
    %c0_i32_1 = arith.constant 0 : i32
    %c0_i32_2 = arith.constant 0 : i32
    return %c0_i32, %c0_i32_0, %c0_i32_1 : i32, i32, i32
  }
  func.func @transform_2(%arg0: i32) -> (i32, i32) {
    %c0_i32 = arith.constant 0 : i32
    %c0_i32_0 = arith.constant 0 : i32
    %c0_i32_1 = arith.constant 0 : i32
    return %c0_i32, %c0_i32_0 : i32, i32
  }
  func.func @transform_3(%arg0: i32) -> (i32, i32) {
    %c0_i32 = arith.constant 0 : i32
    %c0_i32_0 = arith.constant 0 : i32
    %c0_i32_1 = arith.constant 0 : i32
    return %c0_i32, %c0_i32_0 : i32, i32
  }
  func.func @transform_4(%arg0: i32) -> (i32, i32, i32) {
    %c0_i32 = arith.constant 0 : i32
    %c0_i32_0 = arith.constant 0 : i32
    %c0_i32_1 = arith.constant 0 : i32
    return %arg0, %c0_i32, %c0_i32_0 : i32, i32, i32
  }
}

module attributes {stable_mosaic.version = 11 : i64} {
  func.func @_conv3x3_kernel(%arg0: i32, %arg1: memref<1x3x24x128xbf16, #tpu.memory_space<vmem>>, %arg2: memref<9x128x128xbf16, #tpu.memory_space<vmem>>, %arg3: memref<1x128xf32, #tpu.memory_space<vmem>>, %arg4: memref<1x128xf32, #tpu.memory_space<vmem>>, %arg5: memref<1x16x128xbf16, #tpu.memory_space<vmem>>, %arg6: memref<1x16x128xbf16, #tpu.memory_space<vmem>>) attributes {dimension_semantics = [#tpu.dimension_semantics<parallel>], iteration_bounds = array<i64: 2>, scalar_prefetch = 0 : i64, scratch_operands = 0 : i64, tpu.core_type = #tpu.core_type<tc>, window_params = [{transform_indices = @transform_0, window_bounds = array<i64: 1, 3, 24, 128>}, {pipeline_mode = #tpu.pipeline_mode<synchronous>, transform_indices = @transform_1, window_bounds = array<i64: 9, 128, 128>}, {pipeline_mode = #tpu.pipeline_mode<synchronous>, transform_indices = @transform_2, window_bounds = array<i64: 1, 128>}, {pipeline_mode = #tpu.pipeline_mode<synchronous>, transform_indices = @transform_3, window_bounds = array<i64: 1, 128>}, {transform_indices = @transform_4, window_bounds = array<i64: 1, 16, 128>}, {transform_indices = @transform_5, window_bounds = array<i64: 1, 16, 128>}]} {
    %cst = arith.constant 0.000000e+00 : f32
    %0 = vector.broadcast %cst : f32 to vector<16x128xf32>
    %c0 = arith.constant 0 : index
    %c0_0 = arith.constant 0 : index
    %c0_1 = arith.constant 0 : index
    %c0_2 = arith.constant 0 : index
    %1 = vector.load %arg1[%c0, %c0_0, %c0_1, %c0_2] : memref<1x3x24x128xbf16, #tpu.memory_space<vmem>>, vector<1x1x16x128xbf16>
    %2 = vector.shape_cast %1 : vector<1x1x16x128xbf16> to vector<16x128xbf16>
    %c0_3 = arith.constant 0 : index
    %c0_4 = arith.constant 0 : index
    %c0_5 = arith.constant 0 : index
    %3 = vector.load %arg2[%c0_3, %c0_4, %c0_5] : memref<9x128x128xbf16, #tpu.memory_space<vmem>>, vector<1x128x128xbf16>
    %4 = vector.shape_cast %3 : vector<1x128x128xbf16> to vector<128x128xbf16>
    %cst_6 = arith.constant dense<0.000000e+00> : vector<16x128xf32>
    %5 = tpu.matmul %2, %4, %cst_6 {dimension_numbers = #tpu.dot_dimension_numbers<[1], [0], [0], [1], [0, 0, 1, 1], [], []>} : vector<16x128xbf16>, vector<128x128xbf16>, vector<16x128xf32> -> vector<16x128xf32>
    %6 = arith.addf %0, %5 : vector<16x128xf32>
    %c0_7 = arith.constant 0 : index
    %c1 = arith.constant 1 : index
    %c0_8 = arith.constant 0 : index
    %c0_9 = arith.constant 0 : index
    %7 = vector.load %arg1[%c0_7, %c1, %c0_8, %c0_9] : memref<1x3x24x128xbf16, #tpu.memory_space<vmem>>, vector<1x1x16x128xbf16>
    %8 = vector.shape_cast %7 : vector<1x1x16x128xbf16> to vector<16x128xbf16>
    %c1_10 = arith.constant 1 : index
    %c0_11 = arith.constant 0 : index
    %c0_12 = arith.constant 0 : index
    %9 = vector.load %arg2[%c1_10, %c0_11, %c0_12] : memref<9x128x128xbf16, #tpu.memory_space<vmem>>, vector<1x128x128xbf16>
    %10 = vector.shape_cast %9 : vector<1x128x128xbf16> to vector<128x128xbf16>
    %cst_13 = arith.constant dense<0.000000e+00> : vector<16x128xf32>
    %11 = tpu.matmul %8, %10, %cst_13 {dimension_numbers = #tpu.dot_dimension_numbers<[1], [0], [0], [1], [0, 0, 1, 1], [], []>} : vector<16x128xbf16>, vector<128x128xbf16>, vector<16x128xf32> -> vector<16x128xf32>
    %12 = arith.addf %6, %11 : vector<16x128xf32>
    %c0_14 = arith.constant 0 : index
    %c2 = arith.constant 2 : index
    %c0_15 = arith.constant 0 : index
    %c0_16 = arith.constant 0 : index
    %13 = vector.load %arg1[%c0_14, %c2, %c0_15, %c0_16] : memref<1x3x24x128xbf16, #tpu.memory_space<vmem>>, vector<1x1x16x128xbf16>
    %14 = vector.shape_cast %13 : vector<1x1x16x128xbf16> to vector<16x128xbf16>
    %c2_17 = arith.constant 2 : index
    %c0_18 = arith.constant 0 : index
    %c0_19 = arith.constant 0 : index
    %15 = vector.load %arg2[%c2_17, %c0_18, %c0_19] : memref<9x128x128xbf16, #tpu.memory_space<vmem>>, vector<1x128x128xbf16>
    %16 = vector.shape_cast %15 : vector<1x128x128xbf16> to vector<128x128xbf16>
    %cst_20 = arith.constant dense<0.000000e+00> : vector<16x128xf32>
    %17 = tpu.matmul %14, %16, %cst_20 {dimension_numbers = #tpu.dot_dimension_numbers<[1], [0], [0], [1], [0, 0, 1, 1], [], []>} : vector<16x128xbf16>, vector<128x128xbf16>, vector<16x128xf32> -> vector<16x128xf32>
    %18 = arith.addf %12, %17 : vector<16x128xf32>
    %c0_21 = arith.constant 0 : index
    %c0_22 = arith.constant 0 : index
    %c4 = arith.constant 4 : index
    %c0_23 = arith.constant 0 : index
    %19 = vector.load %arg1[%c0_21, %c0_22, %c4, %c0_23] : memref<1x3x24x128xbf16, #tpu.memory_space<vmem>>, vector<1x1x16x128xbf16>
    %20 = vector.shape_cast %19 : vector<1x1x16x128xbf16> to vector<16x128xbf16>
    %c3 = arith.constant 3 : index
    %c0_24 = arith.constant 0 : index
    %c0_25 = arith.constant 0 : index
    %21 = vector.load %arg2[%c3, %c0_24, %c0_25] : memref<9x128x128xbf16, #tpu.memory_space<vmem>>, vector<1x128x128xbf16>
    %22 = vector.shape_cast %21 : vector<1x128x128xbf16> to vector<128x128xbf16>
    %cst_26 = arith.constant dense<0.000000e+00> : vector<16x128xf32>
    %23 = tpu.matmul %20, %22, %cst_26 {dimension_numbers = #tpu.dot_dimension_numbers<[1], [0], [0], [1], [0, 0, 1, 1], [], []>} : vector<16x128xbf16>, vector<128x128xbf16>, vector<16x128xf32> -> vector<16x128xf32>
    %24 = arith.addf %18, %23 : vector<16x128xf32>
    %c0_27 = arith.constant 0 : index
    %c1_28 = arith.constant 1 : index
    %c4_29 = arith.constant 4 : index
    %c0_30 = arith.constant 0 : index
    %25 = vector.load %arg1[%c0_27, %c1_28, %c4_29, %c0_30] : memref<1x3x24x128xbf16, #tpu.memory_space<vmem>>, vector<1x1x16x128xbf16>
    %26 = vector.shape_cast %25 : vector<1x1x16x128xbf16> to vector<16x128xbf16>
    %c4_31 = arith.constant 4 : index
    %c0_32 = arith.constant 0 : index
    %c0_33 = arith.constant 0 : index
    %27 = vector.load %arg2[%c4_31, %c0_32, %c0_33] : memref<9x128x128xbf16, #tpu.memory_space<vmem>>, vector<1x128x128xbf16>
    %28 = vector.shape_cast %27 : vector<1x128x128xbf16> to vector<128x128xbf16>
    %cst_34 = arith.constant dense<0.000000e+00> : vector<16x128xf32>
    %29 = tpu.matmul %26, %28, %cst_34 {dimension_numbers = #tpu.dot_dimension_numbers<[1], [0], [0], [1], [0, 0, 1, 1], [], []>} : vector<16x128xbf16>, vector<128x128xbf16>, vector<16x128xf32> -> vector<16x128xf32>
    %30 = arith.addf %24, %29 : vector<16x128xf32>
    %c0_35 = arith.constant 0 : index
    %c2_36 = arith.constant 2 : index
    %c4_37 = arith.constant 4 : index
    %c0_38 = arith.constant 0 : index
    %31 = vector.load %arg1[%c0_35, %c2_36, %c4_37, %c0_38] : memref<1x3x24x128xbf16, #tpu.memory_space<vmem>>, vector<1x1x16x128xbf16>
    %32 = vector.shape_cast %31 : vector<1x1x16x128xbf16> to vector<16x128xbf16>
    %c5 = arith.constant 5 : index
    %c0_39 = arith.constant 0 : index
    %c0_40 = arith.constant 0 : index
    %33 = vector.load %arg2[%c5, %c0_39, %c0_40] : memref<9x128x128xbf16, #tpu.memory_space<vmem>>, vector<1x128x128xbf16>
    %34 = vector.shape_cast %33 : vector<1x128x128xbf16> to vector<128x128xbf16>
    %cst_41 = arith.constant dense<0.000000e+00> : vector<16x128xf32>
    %35 = tpu.matmul %32, %34, %cst_41 {dimension_numbers = #tpu.dot_dimension_numbers<[1], [0], [0], [1], [0, 0, 1, 1], [], []>} : vector<16x128xbf16>, vector<128x128xbf16>, vector<16x128xf32> -> vector<16x128xf32>
    %36 = arith.addf %30, %35 : vector<16x128xf32>
    %c0_42 = arith.constant 0 : index
    %c0_43 = arith.constant 0 : index
    %c8 = arith.constant 8 : index
    %c0_44 = arith.constant 0 : index
    %37 = vector.load %arg1[%c0_42, %c0_43, %c8, %c0_44] : memref<1x3x24x128xbf16, #tpu.memory_space<vmem>>, vector<1x1x16x128xbf16>
    %38 = vector.shape_cast %37 : vector<1x1x16x128xbf16> to vector<16x128xbf16>
    %c6 = arith.constant 6 : index
    %c0_45 = arith.constant 0 : index
    %c0_46 = arith.constant 0 : index
    %39 = vector.load %arg2[%c6, %c0_45, %c0_46] : memref<9x128x128xbf16, #tpu.memory_space<vmem>>, vector<1x128x128xbf16>
    %40 = vector.shape_cast %39 : vector<1x128x128xbf16> to vector<128x128xbf16>
    %cst_47 = arith.constant dense<0.000000e+00> : vector<16x128xf32>
    %41 = tpu.matmul %38, %40, %cst_47 {dimension_numbers = #tpu.dot_dimension_numbers<[1], [0], [0], [1], [0, 0, 1, 1], [], []>} : vector<16x128xbf16>, vector<128x128xbf16>, vector<16x128xf32> -> vector<16x128xf32>
    %42 = arith.addf %36, %41 : vector<16x128xf32>
    %c0_48 = arith.constant 0 : index
    %c1_49 = arith.constant 1 : index
    %c8_50 = arith.constant 8 : index
    %c0_51 = arith.constant 0 : index
    %43 = vector.load %arg1[%c0_48, %c1_49, %c8_50, %c0_51] : memref<1x3x24x128xbf16, #tpu.memory_space<vmem>>, vector<1x1x16x128xbf16>
    %44 = vector.shape_cast %43 : vector<1x1x16x128xbf16> to vector<16x128xbf16>
    %c7 = arith.constant 7 : index
    %c0_52 = arith.constant 0 : index
    %c0_53 = arith.constant 0 : index
    %45 = vector.load %arg2[%c7, %c0_52, %c0_53] : memref<9x128x128xbf16, #tpu.memory_space<vmem>>, vector<1x128x128xbf16>
    %46 = vector.shape_cast %45 : vector<1x128x128xbf16> to vector<128x128xbf16>
    %cst_54 = arith.constant dense<0.000000e+00> : vector<16x128xf32>
    %47 = tpu.matmul %44, %46, %cst_54 {dimension_numbers = #tpu.dot_dimension_numbers<[1], [0], [0], [1], [0, 0, 1, 1], [], []>} : vector<16x128xbf16>, vector<128x128xbf16>, vector<16x128xf32> -> vector<16x128xf32>
    %48 = arith.addf %42, %47 : vector<16x128xf32>
    %c0_55 = arith.constant 0 : index
    %c2_56 = arith.constant 2 : index
    %c8_57 = arith.constant 8 : index
    %c0_58 = arith.constant 0 : index
    %49 = vector.load %arg1[%c0_55, %c2_56, %c8_57, %c0_58] : memref<1x3x24x128xbf16, #tpu.memory_space<vmem>>, vector<1x1x16x128xbf16>
    %50 = vector.shape_cast %49 : vector<1x1x16x128xbf16> to vector<16x128xbf16>
    %c8_59 = arith.constant 8 : index
    %c0_60 = arith.constant 0 : index
    %c0_61 = arith.constant 0 : index
    %51 = vector.load %arg2[%c8_59, %c0_60, %c0_61] : memref<9x128x128xbf16, #tpu.memory_space<vmem>>, vector<1x128x128xbf16>
    %52 = vector.shape_cast %51 : vector<1x128x128xbf16> to vector<128x128xbf16>
    %cst_62 = arith.constant dense<0.000000e+00> : vector<16x128xf32>
    %53 = tpu.matmul %50, %52, %cst_62 {dimension_numbers = #tpu.dot_dimension_numbers<[1], [0], [0], [1], [0, 0, 1, 1], [], []>} : vector<16x128xbf16>, vector<128x128xbf16>, vector<16x128xf32> -> vector<16x128xf32>
    %54 = arith.addf %48, %53 : vector<16x128xf32>
    %c0_63 = arith.constant 0 : index
    %c0_64 = arith.constant 0 : index
    %c0_65 = arith.constant 0 : index
    %55 = vector.load %arg5[%c0_63, %c0_64, %c0_65] : memref<1x16x128xbf16, #tpu.memory_space<vmem>>, vector<1x16x128xbf16>
    %56 = vector.shape_cast %55 : vector<1x16x128xbf16> to vector<16x128xbf16>
    %57 = arith.extf %56 : vector<16x128xbf16> to vector<16x128xf32>
    %58 = arith.addf %54, %57 : vector<16x128xf32>
    %c0_66 = arith.constant 0 : index
    %c0_67 = arith.constant 0 : index
    %59 = vector.load %arg3[%c0_66, %c0_67] : memref<1x128xf32, #tpu.memory_space<vmem>>, vector<1x128xf32>
    %60 = vector.broadcast %59 : vector<1x128xf32> to vector<16x128xf32>
    %61 = arith.mulf %58, %60 : vector<16x128xf32>
    %c0_68 = arith.constant 0 : index
    %c0_69 = arith.constant 0 : index
    %62 = vector.load %arg4[%c0_68, %c0_69] : memref<1x128xf32, #tpu.memory_space<vmem>>, vector<1x128xf32>
    %63 = vector.broadcast %62 : vector<1x128xf32> to vector<16x128xf32>
    %64 = arith.addf %61, %63 : vector<16x128xf32>
    %cst_70 = arith.constant 0.000000e+00 : f32
    %65 = vector.broadcast %cst_70 : f32 to vector<16x128xf32>
    %66 = arith.cmpf oge, %64, %65 : vector<16x128xf32>
    %cst_71 = arith.constant 1.000000e-01 : f32
    %67 = vector.broadcast %cst_71 : f32 to vector<16x128xf32>
    %68 = arith.mulf %64, %67 : vector<16x128xf32>
    %69 = arith.select %66, %64, %68 : vector<16x128xi1>, vector<16x128xf32>
    %70 = arith.truncf %69 : vector<16x128xf32> to vector<16x128xbf16>
    %c0_72 = arith.constant 0 : index
    %c0_73 = arith.constant 0 : index
    %c0_74 = arith.constant 0 : index
    %71 = vector.load %arg6[%c0_72, %c0_73, %c0_74] : memref<1x16x128xbf16, #tpu.memory_space<vmem>>, vector<1x16x128xbf16>
    %72 = vector.shape_cast %71 : vector<1x16x128xbf16> to vector<16x128xbf16>
    %73 = vector.shape_cast %70 : vector<16x128xbf16> to vector<1x16x128xbf16>
    tpu.vector_store %arg6[%c0_72, %c0_73, %c0_74], %73 {strides = array<i32>} : memref<1x16x128xbf16, #tpu.memory_space<vmem>>, vector<1x16x128xbf16>,
    return
  }
  func.func @transform_0(%arg0: i32) -> (i32, i32, i32, i32) {
    %c0_i32 = arith.constant 0 : i32
    %c0_i32_0 = arith.constant 0 : i32
    %c0_i32_1 = arith.constant 0 : i32
    %c0_i32_2 = arith.constant 0 : i32
    return %arg0, %c0_i32, %c0_i32_0, %c0_i32_1 : i32, i32, i32, i32
  }
  func.func @transform_1(%arg0: i32) -> (i32, i32, i32) {
    %c0_i32 = arith.constant 0 : i32
    %c0_i32_0 = arith.constant 0 : i32
    %c0_i32_1 = arith.constant 0 : i32
    %c0_i32_2 = arith.constant 0 : i32
    return %c0_i32, %c0_i32_0, %c0_i32_1 : i32, i32, i32
  }
  func.func @transform_2(%arg0: i32) -> (i32, i32) {
    %c0_i32 = arith.constant 0 : i32
    %c0_i32_0 = arith.constant 0 : i32
    %c0_i32_1 = arith.constant 0 : i32
    return %c0_i32, %c0_i32_0 : i32, i32
  }
  func.func @transform_3(%arg0: i32) -> (i32, i32) {
    %c0_i32 = arith.constant 0 : i32
    %c0_i32_0 = arith.constant 0 : i32
    %c0_i32_1 = arith.constant 0 : i32
    return %c0_i32, %c0_i32_0 : i32, i32
  }
  func.func @transform_4(%arg0: i32) -> (i32, i32, i32) {
    %c0_i32 = arith.constant 0 : i32
    %c0_i32_0 = arith.constant 0 : i32
    %c0_i32_1 = arith.constant 0 : i32
    return %arg0, %c0_i32, %c0_i32_0 : i32, i32, i32
  }
  func.func @transform_5(%arg0: i32) -> (i32, i32, i32) {
    %c0_i32 = arith.constant 0 : i32
    %c0_i32_0 = arith.constant 0 : i32
    %c0_i32_1 = arith.constant 0 : i32
    return %arg0, %c0_i32, %c0_i32_0 : i32, i32, i32
  }
}

module attributes {stable_mosaic.version = 11 : i64} {
  func.func @_pool_fc_kernel(%arg0: memref<2x16x128xbf16, #tpu.memory_space<vmem>>, %arg1: memref<128x128xf32, #tpu.memory_space<vmem>>, %arg2: memref<1x128xf32, #tpu.memory_space<vmem>>, %arg3: memref<2x128xf32, #tpu.memory_space<vmem>>) attributes {dimension_semantics = [], scalar_prefetch = 0 : i64, scratch_operands = 0 : i64, tpu.core_type = #tpu.core_type<tc>} {
    %c0 = arith.constant 0 : index
    %c0_0 = arith.constant 0 : index
    %c0_1 = arith.constant 0 : index
    %0 = vector.load %arg0[%c0, %c0_0, %c0_1] : memref<2x16x128xbf16, #tpu.memory_space<vmem>>, vector<2x16x128xbf16>
    %1 = arith.extf %0 : vector<2x16x128xbf16> to vector<2x16x128xf32>
    %cst = arith.constant dense<0.000000e+00> : vector<2x128xf32>
    %2 = vector.multi_reduction <add>, %1, %cst [1] : vector<2x16x128xf32> to vector<2x128xf32>
    %cst_2 = arith.constant 6.250000e-02 : f32
    %3 = vector.broadcast %cst_2 : f32 to vector<2x128xf32>
    %4 = arith.mulf %2, %3 : vector<2x128xf32>
    %c0_3 = arith.constant 0 : index
    %c0_4 = arith.constant 0 : index
    %5 = vector.load %arg1[%c0_3, %c0_4] : memref<128x128xf32, #tpu.memory_space<vmem>>, vector<128x128xf32>
    %cst_5 = arith.constant dense<0.000000e+00> : vector<2x128xf32>
    %6 = tpu.matmul %4, %5, %cst_5 {dimension_numbers = #tpu.dot_dimension_numbers<[1], [0], [0], [1], [0, 0, 1, 1], [], []>} : vector<2x128xf32>, vector<128x128xf32>, vector<2x128xf32> -> vector<2x128xf32>
    %c0_6 = arith.constant 0 : index
    %c0_7 = arith.constant 0 : index
    %7 = vector.load %arg2[%c0_6, %c0_7] : memref<1x128xf32, #tpu.memory_space<vmem>>, vector<1x128xf32>
    %8 = vector.broadcast %7 : vector<1x128xf32> to vector<2x128xf32>
    %9 = arith.addf %6, %8 : vector<2x128xf32>
    %c0_8 = arith.constant 0 : index
    %c0_9 = arith.constant 0 : index
    %10 = vector.load %arg3[%c0_8, %c0_9] : memref<2x128xf32, #tpu.memory_space<vmem>>, vector<2x128xf32>
    tpu.vector_store %arg3[%c0_8, %c0_9], %9 {strides = array<i32>} : memref<2x128xf32, #tpu.memory_space<vmem>>, vector<2x128xf32>,
    return
  }
}

</mosaic_0001>

<bundles_post_ra>
// kernel: _lambda_.24
= control target key start
LH: loop header
LB: loop body
LE: loop exit
PB: predicated region body
PF: predicated region fallthrough
CT: control target
= control target key end

     0   :  { %s1368_s9 = smov 0   ;;  %s1370_s10 = smov 0   ;;  %s1468_s0 = inlined_call_operand.vmem [shape: bf16[512,128], index: 0, kind: input, shape index: {}]   ;;  %s1469_s1 = inlined_call_operand.vmem [shape: bf16[128,128], index: 1, kind: input, shape index: {}]   ;;  %s1470_s2 = inlined_call_operand.vmem [shape: bf16[512,128], index: 2, kind: output, shape index: {}]  }
   0x1   :  { %s1372_s11 = smov 0  }
   0x2 LB: > { %s31_s12 = sadd.s32 1, %s1347_s10  ;;  %p1003_p0 = scmp.ge.s32.totalorder %s1351_s11, 1  ;;  %s1351_s11 = sphi %s1372_s11, %s12_s11   ;;  %s1347_s10 = sphi %s1370_s10, %s1472_s10   ;;  %s1343_s9 = sphi %s1368_s9, %s1471_s9  }
   0x3   : > { %p33_p1 = scmp.ge.s32.totalorder %s31_s12, 2  ;;  %p155_p2 = scmp.lt.s32.totalorder %s1351_s11, 3 }
   0x5   : > { %s1474_s12 = smov (%p33_p1, %s31_s12), 0  ;;  %p156_p3 = pnand %p1003_p0, %p155_p2 }
   0x6   : > { %s1004_s15 = sshll.u32 (!%p156_p3), %s1343_s9, 5 }
   0x7   : > { %159 = sbr.rel (%p156_p3) target bundleno = 271 (0x10f), region = 28  ;;  %p192_p4 = scmp.lt.s32.totalorder (!%p156_p3), %s1004_s15, 63 }
   0xc   : > { %v1305_v0 = vld [vmem:[%s1469_s1 + $0x38] sm:$0xff]   ;;  %v1306_v1 = vld [vmem:[%s1469_s1 + $0x30] sm:$0xff]   ;;  %s1476_s15 = smov (!%p192_p4, %s1004_s15), 63  ;;  %v1307_v2 = vld [vmem:[%s1469_s1 + $0x28] sm:$0xff]  }
   0xd   : > { %1217 = vmatprep.subr.bf16.mxu0 %v1305_v0  ;;  %1265 = vmatprep.subr.bf16.mxu1 %v1305_v0  ;;  %s1005_s20 = sshll.u32 %s1476_s15, 2  ;;  %v1308_v3 = vld [vmem:[%s1469_s1 + $0x20] sm:$0xff]   ;;  %v1309_v6 = vld [vmem:[%s1469_s1 + $0x18] sm:$0xff]   ;;  %v1310_v7 = vld [vmem:[%s1469_s1 + $0x10] sm:$0xff]  }
   0xe   : > { %1218 = vmatpush3.bf16.msra.mxu0 %v1305_v0  ;;  %1273 = vmatpush3.bf16.msra.mxu1 %v1305_v0  ;;  %s1403_s23 = scalar_lea.vmem %s1468_s0, %s1005_s20  ;;  %v1311_v8 = vld [vmem:[%s1469_s1 + $0x8] sm:$0xff]   ;;  %v1312_v9 = vld [vmem:[%s1469_s1] sm:$0xff]   ;;  %s1441_s8 = scalar_lea.vmem %s1470_s2, %s1005_s20 }
   0xf   : > { %1219 = vmatprep.subr.bf16.mxu0 %v1306_v1  ;;  %1266 = vmatprep.subr.bf16.mxu1 %v1306_v1  ;;  %v1313_v4 = vld [vmem:[%s1403_s23] sm:$0xff]   ;;  %v1315_v10 = vld [vmem:[%s1403_s23 + $0x8] sm:$0xff]   ;;  %v1317_v12 = vld [vmem:[%s1403_s23 + $0x10] sm:$0xff]  }
  0x10   : > { %v1314_v5 = vld [vmem:[%s1403_s23 + $0x40] sm:$0xff]   ;;  %1233 = vmatprep.mubr.bf16.mxu0 %v1313_v4  ;;  %v1316_v11 = vld [vmem:[%s1403_s23 + $0x48] sm:$0xff]   ;;  %v1318_v13 = vld [vmem:[%s1403_s23 + $0x50] sm:$0xff]  }
  0x11   : > { %1249 = vmatprep.mubr.bf16.mxu1 %v1314_v5  ;;  %v1319_v14 = vld [vmem:[%s1403_s23 + $0x18] sm:$0xff]   ;;  %v1321_v16 = vld [vmem:[%s1403_s23 + $0x20] sm:$0xff]   ;;  %v1323_v18 = vld [vmem:[%s1403_s23 + $0x28] sm:$0xff]  }
  0x12   : > { %1220 = vmatpush3.bf16.msra.mxu0 %v1306_v1  ;;  %1274 = vmatpush3.bf16.msra.mxu1 %v1306_v1  ;;  %v1320_v15 = vld [vmem:[%s1403_s23 + $0x58] sm:$0xff]   ;;  %v1322_v17 = vld [vmem:[%s1403_s23 + $0x60] sm:$0xff]   ;;  %v1324_v19 = vld [vmem:[%s1403_s23 + $0x68] sm:$0xff]  }
  0x13   : > { %1221 = vmatprep.subr.bf16.mxu0 %v1307_v2  ;;  %1267 = vmatprep.subr.bf16.mxu1 %v1307_v2  ;;  %v1325_v20 = vld [vmem:[%s1403_s23 + $0x30] sm:$0xff]   ;;  %v1327_v22 = vld [vmem:[%s1403_s23 + $0x38] sm:$0xff]  }
  0x14   : > { %v1326_v21 = vld [vmem:[%s1403_s23 + $0x70] sm:$0xff]   ;;  %v1328_v23 = vld [vmem:[%s1403_s23 + $0x78] sm:$0xff]  }
  0x16   : > { %1222 = vmatpush3.bf16.msra.mxu0 %v1307_v2  ;;  %1275 = vmatpush3.bf16.msra.mxu1 %v1307_v2 }
  0x17   : > { %1223 = vmatprep.subr.bf16.mxu0 %v1308_v3  ;;  %1268 = vmatprep.subr.bf16.mxu1 %v1308_v3 }
  0x1a   : > { %1224 = vmatpush3.bf16.msra.mxu0 %v1308_v3  ;;  %1276 = vmatpush3.bf16.msra.mxu1 %v1308_v3 }
  0x1b   : > { %1225 = vmatprep.subr.bf16.mxu0 %v1309_v6  ;;  %1269 = vmatprep.subr.bf16.mxu1 %v1309_v6 }
  0x1e   : > { %1226 = vmatpush3.bf16.msra.mxu0 %v1309_v6  ;;  %1277 = vmatpush3.bf16.msra.mxu1 %v1309_v6 }
  0x1f   : > { %1227 = vmatprep.subr.bf16.mxu0 %v1310_v7  ;;  %1270 = vmatprep.subr.bf16.mxu1 %v1310_v7 }
  0x22   : > { %1228 = vmatpush3.bf16.msra.mxu0 %v1310_v7  ;;  %1278 = vmatpush3.bf16.msra.mxu1 %v1310_v7 }
  0x23   : > { %1229 = vmatprep.subr.bf16.mxu0 %v1311_v8  ;;  %1271 = vmatprep.subr.bf16.mxu1 %v1311_v8 }
  0x26   : > { %1230 = vmatpush3.bf16.msra.mxu0 %v1311_v8  ;;  %1279 = vmatpush3.bf16.msra.mxu1 %v1311_v8 }
  0x27   : > { %1231 = vmatprep.subr.bf16.mxu0 %v1312_v9  ;;  %1272 = vmatprep.subr.bf16.mxu1 %v1312_v9 }
  0x2a   : > { %1232 = vmatpush3.bf16.msra.mxu0 %v1312_v9  ;;  %1280 = vmatpush3.bf16.msra.mxu1 %v1312_v9 }
  0x2d   : > { %1234 = vmatmul.mubr.bf16.vlgmr.msra.gmra.mxu0 %v1315_v10  ;;  %1250 = vmatmul.mubr.bf16.vlgmr.msra.gmra.mxu1 %v1316_v11 }
  0x2e   : > { %1237 = vmatprep.mubr.bf16.mxu0 %v1317_v12  ;;  %1253 = vmatprep.mubr.bf16.mxu1 %v1318_v13 }
  0x35   : > { %1238 = vmatmul.mubr.bf16.gmra.mxu0 %v1319_v14  ;;  %1254 = vmatmul.mubr.bf16.gmra.mxu1 %v1320_v15 }
  0x36   : > { %1241 = vmatprep.mubr.bf16.mxu0 %v1321_v16  ;;  %1257 = vmatprep.mubr.bf16.mxu1 %v1322_v17 }
  0x3d   : > { %1242 = vmatmul.mubr.bf16.gmra.mxu0 %v1323_v18  ;;  %1258 = vmatmul.mubr.bf16.gmra.mxu1 %v1324_v19 }
  0x3e   : > { %1245 = vmatprep.mubr.bf16.mxu0 %v1325_v20  ;;  %1261 = vmatprep.mubr.bf16.mxu1 %v1326_v21 }
  0x45   : > { %1246 = vmatmul.mubr.bf16.gmra.mxu0 %v1327_v22  ;;  %1262 = vmatmul.mubr.bf16.gmra.mxu1 %v1328_v23 }
  0xed   : > { %v1235_v24 = vpop.f32.mrf.mxu0  ;;  %v1251_v25 = vpop.f32.mrf.mxu1 }
  0xef   : > { %v513_v26 = vpop.f32.mrf.mxu0  ;;  %v577_v27 = vpop.f32.mrf.mxu1 }
  0xf1   : > { %v1236_v28 = vpop.f32.mrf.mxu0  ;;  %v1252_v29 = vpop.f32.mrf.mxu1 }
  0xf2   : > { %v1106_v30 = vpack.c.bf16 %v1236_v28, %v1235_v24  ;;  %v1146_v31 = vpack.c.bf16 %v1252_v29, %v1251_v25 }
  0xf3   : > { %v516_v32 = vpop.f32.mrf.mxu0  ;;  %v580_v33 = vpop.f32.mrf.mxu1 }
  0xf4   : > { %1178 = vst [vmem:[%s1441_s8 + $0x8] sm:$0xff] %v1106_v30   ;;  %1186 = vst [vmem:[%s1441_s8 + $0x48] sm:$0xff] %v1146_v31   ;;  %v1101_v34 = vpack.c.bf16 %v516_v32, %v513_v26  ;;  %v1141_v35 = vpack.c.bf16 %v580_v33, %v577_v27 }
  0xf5   : > { %v1239_v36 = vpop.f32.mrf.mxu0  ;;  %v1255_v37 = vpop.f32.mrf.mxu1 }
  0xf6   : > { %1102 = vst [vmem:[%s1441_s8] sm:$0xff] %v1101_v34   ;;  %1185 = vst [vmem:[%s1441_s8 + $0x40] sm:$0xff] %v1141_v35  }
  0xf7   : > { %v529_v38 = vpop.f32.mrf.mxu0  ;;  %v593_v39 = vpop.f32.mrf.mxu1 }
  0xf9   : > { %v1240_v40 = vpop.f32.mrf.mxu0  ;;  %v1256_v41 = vpop.f32.mrf.mxu1 }
  0xfa   : > { %v1116_v42 = vpack.c.bf16 %v1240_v40, %v1239_v36  ;;  %v1156_v43 = vpack.c.bf16 %v1256_v41, %v1255_v37 }
  0xfb   : > { %v532_v44 = vpop.f32.mrf.mxu0  ;;  %v596_v45 = vpop.f32.mrf.mxu1 }
  0xfc   : > { %1180 = vst [vmem:[%s1441_s8 + $0x18] sm:$0xff] %v1116_v42   ;;  %1188 = vst [vmem:[%s1441_s8 + $0x58] sm:$0xff] %v1156_v43   ;;  %v1111_v46 = vpack.c.bf16 %v532_v44, %v529_v38  ;;  %v1151_v47 = vpack.c.bf16 %v596_v45, %v593_v39 }
  0xfd   : > { %v1243_v48 = vpop.f32.mrf.mxu0  ;;  %v1259_v49 = vpop.f32.mrf.mxu1 }
  0xfe   : > { %1179 = vst [vmem:[%s1441_s8 + $0x10] sm:$0xff] %v1111_v46   ;;  %1187 = vst [vmem:[%s1441_s8 + $0x50] sm:$0xff] %v1151_v47  }
  0xff   : > { %v545_v50 = vpop.f32.mrf.mxu0  ;;  %v609_v51 = vpop.f32.mrf.mxu1 }
 0x101   : > { %v1244_v52 = vpop.f32.mrf.mxu0  ;;  %v1260_v53 = vpop.f32.mrf.mxu1 }
 0x102   : > { %v1126_v54 = vpack.c.bf16 %v1244_v52, %v1243_v48  ;;  %v1166_v55 = vpack.c.bf16 %v1260_v53, %v1259_v49 }
 0x103   : > { %v548_v56 = vpop.f32.mrf.mxu0  ;;  %v612_v57 = vpop.f32.mrf.mxu1 }
 0x104   : > { %1182 = vst [vmem:[%s1441_s8 + $0x28] sm:$0xff] %v1126_v54   ;;  %1190 = vst [vmem:[%s1441_s8 + $0x68] sm:$0xff] %v1166_v55   ;;  %v1121_v58 = vpack.c.bf16 %v548_v56, %v545_v50  ;;  %v1161_v59 = vpack.c.bf16 %v612_v57, %v609_v51 }
 0x105   : > { %v1247_v60 = vpop.f32.mrf.mxu0  ;;  %v1263_v61 = vpop.f32.mrf.mxu1 }
 0x106   : > { %1181 = vst [vmem:[%s1441_s8 + $0x20] sm:$0xff] %v1121_v58   ;;  %1189 = vst [vmem:[%s1441_s8 + $0x60] sm:$0xff] %v1161_v59  }
 0x107   : > { %v561_v62 = vpop.f32.mrf.mxu0  ;;  %v625_v63 = vpop.f32.mrf.mxu1 }
 0x109   : > { %v1248_v0 = vpop.f32.mrf.mxu0  ;;  %v1264_v1 = vpop.f32.mrf.mxu1 }
 0x10a   : > { %v1136_v2 = vpack.c.bf16 %v1248_v0, %v1247_v60  ;;  %v1176_v3 = vpack.c.bf16 %v1264_v1, %v1263_v61 }
 0x10b   : > { %v564_v4 = vpop.f32.mrf.mxu0  ;;  %v628_v5 = vpop.f32.mrf.mxu1 }
 0x10c   : > { %1184 = vst [vmem:[%s1441_s8 + $0x38] sm:$0xff] %v1136_v2   ;;  %1192 = vst [vmem:[%s1441_s8 + $0x78] sm:$0xff] %v1176_v3   ;;  %v1131_v6 = vpack.c.bf16 %v564_v4, %v561_v62  ;;  %v1171_v7 = vpack.c.bf16 %v628_v5, %v625_v63 }
 0x10e   : > { %1183 = vst [vmem:[%s1441_s8 + $0x30] sm:$0xff] %v1131_v6   ;;  %1191 = vst [vmem:[%s1441_s8 + $0x70] sm:$0xff] %v1171_v7  }
 0x10f PF: > { %s12_s11 = sadd.s32 1, %s1351_s11   ;;  %s1471_s9 = smov %s1347_s10 }
 0x110   : > { %p9_p5 = scmp.ge.s32.totalorder %s12_s11, 4   ;;  %s1472_s10 = smov %s1474_s12 }
 0x112   :  { %11 = sbr.rel (!%p9_p5) target bundleno = 2 (0x2), region = 69 }

// kernel: _lambda_.26
= control target key start
LH: loop header
LB: loop body
LE: loop exit
PB: predicated region body
PF: predicated region fallthrough
CT: control target
= control target key end

     0   :  { %s1631_s0 = inlined_call_operand.vmem [shape: bf16[512,128], index: 0, kind: input, shape index: {}]   ;;  %s1632_s1 = inlined_call_operand.vmem [shape: f32[1,128], index: 1, kind: input, shape index: {}]   ;;  %s1633_s2 = inlined_call_operand.vmem [shape: f32[1,128], index: 2, kind: input, shape index: {}]   ;;  %s1634_s3 = inlined_call_operand.vmem [shape: bf16[512,128], index: 3, kind: output, shape index: {}]  }
   0x1   :  { %v931_v0 = vld [vmem:[%s1631_s0] sm:$0xff]   ;;  %v1218_v4 = vld [vmem:[%s1631_s0 + $0x8] sm:$0xff]   ;;  %v1219_v5 = vld [vmem:[%s1631_s0 + $0x10] sm:$0xff]  }
   0x2   :  { %v1306_v1 = vld [vmem:[%s1632_s1] ss:$0 sm:$0xff]  ;;  %v932_v2 = vunpack.c.l.bf16 %v931_v0  ;;  %v933_v3 = vunpack.c.h.bf16 %v931_v0  ;;  %v1220_v6 = vld [vmem:[%s1631_s0 + $0x18] sm:$0xff]   ;;  %v936_v8 = vunpack.c.l.bf16 %v1218_v4  ;;  %v937_v9 = vunpack.c.h.bf16 %v1218_v4  ;;  %v1222_v35 = vld [vmem:[%s1631_s0 + $0x28] sm:$0xff]  }
   0x3   :  { %v1320_v7 = vld [vmem:[%s1633_s2] ss:$0 sm:$0xff]  ;;  %v940_v10 = vunpack.c.l.bf16 %v1219_v5  ;;  %v941_v11 = vunpack.c.h.bf16 %v1219_v5  ;;  %v944_v14 = vunpack.c.l.bf16 %v1220_v6  ;;  %v945_v15 = vunpack.c.h.bf16 %v1220_v6  ;;  %v1223_v48 = vld [vmem:[%s1631_s0 + $0x30] sm:$0xff]   ;;  %v1224_v4 = vld [vmem:[%s1631_s0 + $0x38] sm:$0xff]  }
   0x4   :  { %v149_v12 = vmul.f32 %v932_v2, %v1306_v1  ;;  %v150_v13 = vmul.f32 %v933_v3, %v1306_v1  ;;  %v151_v16 = vmul.f32 %v936_v8, %v1306_v1  ;;  %v152_v17 = vmul.f32 %v937_v9, %v1306_v1  ;;  %v1221_v34 = vld [vmem:[%s1631_s0 + $0x20] sm:$0xff]  }
   0x5   :  { %v153_v18 = vmul.f32 %v940_v10, %v1306_v1  ;;  %v154_v19 = vmul.f32 %v941_v11, %v1306_v1  ;;  %v155_v22 = vmul.f32 %v944_v14, %v1306_v1  ;;  %v156_v23 = vmul.f32 %v945_v15, %v1306_v1  ;;  %v1225_v15 = vld [vmem:[%s1631_s0 + $0x40] sm:$0xff]  }
   0x6   :  { %v220_v20 = vadd.f32 %v1320_v7, %v149_v12  ;;  %v221_v21 = vadd.f32 %v1320_v7, %v150_v13  ;;  %v222_v24 = vadd.f32 %v1320_v7, %v151_v16  ;;  %v223_v25 = vadd.f32 %v1320_v7, %v152_v17 }
   0x7   :  { %v224_v26 = vadd.f32 %v1320_v7, %v153_v18  ;;  %v225_v27 = vadd.f32 %v1320_v7, %v154_v19  ;;  %v226_v42 = vadd.f32 %v1320_v7, %v155_v22  ;;  %v227_v43 = vadd.f32 %v1320_v7, %v156_v23 }
   0x8   :  { %vm284_vm0 = vcmp.ge.f32.partialorder %v220_v20, 0.0  ;;  %vm285_vm1 = vcmp.ge.f32.partialorder %v221_v21, 0.0  ;;  %v348_v28 = vmul.f32 0.1, %v220_v20  ;;  %v349_v29 = vmul.f32 0.1, %v221_v21 }
   0x9   :  { %vm286_vm2 = vcmp.ge.f32.partialorder %v222_v24, 0.0  ;;  %vm287_vm3 = vcmp.ge.f32.partialorder %v223_v25, 0.0  ;;  %v350_v30 = vmul.f32 0.1, %v222_v24  ;;  %v351_v31 = vmul.f32 0.1, %v223_v25 }
   0xa   :  { %v412_v32 = vsel %vm284_vm0, %v220_v20, %v348_v28  ;;  %v413_v33 = vsel %vm285_vm1, %v221_v21, %v349_v29  ;;  %vm288_vm4 = vcmp.ge.f32.partialorder %v224_v26, 0.0  ;;  %vm289_vm5 = vcmp.ge.f32.partialorder %v225_v27, 0.0 }
   0xb   :  { %v1061_v36 = vpack.c.bf16 %v413_v33, %v412_v32  ;;  %v414_v37 = vsel %vm286_vm2, %v222_v24, %v350_v30  ;;  %v415_v38 = vsel %vm287_vm3, %v223_v25, %v351_v31  ;;  %v352_v39 = vmul.f32 0.1, %v224_v26 }
   0xc   :  { %v1066_v40 = vpack.c.bf16 %v415_v38, %v414_v37  ;;  %v353_v41 = vmul.f32 0.1, %v225_v27  ;;  %v948_v45 = vunpack.c.l.bf16 %v1221_v34  ;;  %v949_v46 = vunpack.c.h.bf16 %v1221_v34 }
   0xd   :  { %1062 = vst [vmem:[%s1634_s3] sm:$0xff] %v1061_v36   ;;  %v416_v44 = vsel %vm288_vm4, %v224_v26, %v352_v39  ;;  %v952_v47 = vunpack.c.l.bf16 %v1222_v35  ;;  %vm290_vm6 = vcmp.ge.f32.partialorder %v226_v42, 0.0  ;;  %vm291_vm7 = vcmp.ge.f32.partialorder %v227_v43, 0.0  ;;  %v1226_v26 = vld [vmem:[%s1631_s0 + $0x48] sm:$0xff]  }
   0xe   :  { %1249 = vst [vmem:[%s1634_s3 + $0x8] sm:$0xff] %v1066_v40   ;;  %v417_v49 = vsel %vm289_vm5, %v225_v27, %v353_v41  ;;  %v354_v50 = vmul.f32 0.1, %v226_v42  ;;  %v355_v52 = vmul.f32 0.1, %v227_v43  ;;  %v157_v53 = vmul.f32 %v948_v45, %v1306_v1  ;;  %v1227_v27 = vld [vmem:[%s1631_s0 + $0x50] sm:$0xff]  }
   0xf   :  { %v1071_v51 = vpack.c.bf16 %v417_v49, %v416_v44  ;;  %v158_v54 = vmul.f32 %v949_v46, %v1306_v1  ;;  %v953_v56 = vunpack.c.h.bf16 %v1222_v35  ;;  %v159_v57 = vmul.f32 %v952_v47, %v1306_v1 }
  0x10   :  { %v418_v55 = vsel %vm290_vm6, %v226_v42, %v354_v50  ;;  %v956_v58 = vunpack.c.l.bf16 %v1223_v48  ;;  %v419_v59 = vsel %vm291_vm7, %v227_v43, %v355_v52  ;;  %v228_v60 = vadd.f32 %v1320_v7, %v157_v53 }
  0x11   :  { %1250 = vst [vmem:[%s1634_s3 + $0x10] sm:$0xff] %v1071_v51   ;;  %v229_v61 = vadd.f32 %v1320_v7, %v158_v54  ;;  %v957_v62 = vunpack.c.h.bf16 %v1223_v48  ;;  %v1076_v63 = vpack.c.bf16 %v419_v59, %v418_v55  ;;  %v160_v0 = vmul.f32 %v953_v56, %v1306_v1  ;;  %v1228_v55 = vld [vmem:[%s1631_s0 + $0x58] sm:$0xff]  }
  0x12   :  { %v230_v2 = vadd.f32 %v1320_v7, %v159_v57  ;;  %v161_v3 = vmul.f32 %v956_v58, %v1306_v1  ;;  %vm292_vm8 = vcmp.ge.f32.partialorder %v228_v60, 0.0  ;;  %v356_v5 = vmul.f32 0.1, %v228_v60 }
  0x13   :  { %vm293_vm9 = vcmp.ge.f32.partialorder %v229_v61, 0.0  ;;  %v357_v6 = vmul.f32 0.1, %v229_v61  ;;  %1251 = vst [vmem:[%s1634_s3 + $0x18] sm:$0xff] %v1076_v63   ;;  %v231_v8 = vadd.f32 %v1320_v7, %v160_v0  ;;  %v162_v10 = vmul.f32 %v957_v62, %v1306_v1 }
  0x14   :  { %vm294_vm10 = vcmp.ge.f32.partialorder %v230_v2, 0.0  ;;  %v358_v9 = vmul.f32 0.1, %v230_v2  ;;  %v420_v11 = vsel %vm292_vm8, %v228_v60, %v356_v5  ;;  %v232_v13 = vadd.f32 %v1320_v7, %v161_v3  ;;  %v1229_v60 = vld [vmem:[%s1631_s0 + $0x60] sm:$0xff]  }
  0x15   :  { %v421_v12 = vsel %vm293_vm9, %v229_v61, %v357_v6  ;;  %v960_v14 = vunpack.c.l.bf16 %v1224_v4  ;;  %vm295_vm11 = vcmp.ge.f32.partialorder %v231_v8, 0.0  ;;  %v359_v17 = vmul.f32 0.1, %v231_v8 }
  0x16   :  { %v1081_v16 = vpack.c.bf16 %v421_v12, %v420_v11  ;;  %v422_v18 = vsel %vm294_vm10, %v230_v2, %v358_v9  ;;  %v233_v19 = vadd.f32 %v1320_v7, %v162_v10  ;;  %vm296_vm12 = vcmp.ge.f32.partialorder %v232_v13, 0.0  ;;  %v1230_v9 = vld [vmem:[%s1631_s0 + $0x68] sm:$0xff]  }
  0x17   :  { %v360_v20 = vmul.f32 0.1, %v232_v13  ;;  %v961_v21 = vunpack.c.h.bf16 %v1224_v4  ;;  %v423_v22 = vsel %vm295_vm11, %v231_v8, %v359_v17  ;;  %v163_v23 = vmul.f32 %v960_v14, %v1306_v1 }
  0x18   :  { %1252 = vst [vmem:[%s1634_s3 + $0x20] sm:$0xff] %v1081_v16   ;;  %v964_v24 = vunpack.c.l.bf16 %v1225_v15  ;;  %v965_v25 = vunpack.c.h.bf16 %v1225_v15  ;;  %v1086_v28 = vpack.c.bf16 %v423_v22, %v422_v18  ;;  %vm297_vm13 = vcmp.ge.f32.partialorder %v233_v19, 0.0 }
  0x19   :  { %v361_v29 = vmul.f32 0.1, %v233_v19  ;;  %v424_v30 = vsel %vm296_vm12, %v232_v13, %v360_v20  ;;  %v164_v31 = vmul.f32 %v961_v21, %v1306_v1  ;;  %v234_v32 = vadd.f32 %v1320_v7, %v163_v23 }
  0x1a   :  { %v165_v33 = vmul.f32 %v964_v24, %v1306_v1  ;;  %v166_v34 = vmul.f32 %v965_v25, %v1306_v1  ;;  %1253 = vst [vmem:[%s1634_s3 + $0x28] sm:$0xff] %v1086_v28   ;;  %v968_v36 = vunpack.c.l.bf16 %v1226_v26  ;;  %v969_v37 = vunpack.c.h.bf16 %v1226_v26  ;;  %v1231_v28 = vld [vmem:[%s1631_s0 + $0x70] sm:$0xff]  }
  0x1b   :  { %v425_v35 = vsel %vm297_vm13, %v233_v19, %v361_v29  ;;  %v972_v38 = vunpack.c.l.bf16 %v1227_v27  ;;  %v235_v40 = vadd.f32 %v1320_v7, %v164_v31  ;;  %vm298_vm14 = vcmp.ge.f32.partialorder %v234_v32, 0.0 }
  0x1c   :  { %v1091_v39 = vpack.c.bf16 %v425_v35, %v424_v30  ;;  %v362_v41 = vmul.f32 0.1, %v234_v32  ;;  %v236_v42 = vadd.f32 %v1320_v7, %v165_v33  ;;  %v237_v43 = vadd.f32 %v1320_v7, %v166_v34 }
  0x1d   :  { %v167_v44 = vmul.f32 %v968_v36, %v1306_v1  ;;  %v168_v45 = vmul.f32 %v969_v37, %v1306_v1  ;;  %vm299_vm15 = vcmp.ge.f32.partialorder %v235_v40, 0.0  ;;  %v363_v46 = vmul.f32 0.1, %v235_v40  ;;  %v1232_v37 = vld [vmem:[%s1631_s0 + $0x78] sm:$0xff]  }
  0x1e   :  { %1254 = vst [vmem:[%s1634_s3 + $0x30] sm:$0xff] %v1091_v39   ;;  %v426_v47 = vsel %vm298_vm14, %v234_v32, %v362_v41  ;;  %v973_v48 = vunpack.c.h.bf16 %v1227_v27  ;;  %vm300_vm0 = vcmp.ge.f32.partialorder %v236_v42, 0.0  ;;  %vm301_vm1 = vcmp.ge.f32.partialorder %v237_v43, 0.0 }
  0x1f   :  { %v364_v49 = vmul.f32 0.1, %v236_v42  ;;  %v365_v50 = vmul.f32 0.1, %v237_v43  ;;  %v427_v51 = vsel %vm299_vm15, %v235_v40, %v363_v46  ;;  %v238_v52 = vadd.f32 %v1320_v7, %v167_v44 }
  0x20   :  { %v239_v53 = vadd.f32 %v1320_v7, %v168_v45  ;;  %v169_v54 = vmul.f32 %v972_v38, %v1306_v1  ;;  %v1096_v56 = vpack.c.bf16 %v427_v51, %v426_v47  ;;  %v170_v59 = vmul.f32 %v973_v48, %v1306_v1 }
  0x21   :  { %v428_v57 = vsel %vm300_vm0, %v236_v42, %v364_v49  ;;  %v429_v58 = vsel %vm301_vm1, %v237_v43, %v365_v50  ;;  %vm302_vm2 = vcmp.ge.f32.partialorder %v238_v52, 0.0  ;;  %v366_v62 = vmul.f32 0.1, %v238_v52  ;;  %v1233_v42 = vld [vmem:[%s1631_s0 + $0x80] sm:$0xff]   ;;  %v1234_v50 = vld [vmem:[%s1631_s0 + $0x88] sm:$0xff]  }
  0x22   :  { %v1101_v61 = vpack.c.bf16 %v429_v58, %v428_v57  ;;  %vm303_vm3 = vcmp.ge.f32.partialorder %v239_v53, 0.0  ;;  %1255 = vst [vmem:[%s1634_s3 + $0x38] sm:$0xff] %v1096_v56   ;;  %v367_v63 = vmul.f32 0.1, %v239_v53  ;;  %v240_v0 = vadd.f32 %v1320_v7, %v169_v54 }
  0x23   :  { %v241_v2 = vadd.f32 %v1320_v7, %v170_v59  ;;  %v976_v3 = vunpack.c.l.bf16 %v1228_v55  ;;  %v430_v4 = vsel %vm302_vm2, %v238_v52, %v366_v62  ;;  %v977_v5 = vunpack.c.h.bf16 %v1228_v55 }
  0x24   :  { %1256 = vst [vmem:[%s1634_s3 + $0x40] sm:$0xff] %v1101_v61   ;;  %v980_v6 = vunpack.c.l.bf16 %v1229_v60  ;;  %v981_v8 = vunpack.c.h.bf16 %v1229_v60  ;;  %v431_v10 = vsel %vm303_vm3, %v239_v53, %v367_v63  ;;  %vm304_vm4 = vcmp.ge.f32.partialorder %v240_v0, 0.0 }
  0x25   :  { %vm305_vm5 = vcmp.ge.f32.partialorder %v241_v2, 0.0  ;;  %v368_v11 = vmul.f32 0.1, %v240_v0  ;;  %v1106_v12 = vpack.c.bf16 %v431_v10, %v430_v4  ;;  %v369_v13 = vmul.f32 0.1, %v241_v2 }
  0x26   :  { %v171_v14 = vmul.f32 %v976_v3, %v1306_v1  ;;  %v172_v15 = vmul.f32 %v977_v5, %v1306_v1  ;;  %v173_v17 = vmul.f32 %v980_v6, %v1306_v1  ;;  %v174_v18 = vmul.f32 %v981_v8, %v1306_v1 }
  0x27   :  { %v432_v16 = vsel %vm304_vm4, %v240_v0, %v368_v11  ;;  %v984_v19 = vunpack.c.l.bf16 %v1230_v9  ;;  %1257 = vst [vmem:[%s1634_s3 + $0x48] sm:$0xff] %v1106_v12   ;;  %v433_v20 = vsel %vm305_vm5, %v241_v2, %v369_v13  ;;  %v985_v23 = vunpack.c.h.bf16 %v1230_v9 }
  0x28   :  { %v242_v21 = vadd.f32 %v1320_v7, %v171_v14  ;;  %v243_v22 = vadd.f32 %v1320_v7, %v172_v15  ;;  %v1111_v24 = vpack.c.bf16 %v433_v20, %v432_v16  ;;  %v244_v25 = vadd.f32 %v1320_v7, %v173_v17  ;;  %v1235_v15 = vld [vmem:[%s1631_s0 + $0x90] sm:$0xff]   ;;  %v1236_v20 = vld [vmem:[%s1631_s0 + $0x98] sm:$0xff]  }
  0x29   :  { %v245_v26 = vadd.f32 %v1320_v7, %v174_v18  ;;  %v175_v27 = vmul.f32 %v984_v19, %v1306_v1  ;;  %v176_v35 = vmul.f32 %v985_v23, %v1306_v1  ;;  %v988_v41 = vunpack.c.l.bf16 %v1231_v28 }
  0x2a   :  { %vm306_vm6 = vcmp.ge.f32.partialorder %v242_v21, 0.0  ;;  %vm307_vm7 = vcmp.ge.f32.partialorder %v243_v22, 0.0  ;;  %v370_v29 = vmul.f32 0.1, %v242_v21  ;;  %v371_v30 = vmul.f32 0.1, %v243_v22 }
  0x2b   :  { %1258 = vst [vmem:[%s1634_s3 + $0x50] sm:$0xff] %v1111_v24   ;;  %vm308_vm8 = vcmp.ge.f32.partialorder %v244_v25, 0.0  ;;  %vm309_vm9 = vcmp.ge.f32.partialorder %v245_v26, 0.0  ;;  %v372_v31 = vmul.f32 0.1, %v244_v25  ;;  %v246_v36 = vadd.f32 %v1320_v7, %v175_v27 }
  0x2c   :  { %v373_v32 = vmul.f32 0.1, %v245_v26  ;;  %v434_v33 = vsel %vm306_vm6, %v242_v21, %v370_v29  ;;  %v435_v34 = vsel %vm307_vm7, %v243_v22, %v371_v30  ;;  %v247_v44 = vadd.f32 %v1320_v7, %v176_v35  ;;  %v1237_v21 = vld [vmem:[%s1631_s0 + $0xa0] sm:$0xff]  }
  0x2d   :  { %v1116_v38 = vpack.c.bf16 %v435_v34, %v434_v33  ;;  %v436_v39 = vsel %vm308_vm8, %v244_v25, %v372_v31  ;;  %vm310_vm10 = vcmp.ge.f32.partialorder %v246_v36, 0.0  ;;  %v374_v45 = vmul.f32 0.1, %v246_v36 }
  0x2e   :  { %v437_v40 = vsel %vm309_vm9, %v245_v26, %v373_v32  ;;  %v989_v46 = vunpack.c.h.bf16 %v1231_v28  ;;  %v177_v47 = vmul.f32 %v988_v41, %v1306_v1  ;;  %v992_v48 = vunpack.c.l.bf16 %v1232_v37 }
  0x2f   :  { %v1121_v43 = vpack.c.bf16 %v437_v40, %v436_v39  ;;  %1259 = vst [vmem:[%s1634_s3 + $0x58] sm:$0xff] %v1116_v38   ;;  %v993_v49 = vunpack.c.h.bf16 %v1232_v37  ;;  %vm311_vm11 = vcmp.ge.f32.partialorder %v247_v44, 0.0  ;;  %v375_v51 = vmul.f32 0.1, %v247_v44  ;;  %v1238_v40 = vld [vmem:[%s1631_s0 + $0xa8] sm:$0xff]  }
  0x30   :  { %v438_v52 = vsel %vm310_vm10, %v246_v36, %v374_v45  ;;  %v996_v53 = vunpack.c.l.bf16 %v1233_v42  ;;  %v178_v54 = vmul.f32 %v989_v46, %v1306_v1  ;;  %v248_v55 = vadd.f32 %v1320_v7, %v177_v47 }
  0x31   :  { %1260 = vst [vmem:[%s1634_s3 + $0x60] sm:$0xff] %v1121_v43   ;;  %v179_v56 = vmul.f32 %v992_v48, %v1306_v1  ;;  %v180_v57 = vmul.f32 %v993_v49, %v1306_v1  ;;  %v439_v58 = vsel %vm311_vm11, %v247_v44, %v375_v51  ;;  %v997_v59 = vunpack.c.h.bf16 %v1233_v42 }
  0x32   :  { %v181_v60 = vmul.f32 %v996_v53, %v1306_v1  ;;  %v1000_v61 = vunpack.c.l.bf16 %v1234_v50  ;;  %v1126_v62 = vpack.c.bf16 %v439_v58, %v438_v52  ;;  %v249_v63 = vadd.f32 %v1320_v7, %v178_v54 }
  0x33   :  { %vm312_vm12 = vcmp.ge.f32.partialorder %v248_v55, 0.0  ;;  %v376_v0 = vmul.f32 0.1, %v248_v55  ;;  %v250_v2 = vadd.f32 %v1320_v7, %v179_v56  ;;  %v251_v3 = vadd.f32 %v1320_v7, %v180_v57 }
  0x34   :  { %v182_v4 = vmul.f32 %v997_v59, %v1306_v1  ;;  %v252_v5 = vadd.f32 %v1320_v7, %v181_v60  ;;  %1261 = vst [vmem:[%s1634_s3 + $0x68] sm:$0xff] %v1126_v62   ;;  %vm313_vm13 = vcmp.ge.f32.partialorder %v249_v63, 0.0  ;;  %v377_v6 = vmul.f32 0.1, %v249_v63 }
  0x35   :  { %v440_v8 = vsel %vm312_vm12, %v248_v55, %v376_v0  ;;  %v1001_v9 = vunpack.c.h.bf16 %v1234_v50  ;;  %vm314_vm14 = vcmp.ge.f32.partialorder %v250_v2, 0.0  ;;  %vm315_vm15 = vcmp.ge.f32.partialorder %v251_v3, 0.0  ;;  %v1239_v0 = vld [vmem:[%s1631_s0 + $0xb0] sm:$0xff]  }
  0x36   :  { %v378_v10 = vmul.f32 0.1, %v250_v2  ;;  %v379_v11 = vmul.f32 0.1, %v251_v3  ;;  %v441_v12 = vsel %vm313_vm13, %v249_v63, %v377_v6  ;;  %v253_v13 = vadd.f32 %v1320_v7, %v182_v4 }
  0x37   :  { %vm316_vm0 = vcmp.ge.f32.partialorder %v252_v5, 0.0  ;;  %v380_v14 = vmul.f32 0.1, %v252_v5  ;;  %v1131_v16 = vpack.c.bf16 %v441_v12, %v440_v8  ;;  %v183_v19 = vmul.f32 %v1000_v61, %v1306_v1 }
  0x38   :  { %v442_v17 = vsel %vm314_vm14, %v250_v2, %v378_v10  ;;  %v443_v18 = vsel %vm315_vm15, %v251_v3, %v379_v11  ;;  %vm317_vm1 = vcmp.ge.f32.partialorder %v253_v13, 0.0  ;;  %v381_v23 = vmul.f32 0.1, %v253_v13  ;;  %v1240_v2 = vld [vmem:[%s1631_s0 + $0xb8] sm:$0xff]  }
  0x39   :  { %v1136_v22 = vpack.c.bf16 %v443_v18, %v442_v17  ;;  %v444_v24 = vsel %vm316_vm0, %v252_v5, %v380_v14  ;;  %1262 = vst [vmem:[%s1634_s3 + $0x70] sm:$0xff] %v1131_v16   ;;  %v184_v25 = vmul.f32 %v1001_v9, %v1306_v1  ;;  %v254_v26 = vadd.f32 %v1320_v7, %v183_v19  ;;  %v1241_v18 = vld [vmem:[%s1631_s0 + $0xc0] sm:$0xff]  }
  0x3a   :  { %v1004_v27 = vunpack.c.l.bf16 %v1235_v15  ;;  %v1005_v28 = vunpack.c.h.bf16 %v1235_v15  ;;  %v445_v29 = vsel %vm317_vm1, %v253_v13, %v381_v23  ;;  %v1008_v30 = vunpack.c.l.bf16 %v1236_v20 }
  0x3b   :  { %1263 = vst [vmem:[%s1634_s3 + $0x78] sm:$0xff] %v1136_v22   ;;  %v1009_v31 = vunpack.c.h.bf16 %v1236_v20  ;;  %v1012_v32 = vunpack.c.l.bf16 %v1237_v21  ;;  %v1141_v33 = vpack.c.bf16 %v445_v29, %v444_v24  ;;  %v255_v34 = vadd.f32 %v1320_v7, %v184_v25 }
  0x3c   :  { %vm318_vm2 = vcmp.ge.f32.partialorder %v254_v26, 0.0  ;;  %v382_v35 = vmul.f32 0.1, %v254_v26  ;;  %v185_v36 = vmul.f32 %v1004_v27, %v1306_v1  ;;  %v186_v37 = vmul.f32 %v1005_v28, %v1306_v1 }
  0x3d   :  { %v187_v38 = vmul.f32 %v1008_v30, %v1306_v1  ;;  %v188_v39 = vmul.f32 %v1009_v31, %v1306_v1  ;;  %1264 = vst [vmem:[%s1634_s3 + $0x80] sm:$0xff] %v1141_v33   ;;  %vm319_vm3 = vcmp.ge.f32.partialorder %v255_v34, 0.0  ;;  %v383_v41 = vmul.f32 0.1, %v255_v34 }
  0x3e   :  { %v446_v42 = vsel %vm318_vm2, %v254_v26, %v382_v35  ;;  %v1013_v43 = vunpack.c.h.bf16 %v1237_v21  ;;  %v256_v44 = vadd.f32 %v1320_v7, %v185_v36  ;;  %v257_v45 = vadd.f32 %v1320_v7, %v186_v37  ;;  %v1242_v36 = vld [vmem:[%s1631_s0 + $0xc8] sm:$0xff]  }
  0x3f   :  { %v258_v46 = vadd.f32 %v1320_v7, %v187_v38  ;;  %v259_v47 = vadd.f32 %v1320_v7, %v188_v39  ;;  %v447_v48 = vsel %vm319_vm3, %v255_v34, %v383_v41  ;;  %v189_v49 = vmul.f32 %v1012_v32, %v1306_v1 }
  0x40   :  { %v190_v50 = vmul.f32 %v1013_v43, %v1306_v1  ;;  %v1016_v51 = vunpack.c.l.bf16 %v1238_v40  ;;  %v1146_v52 = vpack.c.bf16 %v447_v48, %v446_v42  ;;  %vm320_vm4 = vcmp.ge.f32.partialorder %v256_v44, 0.0  ;;  %v1243_v42 = vld [vmem:[%s1631_s0 + $0xd0] sm:$0xff]  }
  0x41   :  { %vm321_vm5 = vcmp.ge.f32.partialorder %v257_v45, 0.0  ;;  %v384_v53 = vmul.f32 0.1, %v256_v44  ;;  %v385_v54 = vmul.f32 0.1, %v257_v45  ;;  %vm322_vm6 = vcmp.ge.f32.partialorder %v258_v46, 0.0 }
  0x42   :  { %vm323_vm7 = vcmp.ge.f32.partialorder %v259_v47, 0.0  ;;  %v386_v55 = vmul.f32 0.1, %v258_v46  ;;  %1265 = vst [vmem:[%s1634_s3 + $0x88] sm:$0xff] %v1146_v52   ;;  %v387_v57 = vmul.f32 0.1, %v259_v47  ;;  %v260_v58 = vadd.f32 %v1320_v7, %v189_v49 }
  0x43   :  { %v448_v56 = vsel %vm320_vm4, %v256_v44, %v384_v53  ;;  %v261_v59 = vadd.f32 %v1320_v7, %v190_v50  ;;  %v449_v60 = vsel %vm321_vm5, %v257_v45, %v385_v54  ;;  %v1017_v62 = vunpack.c.h.bf16 %v1238_v40 }
  0x44   :  { %v450_v61 = vsel %vm322_vm6, %v258_v46, %v386_v55  ;;  %v191_v63 = vmul.f32 %v1016_v51, %v1306_v1  ;;  %v1151_v3 = vpack.c.bf16 %v449_v60, %v448_v56  ;;  %v451_v4 = vsel %vm323_vm7, %v259_v47, %v387_v57  ;;  %v1244_v55 = vld [vmem:[%s1631_s0 + $0xd8] sm:$0xff]  }
  0x45   :  { %vm324_vm8 = vcmp.ge.f32.partialorder %v260_v58, 0.0  ;;  %vm325_vm9 = vcmp.ge.f32.partialorder %v261_v59, 0.0  ;;  %v1156_v5 = vpack.c.bf16 %v451_v4, %v450_v61  ;;  %v388_v6 = vmul.f32 0.1, %v260_v58 }
  0x46   :  { %v389_v8 = vmul.f32 0.1, %v261_v59  ;;  %v192_v9 = vmul.f32 %v1017_v62, %v1306_v1  ;;  %1266 = vst [vmem:[%s1634_s3 + $0x90] sm:$0xff] %v1151_v3   ;;  %v262_v10 = vadd.f32 %v1320_v7, %v191_v63  ;;  %v1020_v11 = vunpack.c.l.bf16 %v1239_v0 }
  0x47   :  { %v1021_v12 = vunpack.c.h.bf16 %v1239_v0  ;;  %v1024_v13 = vunpack.c.l.bf16 %v1240_v2  ;;  %1267 = vst [vmem:[%s1634_s3 + $0x98] sm:$0xff] %v1156_v5   ;;  %v452_v14 = vsel %vm324_vm8, %v260_v58, %v388_v6  ;;  %v1025_v17 = vunpack.c.h.bf16 %v1240_v2 }
  0x48   :  { %v453_v15 = vsel %vm325_vm9, %v261_v59, %v389_v8  ;;  %v263_v16 = vadd.f32 %v1320_v7, %v192_v9  ;;  %vm326_vm10 = vcmp.ge.f32.partialorder %v262_v10, 0.0  ;;  %v390_v20 = vmul.f32 0.1, %v262_v10 }
  0x49   :  { %v1161_v19 = vpack.c.bf16 %v453_v15, %v452_v14  ;;  %v193_v21 = vmul.f32 %v1020_v11, %v1306_v1  ;;  %v194_v23 = vmul.f32 %v1021_v12, %v1306_v1  ;;  %v195_v24 = vmul.f32 %v1024_v13, %v1306_v1  ;;  %v1246_v14 = vld [vmem:[%s1631_s0 + $0xe8] sm:$0xff]  }
  0x4a   :  { %vm327_vm11 = vcmp.ge.f32.partialorder %v263_v16, 0.0  ;;  %v391_v22 = vmul.f32 0.1, %v263_v16  ;;  %v454_v25 = vsel %vm326_vm10, %v262_v10, %v390_v20  ;;  %v196_v27 = vmul.f32 %v1025_v17, %v1306_v1  ;;  %v1245_v10 = vld [vmem:[%s1631_s0 + $0xe0] sm:$0xff]  }
  0x4b   :  { %1268 = vst [vmem:[%s1634_s3 + $0xa0] sm:$0xff] %v1161_v19   ;;  %v264_v26 = vadd.f32 %v1320_v7, %v193_v21  ;;  %v1028_v28 = vunpack.c.l.bf16 %v1241_v18  ;;  %v265_v30 = vadd.f32 %v1320_v7, %v194_v23  ;;  %v266_v31 = vadd.f32 %v1320_v7, %v195_v24 }
  0x4c   :  { %v455_v29 = vsel %vm327_vm11, %v263_v16, %v391_v22  ;;  %v1029_v32 = vunpack.c.h.bf16 %v1241_v18  ;;  %v267_v35 = vadd.f32 %v1320_v7, %v196_v27  ;;  %v1032_v46 = vunpack.c.l.bf16 %v1242_v36 }
  0x4d   :  { %v1166_v33 = vpack.c.bf16 %v455_v29, %v454_v25  ;;  %vm328_vm12 = vcmp.ge.f32.partialorder %v264_v26, 0.0  ;;  %v392_v34 = vmul.f32 0.1, %v264_v26  ;;  %vm329_vm13 = vcmp.ge.f32.partialorder %v265_v30, 0.0 }
  0x4e   :  { %v393_v37 = vmul.f32 0.1, %v265_v30  ;;  %vm330_vm14 = vcmp.ge.f32.partialorder %v266_v31, 0.0  ;;  %v394_v38 = vmul.f32 0.1, %v266_v31  ;;  %vm331_vm15 = vcmp.ge.f32.partialorder %v267_v35, 0.0 }
  0x4f   :  { %1269 = vst [vmem:[%s1634_s3 + $0xa8] sm:$0xff] %v1166_v33   ;;  %v456_v39 = vsel %vm328_vm12, %v264_v26, %v392_v34  ;;  %v395_v40 = vmul.f32 0.1, %v267_v35  ;;  %v197_v41 = vmul.f32 %v1028_v28, %v1306_v1  ;;  %v198_v45 = vmul.f32 %v1029_v32, %v1306_v1 }
  0x50   :  { %v457_v43 = vsel %vm329_vm13, %v265_v30, %v393_v37  ;;  %v458_v44 = vsel %vm330_vm14, %v266_v31, %v394_v38  ;;  %v1033_v50 = vunpack.c.h.bf16 %v1242_v36  ;;  %v199_v53 = vmul.f32 %v1032_v46, %v1306_v1  ;;  %v1247_v30 = vld [vmem:[%s1631_s0 + $0xf0] sm:$0xff]  }
  0x51   :  { %v1171_v47 = vpack.c.bf16 %v457_v43, %v456_v39  ;;  %v459_v48 = vsel %vm331_vm15, %v267_v35, %v395_v40  ;;  %v268_v49 = vadd.f32 %v1320_v7, %v197_v41  ;;  %v269_v52 = vadd.f32 %v1320_v7, %v198_v45 }
  0x52   :  { %v1176_v51 = vpack.c.bf16 %v459_v48, %v458_v44  ;;  %v1036_v54 = vunpack.c.l.bf16 %v1243_v42  ;;  %v200_v57 = vmul.f32 %v1033_v50, %v1306_v1  ;;  %v1037_v58 = vunpack.c.h.bf16 %v1243_v42  ;;  %v1248_v44 = vld [vmem:[%s1631_s0 + $0xf8] sm:$0xff]  }
  0x53   :  { %1270 = vst [vmem:[%s1634_s3 + $0xb0] sm:$0xff] %v1171_v47   ;;  %vm332_vm0 = vcmp.ge.f32.partialorder %v268_v49, 0.0  ;;  %v396_v56 = vmul.f32 0.1, %v268_v49  ;;  %vm333_vm1 = vcmp.ge.f32.partialorder %v269_v52, 0.0  ;;  %v270_v60 = vadd.f32 %v1320_v7, %v199_v53 }
  0x54   :  { %1271 = vst [vmem:[%s1634_s3 + $0xb8] sm:$0xff] %v1176_v51   ;;  %v397_v59 = vmul.f32 0.1, %v269_v52  ;;  %v201_v61 = vmul.f32 %v1036_v54, %v1306_v1  ;;  %v271_v63 = vadd.f32 %v1320_v7, %v200_v57  ;;  %v202_v0 = vmul.f32 %v1037_v58, %v1306_v1 }
  0x55   :  { %v460_v62 = vsel %vm332_vm0, %v268_v49, %v396_v56  ;;  %v1040_v2 = vunpack.c.l.bf16 %v1244_v55  ;;  %vm334_vm2 = vcmp.ge.f32.partialorder %v270_v60, 0.0  ;;  %v398_v4 = vmul.f32 0.1, %v270_v60 }
  0x56   :  { %v461_v3 = vsel %vm333_vm1, %v269_v52, %v397_v59  ;;  %v272_v5 = vadd.f32 %v1320_v7, %v201_v61  ;;  %vm335_vm3 = vcmp.ge.f32.partialorder %v271_v63, 0.0  ;;  %v399_v8 = vmul.f32 0.1, %v271_v63 }
  0x57   :  { %v1181_v6 = vpack.c.bf16 %v461_v3, %v460_v62  ;;  %v273_v9 = vadd.f32 %v1320_v7, %v202_v0  ;;  %v462_v11 = vsel %vm334_vm2, %v270_v60, %v398_v4  ;;  %v1041_v13 = vunpack.c.h.bf16 %v1244_v55 }
  0x58   :  { %vm336_vm4 = vcmp.ge.f32.partialorder %v272_v5, 0.0  ;;  %v400_v12 = vmul.f32 0.1, %v272_v5  ;;  %v463_v15 = vsel %vm335_vm3, %v271_v63, %v399_v8  ;;  %v203_v17 = vmul.f32 %v1040_v2, %v1306_v1 }
  0x59   :  { %1272 = vst [vmem:[%s1634_s3 + $0xc0] sm:$0xff] %v1181_v6   ;;  %vm337_vm5 = vcmp.ge.f32.partialorder %v273_v9, 0.0  ;;  %v401_v16 = vmul.f32 0.1, %v273_v9  ;;  %v1186_v18 = vpack.c.bf16 %v463_v15, %v462_v11  ;;  %v204_v20 = vmul.f32 %v1041_v13, %v1306_v1 }
  0x5a   :  { %v464_v19 = vsel %vm336_vm4, %v272_v5, %v400_v12  ;;  %v1044_v21 = vunpack.c.l.bf16 %v1245_v10  ;;  %v274_v23 = vadd.f32 %v1320_v7, %v203_v17  ;;  %v1045_v24 = vunpack.c.h.bf16 %v1245_v10 }
  0x5b   :  { %v465_v22 = vsel %vm337_vm5, %v273_v9, %v401_v16  ;;  %v1048_v25 = vunpack.c.l.bf16 %v1246_v14  ;;  %1273 = vst [vmem:[%s1634_s3 + $0xc8] sm:$0xff] %v1186_v18   ;;  %v275_v27 = vadd.f32 %v1320_v7, %v204_v20  ;;  %v1049_v29 = vunpack.c.h.bf16 %v1246_v14 }
  0x5c   :  { %v1191_v26 = vpack.c.bf16 %v465_v22, %v464_v19  ;;  %v205_v28 = vmul.f32 %v1044_v21, %v1306_v1  ;;  %vm338_vm6 = vcmp.ge.f32.partialorder %v274_v23, 0.0  ;;  %v402_v31 = vmul.f32 0.1, %v274_v23 }
  0x5d   :  { %v206_v32 = vmul.f32 %v1045_v24, %v1306_v1  ;;  %v207_v33 = vmul.f32 %v1048_v25, %v1306_v1  ;;  %vm339_vm7 = vcmp.ge.f32.partialorder %v275_v27, 0.0  ;;  %v403_v34 = vmul.f32 0.1, %v275_v27 }
  0x5e   :  { %1274 = vst [vmem:[%s1634_s3 + $0xd0] sm:$0xff] %v1191_v26   ;;  %v276_v35 = vadd.f32 %v1320_v7, %v205_v28  ;;  %v208_v36 = vmul.f32 %v1049_v29, %v1306_v1  ;;  %v466_v37 = vsel %vm338_vm6, %v274_v23, %v402_v31  ;;  %v1052_v40 = vunpack.c.l.bf16 %v1247_v30 }
  0x5f   :  { %v277_v38 = vadd.f32 %v1320_v7, %v206_v32  ;;  %v278_v39 = vadd.f32 %v1320_v7, %v207_v33  ;;  %v467_v41 = vsel %vm339_vm7, %v275_v27, %v403_v34  ;;  %v1053_v51 = vunpack.c.h.bf16 %v1247_v30 }
  0x60   :  { %vm340_vm8 = vcmp.ge.f32.partialorder %v276_v35, 0.0  ;;  %v404_v42 = vmul.f32 0.1, %v276_v35  ;;  %v279_v43 = vadd.f32 %v1320_v7, %v208_v36  ;;  %v1196_v45 = vpack.c.bf16 %v467_v41, %v466_v37 }
  0x61   :  { %vm341_vm9 = vcmp.ge.f32.partialorder %v277_v38, 0.0  ;;  %v405_v46 = vmul.f32 0.1, %v277_v38  ;;  %vm342_vm10 = vcmp.ge.f32.partialorder %v278_v39, 0.0  ;;  %v406_v48 = vmul.f32 0.1, %v278_v39 }
  0x62   :  { %v468_v47 = vsel %vm340_vm8, %v276_v35, %v404_v42  ;;  %vm343_vm11 = vcmp.ge.f32.partialorder %v279_v43, 0.0  ;;  %v407_v49 = vmul.f32 0.1, %v279_v43  ;;  %1275 = vst [vmem:[%s1634_s3 + $0xd8] sm:$0xff] %v1196_v45   ;;  %v209_v52 = vmul.f32 %v1052_v40, %v1306_v1 }
  0x63   :  { %v469_v50 = vsel %vm341_vm9, %v277_v38, %v405_v46  ;;  %v1056_v53 = vunpack.c.l.bf16 %v1248_v44  ;;  %v470_v55 = vsel %vm342_vm10, %v278_v39, %v406_v48  ;;  %v1057_v57 = vunpack.c.h.bf16 %v1248_v44 }
  0x64   :  { %v1201_v54 = vpack.c.bf16 %v469_v50, %v468_v47  ;;  %v471_v56 = vsel %vm343_vm11, %v279_v43, %v407_v49  ;;  %v210_v59 = vmul.f32 %v1053_v51, %v1306_v1  ;;  %v280_v60 = vadd.f32 %v1320_v7, %v209_v52 }
  0x65   :  { %v1206_v58 = vpack.c.bf16 %v471_v56, %v470_v55  ;;  %v211_v61 = vmul.f32 %v1056_v53, %v1306_v1  ;;  %v212_v62 = vmul.f32 %v1057_v57, %v1306_v1 }
  0x66   :  { %1276 = vst [vmem:[%s1634_s3 + $0xe0] sm:$0xff] %v1201_v54   ;;  %v281_v63 = vadd.f32 %v1320_v7, %v210_v59  ;;  %vm344_vm12 = vcmp.ge.f32.partialorder %v280_v60, 0.0  ;;  %v408_v0 = vmul.f32 0.1, %v280_v60 }
  0x67   :  { %1277 = vst [vmem:[%s1634_s3 + $0xe8] sm:$0xff] %v1206_v58   ;;  %v282_v2 = vadd.f32 %v1320_v7, %v211_v61  ;;  %v283_v3 = vadd.f32 %v1320_v7, %v212_v62 }
  0x68   :  { %vm345_vm13 = vcmp.ge.f32.partialorder %v281_v63, 0.0  ;;  %v409_v4 = vmul.f32 0.1, %v281_v63  ;;  %v472_v5 = vsel %vm344_vm12, %v280_v60, %v408_v0 }
  0x69   :  { %vm346_vm14 = vcmp.ge.f32.partialorder %v282_v2, 0.0  ;;  %vm347_vm15 = vcmp.ge.f32.partialorder %v283_v3, 0.0  ;;  %v410_v6 = vmul.f32 0.1, %v282_v2  ;;  %v411_v8 = vmul.f32 0.1, %v283_v3 }
  0x6a   :  { %v473_v1 = vsel %vm345_vm13, %v281_v63, %v409_v4 }
  0x6b   :  { %v1211_v9 = vpack.c.bf16 %v473_v1, %v472_v5  ;;  %v474_v10 = vsel %vm346_vm14, %v282_v2, %v410_v6  ;;  %v475_v11 = vsel %vm347_vm15, %v283_v3, %v411_v8 }
  0x6c   :  { %v1216_v12 = vpack.c.bf16 %v475_v11, %v474_v10 }
  0x6d   :  { %1278 = vst [vmem:[%s1634_s3 + $0xf0] sm:$0xff] %v1211_v9  }
  0x6e   :  { %1279 = vst [vmem:[%s1634_s3 + $0xf8] sm:$0xff] %v1216_v12  }

// kernel: _lambda_.22
= control target key start
LH: loop header
LB: loop body
LE: loop exit
PB: predicated region body
PF: predicated region fallthrough
CT: control target
= control target key end

     0   :  { %s5629_s15 = smov 0   ;;  %s6572_s0 = inlined_call_operand.vmem [shape: bf16[2,3,288,128], index: 0, kind: input, shape index: {}]   ;;  %s6573_s1 = inlined_call_operand.vmem [shape: bf16[9,128,128], index: 1, kind: input, shape index: {}]   ;;  %s6574_s2 = inlined_call_operand.vmem [shape: f32[1,128], index: 2, kind: input, shape index: {}]   ;;  %s6575_s3 = inlined_call_operand.vmem [shape: f32[1,128], index: 3, kind: input, shape index: {}]   ;;  %s6576_s4 = inlined_call_operand.vmem [shape: bf16[2,256,128], index: 4, kind: output, shape index: {}]  }
   0x1 LB: > { %s3999_s16 = sadd.s32 4294967295, %s5602_s15   ;;  %p4003_p0 = scmp.ge.s32.totalorder %s5602_s15, 1  ;;  %s5602_s15 = sphi %s5629_s15, %s14_s15  }
   0x2   : > { %p162_p1 = scmp.lt.s32.totalorder %s5602_s15, 3 }
   0x4   : > { %p163_p2 = pnand %p4003_p0, %p162_p1 }
   0x6   : > { %166 = sbr.rel (%p163_p2) target bundleno = 537 (0x219), region = 36 }
   0xb   : > { %v5380_v0 = vld [vmem:[%s6573_s1 + $0x78] sm:$0xff]   ;;  %p188_p3 = scmp.lt.s32.totalorder %s3999_s16, 1  ;;  %v5381_v1 = vld [vmem:[%s6573_s1 + $0x70] sm:$0xff]   ;;  %v5382_v2 = vld [vmem:[%s6573_s1 + $0x68] sm:$0xff]  }
   0xc   : > { %4923 = vmatprep.subr.bf16.mxu0 %v5380_v0  ;;  %5355 = vmatprep.subr.bf16.mxu1 %v5380_v0  ;;  %v5383_v3 = vld [vmem:[%s6573_s1 + $0x60] sm:$0xff]   ;;  %v5384_v6 = vld [vmem:[%s6573_s1 + $0x58] sm:$0xff]   ;;  %v5385_v7 = vld [vmem:[%s6573_s1 + $0x50] sm:$0xff]  }
   0xd   : > { %s6600_s16 = smov (!%p188_p3, %s3999_s16), 1  ;;  %4924 = vmatpush3.bf16.msra.mxu0 %v5380_v0  ;;  %5363 = vmatpush3.bf16.msra.mxu1 %v5380_v0  ;;  %v5386_v8 = vld [vmem:[%s6573_s1 + $0x48] sm:$0xff]   ;;  %v5387_v9 = vld [vmem:[%s6573_s1 + $0x40] sm:$0xff]   ;;  %v5392_v10 = vld [vmem:[%s6573_s1 + $0x38] sm:$0xff]  }
   0xe   : > { %4925 = vmatprep.subr.bf16.mxu0 %v5381_v1  ;;  %5356 = vmatprep.subr.bf16.mxu1 %v5381_v1  ;;  %s5371_s23 = smul.u32 432, %s6600_s16  ;;  %v5393_v12 = vld [vmem:[%s6573_s1 + $0xb8] sm:$0xff]   ;;  %v5394_v14 = vld [vmem:[%s6573_s1 + $0x30] sm:$0xff]   ;;  %v5400_v18 = vld [vmem:[%s6573_s1 + $0x28] sm:$0xff]   ;;  %s4579_s30 = sshll.u32 %s6600_s16, 7 }
   0xf   : > { %v5395_v15 = vld [vmem:[%s6573_s1 + $0xb0] sm:$0xff]   ;;  %v5401_v20 = vld [vmem:[%s6573_s1 + $0xa8] sm:$0xff]   ;;  %v5402_v22 = vld [vmem:[%s6573_s1 + $0x20] sm:$0xff]   ;;  %s6434_s6 = scalar_lea.vmem %s6576_s4, %s4579_s30 }
  0x10   : > { %s5652_s26 = scalar_lea.vmem %s6572_s0, %s5371_s23  ;;  %v5403_v23 = vld [vmem:[%s6573_s1 + $0xa0] sm:$0xff]   ;;  %v5408_v26 = vld [vmem:[%s6573_s1 + $0x18] sm:$0xff]   ;;  %v5410_v30 = vld [vmem:[%s6573_s1 + $0x10] sm:$0xff]  }
  0x11   : > { %4926 = vmatpush3.bf16.msra.mxu0 %v5381_v1  ;;  %5364 = vmatpush3.bf16.msra.mxu1 %v5381_v1  ;;  %v5388_v4 = vld [vmem:[%s5652_s26 + $0x90] sm:$0xff]   ;;  %v5390_v11 = vld [vmem:[%s5652_s26 + $0x98] sm:$0xff]   ;;  %v5396_v16 = vld [vmem:[%s5652_s26 + $0xa0] sm:$0xff]  }
  0x12   : > { %4927 = vmatprep.subr.bf16.mxu0 %v5382_v2  ;;  %5357 = vmatprep.subr.bf16.mxu1 %v5382_v2  ;;  %v5389_v5 = vld [vmem:[%s5652_s26 + $0xd0] sm:$0xff]   ;;  %v5391_v13 = vld [vmem:[%s5652_s26 + $0xd8] sm:$0xff]   ;;  %v5397_v17 = vld [vmem:[%s5652_s26 + $0xe0] sm:$0xff]  }
  0x13   : > { %4939 = vmatprep.mubr.bf16.mxu0 %v5388_v4  ;;  %4955 = vmatprep.mubr.bf16.mxu1 %v5389_v5  ;;  %v5398_v19 = vld [vmem:[%s5652_s26 + $0xa8] sm:$0xff]   ;;  %v5404_v24 = vld [vmem:[%s5652_s26 + $0xb0] sm:$0xff]   ;;  %v5406_v27 = vld [vmem:[%s5652_s26 + $0xb8] sm:$0xff]  }
  0x14   : > { %v5399_v21 = vld [vmem:[%s5652_s26 + $0xe8] sm:$0xff]   ;;  %v5405_v25 = vld [vmem:[%s5652_s26 + $0xf0] sm:$0xff]   ;;  %v5409_v28 = vld [vmem:[%s6573_s1 + $0x98] sm:$0xff]  }
  0x15   : > { %4928 = vmatpush3.bf16.msra.mxu0 %v5382_v2  ;;  %5365 = vmatpush3.bf16.msra.mxu1 %v5382_v2  ;;  %v5407_v29 = vld [vmem:[%s5652_s26 + $0xf8] sm:$0xff]   ;;  %v5411_v31 = vld [vmem:[%s6573_s1 + $0x90] sm:$0xff]   ;;  %v5412_v32 = vld [vmem:[%s5652_s26 + $0xc0] sm:$0xff]  }
  0x16   : > { %4929 = vmatprep.subr.bf16.mxu0 %v5383_v3  ;;  %5358 = vmatprep.subr.bf16.mxu1 %v5383_v3  ;;  %v5413_v33 = vld [vmem:[%s5652_s26 + $0x100] sm:$0xff]   ;;  %v5416_v34 = vld [vmem:[%s6573_s1 + $0x8] sm:$0xff]   ;;  %v5424_v42 = vld [vmem:[%s6573_s1 + $0xf8] sm:$0xff]  }
  0x17   : > { %v5414_v35 = vld [vmem:[%s5652_s26 + $0xc8] sm:$0xff]   ;;  %v5418_v38 = vld [vmem:[%s6573_s1] sm:$0xff]   ;;  %v5425_v44 = vld [vmem:[%s6573_s1 + $0x138] sm:$0xff]  }
  0x18   : > { %v5417_v36 = vld [vmem:[%s6573_s1 + $0x88] sm:$0xff]   ;;  %v5419_v39 = vld [vmem:[%s6573_s1 + $0x80] sm:$0xff]   ;;  %v5426_v46 = vld [vmem:[%s5652_s26 + $0x10] sm:$0xff]  }
  0x19   : > { %4930 = vmatpush3.bf16.msra.mxu0 %v5383_v3  ;;  %5366 = vmatpush3.bf16.msra.mxu1 %v5383_v3  ;;  %v5415_v37 = vld [vmem:[%s5652_s26 + $0x108] sm:$0xff]   ;;  %v5420_v40 = vld [vmem:[%s5652_s26] sm:$0xff]   ;;  %v5427_v47 = vld [vmem:[%s5652_s26 + $0x130] sm:$0xff]  }
  0x1a   : > { %4931 = vmatprep.subr.bf16.mxu0 %v5384_v6  ;;  %5359 = vmatprep.subr.bf16.mxu1 %v5384_v6  ;;  %v5421_v41 = vld [vmem:[%s5652_s26 + $0x120] sm:$0xff]   ;;  %v5422_v43 = vld [vmem:[%s5652_s26 + $0x8] sm:$0xff]   ;;  %v5430_v48 = vld [vmem:[%s6573_s1 + $0xf0] sm:$0xff]  }
  0x1b   : > { %v5423_v45 = vld [vmem:[%s5652_s26 + $0x128] sm:$0xff]   ;;  %v5431_v49 = vld [vmem:[%s6573_s1 + $0x130] sm:$0xff]   ;;  %v5428_v51 = vld [vmem:[%s5652_s26 + $0x18] sm:$0xff]  }
  0x1c   : > { %v5436_v50 = vld [vmem:[%s6573_s1 + $0xe8] sm:$0xff]   ;;  %v5429_v53 = vld [vmem:[%s5652_s26 + $0x138] sm:$0xff]   ;;  %v5432_v54 = vld [vmem:[%s5652_s26 + $0x20] sm:$0xff]  }
  0x1d   : > { %4932 = vmatpush3.bf16.msra.mxu0 %v5384_v6  ;;  %5367 = vmatpush3.bf16.msra.mxu1 %v5384_v6  ;;  %v5437_v52 = vld [vmem:[%s6573_s1 + $0x128] sm:$0xff]   ;;  %v5433_v55 = vld [vmem:[%s5652_s26 + $0x140] sm:$0xff]   ;;  %v5448_v60 = vld [vmem:[%s6573_s1 + $0xd8] sm:$0xff]  }
  0x1e   : > { %4933 = vmatprep.subr.bf16.mxu0 %v5385_v7  ;;  %5360 = vmatprep.subr.bf16.mxu1 %v5385_v7  ;;  %v5442_v56 = vld [vmem:[%s6573_s1 + $0xe0] sm:$0xff]   ;;  %v5434_v58 = vld [vmem:[%s5652_s26 + $0x28] sm:$0xff]   ;;  %v5449_v61 = vld [vmem:[%s6573_s1 + $0x118] sm:$0xff]  }
  0x1f   : > { %v5443_v57 = vld [vmem:[%s6573_s1 + $0x120] sm:$0xff]   ;;  %v5435_v59 = vld [vmem:[%s5652_s26 + $0x148] sm:$0xff]   ;;  %v5438_v62 = vld [vmem:[%s5652_s26 + $0x30] sm:$0xff]  }
  0x20   : > { %v5439_v63 = vld [vmem:[%s5652_s26 + $0x150] sm:$0xff]   ;;  %v5440_v2 = vld [vmem:[%s5652_s26 + $0x38] sm:$0xff]   ;;  %v5460_v4 = vld [vmem:[%s6573_s1 + $0xc8] sm:$0xff]  }
  0x21   : > { %4934 = vmatpush3.bf16.msra.mxu0 %v5385_v7  ;;  %5368 = vmatpush3.bf16.msra.mxu1 %v5385_v7  ;;  %v5454_v0 = vld [vmem:[%s6573_s1 + $0xd0] sm:$0xff]   ;;  %v5441_v3 = vld [vmem:[%s5652_s26 + $0x158] sm:$0xff]   ;;  %v5461_v5 = vld [vmem:[%s6573_s1 + $0x108] sm:$0xff]  }
  0x22   : > { %4935 = vmatprep.subr.bf16.mxu0 %v5386_v8  ;;  %5361 = vmatprep.subr.bf16.mxu1 %v5386_v8  ;;  %v5455_v1 = vld [vmem:[%s6573_s1 + $0x110] sm:$0xff]   ;;  %v5444_v6 = vld [vmem:[%s5652_s26 + $0x40] sm:$0xff]  }
  0x23   : > { %v5445_v7 = vld [vmem:[%s5652_s26 + $0x160] sm:$0xff]  }
  0x25   : > { %4936 = vmatpush3.bf16.msra.mxu0 %v5386_v8  ;;  %5369 = vmatpush3.bf16.msra.mxu1 %v5386_v8  ;;  %v5466_v8 = vld [vmem:[%s6573_s1 + $0xc0] sm:$0xff]  }
  0x26   : > { %4937 = vmatprep.subr.bf16.mxu0 %v5387_v9  ;;  %5362 = vmatprep.subr.bf16.mxu1 %v5387_v9 }
  0x29   : > { %4938 = vmatpush3.bf16.msra.mxu0 %v5387_v9  ;;  %5370 = vmatpush3.bf16.msra.mxu1 %v5387_v9  ;;  %v5467_v9 = vld [vmem:[%s6573_s1 + $0x100] sm:$0xff]  }
  0x2a   : > { %4971 = vmatprep.subr.bf16.mxu1 %v5392_v10  ;;  %5019 = vmatprep.subr.bf16.mxu0 %v5393_v12 }
  0x2c   : > { %4940 = vmatmul.mubr.bf16.vlgmr.msra.gmra.mxu0 %v5390_v11  ;;  %4956 = vmatmul.mubr.bf16.vlgmr.msra.gmra.mxu1 %v5391_v13  ;;  %v5447_v11 = vld [vmem:[%s5652_s26 + $0x168] sm:$0xff]   ;;  %v5473_v13 = vld [vmem:[%s6573_s1 + $0x1b8] sm:$0xff]  }
  0x2d   : > { %4972 = vmatpush3.bf16.msra.mxu1 %v5392_v10  ;;  %5020 = vmatpush3.bf16.msra.mxu0 %v5393_v12  ;;  %v5446_v10 = vld [vmem:[%s5652_s26 + $0x48] sm:$0xff]   ;;  %v5472_v12 = vld [vmem:[%s6573_s1 + $0x178] sm:$0xff]  }
  0x2e   : > { %4973 = vmatprep.subr.bf16.mxu1 %v5394_v14  ;;  %5021 = vmatprep.subr.bf16.mxu0 %v5395_v15 }
  0x2f   : > { %4943 = vmatprep.mubr.bf16.mxu0 %v5396_v16  ;;  %4959 = vmatprep.mubr.bf16.mxu1 %v5397_v17  ;;  %v5452_v16 = vld [vmem:[%s5652_s26 + $0x58] sm:$0xff]  }
  0x30   : > { %v5453_v17 = vld [vmem:[%s5652_s26 + $0x178] sm:$0xff]  }
  0x31   : > { %4974 = vmatpush3.bf16.msra.mxu1 %v5394_v14  ;;  %5022 = vmatpush3.bf16.msra.mxu0 %v5395_v15  ;;  %v5450_v14 = vld [vmem:[%s5652_s26 + $0x50] sm:$0xff]  }
  0x32   : > { %4975 = vmatprep.subr.bf16.mxu1 %v5400_v18  ;;  %5023 = vmatprep.subr.bf16.mxu0 %v5401_v20  ;;  %v5451_v15 = vld [vmem:[%s5652_s26 + $0x170] sm:$0xff]  }
  0x34   : > { %4944 = vmatmul.mubr.bf16.gmra.mxu0 %v5398_v19  ;;  %4960 = vmatmul.mubr.bf16.gmra.mxu1 %v5399_v21  ;;  %v5457_v19 = vld [vmem:[%s5652_s26 + $0x180] sm:$0xff]   ;;  %v5459_v21 = vld [vmem:[%s5652_s26 + $0x188] sm:$0xff]  }
  0x35   : > { %4976 = vmatpush3.bf16.msra.mxu1 %v5400_v18  ;;  %5024 = vmatpush3.bf16.msra.mxu0 %v5401_v20  ;;  %v5456_v18 = vld [vmem:[%s5652_s26 + $0x60] sm:$0xff]   ;;  %v5458_v20 = vld [vmem:[%s5652_s26 + $0x68] sm:$0xff]  }
  0x36   : > { %4977 = vmatprep.subr.bf16.mxu1 %v5402_v22  ;;  %5025 = vmatprep.subr.bf16.mxu0 %v5403_v23 }
  0x37   : > { %4947 = vmatprep.mubr.bf16.mxu0 %v5404_v24  ;;  %4963 = vmatprep.mubr.bf16.mxu1 %v5405_v25  ;;  %v5464_v24 = vld [vmem:[%s5652_s26 + $0x78] sm:$0xff]  }
  0x38   : > { %v5465_v25 = vld [vmem:[%s5652_s26 + $0x198] sm:$0xff]  }
  0x39   : > { %4978 = vmatpush3.bf16.msra.mxu1 %v5402_v22  ;;  %5026 = vmatpush3.bf16.msra.mxu0 %v5403_v23  ;;  %v5462_v22 = vld [vmem:[%s5652_s26 + $0x70] sm:$0xff]  }
  0x3a   : > { %4979 = vmatprep.subr.bf16.mxu1 %v5408_v26  ;;  %5027 = vmatprep.subr.bf16.mxu0 %v5409_v28  ;;  %v5463_v23 = vld [vmem:[%s5652_s26 + $0x190] sm:$0xff]  }
  0x3c   : > { %4948 = vmatmul.mubr.bf16.gmra.mxu0 %v5406_v27  ;;  %4964 = vmatmul.mubr.bf16.gmra.mxu1 %v5407_v29  ;;  %v5469_v27 = vld [vmem:[%s5652_s26 + $0x98] sm:$0xff]   ;;  %v5471_v29 = vld [vmem:[%s5652_s26 + $0xa0] sm:$0xff]  }
  0x3d   : > { %4980 = vmatpush3.bf16.msra.mxu1 %v5408_v26  ;;  %5028 = vmatpush3.bf16.msra.mxu0 %v5409_v28  ;;  %v5468_v26 = vld [vmem:[%s5652_s26 + $0x8] sm:$0xff]   ;;  %v5470_v28 = vld [vmem:[%s5652_s26 + $0x10] sm:$0xff]  }
  0x3e   : > { %4981 = vmatprep.subr.bf16.mxu1 %v5410_v30  ;;  %5029 = vmatprep.subr.bf16.mxu0 %v5411_v31 }
  0x3f   : > { %4951 = vmatprep.mubr.bf16.mxu0 %v5412_v32  ;;  %4967 = vmatprep.mubr.bf16.mxu1 %v5413_v33  ;;  %v5478_v32 = vld [vmem:[%s6573_s1 + $0x170] sm:$0xff]  }
  0x40   : > { %v5479_v33 = vld [vmem:[%s6573_s1 + $0x1b0] sm:$0xff]  }
  0x41   : > { %4982 = vmatpush3.bf16.msra.mxu1 %v5410_v30  ;;  %5030 = vmatpush3.bf16.msra.mxu0 %v5411_v31  ;;  %v5474_v30 = vld [vmem:[%s5652_s26 + $0x18] sm:$0xff]   ;;  %v5475_v31 = vld [vmem:[%s5652_s26 + $0xa8] sm:$0xff]  }
  0x42   : > { %4983 = vmatprep.subr.bf16.mxu1 %v5416_v34  ;;  %5031 = vmatprep.subr.bf16.mxu0 %v5417_v36 }
  0x44   : > { %4952 = vmatmul.mubr.bf16.gmra.mxu0 %v5414_v35  ;;  %4968 = vmatmul.mubr.bf16.gmra.mxu1 %v5415_v37  ;;  %v5476_v35 = vld [vmem:[%s5652_s26 + $0x20] sm:$0xff]   ;;  %v5477_v37 = vld [vmem:[%s5652_s26 + $0xb0] sm:$0xff]  }
  0x45   : > { %4984 = vmatpush3.bf16.msra.mxu1 %v5416_v34  ;;  %5032 = vmatpush3.bf16.msra.mxu0 %v5417_v36  ;;  %v5484_v34 = vld [vmem:[%s6573_s1 + $0x168] sm:$0xff]  }
  0x46   : > { %4985 = vmatprep.subr.bf16.mxu1 %v5418_v38  ;;  %5033 = vmatprep.subr.bf16.mxu0 %v5419_v39  ;;  %v5485_v36 = vld [vmem:[%s6573_s1 + $0x1a8] sm:$0xff]  }
  0x47   : > { %4987 = vmatprep.mubr.bf16.mxu1 %v5420_v40  ;;  %5035 = vmatprep.mubr.bf16.mxu0 %v5421_v41  ;;  %v5490_v40 = vld [vmem:[%s6573_s1 + $0x160] sm:$0xff]  }
  0x48   : > { %v5491_v41 = vld [vmem:[%s6573_s1 + $0x1a0] sm:$0xff]  }
  0x49   : > { %4986 = vmatpush3.bf16.msra.mxu1 %v5418_v38  ;;  %5034 = vmatpush3.bf16.msra.mxu0 %v5419_v39  ;;  %v5480_v38 = vld [vmem:[%s5652_s26 + $0x28] sm:$0xff]   ;;  %v5481_v39 = vld [vmem:[%s5652_s26 + $0xb8] sm:$0xff]  }
  0x4a   : > { %5067 = vmatprep.subr.bf16.mxu1 %v5424_v42  ;;  %5115 = vmatprep.subr.bf16.mxu0 %v5425_v44 }
  0x4c   : > { %4988 = vmatmul.mubr.bf16.vlgmr.msra.gmra.mxu1 %v5422_v43  ;;  %5036 = vmatmul.mubr.bf16.vlgmr.msra.gmra.mxu0 %v5423_v45  ;;  %v5483_v43 = vld [vmem:[%s5652_s26 + $0xc0] sm:$0xff]   ;;  %v5497_v45 = vld [vmem:[%s6573_s1 + $0x198] sm:$0xff]  }
  0x4d   : > { %5068 = vmatpush3.bf16.msra.mxu1 %v5424_v42  ;;  %5116 = vmatpush3.bf16.msra.mxu0 %v5425_v44  ;;  %v5482_v42 = vld [vmem:[%s5652_s26 + $0x30] sm:$0xff]   ;;  %v5496_v44 = vld [vmem:[%s6573_s1 + $0x158] sm:$0xff]  }
  0x4e   : > { %4991 = vmatprep.mubr.bf16.mxu1 %v5426_v46  ;;  %5039 = vmatprep.mubr.bf16.mxu0 %v5427_v47  ;;  %v5486_v46 = vld [vmem:[%s5652_s26 + $0x38] sm:$0xff]   ;;  %v5487_v47 = vld [vmem:[%s5652_s26 + $0xc8] sm:$0xff]  }
  0x4f   : > { %5069 = vmatprep.subr.bf16.mxu1 %v5430_v48  ;;  %5117 = vmatprep.subr.bf16.mxu0 %v5431_v49 }
  0x51   : > { %5070 = vmatpush3.bf16.msra.mxu1 %v5430_v48  ;;  %5118 = vmatpush3.bf16.msra.mxu0 %v5431_v49  ;;  %v5502_v48 = vld [vmem:[%s6573_s1 + $0x150] sm:$0xff]  }
  0x52   : > { %5071 = vmatprep.subr.bf16.mxu1 %v5436_v50  ;;  %5119 = vmatprep.subr.bf16.mxu0 %v5437_v52  ;;  %v5503_v49 = vld [vmem:[%s6573_s1 + $0x190] sm:$0xff]  }
  0x54   : > { %4992 = vmatmul.mubr.bf16.gmra.mxu1 %v5428_v51  ;;  %5040 = vmatmul.mubr.bf16.gmra.mxu0 %v5429_v53  ;;  %v5489_v51 = vld [vmem:[%s5652_s26 + $0xd0] sm:$0xff]   ;;  %v5509_v53 = vld [vmem:[%s6573_s1 + $0x188] sm:$0xff]  }
  0x55   : > { %4995 = vmatprep.mubr.bf16.mxu1 %v5432_v54  ;;  %5043 = vmatprep.mubr.bf16.mxu0 %v5433_v55  ;;  %v5492_v54 = vld [vmem:[%s5652_s26 + $0x48] sm:$0xff]   ;;  %v5493_v55 = vld [vmem:[%s5652_s26 + $0xd8] sm:$0xff]  }
  0x56   : > { %5072 = vmatpush3.bf16.msra.mxu1 %v5436_v50  ;;  %5120 = vmatpush3.bf16.msra.mxu0 %v5437_v52  ;;  %v5488_v50 = vld [vmem:[%s5652_s26 + $0x40] sm:$0xff]   ;;  %v5508_v52 = vld [vmem:[%s6573_s1 + $0x148] sm:$0xff]  }
  0x57   : > { %5073 = vmatprep.subr.bf16.mxu1 %v5442_v56  ;;  %5121 = vmatprep.subr.bf16.mxu0 %v5443_v57 }
  0x5a   : > { %5074 = vmatpush3.bf16.msra.mxu1 %v5442_v56  ;;  %5122 = vmatpush3.bf16.msra.mxu0 %v5443_v57  ;;  %v5514_v56 = vld [vmem:[%s6573_s1 + $0x140] sm:$0xff]  }
  0x5b   : > { %5075 = vmatprep.subr.bf16.mxu1 %v5448_v60  ;;  %5123 = vmatprep.subr.bf16.mxu0 %v5449_v61  ;;  %v5515_v57 = vld [vmem:[%s6573_s1 + $0x180] sm:$0xff]  }
  0x5c   : > { %4996 = vmatmul.mubr.bf16.gmra.mxu1 %v5434_v58  ;;  %5044 = vmatmul.mubr.bf16.gmra.mxu0 %v5435_v59  ;;  %v5494_v58 = vld [vmem:[%s5652_s26 + $0x50] sm:$0xff]   ;;  %v5495_v59 = vld [vmem:[%s5652_s26 + $0xe0] sm:$0xff]  }
  0x5d   : > { %4999 = vmatprep.mubr.bf16.mxu1 %v5438_v62  ;;  %5047 = vmatprep.mubr.bf16.mxu0 %v5439_v63  ;;  %v5498_v62 = vld [vmem:[%s5652_s26 + $0x58] sm:$0xff]   ;;  %v5499_v63 = vld [vmem:[%s5652_s26 + $0xe8] sm:$0xff]  }
  0x5e   : > { %5076 = vmatpush3.bf16.msra.mxu1 %v5448_v60  ;;  %5124 = vmatpush3.bf16.msra.mxu0 %v5449_v61  ;;  %v5520_v60 = vld [vmem:[%s6573_s1 + $0x1f8] sm:$0xff]  }
  0x5f   : > { %5077 = vmatprep.subr.bf16.mxu1 %v5454_v0  ;;  %5125 = vmatprep.subr.bf16.mxu0 %v5455_v1  ;;  %v5521_v61 = vld [vmem:[%s6573_s1 + $0x238] sm:$0xff]  }
  0x62   : > { %5078 = vmatpush3.bf16.msra.mxu1 %v5454_v0  ;;  %5126 = vmatpush3.bf16.msra.mxu0 %v5455_v1  ;;  %v5500_v0 = vld [vmem:[%s5652_s26 + $0x60] sm:$0xff]   ;;  %v5501_v1 = vld [vmem:[%s5652_s26 + $0xf0] sm:$0xff]  }
  0x63   : > { %5079 = vmatprep.subr.bf16.mxu1 %v5460_v4  ;;  %5127 = vmatprep.subr.bf16.mxu0 %v5461_v5 }
  0x64   : > { %5000 = vmatmul.mubr.bf16.gmra.mxu1 %v5440_v2  ;;  %5048 = vmatmul.mubr.bf16.gmra.mxu0 %v5441_v3  ;;  %v5504_v2 = vld [vmem:[%s5652_s26 + $0x68] sm:$0xff]   ;;  %v5505_v3 = vld [vmem:[%s5652_s26 + $0xf8] sm:$0xff]  }
  0x65   : > { %5003 = vmatprep.mubr.bf16.mxu1 %v5444_v6  ;;  %5051 = vmatprep.mubr.bf16.mxu0 %v5445_v7  ;;  %v5510_v6 = vld [vmem:[%s5652_s26 + $0x78] sm:$0xff]   ;;  %v5511_v7 = vld [vmem:[%s5652_s26 + $0x108] sm:$0xff]  }
  0x66   : > { %5080 = vmatpush3.bf16.msra.mxu1 %v5460_v4  ;;  %5128 = vmatpush3.bf16.msra.mxu0 %v5461_v5  ;;  %v5506_v4 = vld [vmem:[%s5652_s26 + $0x70] sm:$0xff]   ;;  %v5507_v5 = vld [vmem:[%s5652_s26 + $0x100] sm:$0xff]  }
  0x67   : > { %5081 = vmatprep.subr.bf16.mxu1 %v5466_v8  ;;  %5129 = vmatprep.subr.bf16.mxu0 %v5467_v9 }
  0x6a   : > { %5082 = vmatpush3.bf16.msra.mxu1 %v5466_v8  ;;  %5130 = vmatpush3.bf16.msra.mxu0 %v5467_v9  ;;  %v5512_v8 = vld [vmem:[%s5652_s26 + $0x80] sm:$0xff]   ;;  %v5513_v9 = vld [vmem:[%s5652_s26 + $0x110] sm:$0xff]  }
  0x6b   : > { %5163 = vmatprep.subr.bf16.mxu1 %v5472_v12  ;;  %5211 = vmatprep.subr.bf16.mxu0 %v5473_v13 }
  0x6c   : > { %5004 = vmatmul.mubr.bf16.gmra.mxu1 %v5446_v10  ;;  %5052 = vmatmul.mubr.bf16.gmra.mxu0 %v5447_v11  ;;  %v5516_v10 = vld [vmem:[%s5652_s26 + $0x128] sm:$0xff]   ;;  %v5517_v11 = vld [vmem:[%s5652_s26 + $0x10] sm:$0xff]  }
  0x6d   : > { %5007 = vmatprep.mubr.bf16.mxu1 %v5450_v14  ;;  %5055 = vmatprep.mubr.bf16.mxu0 %v5451_v15  ;;  %v5522_v14 = vld [vmem:[%s5652_s26 + $0x138] sm:$0xff]   ;;  %v5523_v15 = vld [vmem:[%s5652_s26 + $0x20] sm:$0xff]  }
  0x74   : > { %5008 = vmatmul.mubr.bf16.gmra.mxu1 %v5452_v16  ;;  %5056 = vmatmul.mubr.bf16.gmra.mxu0 %v5453_v17  ;;  %v5526_v16 = vld [vmem:[%s6573_s1 + $0x1f0] sm:$0xff]  }
  0x75   : > { %5011 = vmatprep.mubr.bf16.mxu1 %v5456_v18  ;;  %5059 = vmatprep.mubr.bf16.mxu0 %v5457_v19  ;;  %v5527_v17 = vld [vmem:[%s6573_s1 + $0x230] sm:$0xff]   ;;  %v5532_v18 = vld [vmem:[%s6573_s1 + $0x1e8] sm:$0xff]   ;;  %v5524_v19 = vld [vmem:[%s5652_s26 + $0x140] sm:$0xff]  }
  0x7c   : > { %5012 = vmatmul.mubr.bf16.gmra.mxu1 %v5458_v20  ;;  %5060 = vmatmul.mubr.bf16.gmra.mxu0 %v5459_v21  ;;  %v5533_v20 = vld [vmem:[%s6573_s1 + $0x228] sm:$0xff]  }
  0x7d   : > { %5015 = vmatprep.mubr.bf16.mxu1 %v5462_v22  ;;  %5063 = vmatprep.mubr.bf16.mxu0 %v5463_v23  ;;  %v5525_v21 = vld [vmem:[%s5652_s26 + $0x28] sm:$0xff]   ;;  %v5529_v23 = vld [vmem:[%s5652_s26 + $0x30] sm:$0xff]  }
  0x7e   : > { %v5528_v22 = vld [vmem:[%s5652_s26 + $0x148] sm:$0xff]  }
  0x84   : > { %5016 = vmatmul.mubr.bf16.gmra.mxu1 %v5464_v24  ;;  %5064 = vmatmul.mubr.bf16.gmra.mxu0 %v5465_v25  ;;  %v5538_v24 = vld [vmem:[%s6573_s1 + $0x1e0] sm:$0xff]  }
  0x85   : > { %5083 = vmatprep.mubr.bf16.mxu1 %v5468_v26  ;;  %5131 = vmatprep.mubr.bf16.mxu0 %v5469_v27  ;;  %v5539_v25 = vld [vmem:[%s6573_s1 + $0x220] sm:$0xff]   ;;  %v5530_v26 = vld [vmem:[%s5652_s26 + $0x150] sm:$0xff]   ;;  %v5531_v27 = vld [vmem:[%s5652_s26 + $0x38] sm:$0xff]  }
  0x8c   : > { %5084 = vmatmul.mubr.bf16.vlgmr.msra.gmra.mxu1 %v5470_v28  ;;  %5132 = vmatmul.mubr.bf16.vlgmr.msra.gmra.mxu0 %v5471_v29  ;;  %v5544_v28 = vld [vmem:[%s6573_s1 + $0x1d8] sm:$0xff]  }
  0x8d   : > { %5164 = vmatpush3.bf16.msra.mxu1 %v5472_v12  ;;  %5212 = vmatpush3.bf16.msra.mxu0 %v5473_v13  ;;  %v5518_v12 = vld [vmem:[%s5652_s26 + $0x130] sm:$0xff]   ;;  %v5519_v13 = vld [vmem:[%s5652_s26 + $0x18] sm:$0xff]  }
  0x8e   : > { %5087 = vmatprep.mubr.bf16.mxu1 %v5474_v30  ;;  %5135 = vmatprep.mubr.bf16.mxu0 %v5475_v31  ;;  %v5545_v29 = vld [vmem:[%s6573_s1 + $0x218] sm:$0xff]   ;;  %v5535_v31 = vld [vmem:[%s5652_s26 + $0x40] sm:$0xff]  }
  0x8f   : > { %5165 = vmatprep.subr.bf16.mxu1 %v5478_v32  ;;  %5213 = vmatprep.subr.bf16.mxu0 %v5479_v33  ;;  %v5534_v30 = vld [vmem:[%s5652_s26 + $0x158] sm:$0xff]  }
  0x91   : > { %5166 = vmatpush3.bf16.msra.mxu1 %v5478_v32  ;;  %5214 = vmatpush3.bf16.msra.mxu0 %v5479_v33  ;;  %v5550_v32 = vld [vmem:[%s6573_s1 + $0x1d0] sm:$0xff]  }
  0x92   : > { %5167 = vmatprep.subr.bf16.mxu1 %v5484_v34  ;;  %5215 = vmatprep.subr.bf16.mxu0 %v5485_v36  ;;  %v5551_v33 = vld [vmem:[%s6573_s1 + $0x210] sm:$0xff]  }
  0x94   : > { %5088 = vmatmul.mubr.bf16.gmra.mxu1 %v5476_v35  ;;  %5136 = vmatmul.mubr.bf16.gmra.mxu0 %v5477_v37  ;;  %v5537_v35 = vld [vmem:[%s5652_s26 + $0x48] sm:$0xff]  }
  0x95   : > { %5091 = vmatprep.mubr.bf16.mxu1 %v5480_v38  ;;  %5139 = vmatprep.mubr.bf16.mxu0 %v5481_v39  ;;  %v5557_v37 = vld [vmem:[%s6573_s1 + $0x208] sm:$0xff]   ;;  %v5541_v39 = vld [vmem:[%s5652_s26 + $0x50] sm:$0xff]  }
  0x96   : > { %5168 = vmatpush3.bf16.msra.mxu1 %v5484_v34  ;;  %5216 = vmatpush3.bf16.msra.mxu0 %v5485_v36  ;;  %v5536_v34 = vld [vmem:[%s5652_s26 + $0x160] sm:$0xff]   ;;  %v5556_v36 = vld [vmem:[%s6573_s1 + $0x1c8] sm:$0xff]  }
  0x97   : > { %5169 = vmatprep.subr.bf16.mxu1 %v5490_v40  ;;  %5217 = vmatprep.subr.bf16.mxu0 %v5491_v41  ;;  %v5540_v38 = vld [vmem:[%s5652_s26 + $0x168] sm:$0xff]  }
  0x9a   : > { %5170 = vmatpush3.bf16.msra.mxu1 %v5490_v40  ;;  %5218 = vmatpush3.bf16.msra.mxu0 %v5491_v41  ;;  %v5562_v40 = vld [vmem:[%s6573_s1 + $0x1c0] sm:$0xff]  }
  0x9b   : > { %5171 = vmatprep.subr.bf16.mxu1 %v5496_v44  ;;  %5219 = vmatprep.subr.bf16.mxu0 %v5497_v45  ;;  %v5563_v41 = vld [vmem:[%s6573_s1 + $0x200] sm:$0xff]  }
  0x9c   : > { %5092 = vmatmul.mubr.bf16.gmra.mxu1 %v5482_v42  ;;  %5140 = vmatmul.mubr.bf16.gmra.mxu0 %v5483_v43  ;;  %v5542_v42 = vld [vmem:[%s5652_s26 + $0x170] sm:$0xff]   ;;  %v5543_v43 = vld [vmem:[%s5652_s26 + $0x58] sm:$0xff]  }
  0x9d   : > { %5095 = vmatprep.mubr.bf16.mxu1 %v5486_v46  ;;  %5143 = vmatprep.mubr.bf16.mxu0 %v5487_v47 }
  0x9e   : > { %5172 = vmatpush3.bf16.msra.mxu1 %v5496_v44  ;;  %5220 = vmatpush3.bf16.msra.mxu0 %v5497_v45  ;;  %v5546_v44 = vld [vmem:[%s5652_s26 + $0x178] sm:$0xff]   ;;  %v5547_v45 = vld [vmem:[%s5652_s26 + $0x60] sm:$0xff]  }
  0x9f   : > { %5173 = vmatprep.subr.bf16.mxu1 %v5502_v48  ;;  %5221 = vmatprep.subr.bf16.mxu0 %v5503_v49 }
  0xa2   : > { %5174 = vmatpush3.bf16.msra.mxu1 %v5502_v48  ;;  %5222 = vmatpush3.bf16.msra.mxu0 %v5503_v49 }
  0xa3   : > { %5175 = vmatprep.subr.bf16.mxu1 %v5508_v52  ;;  %5223 = vmatprep.subr.bf16.mxu0 %v5509_v53 }
  0xa4   : > { %5096 = vmatmul.mubr.bf16.gmra.mxu1 %v5488_v50  ;;  %5144 = vmatmul.mubr.bf16.gmra.mxu0 %v5489_v51 }
  0xa5   : > { %5099 = vmatprep.mubr.bf16.mxu1 %v5492_v54  ;;  %5147 = vmatprep.mubr.bf16.mxu0 %v5493_v55  ;;  %v5552_v54 = vld [vmem:[%s5652_s26 + $0x188] sm:$0xff]   ;;  %v5553_v55 = vld [vmem:[%s5652_s26 + $0x70] sm:$0xff]  }
  0xa6   : > { %5176 = vmatpush3.bf16.msra.mxu1 %v5508_v52  ;;  %5224 = vmatpush3.bf16.msra.mxu0 %v5509_v53  ;;  %v5548_v52 = vld [vmem:[%s5652_s26 + $0x180] sm:$0xff]   ;;  %v5549_v53 = vld [vmem:[%s5652_s26 + $0x68] sm:$0xff]  }
  0xa7   : > { %5177 = vmatprep.subr.bf16.mxu1 %v5514_v56  ;;  %5225 = vmatprep.subr.bf16.mxu0 %v5515_v57 }
  0xaa   : > { %5178 = vmatpush3.bf16.msra.mxu1 %v5514_v56  ;;  %5226 = vmatpush3.bf16.msra.mxu0 %v5515_v57 }
  0xab   : > { %5259 = vmatprep.subr.bf16.mxu1 %v5520_v60  ;;  %5307 = vmatprep.subr.bf16.mxu0 %v5521_v61 }
  0xac   : > { %5100 = vmatmul.mubr.bf16.gmra.mxu1 %v5494_v58  ;;  %5148 = vmatmul.mubr.bf16.gmra.mxu0 %v5495_v59 }
  0xad   : > { %5103 = vmatprep.mubr.bf16.mxu1 %v5498_v62  ;;  %5151 = vmatprep.mubr.bf16.mxu0 %v5499_v63 }
  0xb4   : > { %5104 = vmatmul.mubr.bf16.gmra.mxu1 %v5500_v0  ;;  %5152 = vmatmul.mubr.bf16.gmra.mxu0 %v5501_v1  ;;  %v5554_v0 = vld [vmem:[%s5652_s26 + $0x190] sm:$0xff]   ;;  %v5555_v1 = vld [vmem:[%s5652_s26 + $0x78] sm:$0xff]  }
  0xb5   : > { %5107 = vmatprep.mubr.bf16.mxu1 %v5504_v2  ;;  %5155 = vmatprep.mubr.bf16.mxu0 %v5505_v3  ;;  %v5558_v2 = vld [vmem:[%s5652_s26 + $0x198] sm:$0xff]   ;;  %v5559_v3 = vld [vmem:[%s5652_s26 + $0x80] sm:$0xff]  }
  0xbc   : > { %5108 = vmatmul.mubr.bf16.gmra.mxu1 %v5506_v4  ;;  %5156 = vmatmul.mubr.bf16.gmra.mxu0 %v5507_v5 }
  0xbd   : > { %5111 = vmatprep.mubr.bf16.mxu1 %v5510_v6  ;;  %5159 = vmatprep.mubr.bf16.mxu0 %v5511_v7 }
  0xc4   : > { %5112 = vmatmul.mubr.bf16.gmra.mxu1 %v5512_v8  ;;  %5160 = vmatmul.mubr.bf16.gmra.mxu0 %v5513_v9 }
  0xc5   : > { %5179 = vmatprep.mubr.bf16.mxu1 %v5516_v10  ;;  %5227 = vmatprep.mubr.bf16.mxu0 %v5517_v11 }
  0xcc   : > { %5180 = vmatmul.mubr.bf16.vlgmr.msra.gmra.mxu1 %v5518_v12  ;;  %5228 = vmatmul.mubr.bf16.vlgmr.msra.gmra.mxu0 %v5519_v13  ;;  %v5560_v12 = vld [vmem:[%s5652_s26 + $0x1a0] sm:$0xff]   ;;  %v5561_v13 = vld [vmem:[%s5652_s26 + $0x88] sm:$0xff]  }
  0xcd   : > { %5260 = vmatpush3.bf16.msra.mxu1 %v5520_v60  ;;  %5308 = vmatpush3.bf16.msra.mxu0 %v5521_v61 }
  0xce   : > { %5183 = vmatprep.mubr.bf16.mxu1 %v5522_v14  ;;  %5231 = vmatprep.mubr.bf16.mxu0 %v5523_v15  ;;  %v5564_v14 = vld [vmem:[%s5652_s26 + $0xa0] sm:$0xff]   ;;  %v5565_v15 = vld [vmem:[%s5652_s26 + $0x130] sm:$0xff]  }
  0xcf   : > { %5261 = vmatprep.subr.bf16.mxu1 %v5526_v16  ;;  %5309 = vmatprep.subr.bf16.mxu0 %v5527_v17 }
  0xd1   : > { %5262 = vmatpush3.bf16.msra.mxu1 %v5526_v16  ;;  %5310 = vmatpush3.bf16.msra.mxu0 %v5527_v17 }
  0xd2   : > { %5263 = vmatprep.subr.bf16.mxu1 %v5532_v18  ;;  %5311 = vmatprep.subr.bf16.mxu0 %v5533_v20 }
  0xd4   : > { %5184 = vmatmul.mubr.bf16.gmra.mxu1 %v5524_v19  ;;  %5232 = vmatmul.mubr.bf16.gmra.mxu0 %v5525_v21 }
  0xd5   : > { %5187 = vmatprep.mubr.bf16.mxu1 %v5528_v22  ;;  %5235 = vmatprep.mubr.bf16.mxu0 %v5529_v23 }
  0xd6   : > { %5264 = vmatpush3.bf16.msra.mxu1 %v5532_v18  ;;  %5312 = vmatpush3.bf16.msra.mxu0 %v5533_v20 }
  0xd7   : > { %5265 = vmatprep.subr.bf16.mxu1 %v5538_v24  ;;  %5313 = vmatprep.subr.bf16.mxu0 %v5539_v25 }
  0xda   : > { %5266 = vmatpush3.bf16.msra.mxu1 %v5538_v24  ;;  %5314 = vmatpush3.bf16.msra.mxu0 %v5539_v25  ;;  %v5566_v24 = vld [vmem:[%s5652_s26 + $0xa8] sm:$0xff]   ;;  %v5567_v25 = vld [vmem:[%s5652_s26 + $0x138] sm:$0xff]  }
  0xdb   : > { %5267 = vmatprep.subr.bf16.mxu1 %v5544_v28  ;;  %5315 = vmatprep.subr.bf16.mxu0 %v5545_v29 }
  0xdc   : > { %5188 = vmatmul.mubr.bf16.gmra.mxu1 %v5530_v26  ;;  %5236 = vmatmul.mubr.bf16.gmra.mxu0 %v5531_v27  ;;  %v5568_v26 = vld [vmem:[%s5652_s26 + $0xb0] sm:$0xff]   ;;  %v5569_v27 = vld [vmem:[%s5652_s26 + $0x140] sm:$0xff]  }
  0xdd   : > { %5191 = vmatprep.mubr.bf16.mxu1 %v5534_v30  ;;  %5239 = vmatprep.mubr.bf16.mxu0 %v5535_v31 }
  0xde   : > { %5268 = vmatpush3.bf16.msra.mxu1 %v5544_v28  ;;  %5316 = vmatpush3.bf16.msra.mxu0 %v5545_v29 }
  0xdf   : > { %5269 = vmatprep.subr.bf16.mxu1 %v5550_v32  ;;  %5317 = vmatprep.subr.bf16.mxu0 %v5551_v33 }
  0xe2   : > { %5270 = vmatpush3.bf16.msra.mxu1 %v5550_v32  ;;  %5318 = vmatpush3.bf16.msra.mxu0 %v5551_v33 }
  0xe3   : > { %5271 = vmatprep.subr.bf16.mxu1 %v5556_v36  ;;  %5319 = vmatprep.subr.bf16.mxu0 %v5557_v37 }
  0xe4   : > { %5192 = vmatmul.mubr.bf16.gmra.mxu1 %v5536_v34  ;;  %5240 = vmatmul.mubr.bf16.gmra.mxu0 %v5537_v35 }
  0xe5   : > { %5195 = vmatprep.mubr.bf16.mxu1 %v5540_v38  ;;  %5243 = vmatprep.mubr.bf16.mxu0 %v5541_v39  ;;  %v5570_v39 = vld [vmem:[%s5652_s26 + $0xb8] sm:$0xff]  }
  0xe6   : > { %5272 = vmatpush3.bf16.msra.mxu1 %v5556_v36  ;;  %5320 = vmatpush3.bf16.msra.mxu0 %v5557_v37 }
  0xe7   : > { %5273 = vmatprep.subr.bf16.mxu1 %v5562_v40  ;;  %5321 = vmatprep.subr.bf16.mxu0 %v5563_v41 }
  0xea   : > { %5274 = vmatpush3.bf16.msra.mxu1 %v5562_v40  ;;  %5322 = vmatpush3.bf16.msra.mxu0 %v5563_v41  ;;  %v5571_v40 = vld [vmem:[%s5652_s26 + $0x148] sm:$0xff]  }
  0xec   : > { %v5963_v46 = vpop.f32.mrf.mxu0  ;;  %v5965_v47 = vpop.f32.mrf.mxu1  ;;  %5196 = vmatmul.mubr.bf16.gmra.mxu1 %v5542_v42  ;;  %5244 = vmatmul.mubr.bf16.gmra.mxu0 %v5543_v43  ;;  %v5572_v43 = vld [vmem:[%s5652_s26 + $0xc0] sm:$0xff]  }
  0xed   : > { %5199 = vmatprep.mubr.bf16.mxu1 %v5546_v44  ;;  %5247 = vmatprep.mubr.bf16.mxu0 %v5547_v45  ;;  %v5573_v44 = vld [vmem:[%s5652_s26 + $0x150] sm:$0xff]  }
  0xee   : > { %v5967_v48 = vpop.f32.mrf.mxu0  ;;  %v5969_v49 = vpop.f32.mrf.mxu1 }
  0xf0   : > { %v5971_v50 = vpop.f32.mrf.mxu0  ;;  %v5973_v51 = vpop.f32.mrf.mxu1 }
  0xf2   : > { %v5979_v56 = vpop.f32.mrf.mxu0  ;;  %v5981_v57 = vpop.f32.mrf.mxu1 }
  0xf4   : > { %v5983_v58 = vpop.f32.mrf.mxu0  ;;  %v5985_v59 = vpop.f32.mrf.mxu1  ;;  %5200 = vmatmul.mubr.bf16.gmra.mxu1 %v5548_v52  ;;  %5248 = vmatmul.mubr.bf16.gmra.mxu0 %v5549_v53 }
  0xf5   : > { %5203 = vmatprep.mubr.bf16.mxu1 %v5552_v54  ;;  %5251 = vmatprep.mubr.bf16.mxu0 %v5553_v55 }
  0xf6   : > { %v5987_v60 = vpop.f32.mrf.mxu0  ;;  %v5989_v61 = vpop.f32.mrf.mxu1 }
  0xf8   : > { %v5991_v62 = vpop.f32.mrf.mxu0  ;;  %v5993_v63 = vpop.f32.mrf.mxu1 }
  0xfa   : > { %v5999_v4 = vpop.f32.mrf.mxu0  ;;  %v6001_v5 = vpop.f32.mrf.mxu1 }
  0xfc   : > { %v6003_v6 = vpop.f32.mrf.mxu0  ;;  %v6005_v7 = vpop.f32.mrf.mxu1  ;;  %5204 = vmatmul.mubr.bf16.gmra.mxu1 %v5554_v0  ;;  %5252 = vmatmul.mubr.bf16.gmra.mxu0 %v5555_v1 }
  0xfd   : > { %5207 = vmatprep.mubr.bf16.mxu1 %v5558_v2  ;;  %5255 = vmatprep.mubr.bf16.mxu0 %v5559_v3 }
  0xfe   : > { %v6007_v8 = vpop.f32.mrf.mxu0  ;;  %v6009_v9 = vpop.f32.mrf.mxu1 }
 0x100   : > { %v6011_v10 = vpop.f32.mrf.mxu0  ;;  %v6013_v11 = vpop.f32.mrf.mxu1 }
 0x102   : > { %v6019_v16 = vpop.f32.mrf.mxu0  ;;  %v6021_v17 = vpop.f32.mrf.mxu1 }
 0x104   : > { %v6023_v18 = vpop.f32.mrf.mxu0  ;;  %v6025_v19 = vpop.f32.mrf.mxu1  ;;  %5208 = vmatmul.mubr.bf16.gmra.mxu1 %v5560_v12  ;;  %5256 = vmatmul.mubr.bf16.gmra.mxu0 %v5561_v13  ;;  %v5574_v13 = vld [vmem:[%s5652_s26 + $0xc8] sm:$0xff]  }
 0x105   : > { %5275 = vmatprep.mubr.bf16.mxu1 %v5564_v14  ;;  %5323 = vmatprep.mubr.bf16.mxu0 %v5565_v15  ;;  %v5575_v14 = vld [vmem:[%s5652_s26 + $0x158] sm:$0xff]  }
 0x106   : > { %v6027_v20 = vpop.f32.mrf.mxu0  ;;  %v6029_v21 = vpop.f32.mrf.mxu1 }
 0x108   : > { %v6031_v22 = vpop.f32.mrf.mxu0  ;;  %v6033_v23 = vpop.f32.mrf.mxu1 }
 0x10a   : > { %v6039_v28 = vpop.f32.mrf.mxu0  ;;  %v6041_v29 = vpop.f32.mrf.mxu1 }
 0x10c   : > { %v4989_v30 = vpop.f32.mrf.mxu1  ;;  %v5037_v31 = vpop.f32.mrf.mxu0  ;;  %5276 = vmatmul.mubr.bf16.vlgmr.msra.gmra.mxu1 %v5566_v24  ;;  %5324 = vmatmul.mubr.bf16.vlgmr.msra.gmra.mxu0 %v5567_v25  ;;  %v5576_v25 = vld [vmem:[%s5652_s26 + $0xd0] sm:$0xff]  }
 0x10d   : > { %v789_v32 = vadd.f32 %v4989_v30, %v5963_v46  ;;  %5279 = vmatprep.mubr.bf16.mxu1 %v5568_v26  ;;  %5327 = vmatprep.mubr.bf16.mxu0 %v5569_v27  ;;  %v5577_v26 = vld [vmem:[%s5652_s26 + $0x160] sm:$0xff]  }
 0x10e   : > { %v780_v33 = vpop.f32.mrf.mxu1  ;;  %v1135_v34 = vpop.f32.mrf.mxu0 }
 0x10f   : > { %v6044_v35 = vadd.f32 %v5037_v31, %v789_v32  ;;  %v781_v36 = vadd.f32 %v780_v33, %v5967_v48 }
 0x110   : > { %v4990_v37 = vpop.f32.mrf.mxu1  ;;  %v5038_v38 = vpop.f32.mrf.mxu0 }
 0x111   : > { %v6049_v41 = vadd.f32 %v1135_v34, %v781_v36  ;;  %v792_v42 = vadd.f32 %v4990_v37, %v5971_v50 }
 0x112   : > { %v783_v45 = vpop.f32.mrf.mxu1  ;;  %v1138_v46 = vpop.f32.mrf.mxu0 }
 0x113   : > { %v6054_v52 = vadd.f32 %v5038_v38, %v792_v42  ;;  %v784_v53 = vadd.f32 %v783_v45, %v5979_v56  ;;  %v5579_v42 = vld [vmem:[%s5652_s26 + $0x168] sm:$0xff]   ;;  %v5580_v45 = vld [vmem:[%s5652_s26 + $0xe0] sm:$0xff]  }
 0x114   : > { %v4993_v54 = vpop.f32.mrf.mxu1  ;;  %v5041_v48 = vpop.f32.mrf.mxu0  ;;  %5280 = vmatmul.mubr.bf16.gmra.mxu1 %v5570_v39  ;;  %5328 = vmatmul.mubr.bf16.gmra.mxu0 %v5571_v40  ;;  %v5578_v40 = vld [vmem:[%s5652_s26 + $0xd8] sm:$0xff]  }
 0x115   : > { %v6057_v55 = vadd.f32 %v1138_v46, %v784_v53  ;;  %v805_v50 = vadd.f32 %v4993_v54, %v5983_v58  ;;  %5283 = vmatprep.mubr.bf16.mxu1 %v5572_v43  ;;  %5331 = vmatprep.mubr.bf16.mxu0 %v5573_v44  ;;  %v5581_v46 = vld [vmem:[%s5652_s26 + $0x170] sm:$0xff]  }
 0x116   : > { %v796_v0 = vpop.f32.mrf.mxu1  ;;  %v1151_v1 = vpop.f32.mrf.mxu0 }
 0x117   : > { %v6060_v2 = vadd.f32 %v5041_v48, %v805_v50  ;;  %v797_v3 = vadd.f32 %v796_v0, %v5987_v60 }
 0x118   : > { %v4994_v56 = vpop.f32.mrf.mxu1  ;;  %v5042_v12 = vpop.f32.mrf.mxu0 }
 0x119   : > { %v6065_v15 = vadd.f32 %v1151_v1, %v797_v3  ;;  %v808_v24 = vadd.f32 %v4994_v56, %v5991_v62 }
 0x11a   : > { %v799_v27 = vpop.f32.mrf.mxu1  ;;  %v1154_v58 = vpop.f32.mrf.mxu0 }
 0x11b   : > { %v6070_v30 = vadd.f32 %v5042_v12, %v808_v24  ;;  %v800_v31 = vadd.f32 %v799_v27, %v5999_v4  ;;  %v5583_v24 = vld [vmem:[%s5652_s26 + $0x178] sm:$0xff]   ;;  %v5584_v27 = vld [vmem:[%s5652_s26 + $0xf0] sm:$0xff]  }
 0x11c   : > { %v4997_v32 = vpop.f32.mrf.mxu1  ;;  %v5045_v60 = vpop.f32.mrf.mxu0  ;;  %5284 = vmatmul.mubr.bf16.gmra.mxu1 %v5574_v13  ;;  %5332 = vmatmul.mubr.bf16.gmra.mxu0 %v5575_v14  ;;  %v5582_v14 = vld [vmem:[%s5652_s26 + $0xe8] sm:$0xff]  }
 0x11d   : > { %v6073_v33 = vadd.f32 %v1154_v58, %v800_v31  ;;  %v821_v62 = vadd.f32 %v4997_v32, %v6003_v6  ;;  %5287 = vmatprep.mubr.bf16.mxu1 %v5576_v25  ;;  %5335 = vmatprep.mubr.bf16.mxu0 %v5577_v26  ;;  %v5585_v58 = vld [vmem:[%s5652_s26 + $0x180] sm:$0xff]  }
 0x11e   : > { %v812_v34 = vpop.f32.mrf.mxu1  ;;  %v1167_v36 = vpop.f32.mrf.mxu0 }
 0x11f   : > { %v6076_v37 = vadd.f32 %v5045_v60, %v821_v62  ;;  %v813_v38 = vadd.f32 %v812_v34, %v6007_v8 }
 0x120   : > { %v4998_v4 = vpop.f32.mrf.mxu1  ;;  %v5046_v39 = vpop.f32.mrf.mxu0 }
 0x121   : > { %v6081_v43 = vadd.f32 %v1167_v36, %v813_v38  ;;  %v824_v44 = vadd.f32 %v4998_v4, %v6011_v10 }
 0x122   : > { %v815_v53 = vpop.f32.mrf.mxu1  ;;  %v1170_v6 = vpop.f32.mrf.mxu0 }
 0x123   : > { %v6086_v54 = vadd.f32 %v5046_v39, %v824_v44  ;;  %v816_v48 = vadd.f32 %v815_v53, %v6019_v16  ;;  %v5587_v44 = vld [vmem:[%s5652_s26 + $0x188] sm:$0xff]   ;;  %v5588_v53 = vld [vmem:[%s5652_s26 + $0x100] sm:$0xff]  }
 0x124   : > { %v5001_v50 = vpop.f32.mrf.mxu1  ;;  %v5049_v8 = vpop.f32.mrf.mxu0  ;;  %5288 = vmatmul.mubr.bf16.gmra.mxu1 %v5578_v40  ;;  %5336 = vmatmul.mubr.bf16.gmra.mxu0 %v5579_v42  ;;  %v5586_v42 = vld [vmem:[%s5652_s26 + $0xf8] sm:$0xff]  }
 0x125   : > { %v6089_v0 = vadd.f32 %v1170_v6, %v816_v48  ;;  %v837_v10 = vadd.f32 %v5001_v50, %v6023_v18  ;;  %5291 = vmatprep.mubr.bf16.mxu1 %v5580_v45  ;;  %5339 = vmatprep.mubr.bf16.mxu0 %v5581_v46  ;;  %v5589_v6 = vld [vmem:[%s5652_s26 + $0x190] sm:$0xff]  }
 0x126   : > { %v828_v1 = vpop.f32.mrf.mxu1  ;;  %v1183_v3 = vpop.f32.mrf.mxu0 }
 0x127   : > { %v6092_v56 = vadd.f32 %v5049_v8, %v837_v10  ;;  %v829_v12 = vadd.f32 %v828_v1, %v6027_v20 }
 0x128   : > { %v5002_v16 = vpop.f32.mrf.mxu1  ;;  %v5050_v13 = vpop.f32.mrf.mxu0 }
 0x129   : > { %v6097_v25 = vadd.f32 %v1183_v3, %v829_v12  ;;  %v840_v26 = vadd.f32 %v5002_v16, %v6031_v22 }
 0x12a   : > { %v831_v31 = vpop.f32.mrf.mxu1  ;;  %v1186_v18 = vpop.f32.mrf.mxu0 }
 0x12b   : > { %v6102_v32 = vadd.f32 %v5050_v13, %v840_v26  ;;  %v832_v60 = vadd.f32 %v831_v31, %v6039_v28  ;;  %v5591_v26 = vld [vmem:[%s5652_s26 + $0x198] sm:$0xff]   ;;  %v5592_v31 = vld [vmem:[%s5652_s26 + $0x110] sm:$0xff]  }
 0x12c   : > { %v5005_v62 = vpop.f32.mrf.mxu1  ;;  %v5053_v20 = vpop.f32.mrf.mxu0  ;;  %5292 = vmatmul.mubr.bf16.gmra.mxu1 %v5582_v14  ;;  %5340 = vmatmul.mubr.bf16.gmra.mxu0 %v5583_v24  ;;  %v5590_v24 = vld [vmem:[%s5652_s26 + $0x108] sm:$0xff]  }
 0x12d   : > { %v6105_v34 = vadd.f32 %v1186_v18, %v832_v60  ;;  %v853_v22 = vadd.f32 %v5005_v62, %v5965_v47  ;;  %5295 = vmatprep.mubr.bf16.mxu1 %v5584_v27  ;;  %5343 = vmatprep.mubr.bf16.mxu0 %v5585_v58  ;;  %v5593_v18 = vld [vmem:[%s5652_s26 + $0x1a0] sm:$0xff]  }
 0x12e   : > { %v844_v36 = vpop.f32.mrf.mxu1  ;;  %v1199_v38 = vpop.f32.mrf.mxu0 }
 0x12f   : > { %v6108_v4 = vadd.f32 %v5053_v20, %v853_v22  ;;  %v845_v39 = vadd.f32 %v844_v36, %v5969_v49 }
 0x130   : > { %v5006_v28 = vpop.f32.mrf.mxu1  ;;  %v5054_v40 = vpop.f32.mrf.mxu0 }
 0x131   : > { %v6113_v45 = vadd.f32 %v1199_v38, %v845_v39  ;;  %v856_v46 = vadd.f32 %v5006_v28, %v5973_v51 }
 0x132   : > { %v847_v48 = vpop.f32.mrf.mxu1  ;;  %v1202_v47 = vpop.f32.mrf.mxu0 }
 0x133   : > { %v6118_v50 = vadd.f32 %v5054_v40, %v856_v46  ;;  %v848_v8 = vadd.f32 %v847_v48, %v5981_v57  ;;  %v5595_v46 = vld [vmem:[%s5652_s26 + $0x1a8] sm:$0xff]  }
 0x134   : > { %v5009_v10 = vpop.f32.mrf.mxu1  ;;  %v5057_v49 = vpop.f32.mrf.mxu0  ;;  %5296 = vmatmul.mubr.bf16.gmra.mxu1 %v5586_v42  ;;  %5344 = vmatmul.mubr.bf16.gmra.mxu0 %v5587_v44 }
 0x135   : > { %v6121_v1 = vadd.f32 %v1202_v47, %v848_v8  ;;  %v869_v51 = vadd.f32 %v5009_v10, %v5985_v59  ;;  %5299 = vmatprep.mubr.bf16.mxu1 %v5588_v53  ;;  %5347 = vmatprep.mubr.bf16.mxu0 %v5589_v6 }
 0x136   : > { %v860_v3 = vpop.f32.mrf.mxu1  ;;  %v1215_v12 = vpop.f32.mrf.mxu0 }
 0x137   : > { %v6124_v16 = vadd.f32 %v5057_v49, %v869_v51  ;;  %v861_v13 = vadd.f32 %v860_v3, %v5989_v61 }
 0x138   : > { %v5010_v57 = vpop.f32.mrf.mxu1  ;;  %v5058_v14 = vpop.f32.mrf.mxu0 }
 0x139   : > { %v6129_v27 = vadd.f32 %v1215_v12, %v861_v13  ;;  %v872_v58 = vadd.f32 %v5010_v57, %v5993_v63 }
 0x13a   : > { %v863_v60 = vpop.f32.mrf.mxu1  ;;  %v1218_v59 = vpop.f32.mrf.mxu0 }
 0x13b   : > { %v6134_v62 = vadd.f32 %v5058_v14, %v872_v58  ;;  %v864_v20 = vadd.f32 %v863_v60, %v6001_v5  ;;  %v5594_v5 = vld [vmem:[%s5652_s26 + $0x118] sm:$0xff]  }
 0x13c   : > { %v5013_v22 = vpop.f32.mrf.mxu1  ;;  %v5061_v61 = vpop.f32.mrf.mxu0  ;;  %5300 = vmatmul.mubr.bf16.gmra.mxu1 %v5590_v24  ;;  %5348 = vmatmul.mubr.bf16.gmra.mxu0 %v5591_v26 }
 0x13d   : > { %v6137_v36 = vadd.f32 %v1218_v59, %v864_v20  ;;  %v885_v38 = vadd.f32 %v5013_v22, %v6005_v7  ;;  %5303 = vmatprep.mubr.bf16.mxu1 %v5592_v31  ;;  %5351 = vmatprep.mubr.bf16.mxu0 %v5593_v18 }
 0x13e   : > { %v876_v63 = vpop.f32.mrf.mxu1  ;;  %v1231_v39 = vpop.f32.mrf.mxu0 }
 0x13f   : > { %v6140_v28 = vadd.f32 %v5061_v61, %v885_v38  ;;  %v877_v40 = vadd.f32 %v876_v63, %v6009_v9 }
 0x140   : > { %v5014_v42 = vpop.f32.mrf.mxu1  ;;  %v5062_v44 = vpop.f32.mrf.mxu0 }
 0x141   : > { %v6145_v53 = vadd.f32 %v1231_v39, %v877_v40  ;;  %v888_v6 = vadd.f32 %v5014_v42, %v6013_v11 }
 0x142   : > { %v879_v48 = vpop.f32.mrf.mxu1  ;;  %v1234_v47 = vpop.f32.mrf.mxu0 }
 0x143   : > { %v6148_v8 = vadd.f32 %v5062_v44, %v888_v6  ;;  %v880_v7 = vadd.f32 %v879_v48, %v6021_v17 }
 0x144   : > { %v5017_v10 = vpop.f32.mrf.mxu1  ;;  %v5065_v49 = vpop.f32.mrf.mxu0  ;;  %5304 = vmatmul.mubr.bf16.gmra.mxu1 %v5594_v5  ;;  %5352 = vmatmul.mubr.bf16.gmra.mxu0 %v5595_v46 }
 0x145   : > { %v6151_v51 = vadd.f32 %v1234_v47, %v880_v7  ;;  %v901_v9 = vadd.f32 %v5017_v10, %v6025_v19 }
 0x146   : > { %v892_v3 = vpop.f32.mrf.mxu1  ;;  %v1247_v12 = vpop.f32.mrf.mxu0 }
 0x147   : > { %v6154_v13 = vadd.f32 %v5065_v49, %v901_v9  ;;  %v893_v11 = vadd.f32 %v892_v3, %v6029_v21 }
 0x148   : > { %v5018_v57 = vpop.f32.mrf.mxu1  ;;  %v5066_v14 = vpop.f32.mrf.mxu0 }
 0x149   : > { %v6157_v24 = vadd.f32 %v1247_v12, %v893_v11  ;;  %v904_v17 = vadd.f32 %v5018_v57, %v6033_v23 }
 0x14a   : > { %v895_v26 = vpop.f32.mrf.mxu1  ;;  %v1250_v58 = vpop.f32.mrf.mxu0 }
 0x14b   : > { %v6160_v31 = vadd.f32 %v5066_v14, %v904_v17  ;;  %v896_v18 = vadd.f32 %v895_v26, %v6041_v29 }
 0x14c   : > { %v5085_v60 = vpop.f32.mrf.mxu1  ;;  %v5133_v19 = vpop.f32.mrf.mxu0 }
 0x14d   : > { %v6163_v59 = vadd.f32 %v1250_v58, %v896_v18  ;;  %v1650_v20 = vadd.f32 %v5085_v60, %v6044_v35 }
 0x14e   : > { %v1521_v22 = vpop.f32.mrf.mxu1  ;;  %v1907_v21 = vpop.f32.mrf.mxu0 }
 0x14f   : > { %v6166_v61 = vadd.f32 %v5133_v19, %v1650_v20  ;;  %v1648_v38 = vadd.f32 %v1521_v22, %v6049_v41 }
 0x150   : > { %v5086_v63 = vpop.f32.mrf.mxu1  ;;  %v5134_v23 = vpop.f32.mrf.mxu0 }
 0x151   : > { %v6169_v39 = vadd.f32 %v1907_v21, %v1648_v38  ;;  %v1651_v40 = vadd.f32 %v5086_v63, %v6054_v52 }
 0x152   : > { %v1524_v42 = vpop.f32.mrf.mxu1  ;;  %v1910_v29 = vpop.f32.mrf.mxu0 }
 0x153   : > { %v6172_v44 = vadd.f32 %v5134_v23, %v1651_v40  ;;  %v1649_v5 = vadd.f32 %v1524_v42, %v6057_v55 }
 0x154   : > { %v5089_v46 = vpop.f32.mrf.mxu1  ;;  %v5137_v35 = vpop.f32.mrf.mxu0 }
 0x155   : > { %v6175_v6 = vadd.f32 %v1910_v29, %v1649_v5  ;;  %v1654_v48 = vadd.f32 %v5089_v46, %v6060_v2 }
 0x156   : > { %v1537_v47 = vpop.f32.mrf.mxu1  ;;  %v1923_v41 = vpop.f32.mrf.mxu0 }
 0x157   : > { %v6178_v7 = vadd.f32 %v5137_v35, %v1654_v48  ;;  %v1652_v10 = vadd.f32 %v1537_v47, %v6065_v15 }
 0x158   : > { %v5090_v49 = vpop.f32.mrf.mxu1  ;;  %v5138_v52 = vpop.f32.mrf.mxu0 }
 0x159   : > { %v6181_v9 = vadd.f32 %v1923_v41, %v1652_v10  ;;  %v1655_v3 = vadd.f32 %v5090_v49, %v6070_v30 }
 0x15a   : > { %v1540_v12 = vpop.f32.mrf.mxu1  ;;  %v1926_v55 = vpop.f32.mrf.mxu0 }
 0x15b   : > { %v6184_v11 = vadd.f32 %v5138_v52, %v1655_v3  ;;  %v1653_v57 = vadd.f32 %v1540_v12, %v6073_v33 }
 0x15c   : > { %v5093_v14 = vpop.f32.mrf.mxu1  ;;  %v5141_v2 = vpop.f32.mrf.mxu0 }
 0x15d   : > { %v6187_v17 = vadd.f32 %v1926_v55, %v1653_v57  ;;  %v1658_v26 = vadd.f32 %v5093_v14, %v6076_v37 }
 0x15e   : > { %v1553_v58 = vpop.f32.mrf.mxu1  ;;  %v1939_v15 = vpop.f32.mrf.mxu0 }
 0x15f   : > { %v6190_v18 = vadd.f32 %v5141_v2, %v1658_v26  ;;  %v1656_v60 = vadd.f32 %v1553_v58, %v6081_v43 }
 0x160   : > { %v5094_v19 = vpop.f32.mrf.mxu1  ;;  %v5142_v30 = vpop.f32.mrf.mxu0 }
 0x161   : > { %v6193_v20 = vadd.f32 %v1939_v15, %v1656_v60  ;;  %v1659_v22 = vadd.f32 %v5094_v19, %v6086_v54 }
 0x162   : > { %v1556_v21 = vpop.f32.mrf.mxu1  ;;  %v1942_v33 = vpop.f32.mrf.mxu0 }
 0x163   : > { %v6196_v38 = vadd.f32 %v5142_v30, %v1659_v22  ;;  %v1657_v63 = vadd.f32 %v1556_v21, %v6089_v0 }
 0x164   : > { %v5097_v23 = vpop.f32.mrf.mxu1  ;;  %v5145_v37 = vpop.f32.mrf.mxu0 }
 0x165   : > { %v6199_v40 = vadd.f32 %v1942_v33, %v1657_v63  ;;  %v1662_v42 = vadd.f32 %v5097_v23, %v6092_v56 }
 0x166   : > { %v1569_v29 = vpop.f32.mrf.mxu1  ;;  %v1955_v43 = vpop.f32.mrf.mxu0 }
 0x167   : > { %v6202_v5 = vadd.f32 %v5145_v37, %v1662_v42  ;;  %v1660_v46 = vadd.f32 %v1569_v29, %v6097_v25 }
 0x168   : > { %v5098_v35 = vpop.f32.mrf.mxu1  ;;  %v5146_v54 = vpop.f32.mrf.mxu0 }
 0x169   : > { %v6205_v48 = vadd.f32 %v1955_v43, %v1660_v46  ;;  %v1663_v47 = vadd.f32 %v5098_v35, %v6102_v32 }
 0x16a   : > { %v1572_v41 = vpop.f32.mrf.mxu1  ;;  %v1958_v0 = vpop.f32.mrf.mxu0 }
 0x16b   : > { %v6208_v10 = vadd.f32 %v5146_v54, %v1663_v47  ;;  %v1661_v49 = vadd.f32 %v1572_v41, %v6105_v34 }
 0x16c   : > { %v5101_v52 = vpop.f32.mrf.mxu1  ;;  %v5149_v56 = vpop.f32.mrf.mxu0 }
 0x16d   : > { %v6211_v3 = vadd.f32 %v1958_v0, %v1661_v49  ;;  %v1666_v12 = vadd.f32 %v5101_v52, %v6108_v4 }
 0x16e   : > { %v1585_v55 = vpop.f32.mrf.mxu1  ;;  %v1971_v25 = vpop.f32.mrf.mxu0 }
 0x16f   : > { %v6214_v57 = vadd.f32 %v5149_v56, %v1666_v12  ;;  %v1664_v14 = vadd.f32 %v1585_v55, %v6113_v45 }
 0x170   : > { %v5102_v2 = vpop.f32.mrf.mxu1  ;;  %v5150_v32 = vpop.f32.mrf.mxu0 }
 0x171   : > { %v6217_v26 = vadd.f32 %v1971_v25, %v1664_v14  ;;  %v1667_v58 = vadd.f32 %v5102_v2, %v6118_v50 }
 0x172   : > { %v1588_v15 = vpop.f32.mrf.mxu1  ;;  %v1974_v34 = vpop.f32.mrf.mxu0 }
 0x173   : > { %v6220_v60 = vadd.f32 %v5150_v32, %v1667_v58  ;;  %v1665_v19 = vadd.f32 %v1588_v15, %v6121_v1 }
 0x174   : > { %v5105_v30 = vpop.f32.mrf.mxu1  ;;  %v5153_v4 = vpop.f32.mrf.mxu0 }
 0x175   : > { %v6223_v22 = vadd.f32 %v1974_v34, %v1665_v19  ;;  %v1670_v21 = vadd.f32 %v5105_v30, %v6124_v16 }
 0x176   : > { %v1601_v33 = vpop.f32.mrf.mxu1  ;;  %v1987_v45 = vpop.f32.mrf.mxu0 }
 0x177   : > { %v6226_v63 = vadd.f32 %v5153_v4, %v1670_v21  ;;  %v1668_v23 = vadd.f32 %v1601_v33, %v6129_v27 }
 0x178   : > { %v5106_v37 = vpop.f32.mrf.mxu1  ;;  %v5154_v50 = vpop.f32.mrf.mxu0 }
 0x179   : > { %v6229_v42 = vadd.f32 %v1987_v45, %v1668_v23  ;;  %v1671_v29 = vadd.f32 %v5106_v37, %v6134_v62 }
 0x17a   : > { %v1604_v43 = vpop.f32.mrf.mxu1  ;;  %v1990_v1 = vpop.f32.mrf.mxu0 }
 0x17b   : > { %v6232_v46 = vadd.f32 %v5154_v50, %v1671_v29  ;;  %v1669_v35 = vadd.f32 %v1604_v43, %v6137_v36 }
 0x17c   : > { %v5109_v54 = vpop.f32.mrf.mxu1  ;;  %v5157_v16 = vpop.f32.mrf.mxu0 }
 0x17d   : > { %v6235_v47 = vadd.f32 %v1990_v1, %v1669_v35  ;;  %v1674_v41 = vadd.f32 %v5109_v54, %v6140_v28 }
 0x17e   : > { %v1617_v0 = vpop.f32.mrf.mxu1  ;;  %v2003_v27 = vpop.f32.mrf.mxu0 }
 0x17f   : > { %v6238_v49 = vadd.f32 %v5157_v16, %v1674_v41  ;;  %v1672_v52 = vadd.f32 %v1617_v0, %v6145_v53 }
 0x180   : > { %v5110_v56 = vpop.f32.mrf.mxu1  ;;  %v5158_v62 = vpop.f32.mrf.mxu0 }
 0x181   : > { %v6241_v12 = vadd.f32 %v2003_v27, %v1672_v52  ;;  %v1675_v55 = vadd.f32 %v5110_v56, %v6148_v8 }
 0x182   : > { %v1620_v25 = vpop.f32.mrf.mxu1  ;;  %v2006_v36 = vpop.f32.mrf.mxu0 }
 0x183   : > { %v6244_v14 = vadd.f32 %v5158_v62, %v1675_v55  ;;  %v1673_v2 = vadd.f32 %v1620_v25, %v6151_v51 }
 0x184   : > { %v5113_v32 = vpop.f32.mrf.mxu1  ;;  %v5161_v28 = vpop.f32.mrf.mxu0 }
 0x185   : > { %v6247_v58 = vadd.f32 %v2006_v36, %v1673_v2  ;;  %v1678_v15 = vadd.f32 %v5113_v32, %v6154_v13 }
 0x186   : > { %v1633_v34 = vpop.f32.mrf.mxu1  ;;  %v2019_v53 = vpop.f32.mrf.mxu0 }
 0x187   : > { %6577 = vst [vmem:[#allocation2_spill] sm:$0xff] %v6247_v58  ;;  %v6250_v19 = vadd.f32 %v5161_v28, %v1678_v15  ;;  %v1676_v30 = vadd.f32 %v1633_v34, %v6157_v24 }
 0x188   : > { %v5114_v4 = vpop.f32.mrf.mxu1  ;;  %v5162_v8 = vpop.f32.mrf.mxu0 }
 0x189   : > { %v6253_v21 = vadd.f32 %v2019_v53, %v1676_v30  ;;  %v1679_v33 = vadd.f32 %v5114_v4, %v6160_v31 }
 0x18a   : > { %v1636_v45 = vpop.f32.mrf.mxu1  ;;  %v2022_v51 = vpop.f32.mrf.mxu0 }
 0x18b   : > { %v6256_v23 = vadd.f32 %v5162_v8, %v1679_v33  ;;  %v1677_v37 = vadd.f32 %v1636_v45, %v6163_v59 }
 0x18c   : > { %v5181_v50 = vpop.f32.mrf.mxu1  ;;  %v5229_v13 = vpop.f32.mrf.mxu0 }
 0x18d   : > { %6578 = vst [vmem:[#allocation3_spill] sm:$0xff] %v6256_v23  ;;  %v6259_v29 = vadd.f32 %v2022_v51, %v1677_v37  ;;  %v2422_v43 = vadd.f32 %v5181_v50, %v6166_v61 }
 0x18e   : > { %v2293_v1 = vpop.f32.mrf.mxu1  ;;  %v2679_v24 = vpop.f32.mrf.mxu0 }
 0x18f   : > { %6579 = vst [vmem:[#allocation4_spill] sm:$0xff] %v6259_v29  ;;  %v6262_v35 = vadd.f32 %v5229_v13, %v2422_v43  ;;  %v2420_v54 = vadd.f32 %v2293_v1, %v6169_v39 }
 0x190   : > { %v6265_v16 = vpop.f32.mrf.mxu1  ;;  %v6267_v31 = vpop.f32.mrf.mxu0 }
 0x191   : > { %v6269_v41 = vadd.f32 %v2679_v24, %v2420_v54 }
 0x192   : > { %v6271_v0 = vpop.f32.mrf.mxu1  ;;  %v6273_v59 = vpop.f32.mrf.mxu0 }
 0x194   : > { %v5185_v27 = vpop.f32.mrf.mxu1  ;;  %v5233_v52 = vpop.f32.mrf.mxu0 }
 0x195   : > { %v2426_v61 = vadd.f32 %v5185_v27, %v6178_v7 }
 0x196   : > { %v2309_v56 = vpop.f32.mrf.mxu1  ;;  %v2695_v62 = vpop.f32.mrf.mxu0 }
 0x197   : > { %v6276_v55 = vadd.f32 %v5233_v52, %v2426_v61  ;;  %v2424_v39 = vadd.f32 %v2309_v56, %v6181_v9 }
 0x198   : > { %v6279_v25 = vpop.f32.mrf.mxu1  ;;  %v6281_v36 = vpop.f32.mrf.mxu0 }
 0x199   : > { %v6283_v2 = vadd.f32 %v2695_v62, %v2424_v39 }
 0x19a   : > { %v6285_v32 = vpop.f32.mrf.mxu1  ;;  %v6287_v28 = vpop.f32.mrf.mxu0 }
 0x19c   : > { %v5189_v15 = vpop.f32.mrf.mxu1  ;;  %v5237_v34 = vpop.f32.mrf.mxu0 }
 0x19d   : > { %v2430_v7 = vadd.f32 %v5189_v15, %v6190_v18 }
 0x19e   : > { %v2325_v53 = vpop.f32.mrf.mxu1  ;;  %v2711_v30 = vpop.f32.mrf.mxu0 }
 0x19f   : > { %v6290_v4 = vadd.f32 %v5237_v34, %v2430_v7  ;;  %v2428_v9 = vadd.f32 %v2325_v53, %v6193_v20 }
 0x1a0   : > { %v6293_v8 = vpop.f32.mrf.mxu1  ;;  %v6295_v33 = vpop.f32.mrf.mxu0 }
 0x1a1   : > { %v6297_v45 = vadd.f32 %v2711_v30, %v2428_v9 }
 0x1a2   : > { %v6299_v51 = vpop.f32.mrf.mxu1  ;;  %v6301_v37 = vpop.f32.mrf.mxu0 }
 0x1a4   : > { %v5193_v50 = vpop.f32.mrf.mxu1  ;;  %v5241_v13 = vpop.f32.mrf.mxu0 }
 0x1a5   : > { %v2434_v18 = vadd.f32 %v5193_v50, %v6202_v5 }
 0x1a6   : > { %v2341_v43 = vpop.f32.mrf.mxu1  ;;  %v2727_v1 = vpop.f32.mrf.mxu0 }
 0x1a7   : > { %v6304_v24 = vadd.f32 %v5241_v13, %v2434_v18  ;;  %v2432_v20 = vadd.f32 %v2341_v43, %v6205_v48 }
 0x1a8   : > { %v6307_v54 = vpop.f32.mrf.mxu1  ;;  %v6309_v27 = vpop.f32.mrf.mxu0 }
 0x1a9   : > { %v6311_v52 = vadd.f32 %v2727_v1, %v2432_v20 }
 0x1aa   : > { %v6313_v61 = vpop.f32.mrf.mxu1  ;;  %v6315_v56 = vpop.f32.mrf.mxu0 }
 0x1ac   : > { %v5197_v62 = vpop.f32.mrf.mxu1  ;;  %v5245_v39 = vpop.f32.mrf.mxu0 }
 0x1ad   : > { %v2438_v5 = vadd.f32 %v5197_v62, %v6214_v57 }
 0x1ae   : > { %v2357_v15 = vpop.f32.mrf.mxu1  ;;  %v2743_v34 = vpop.f32.mrf.mxu0 }
 0x1af   : > { %v6318_v7 = vadd.f32 %v5245_v39, %v2438_v5  ;;  %v2436_v48 = vadd.f32 %v2357_v15, %v6217_v26 }
 0x1b0   : > { %v6321_v53 = vpop.f32.mrf.mxu1  ;;  %v6323_v30 = vpop.f32.mrf.mxu0 }
 0x1b1   : > { %v6325_v9 = vadd.f32 %v2743_v34, %v2436_v48 }
 0x1b2   : > { %v6327_v50 = vpop.f32.mrf.mxu1  ;;  %v6329_v13 = vpop.f32.mrf.mxu0 }
 0x1b3   : > { %6580 = vst [vmem:[#allocation5_spill] sm:$0xff] %v6325_v9 }
 0x1b4   : > { %v5201_v18 = vpop.f32.mrf.mxu1  ;;  %v5249_v43 = vpop.f32.mrf.mxu0 }
 0x1b5   : > { %v2442_v57 = vadd.f32 %v5201_v18, %v6226_v63 }
 0x1b6   : > { %v2373_v1 = vpop.f32.mrf.mxu1  ;;  %v2759_v20 = vpop.f32.mrf.mxu0 }
 0x1b7   : > { %v6332_v62 = vadd.f32 %v5249_v43, %v2442_v57  ;;  %v2440_v26 = vadd.f32 %v2373_v1, %v6229_v42 }
 0x1b8   : > { %v6335_v39 = vpop.f32.mrf.mxu1  ;;  %v6337_v5 = vpop.f32.mrf.mxu0 }
 0x1b9   : > { %6581 = vst [vmem:[#allocation6_spill] sm:$0xff] %v6332_v62  ;;  %v6339_v15 = vadd.f32 %v2759_v20, %v2440_v26 }
 0x1ba   : > { %v6341_v34 = vpop.f32.mrf.mxu1  ;;  %v6343_v48 = vpop.f32.mrf.mxu0 }
 0x1bb   : > { %6582 = vst [vmem:[#allocation7_spill] sm:$0xff] %v6339_v15  ;;  %6583 = vst [vmem:[#allocation8_spill] sm:$0xff] %v6343_v48 }
 0x1bc   : > { %v5205_v29 = vpop.f32.mrf.mxu1  ;;  %v5253_v23 = vpop.f32.mrf.mxu0 }
 0x1bd   : > { %v2446_v63 = vadd.f32 %v5205_v29, %v6238_v49 }
 0x1be   : > { %v2389_v18 = vpop.f32.mrf.mxu1  ;;  %v2775_v58 = vpop.f32.mrf.mxu0 }
 0x1bf   : > { %v6346_v43 = vadd.f32 %v5253_v23, %v2446_v63  ;;  %v2444_v42 = vadd.f32 %v2389_v18, %v6241_v12 }
 0x1c0   : > { %v6349_v57 = vpop.f32.mrf.mxu1  ;;  %v6351_v1 = vpop.f32.mrf.mxu0 }
 0x1c1   : > { %6584 = vst [vmem:[#allocation9_spill] sm:$0xff] %v6346_v43  ;;  %v6353_v20 = vadd.f32 %v2775_v58, %v2444_v42  ;;  %v2423_v43 = vadd.f32 %v6265_v16, %v6172_v44  ;;  %v2431_v16 = vadd.f32 %v6293_v8, %v6196_v38 }
 0x1c2   : > { %v6355_v26 = vpop.f32.mrf.mxu1  ;;  %v6357_v15 = vpop.f32.mrf.mxu0 }
 0x1c3   : > { %6585 = vst [vmem:[#allocation10_spill] sm:$0xff] %v6353_v20 }
 0x1c4   : > { %v5209_v62 = vpop.f32.mrf.mxu1  ;;  %v5257_v9 = vpop.f32.mrf.mxu0 }
 0x1c5   : > { %v2450_v49 = vadd.f32 %v5209_v62, %v6250_v19  ;;  %v2421_v19 = vadd.f32 %v6271_v0, %v6175_v6  ;;  %v2427_v6 = vadd.f32 %v6279_v25, %v6184_v11  ;;  %v6395_v0 = vld [vmem:[%s6575_s3] ss:$0 sm:$0xff] }
 0x1c6   : > { %v2405_v29 = vpop.f32.mrf.mxu1  ;;  %v2791_v48 = vpop.f32.mrf.mxu0 }
 0x1c7   : > { %v6360_v23 = vadd.f32 %v5257_v9, %v2450_v49  ;;  %v2448_v12 = vadd.f32 %v2405_v29, %v6253_v21  ;;  %v6381_v49 = vld [vmem:[%s6574_s2] ss:$0 sm:$0xff]  ;;  %v2807_v44 = vadd.f32 %v6273_v59, %v2421_v19 }
 0x1c8   : > { %v6363_v63 = vpop.f32.mrf.mxu1  ;;  %v6365_v18 = vpop.f32.mrf.mxu0 }
 0x1c9   : > { %v6367_v58 = vadd.f32 %v2791_v48, %v2448_v12  ;;  %v2809_v12 = vadd.f32 %v6267_v31, %v2423_v43 }
 0x1ca   : > { %v6369_v42 = vpop.f32.mrf.mxu1  ;;  %v6371_v20 = vpop.f32.mrf.mxu0 }
 0x1cb   : > { %6586 = vst [vmem:[#allocation11_spill] sm:$0xff] %v6367_v58  ;;  %6587 = vst [vmem:[#allocation12_spill] sm:$0xff] %v6371_v20 }
 0x1cc   : > { %v5277_v9 = vpop.f32.mrf.mxu1  ;;  %v5325_v62 = vpop.f32.mrf.mxu0 }
 0x1cd   : > { %v3194_v21 = vadd.f32 %v5277_v9, %v6262_v35  ;;  %v2425_v35 = vadd.f32 %v6285_v32, %v6187_v17  ;;  %v2435_v17 = vadd.f32 %v6307_v54, %v6208_v10 }
 0x1ce   : > { %v3065_v48 = vpop.f32.mrf.mxu1  ;;  %v3451_v29 = vpop.f32.mrf.mxu0 }
 0x1cf   : > { %v3580_v20 = vadd.f32 %v5325_v62, %v3194_v21  ;;  %v3192_v58 = vadd.f32 %v3065_v48, %v6269_v41  ;;  %v2429_v41 = vadd.f32 %v6299_v51, %v6199_v40  ;;  %v2813_v21 = vadd.f32 %v6281_v36, %v2427_v6 }
 0x1d0   : > { %v5278_v31 = vpop.f32.mrf.mxu1  ;;  %v5326_v43 = vpop.f32.mrf.mxu0  ;;  %v2811_v48 = vadd.f32 %v6287_v28, %v2425_v35  ;;  %v6416_v6 = vadd.f32 %v6309_v27, %v2435_v17 }
 0x1d1   : > { %v3619_v59 = vmul.f32 %v6381_v49, %v3580_v20  ;;  %v3578_v19 = vadd.f32 %v3451_v29, %v3192_v58  ;;  %v3195_v11 = vadd.f32 %v5278_v31, %v2809_v12  ;;  %v6407_v20 = vadd.f32 %v6295_v33, %v2431_v16 }
 0x1d2   : > { %v3068_v25 = vpop.f32.mrf.mxu1  ;;  %v3454_v32 = vpop.f32.mrf.mxu0  ;;  %v6410_v10 = vadd.f32 %v6301_v37, %v2429_v41  ;;  %v2433_v33 = vadd.f32 %v6313_v61, %v6211_v3  ;;  %v2439_v37 = vadd.f32 %v6321_v53, %v6220_v60  ;;  %v2437_v16 = vadd.f32 %v6327_v50, %v6223_v22 }
 0x1d3   : > { %v3658_v38 = vadd.f32 %v6395_v0, %v3619_v59  ;;  %v3617_v8 = vmul.f32 %v6381_v49, %v3578_v19  ;;  %v3581_v9 = vadd.f32 %v5326_v43, %v3195_v11  ;;  %v3193_v62 = vadd.f32 %v3068_v25, %v2807_v44 }
 0x1d4   : > { %v5281_v40 = vpop.f32.mrf.mxu1  ;;  %v5329_v51 = vpop.f32.mrf.mxu0 }
 0x1d5   : > { %v3722_v54 = vmul.f32 0.1, %v3658_v38  ;;  %v3620_v58 = vmul.f32 %v6381_v49, %v3581_v9  ;;  %vm3690_vm0 = vcmp.ge.f32.partialorder %v3658_v38, 0.0  ;;  %v3656_v29 = vadd.f32 %v6395_v0, %v3617_v8 }
 0x1d6   : > { %v3579_v12 = vadd.f32 %v3454_v32, %v3193_v62  ;;  %v3198_v36 = vadd.f32 %v5281_v40, %v6276_v55  ;;  %v3081_v44 = vpop.f32.mrf.mxu1  ;;  %v3467_v28 = vpop.f32.mrf.mxu0 }
 0x1d7   : > { %v3659_v35 = vadd.f32 %v6395_v0, %v3620_v58  ;;  %v3196_v43 = vadd.f32 %v3081_v44, %v6283_v2  ;;  %v3754_v59 = vsel %vm3690_vm0, %v3658_v38, %v3722_v54  ;;  %v3720_v19 = vmul.f32 0.1, %v3656_v29 }
 0x1d8   : > { %v3618_v31 = vmul.f32 %v6381_v49, %v3579_v12  ;;  %v3584_v55 = vadd.f32 %v5329_v51, %v3198_v36  ;;  %v5282_v41 = vpop.f32.mrf.mxu1  ;;  %v5330_v27 = vpop.f32.mrf.mxu0  ;;  %vm3688_vm2 = vcmp.ge.f32.partialorder %v3656_v29, 0.0  ;;  %v6441_v58 = vadd.f32 %v6315_v56, %v2433_v33 }
 0x1d9   : > { %vm3691_vm1 = vcmp.ge.f32.partialorder %v3659_v35, 0.0  ;;  %v3723_v3 = vmul.f32 0.1, %v3659_v35  ;;  %v3199_v61 = vadd.f32 %v5282_v41, %v2813_v21  ;;  %v3582_v11 = vadd.f32 %v3467_v28, %v3196_v43 }
 0x1da   : > { %v3657_v60 = vadd.f32 %v6395_v0, %v3618_v31  ;;  %v3623_v53 = vmul.f32 %v6381_v49, %v3584_v55  ;;  %v3084_v22 = vpop.f32.mrf.mxu1  ;;  %v3470_v50 = vpop.f32.mrf.mxu0  ;;  %v3752_v12 = vsel %vm3688_vm2, %v3656_v29, %v3720_v19 }
 0x1db   : > { %v3755_v2 = vsel %vm3691_vm1, %v3659_v35, %v3723_v3  ;;  %v3585_v17 = vadd.f32 %v5330_v27, %v3199_v61  ;;  %v3197_v25 = vadd.f32 %v3084_v22, %v2811_v48  ;;  %v3621_v21 = vmul.f32 %v6381_v49, %v3582_v11 }
 0x1dc   : > { %v4620_v32 = vpack.c.bf16 %v3755_v2, %v3754_v59  ;;  %vm3689_vm3 = vcmp.ge.f32.partialorder %v3657_v60, 0.0  ;;  %v3721_v38 = vmul.f32 0.1, %v3657_v60  ;;  %v3662_v8 = vadd.f32 %v6395_v0, %v3623_v53  ;;  %v5285_v9 = vpop.f32.mrf.mxu1  ;;  %v5333_v62 = vpop.f32.mrf.mxu0 }
 0x1dd   : > { %v3624_v40 = vmul.f32 %v6381_v49, %v3585_v17  ;;  %v3583_v51 = vadd.f32 %v3470_v50, %v3197_v25  ;;  %v3202_v54 = vadd.f32 %v5285_v9, %v6290_v4  ;;  %v3660_v31 = vadd.f32 %v6395_v0, %v3621_v21 }
 0x1de   : > { %4692 = vst [vmem:[%s6434_s6 + $0x8] sm:$0xff] %v4620_v32   ;;  %v3753_v48 = vsel %vm3689_vm3, %v3657_v60, %v3721_v38  ;;  %v3726_v36 = vmul.f32 0.1, %v3662_v8  ;;  %v3097_v44 = vpop.f32.mrf.mxu1  ;;  %v3483_v28 = vpop.f32.mrf.mxu0  ;;  %v6449_v4 = vadd.f32 %v6323_v30, %v2439_v37  ;;  %vm3694_vm4 = vcmp.ge.f32.partialorder %v3662_v8, 0.0 }
 0x1df   : > { %v4615_v35 = vpack.c.bf16 %v3753_v48, %v3752_v12  ;;  %v3663_v55 = vadd.f32 %v6395_v0, %v3624_v40  ;;  %v3622_v43 = vmul.f32 %v6381_v49, %v3583_v51  ;;  %v3588_v56 = vadd.f32 %v5333_v62, %v3202_v54 }
 0x1e0   : > { %v3200_v29 = vadd.f32 %v3097_v44, %v6297_v45  ;;  %v5286_v33 = vpop.f32.mrf.mxu1  ;;  %v5334_v41 = vpop.f32.mrf.mxu0  ;;  %v6453_v27 = vadd.f32 %v6329_v13, %v2437_v16  ;;  %v3724_v59 = vmul.f32 0.1, %v3660_v31  ;;  %v3758_v45 = vsel %vm3694_vm4, %v3662_v8, %v3726_v36 }
 0x1e1   : > { %4616 = vst [vmem:[%s6434_s6] sm:$0xff] %v4615_v35   ;;  %vm3695_vm5 = vcmp.ge.f32.partialorder %v3663_v55, 0.0  ;;  %v3727_v3 = vmul.f32 0.1, %v3663_v55  ;;  %v3661_v61 = vadd.f32 %v6395_v0, %v3622_v43  ;;  %v3627_v19 = vmul.f32 %v6381_v49, %v3588_v56 }
 0x1e2   : > { %v3586_v60 = vadd.f32 %v3483_v28, %v3200_v29  ;;  %v3203_v30 = vadd.f32 %v5286_v33, %v6407_v20  ;;  %v3100_v37 = vpop.f32.mrf.mxu1  ;;  %v3486_v53 = vpop.f32.mrf.mxu0  ;;  %vm3692_vm6 = vcmp.ge.f32.partialorder %v3660_v31, 0.0  ;;  %v2443_v8 = vadd.f32 %v6335_v39, %v6232_v46 }
 0x1e3   : > { %v3759_v11 = vsel %vm3695_vm5, %v3663_v55, %v3727_v3  ;;  %v3201_v13 = vadd.f32 %v3100_v37, %v6410_v10  ;;  %vm3693_vm7 = vcmp.ge.f32.partialorder %v3661_v61, 0.0  ;;  %v3725_v22 = vmul.f32 0.1, %v3661_v61 }
 0x1e4   : > { %v4630_v16 = vpack.c.bf16 %v3759_v11, %v3758_v45  ;;  %v3666_v50 = vadd.f32 %v6395_v0, %v3627_v19  ;;  %v5289_v2 = vpop.f32.mrf.mxu1  ;;  %v5337_v17 = vpop.f32.mrf.mxu0  ;;  %v3625_v25 = vmul.f32 %v6381_v49, %v3586_v60  ;;  %v3589_v32 = vadd.f32 %v5334_v41, %v3203_v30 }
 0x1e5   : > { %v3587_v20 = vadd.f32 %v3486_v53, %v3201_v13  ;;  %v3206_v38 = vadd.f32 %v5289_v2, %v6304_v24  ;;  %v3756_v9 = vsel %vm3692_vm6, %v3660_v31, %v3724_v59  ;;  %v3757_v10 = vsel %vm3693_vm7, %v3661_v61, %v3725_v22 }
 0x1e6   : > { %4694 = vst [vmem:[%s6434_s6 + $0x18] sm:$0xff] %v4630_v16   ;;  %v3730_v62 = vmul.f32 0.1, %v3666_v50  ;;  %v3113_v21 = vpop.f32.mrf.mxu1  ;;  %v3499_v40 = vpop.f32.mrf.mxu0  ;;  %v4625_v51 = vpack.c.bf16 %v3757_v10, %v3756_v9  ;;  %v3664_v54 = vadd.f32 %v6395_v0, %v3625_v25  ;;  %v3628_v12 = vmul.f32 %v6381_v49, %v3589_v32  ;;  %v6588_v25 = vld [vmem:[#allocation8_spill] sm:$0xff] }
 0x1e7   : > { %v3626_v48 = vmul.f32 %v6381_v49, %v3587_v20  ;;  %v2441_v24 = vadd.f32 %v6341_v34, %v6235_v47  ;;  %vm3698_vm8 = vcmp.ge.f32.partialorder %v3666_v50, 0.0  ;;  %v3592_v36 = vadd.f32 %v5337_v17, %v3206_v38 }
 0x1e8   : > { %v3204_v46 = vadd.f32 %v3113_v21, %v6311_v52  ;;  %v5290_v39 = vpop.f32.mrf.mxu1  ;;  %v5338_v44 = vpop.f32.mrf.mxu0  ;;  %v2447_v28 = vadd.f32 %v6349_v57, %v6244_v14  ;;  %4693 = vst [vmem:[%s6434_s6 + $0x10] sm:$0xff] %v4625_v51   ;;  %v3728_v35 = vmul.f32 0.1, %v3664_v54  ;;  %v3667_v31 = vadd.f32 %v6395_v0, %v3628_v12 }
 0x1e9   : > { %v3665_v55 = vadd.f32 %v6395_v0, %v3626_v48  ;;  %vm3696_vm9 = vcmp.ge.f32.partialorder %v3664_v54, 0.0  ;;  %v3631_v43 = vmul.f32 %v6381_v49, %v3592_v36  ;;  %v3207_v47 = vadd.f32 %v5290_v39, %v6416_v6 }
 0x1ea   : > { %v3590_v56 = vadd.f32 %v3499_v40, %v3204_v46  ;;  %v3116_v34 = vpop.f32.mrf.mxu1  ;;  %v3502_v29 = vpop.f32.mrf.mxu0  ;;  %v3762_v52 = vsel %vm3698_vm8, %v3666_v50, %v3730_v62  ;;  %vm3699_vm10 = vcmp.ge.f32.partialorder %v3667_v31, 0.0  ;;  %v3731_v33 = vmul.f32 0.1, %v3667_v31 }
 0x1eb   : > { %vm3697_vm11 = vcmp.ge.f32.partialorder %v3665_v55, 0.0  ;;  %v3729_v14 = vmul.f32 0.1, %v3665_v55  ;;  %v3670_v57 = vadd.f32 %v6395_v0, %v3631_v43  ;;  %v3593_v59 = vadd.f32 %v5338_v44, %v3207_v47 }
 0x1ec   : > { %v3629_v41 = vmul.f32 %v6381_v49, %v3590_v56  ;;  %v5293_v3 = vpop.f32.mrf.mxu1  ;;  %v5341_v61 = vpop.f32.mrf.mxu0  ;;  %v3760_v19 = vsel %vm3696_vm9, %v3664_v54, %v3728_v35  ;;  %v3763_v60 = vsel %vm3699_vm10, %v3667_v31, %v3731_v33  ;;  %v3205_v6 = vadd.f32 %v3116_v34, %v6441_v58  ;;  %v6589_v58 = vld [vmem:[#allocation5_spill] sm:$0xff]  ;;  %v6591_v56 = vld [vmem:[#allocation2_spill] sm:$0xff] }
 0x1ed   : > { %v3210_v30 = vadd.f32 %v5293_v3, %v6318_v7  ;;  %v4640_v37 = vpack.c.bf16 %v3763_v60, %v3762_v52  ;;  %v3761_v53 = vsel %vm3697_vm11, %v3665_v55, %v3729_v14  ;;  %vm3702_vm12 = vcmp.ge.f32.partialorder %v3670_v57, 0.0  ;;  %v6590_v55 = vld [vmem:[#allocation6_spill] sm:$0xff] }
 0x1ee   : > { %v3734_v45 = vmul.f32 0.1, %v3670_v57  ;;  %v3129_v11 = vpop.f32.mrf.mxu1  ;;  %v3515_v13 = vpop.f32.mrf.mxu0  ;;  %v4635_v16 = vpack.c.bf16 %v3761_v53, %v3760_v19  ;;  %v3668_v22 = vadd.f32 %v6395_v0, %v3629_v41  ;;  %v3632_v50 = vmul.f32 %v6381_v49, %v3593_v59  ;;  %v6592_v53 = vld [vmem:[#allocation7_spill] sm:$0xff] }
 0x1ef   : > { %v3591_v2 = vadd.f32 %v3502_v29, %v3205_v6  ;;  %v2829_v17 = vadd.f32 %v6337_v5, %v2443_v8  ;;  %v6490_v32 = vadd.f32 %v6588_v25, %v2441_v24  ;;  %4696 = vst [vmem:[%s6434_s6 + $0x28] sm:$0xff] %v4640_v37   ;;  %v3596_v7 = vadd.f32 %v5341_v61, %v3210_v30 }
 0x1f0   : > { %v3208_v20 = vadd.f32 %v3129_v11, %v6589_v58  ;;  %v5294_v38 = vpop.f32.mrf.mxu1  ;;  %v5342_v9 = vpop.f32.mrf.mxu0  ;;  %v6495_v10 = vadd.f32 %v6351_v1, %v2447_v28  ;;  %4695 = vst [vmem:[%s6434_s6 + $0x20] sm:$0xff] %v4635_v16   ;;  %v3766_v62 = vsel %vm3702_vm12, %v3670_v57, %v3734_v45  ;;  %v3671_v21 = vadd.f32 %v6395_v0, %v3632_v50 }
 0x1f1   : > { %v3630_v40 = vmul.f32 %v6381_v49, %v3591_v2  ;;  %v3732_v5 = vmul.f32 0.1, %v3668_v22  ;;  %v3635_v8 = vmul.f32 %v6381_v49, %v3596_v7  ;;  %v3211_v54 = vadd.f32 %v5294_v38, %v6449_v4 }
 0x1f2   : > { %v3594_v51 = vadd.f32 %v3515_v13, %v3208_v20  ;;  %v3132_v12 = vpop.f32.mrf.mxu1  ;;  %v3518_v48 = vpop.f32.mrf.mxu0  ;;  %vm3700_vm13 = vcmp.ge.f32.partialorder %v3668_v22, 0.0  ;;  %vm3703_vm14 = vcmp.ge.f32.partialorder %v3671_v21, 0.0  ;;  %v3735_v24 = vmul.f32 0.1, %v3671_v21  ;;  %v6593_v13 = vld [vmem:[#allocation3_spill] sm:$0xff] }
 0x1f3   : > { %v3669_v1 = vadd.f32 %v6395_v0, %v3630_v40  ;;  %v3674_v36 = vadd.f32 %v6395_v0, %v3635_v8  ;;  %v3597_v39 = vadd.f32 %v5342_v9, %v3211_v54  ;;  %v3209_v44 = vadd.f32 %v3132_v12, %v6453_v27 }
 0x1f4   : > { %v3633_v46 = vmul.f32 %v6381_v49, %v3594_v51  ;;  %v5297_v28 = vpop.f32.mrf.mxu1  ;;  %v5345_v35 = vpop.f32.mrf.mxu0  ;;  %v3767_v31 = vsel %vm3703_vm14, %v3671_v21, %v3735_v24  ;;  %v2445_v47 = vadd.f32 %v6355_v26, %v6591_v56  ;;  %v3764_v34 = vsel %vm3700_vm13, %v3668_v22, %v3732_v5 }
 0x1f5   : > { %vm3701_vm15 = vcmp.ge.f32.partialorder %v3669_v1, 0.0  ;;  %v3733_v4 = vmul.f32 0.1, %v3669_v1  ;;  %v3214_v43 = vadd.f32 %v5297_v28, %v6590_v55  ;;  %v4650_v29 = vpack.c.bf16 %v3767_v31, %v3766_v62 }
 0x1f6   : > { %v3672_v52 = vadd.f32 %v6395_v0, %v3633_v46  ;;  %v3145_v33 = vpop.f32.mrf.mxu1  ;;  %v3531_v14 = vpop.f32.mrf.mxu0  ;;  %v3636_v27 = vmul.f32 %v6381_v49, %v3597_v39  ;;  %v3595_v41 = vadd.f32 %v3518_v48, %v3209_v44  ;;  %vm3706_vm0 = vcmp.ge.f32.partialorder %v3674_v36, 0.0 }
 0x1f7   : > { %v3765_v57 = vsel %vm3701_vm15, %v3669_v1, %v3733_v4  ;;  %v3600_v59 = vadd.f32 %v5345_v35, %v3214_v43  ;;  %4698 = vst [vmem:[%s6434_s6 + $0x38] sm:$0xff] %v4650_v29   ;;  %v3738_v61 = vmul.f32 0.1, %v3674_v36  ;;  %v3212_v45 = vadd.f32 %v3145_v33, %v6592_v53  ;;  %v6594_v1 = vld [vmem:[#allocation9_spill] sm:$0xff] }
 0x1f8   : > { %v4645_v3 = vpack.c.bf16 %v3765_v57, %v3764_v34  ;;  %v3736_v19 = vmul.f32 0.1, %v3672_v52  ;;  %v5298_v60 = vpop.f32.mrf.mxu1  ;;  %v5346_v6 = vpop.f32.mrf.mxu0  ;;  %v3675_v26 = vadd.f32 %v6395_v0, %v3636_v27  ;;  %v3634_v30 = vmul.f32 %v6381_v49, %v3595_v41  ;;  %v6596_v34 = vld [vmem:[#allocation4_spill] sm:$0xff] }
 0x1f9   : > { %v3639_v37 = vmul.f32 %v6381_v49, %v3600_v59  ;;  %v2831_v11 = vadd.f32 %v6357_v15, %v2445_v47  ;;  %v6520_v16 = vadd.f32 %v6363_v63, %v6593_v13  ;;  %vm3704_vm1 = vcmp.ge.f32.partialorder %v3672_v52, 0.0 }
 0x1fa   : > { %4697 = vst [vmem:[%s6434_s6 + $0x30] sm:$0xff] %v4645_v3   ;;  %v3215_v22 = vadd.f32 %v5298_v60, %v2829_v17  ;;  %v3148_v50 = vpop.f32.mrf.mxu1  ;;  %v3534_v2 = vpop.f32.mrf.mxu0  ;;  %vm3707_vm2 = vcmp.ge.f32.partialorder %v3675_v26, 0.0  ;;  %v3739_v25 = vmul.f32 0.1, %v3675_v26  ;;  %v3673_v7 = vadd.f32 %v6395_v0, %v3634_v30 }
 0x1fb   : > { %v3678_v58 = vadd.f32 %v6395_v0, %v3639_v37  ;;  %v3770_v20 = vsel %vm3706_vm0, %v3674_v36, %v3738_v61  ;;  %v3598_v38 = vadd.f32 %v3531_v14, %v3212_v45  ;;  %v3213_v15 = vadd.f32 %v3148_v50, %v6490_v32  ;;  %v6595_v36 = vld [vmem:[#allocation10_spill] sm:$0xff] }
 0x1fc   : > { %v3601_v9 = vadd.f32 %v5346_v6, %v3215_v22  ;;  %v5301_v62 = vpop.f32.mrf.mxu1  ;;  %v5349_v63 = vpop.f32.mrf.mxu0  ;;  %v3768_v21 = vsel %vm3704_vm1, %v3672_v52, %v3736_v19  ;;  %v3771_v40 = vsel %vm3707_vm2, %v3675_v26, %v3739_v25  ;;  %vm3705_vm3 = vcmp.ge.f32.partialorder %v3673_v7, 0.0 }
 0x1fd   : > { %v3737_v17 = vmul.f32 0.1, %v3673_v7  ;;  %v4660_v5 = vpack.c.bf16 %v3771_v40, %v3770_v20  ;;  %vm3710_vm4 = vcmp.ge.f32.partialorder %v3678_v58, 0.0  ;;  %v3637_v8 = vmul.f32 %v6381_v49, %v3598_v38  ;;  %v6598_v20 = vld [vmem:[#allocation12_spill] sm:$0xff] }
 0x1fe   : > { %v3640_v51 = vmul.f32 %v6381_v49, %v3601_v9  ;;  %v3161_v54 = vpop.f32.mrf.mxu1  ;;  %v3547_v12 = vpop.f32.mrf.mxu0  ;;  %v3599_v24 = vadd.f32 %v3534_v2, %v3213_v15  ;;  %v3218_v32 = vadd.f32 %v5301_v62, %v6594_v1  ;;  %v3742_v44 = vmul.f32 0.1, %v3678_v58 }
 0x1ff   : > { %v3769_v48 = vsel %vm3705_vm3, %v3673_v7, %v3737_v17  ;;  %v3216_v46 = vadd.f32 %v3161_v54, %v6595_v36  ;;  %4700 = vst [vmem:[%s6434_s6 + $0x48] sm:$0xff] %v4660_v5   ;;  %v3676_v28 = vadd.f32 %v6395_v0, %v3637_v8  ;;  %v2449_v29 = vadd.f32 %v6369_v42, %v6596_v34  ;;  %v6597_v7 = vld [vmem:[#allocation11_spill] sm:$0xff] }
 0x200   : > { %v4655_v39 = vpack.c.bf16 %v3769_v48, %v3768_v21  ;;  %v3679_v35 = vadd.f32 %v6395_v0, %v3640_v51  ;;  %v5302_v31 = vpop.f32.mrf.mxu1  ;;  %v5350_v4 = vpop.f32.mrf.mxu0  ;;  %v3638_v55 = vmul.f32 %v6381_v49, %v3599_v24  ;;  %v3604_v43 = vadd.f32 %v5349_v63, %v3218_v32 }
 0x201   : > { %v3602_v56 = vadd.f32 %v3547_v12, %v3216_v46  ;;  %v3219_v47 = vadd.f32 %v5302_v31, %v6495_v10  ;;  %v3740_v52 = vmul.f32 0.1, %v3676_v28  ;;  %v3774_v61 = vsel %vm3710_vm4, %v3678_v58, %v3742_v44 }
 0x202   : > { %4699 = vst [vmem:[%s6434_s6 + $0x40] sm:$0xff] %v4655_v39   ;;  %vm3711_vm5 = vcmp.ge.f32.partialorder %v3679_v35, 0.0  ;;  %v3743_v33 = vmul.f32 0.1, %v3679_v35  ;;  %v3164_v14 = vpop.f32.mrf.mxu1  ;;  %v3550_v57 = vpop.f32.mrf.mxu0  ;;  %v3677_v27 = vadd.f32 %v6395_v0, %v3638_v55  ;;  %v3643_v41 = vmul.f32 %v6381_v49, %v3604_v43 }
 0x203   : > { %v3641_v59 = vmul.f32 %v6381_v49, %v3602_v56  ;;  %v3605_v3 = vadd.f32 %v5350_v4, %v3219_v47  ;;  %vm3708_vm6 = vcmp.ge.f32.partialorder %v3676_v28, 0.0  ;;  %v3217_v19 = vadd.f32 %v3164_v14, %v2831_v11 }
 0x204   : > { %v3775_v10 = vsel %vm3711_vm5, %v3679_v35, %v3743_v33  ;;  %v5305_v42 = vpop.f32.mrf.mxu1  ;;  %v5353_v60 = vpop.f32.mrf.mxu0  ;;  %vm3709_vm7 = vcmp.ge.f32.partialorder %v3677_v27, 0.0  ;;  %v3741_v26 = vmul.f32 0.1, %v3677_v27  ;;  %v3682_v30 = vadd.f32 %v6395_v0, %v3643_v41 }
 0x205   : > { %v4670_v6 = vpack.c.bf16 %v3775_v10, %v3774_v61  ;;  %v3680_v37 = vadd.f32 %v6395_v0, %v3641_v59  ;;  %v3644_v53 = vmul.f32 %v6381_v49, %v3605_v3  ;;  %v3603_v45 = vadd.f32 %v3550_v57, %v3217_v19 }
 0x206   : > { %v3222_v13 = vadd.f32 %v5305_v42, %v6360_v23  ;;  %v3177_v22 = vpop.f32.mrf.mxu1  ;;  %v3563_v50 = vpop.f32.mrf.mxu0  ;;  %v2837_v11 = vadd.f32 %v6365_v18, %v6520_v16  ;;  %v3772_v2 = vsel %vm3708_vm6, %v3676_v28, %v3740_v52  ;;  %v3773_v25 = vsel %vm3709_vm7, %v3677_v27, %v3741_v26 }
 0x207   : > { %4702 = vst [vmem:[%s6434_s6 + $0x58] sm:$0xff] %v4670_v6   ;;  %v3220_v58 = vadd.f32 %v3177_v22, %v6597_v7  ;;  %v2835_v38 = vadd.f32 %v6598_v20, %v2449_v29  ;;  %v4665_v9 = vpack.c.bf16 %v3773_v25, %v3772_v2  ;;  %v3746_v15 = vmul.f32 0.1, %v3682_v30 }
 0x208   : > { %v3683_v62 = vadd.f32 %v6395_v0, %v3644_v53  ;;  %v5306_v63 = vpop.f32.mrf.mxu1  ;;  %vm3714_vm8 = vcmp.ge.f32.partialorder %v3682_v30, 0.0  ;;  %v3642_v23 = vmul.f32 %v6381_v49, %v3603_v45  ;;  %v3608_v21 = vadd.f32 %v5353_v60, %v3222_v13  ;;  %v5354_v17 = vpop.f32.mrf.mxu0 }
 0x209   : > { %v3606_v40 = vadd.f32 %v3563_v50, %v3220_v58  ;;  %4701 = vst [vmem:[%s6434_s6 + $0x50] sm:$0xff] %v4665_v9   ;;  %v3744_v18 = vmul.f32 0.1, %v3680_v37  ;;  %v3223_v5 = vadd.f32 %v5306_v63, %v2837_v11  ;;  %v3778_v24 = vsel %vm3714_vm8, %v3682_v30, %v3746_v15 }
 0x20a   : > { %vm3715_vm9 = vcmp.ge.f32.partialorder %v3683_v62, 0.0  ;;  %v3747_v16 = vmul.f32 0.1, %v3683_v62  ;;  %v3180_v8 = vpop.f32.mrf.mxu1  ;;  %v3681_v51 = vadd.f32 %v6395_v0, %v3642_v23  ;;  %v3647_v54 = vmul.f32 %v6381_v49, %v3608_v21  ;;  %v3566_v44 = vpop.f32.mrf.mxu0 }
 0x20b   : > { %v3645_v12 = vmul.f32 %v6381_v49, %v3606_v40  ;;  %v3221_v48 = vadd.f32 %v3180_v8, %v2835_v38  ;;  %vm3712_vm10 = vcmp.ge.f32.partialorder %v3680_v37, 0.0  ;;  %v3609_v32 = vadd.f32 %v5354_v17, %v3223_v5 }
 0x20c   : > { %v3779_v1 = vsel %vm3715_vm9, %v3683_v62, %v3747_v16  ;;  %vm3713_vm11 = vcmp.ge.f32.partialorder %v3681_v51, 0.0  ;;  %v3745_v46 = vmul.f32 0.1, %v3681_v51  ;;  %v3686_v39 = vadd.f32 %v6395_v0, %v3647_v54 }
 0x20d   : > { %v4680_v36 = vpack.c.bf16 %v3779_v1, %v3778_v24  ;;  %v3648_v28 = vmul.f32 %v6381_v49, %v3609_v32  ;;  %v3607_v35 = vadd.f32 %v3566_v44, %v3221_v48  ;;  %v3776_v31 = vsel %vm3712_vm10, %v3680_v37, %v3744_v18 }
 0x20e   : > { %v3777_v4 = vsel %vm3713_vm11, %v3681_v51, %v3745_v46  ;;  %v3684_v55 = vadd.f32 %v6395_v0, %v3645_v12  ;;  %v3750_v56 = vmul.f32 0.1, %v3686_v39  ;;  %vm3718_vm12 = vcmp.ge.f32.partialorder %v3686_v39, 0.0 }
 0x20f   : > { %4704 = vst [vmem:[%s6434_s6 + $0x68] sm:$0xff] %v4680_v36   ;;  %v4675_v43 = vpack.c.bf16 %v3777_v4, %v3776_v31  ;;  %v3687_v47 = vadd.f32 %v6395_v0, %v3648_v28  ;;  %v3646_v34 = vmul.f32 %v6381_v49, %v3607_v35 }
 0x210   : > { %v3748_v52 = vmul.f32 0.1, %v3684_v55  ;;  %v3782_v14 = vsel %vm3718_vm12, %v3686_v39, %v3750_v56  ;;  %vm3716_vm14 = vcmp.ge.f32.partialorder %v3684_v55, 0.0 }
 0x211   : > { %4703 = vst [vmem:[%s6434_s6 + $0x60] sm:$0xff] %v4675_v43   ;;  %vm3719_vm13 = vcmp.ge.f32.partialorder %v3687_v47, 0.0  ;;  %v3751_v29 = vmul.f32 0.1, %v3687_v47  ;;  %v3685_v33 = vadd.f32 %v6395_v0, %v3646_v34 }
 0x212   : > { %v3780_v59 = vsel %vm3716_vm14, %v3684_v55, %v3748_v52 }
 0x213   : > { %v3783_v57 = vsel %vm3719_vm13, %v3687_v47, %v3751_v29  ;;  %vm3717_vm15 = vcmp.ge.f32.partialorder %v3685_v33, 0.0  ;;  %v3749_v41 = vmul.f32 0.1, %v3685_v33 }
 0x214   : > { %v4690_v27 = vpack.c.bf16 %v3783_v57, %v3782_v14 }
 0x215   : > { %v3781_v3 = vsel %vm3717_vm15, %v3685_v33, %v3749_v41 }
 0x216   : > { %4706 = vst [vmem:[%s6434_s6 + $0x78] sm:$0xff] %v4690_v27   ;;  %v4685_v61 = vpack.c.bf16 %v3781_v3, %v3780_v59 }
 0x218   : > { %4705 = vst [vmem:[%s6434_s6 + $0x70] sm:$0xff] %v4685_v61  }
 0x219 PF: > { %s14_s15 = sadd.s32 1, %s5602_s15  }
 0x21a   : > { %p11_p4 = scmp.ge.s32.totalorder %s14_s15, 4  }
 0x21c   :  { %13 = sbr.rel (!%p11_p4) target bundleno = 1 (0x1), region = 76 }

// kernel: _lambda_.31
= control target key start
LH: loop header
LB: loop body
LE: loop exit
PB: predicated region body
PF: predicated region fallthrough
CT: control target
= control target key end

     0   :  { %s670_s1 = inlined_call_operand.vmem [shape: bf16[128,128], index: 1, kind: input, shape index: {}]   ;;  %s671_s0 = inlined_call_operand.vmem [shape: bf16[128,128], index: 0, kind: input, shape index: {}]   ;;  %s672_s2 = inlined_call_operand.vmem [shape: bf16[128,128], index: 2, kind: output, shape index: {}]  }
   0x1   :  { %v567_v0 = vld [vmem:[%s670_s1 + $0x38] sm:$0xff]   ;;  %v568_v1 = vld [vmem:[%s670_s1 + $0x30] sm:$0xff]   ;;  %v569_v2 = vld [vmem:[%s670_s1 + $0x28] sm:$0xff]  }
   0x2   :  { %519 = vmatprep.subr.bf16.mxu0 %v567_v0  ;;  %551 = vmatprep.subr.bf16.mxu1 %v567_v0  ;;  %v570_v3 = vld [vmem:[%s670_s1 + $0x20] sm:$0xff]   ;;  %v571_v6 = vld [vmem:[%s670_s1 + $0x18] sm:$0xff]   ;;  %v572_v7 = vld [vmem:[%s670_s1 + $0x10] sm:$0xff]  }
   0x3   :  { %520 = vmatpush3.bf16.msra.mxu0 %v567_v0  ;;  %559 = vmatpush3.bf16.msra.mxu1 %v567_v0  ;;  %v575_v4 = vld [vmem:[%s671_s0] sm:$0xff]   ;;  %v573_v8 = vld [vmem:[%s670_s1 + $0x8] sm:$0xff]   ;;  %v579_v12 = vld [vmem:[%s671_s0 + $0x10] sm:$0xff]  }
   0x4   :  { %521 = vmatprep.subr.bf16.mxu0 %v568_v1  ;;  %552 = vmatprep.subr.bf16.mxu1 %v568_v1  ;;  %v576_v5 = vld [vmem:[%s671_s0 + $0x20] sm:$0xff]   ;;  %v577_v10 = vld [vmem:[%s671_s0 + $0x8] sm:$0xff]   ;;  %v580_v13 = vld [vmem:[%s671_s0 + $0x30] sm:$0xff]  }
   0x5   :  { %535 = vmatprep.mubr.bf16.mxu0 %v575_v4  ;;  %543 = vmatprep.mubr.bf16.mxu1 %v576_v5  ;;  %v574_v9 = vld [vmem:[%s670_s1] sm:$0xff]   ;;  %v578_v11 = vld [vmem:[%s671_s0 + $0x28] sm:$0xff]   ;;  %v581_v14 = vld [vmem:[%s671_s0 + $0x18] sm:$0xff]  }
   0x6   :  { %v582_v15 = vld [vmem:[%s671_s0 + $0x38] sm:$0xff]  }
   0x7   :  { %522 = vmatpush3.bf16.msra.mxu0 %v568_v1  ;;  %560 = vmatpush3.bf16.msra.mxu1 %v568_v1 }
   0x8   :  { %523 = vmatprep.subr.bf16.mxu0 %v569_v2  ;;  %553 = vmatprep.subr.bf16.mxu1 %v569_v2 }
   0xb   :  { %524 = vmatpush3.bf16.msra.mxu0 %v569_v2  ;;  %561 = vmatpush3.bf16.msra.mxu1 %v569_v2 }
   0xc   :  { %525 = vmatprep.subr.bf16.mxu0 %v570_v3  ;;  %554 = vmatprep.subr.bf16.mxu1 %v570_v3 }
   0xf   :  { %526 = vmatpush3.bf16.msra.mxu0 %v570_v3  ;;  %562 = vmatpush3.bf16.msra.mxu1 %v570_v3 }
  0x10   :  { %527 = vmatprep.subr.bf16.mxu0 %v571_v6  ;;  %555 = vmatprep.subr.bf16.mxu1 %v571_v6 }
  0x13   :  { %528 = vmatpush3.bf16.msra.mxu0 %v571_v6  ;;  %563 = vmatpush3.bf16.msra.mxu1 %v571_v6 }
  0x14   :  { %529 = vmatprep.subr.bf16.mxu0 %v572_v7  ;;  %556 = vmatprep.subr.bf16.mxu1 %v572_v7 }
  0x17   :  { %530 = vmatpush3.bf16.msra.mxu0 %v572_v7  ;;  %564 = vmatpush3.bf16.msra.mxu1 %v572_v7 }
  0x18   :  { %531 = vmatprep.subr.bf16.mxu0 %v573_v8  ;;  %557 = vmatprep.subr.bf16.mxu1 %v573_v8 }
  0x1b   :  { %532 = vmatpush3.bf16.msra.mxu0 %v573_v8  ;;  %565 = vmatpush3.bf16.msra.mxu1 %v573_v8 }
  0x1c   :  { %533 = vmatprep.subr.bf16.mxu0 %v574_v9  ;;  %558 = vmatprep.subr.bf16.mxu1 %v574_v9 }
  0x1f   :  { %534 = vmatpush3.bf16.msra.mxu0 %v574_v9  ;;  %566 = vmatpush3.bf16.msra.mxu1 %v574_v9 }
  0x22   :  { %536 = vmatmul.mubr.bf16.vlgmr.msra.gmra.mxu0 %v577_v10  ;;  %544 = vmatmul.mubr.bf16.vlgmr.msra.gmra.mxu1 %v578_v11 }
  0x23   :  { %539 = vmatprep.mubr.bf16.mxu0 %v579_v12  ;;  %547 = vmatprep.mubr.bf16.mxu1 %v580_v13 }
  0x2a   :  { %540 = vmatmul.mubr.bf16.gmra.mxu0 %v581_v14  ;;  %548 = vmatmul.mubr.bf16.gmra.mxu1 %v582_v15 }
  0xe2   :  { %v537_v16 = vpop.f32.mrf.mxu0  ;;  %v545_v17 = vpop.f32.mrf.mxu1 }
  0xe4   :  { %v210_v18 = vpop.f32.mrf.mxu0  ;;  %v242_v19 = vpop.f32.mrf.mxu1 }
  0xe6   :  { %v538_v20 = vpop.f32.mrf.mxu0  ;;  %v546_v21 = vpop.f32.mrf.mxu1 }
  0xe7   :  { %v464_v22 = vpack.c.bf16 %v538_v20, %v537_v16  ;;  %v484_v23 = vpack.c.bf16 %v546_v21, %v545_v17 }
  0xe8   :  { %v213_v24 = vpop.f32.mrf.mxu0  ;;  %v245_v25 = vpop.f32.mrf.mxu1 }
  0xe9   :  { %496 = vst [vmem:[%s672_s2 + $0x8] sm:$0xff] %v464_v22   ;;  %500 = vst [vmem:[%s672_s2 + $0x28] sm:$0xff] %v484_v23   ;;  %v459_v26 = vpack.c.bf16 %v213_v24, %v210_v18  ;;  %v479_v27 = vpack.c.bf16 %v245_v25, %v242_v19 }
  0xea   :  { %v541_v28 = vpop.f32.mrf.mxu0  ;;  %v549_v29 = vpop.f32.mrf.mxu1 }
  0xeb   :  { %460 = vst [vmem:[%s672_s2] sm:$0xff] %v459_v26   ;;  %499 = vst [vmem:[%s672_s2 + $0x20] sm:$0xff] %v479_v27  }
  0xec   :  { %v226_v30 = vpop.f32.mrf.mxu0  ;;  %v258_v31 = vpop.f32.mrf.mxu1 }
  0xee   :  { %v542_v32 = vpop.f32.mrf.mxu0  ;;  %v550_v33 = vpop.f32.mrf.mxu1 }
  0xef   :  { %v474_v34 = vpack.c.bf16 %v542_v32, %v541_v28  ;;  %v494_v35 = vpack.c.bf16 %v550_v33, %v549_v29 }
  0xf0   :  { %v229_v36 = vpop.f32.mrf.mxu0  ;;  %v261_v37 = vpop.f32.mrf.mxu1 }
  0xf1   :  { %498 = vst [vmem:[%s672_s2 + $0x18] sm:$0xff] %v474_v34   ;;  %502 = vst [vmem:[%s672_s2 + $0x38] sm:$0xff] %v494_v35   ;;  %v469_v38 = vpack.c.bf16 %v229_v36, %v226_v30  ;;  %v489_v39 = vpack.c.bf16 %v261_v37, %v258_v31 }
  0xf3   :  { %497 = vst [vmem:[%s672_s2 + $0x10] sm:$0xff] %v469_v38   ;;  %501 = vst [vmem:[%s672_s2 + $0x30] sm:$0xff] %v489_v39  }

// kernel: _lambda_.25
= control target key start
LH: loop header
LB: loop body
LE: loop exit
PB: predicated region body
PF: predicated region fallthrough
CT: control target
= control target key end

     0   :  { %s5775_s18 = smov 0   ;;  %s6715_s0 = inlined_call_operand.vmem [shape: bf16[2,3,288,128], index: 0, kind: input, shape index: {}]   ;;  %s6716_s1 = inlined_call_operand.vmem [shape: bf16[9,128,128], index: 1, kind: input, shape index: {}]   ;;  %s6717_s2 = inlined_call_operand.vmem [shape: f32[1,128], index: 2, kind: input, shape index: {}]   ;;  %s6718_s3 = inlined_call_operand.vmem [shape: f32[1,128], index: 3, kind: input, shape index: {}]   ;;  %s6719_s4 = inlined_call_operand.vmem [shape: bf16[2,256,128], index: 4, kind: input, shape index: {}]   ;;  %s6720_s5 = inlined_call_operand.vmem [shape: bf16[2,256,128], index: 5, kind: output, shape index: {}]  }
   0x1 LB: > { %s4058_s19 = sadd.s32 4294967295, %s5743_s18   ;;  %p4062_p0 = scmp.ge.s32.totalorder %s5743_s18, 1  ;;  %s5743_s18 = sphi %s5775_s18, %s15_s18  }
   0x2   : > { %p197_p1 = scmp.lt.s32.totalorder %s5743_s18, 3 }
   0x4   : > { %p198_p2 = pnand %p4062_p0, %p197_p1 }
   0x6   : > { %201 = sbr.rel (%p198_p2) target bundleno = 536 (0x218), region = 40 }
   0xb   : > { %v5521_v0 = vld [vmem:[%s6716_s1 + $0x78] sm:$0xff]   ;;  %p230_p3 = scmp.lt.s32.totalorder %s4058_s19, 1  ;;  %v5522_v1 = vld [vmem:[%s6716_s1 + $0x70] sm:$0xff]   ;;  %v5523_v2 = vld [vmem:[%s6716_s1 + $0x68] sm:$0xff]  }
   0xc   : > { %5064 = vmatprep.subr.bf16.mxu0 %v5521_v0  ;;  %5496 = vmatprep.subr.bf16.mxu1 %v5521_v0  ;;  %v5524_v3 = vld [vmem:[%s6716_s1 + $0x60] sm:$0xff]   ;;  %v5525_v6 = vld [vmem:[%s6716_s1 + $0x58] sm:$0xff]   ;;  %v5526_v7 = vld [vmem:[%s6716_s1 + $0x50] sm:$0xff]  }
   0xd   : > { %s6758_s19 = smov (!%p230_p3, %s4058_s19), 1  ;;  %5065 = vmatpush3.bf16.msra.mxu0 %v5521_v0  ;;  %5504 = vmatpush3.bf16.msra.mxu1 %v5521_v0  ;;  %v5527_v8 = vld [vmem:[%s6716_s1 + $0x48] sm:$0xff]   ;;  %v5528_v9 = vld [vmem:[%s6716_s1 + $0x40] sm:$0xff]   ;;  %v5533_v10 = vld [vmem:[%s6716_s1 + $0x38] sm:$0xff]  }
   0xe   : > { %5066 = vmatprep.subr.bf16.mxu0 %v5522_v1  ;;  %5497 = vmatprep.subr.bf16.mxu1 %v5522_v1  ;;  %s5512_s26 = smul.u32 432, %s6758_s19  ;;  %v5534_v12 = vld [vmem:[%s6716_s1 + $0xb8] sm:$0xff]   ;;  %v5535_v14 = vld [vmem:[%s6716_s1 + $0x30] sm:$0xff]   ;;  %v5541_v18 = vld [vmem:[%s6716_s1 + $0x28] sm:$0xff]  }
   0xf   : > { %v5536_v15 = vld [vmem:[%s6716_s1 + $0xb0] sm:$0xff]   ;;  %v5542_v20 = vld [vmem:[%s6716_s1 + $0xa8] sm:$0xff]   ;;  %v5543_v22 = vld [vmem:[%s6716_s1 + $0x20] sm:$0xff]  }
  0x10   : > { %s5798_s29 = scalar_lea.vmem %s6715_s0, %s5512_s26  ;;  %v5544_v23 = vld [vmem:[%s6716_s1 + $0xa0] sm:$0xff]   ;;  %v5549_v26 = vld [vmem:[%s6716_s1 + $0x18] sm:$0xff]   ;;  %v5551_v30 = vld [vmem:[%s6716_s1 + $0x10] sm:$0xff]  }
  0x11   : > { %5067 = vmatpush3.bf16.msra.mxu0 %v5522_v1  ;;  %5505 = vmatpush3.bf16.msra.mxu1 %v5522_v1  ;;  %v5529_v4 = vld [vmem:[%s5798_s29 + $0x90] sm:$0xff]   ;;  %v5531_v11 = vld [vmem:[%s5798_s29 + $0x98] sm:$0xff]   ;;  %v5537_v16 = vld [vmem:[%s5798_s29 + $0xa0] sm:$0xff]  }
  0x12   : > { %5068 = vmatprep.subr.bf16.mxu0 %v5523_v2  ;;  %5498 = vmatprep.subr.bf16.mxu1 %v5523_v2  ;;  %v5530_v5 = vld [vmem:[%s5798_s29 + $0xd0] sm:$0xff]   ;;  %v5532_v13 = vld [vmem:[%s5798_s29 + $0xd8] sm:$0xff]   ;;  %v5538_v17 = vld [vmem:[%s5798_s29 + $0xe0] sm:$0xff]  }
  0x13   : > { %5080 = vmatprep.mubr.bf16.mxu0 %v5529_v4  ;;  %5096 = vmatprep.mubr.bf16.mxu1 %v5530_v5  ;;  %v5539_v19 = vld [vmem:[%s5798_s29 + $0xa8] sm:$0xff]   ;;  %v5545_v24 = vld [vmem:[%s5798_s29 + $0xb0] sm:$0xff]   ;;  %v5547_v27 = vld [vmem:[%s5798_s29 + $0xb8] sm:$0xff]  }
  0x14   : > { %v5540_v21 = vld [vmem:[%s5798_s29 + $0xe8] sm:$0xff]   ;;  %v5546_v25 = vld [vmem:[%s5798_s29 + $0xf0] sm:$0xff]   ;;  %v5550_v28 = vld [vmem:[%s6716_s1 + $0x98] sm:$0xff]  }
  0x15   : > { %5069 = vmatpush3.bf16.msra.mxu0 %v5523_v2  ;;  %5506 = vmatpush3.bf16.msra.mxu1 %v5523_v2  ;;  %v5548_v29 = vld [vmem:[%s5798_s29 + $0xf8] sm:$0xff]   ;;  %v5552_v31 = vld [vmem:[%s6716_s1 + $0x90] sm:$0xff]   ;;  %v5553_v32 = vld [vmem:[%s5798_s29 + $0xc0] sm:$0xff]  }
  0x16   : > { %5070 = vmatprep.subr.bf16.mxu0 %v5524_v3  ;;  %5499 = vmatprep.subr.bf16.mxu1 %v5524_v3  ;;  %v5554_v33 = vld [vmem:[%s5798_s29 + $0x100] sm:$0xff]   ;;  %v5557_v34 = vld [vmem:[%s6716_s1 + $0x8] sm:$0xff]   ;;  %v5565_v42 = vld [vmem:[%s6716_s1 + $0xf8] sm:$0xff]  }
  0x17   : > { %v5555_v35 = vld [vmem:[%s5798_s29 + $0xc8] sm:$0xff]   ;;  %v5559_v38 = vld [vmem:[%s6716_s1] sm:$0xff]   ;;  %v5566_v44 = vld [vmem:[%s6716_s1 + $0x138] sm:$0xff]  }
  0x18   : > { %v5558_v36 = vld [vmem:[%s6716_s1 + $0x88] sm:$0xff]   ;;  %v5560_v39 = vld [vmem:[%s6716_s1 + $0x80] sm:$0xff]   ;;  %v5567_v46 = vld [vmem:[%s5798_s29 + $0x10] sm:$0xff]  }
  0x19   : > { %5071 = vmatpush3.bf16.msra.mxu0 %v5524_v3  ;;  %5507 = vmatpush3.bf16.msra.mxu1 %v5524_v3  ;;  %v5556_v37 = vld [vmem:[%s5798_s29 + $0x108] sm:$0xff]   ;;  %v5561_v40 = vld [vmem:[%s5798_s29] sm:$0xff]   ;;  %v5568_v47 = vld [vmem:[%s5798_s29 + $0x130] sm:$0xff]  }
  0x1a   : > { %5072 = vmatprep.subr.bf16.mxu0 %v5525_v6  ;;  %5500 = vmatprep.subr.bf16.mxu1 %v5525_v6  ;;  %v5562_v41 = vld [vmem:[%s5798_s29 + $0x120] sm:$0xff]   ;;  %v5563_v43 = vld [vmem:[%s5798_s29 + $0x8] sm:$0xff]   ;;  %v5571_v48 = vld [vmem:[%s6716_s1 + $0xf0] sm:$0xff]  }
  0x1b   : > { %v5564_v45 = vld [vmem:[%s5798_s29 + $0x128] sm:$0xff]   ;;  %v5572_v49 = vld [vmem:[%s6716_s1 + $0x130] sm:$0xff]   ;;  %v5569_v51 = vld [vmem:[%s5798_s29 + $0x18] sm:$0xff]  }
  0x1c   : > { %v5577_v50 = vld [vmem:[%s6716_s1 + $0xe8] sm:$0xff]   ;;  %v5570_v53 = vld [vmem:[%s5798_s29 + $0x138] sm:$0xff]   ;;  %v5573_v54 = vld [vmem:[%s5798_s29 + $0x20] sm:$0xff]  }
  0x1d   : > { %5073 = vmatpush3.bf16.msra.mxu0 %v5525_v6  ;;  %5508 = vmatpush3.bf16.msra.mxu1 %v5525_v6  ;;  %v5578_v52 = vld [vmem:[%s6716_s1 + $0x128] sm:$0xff]   ;;  %v5574_v55 = vld [vmem:[%s5798_s29 + $0x140] sm:$0xff]   ;;  %v5589_v60 = vld [vmem:[%s6716_s1 + $0xd8] sm:$0xff]  }
  0x1e   : > { %5074 = vmatprep.subr.bf16.mxu0 %v5526_v7  ;;  %5501 = vmatprep.subr.bf16.mxu1 %v5526_v7  ;;  %v5583_v56 = vld [vmem:[%s6716_s1 + $0xe0] sm:$0xff]   ;;  %v5575_v58 = vld [vmem:[%s5798_s29 + $0x28] sm:$0xff]   ;;  %v5590_v61 = vld [vmem:[%s6716_s1 + $0x118] sm:$0xff]  }
  0x1f   : > { %v5584_v57 = vld [vmem:[%s6716_s1 + $0x120] sm:$0xff]   ;;  %v5576_v59 = vld [vmem:[%s5798_s29 + $0x148] sm:$0xff]   ;;  %v5579_v62 = vld [vmem:[%s5798_s29 + $0x30] sm:$0xff]  }
  0x20   : > { %v5580_v63 = vld [vmem:[%s5798_s29 + $0x150] sm:$0xff]   ;;  %v5581_v2 = vld [vmem:[%s5798_s29 + $0x38] sm:$0xff]   ;;  %v5601_v4 = vld [vmem:[%s6716_s1 + $0xc8] sm:$0xff]  }
  0x21   : > { %5075 = vmatpush3.bf16.msra.mxu0 %v5526_v7  ;;  %5509 = vmatpush3.bf16.msra.mxu1 %v5526_v7  ;;  %v5595_v0 = vld [vmem:[%s6716_s1 + $0xd0] sm:$0xff]   ;;  %v5582_v3 = vld [vmem:[%s5798_s29 + $0x158] sm:$0xff]   ;;  %v5602_v5 = vld [vmem:[%s6716_s1 + $0x108] sm:$0xff]  }
  0x22   : > { %5076 = vmatprep.subr.bf16.mxu0 %v5527_v8  ;;  %5502 = vmatprep.subr.bf16.mxu1 %v5527_v8  ;;  %v5596_v1 = vld [vmem:[%s6716_s1 + $0x110] sm:$0xff]   ;;  %v5585_v6 = vld [vmem:[%s5798_s29 + $0x40] sm:$0xff]  }
  0x23   : > { %v5586_v7 = vld [vmem:[%s5798_s29 + $0x160] sm:$0xff]  }
  0x25   : > { %5077 = vmatpush3.bf16.msra.mxu0 %v5527_v8  ;;  %5510 = vmatpush3.bf16.msra.mxu1 %v5527_v8  ;;  %v5607_v8 = vld [vmem:[%s6716_s1 + $0xc0] sm:$0xff]  }
  0x26   : > { %5078 = vmatprep.subr.bf16.mxu0 %v5528_v9  ;;  %5503 = vmatprep.subr.bf16.mxu1 %v5528_v9 }
  0x29   : > { %5079 = vmatpush3.bf16.msra.mxu0 %v5528_v9  ;;  %5511 = vmatpush3.bf16.msra.mxu1 %v5528_v9  ;;  %v5608_v9 = vld [vmem:[%s6716_s1 + $0x100] sm:$0xff]  }
  0x2a   : > { %5112 = vmatprep.subr.bf16.mxu1 %v5533_v10  ;;  %5160 = vmatprep.subr.bf16.mxu0 %v5534_v12 }
  0x2c   : > { %5081 = vmatmul.mubr.bf16.vlgmr.msra.gmra.mxu0 %v5531_v11  ;;  %5097 = vmatmul.mubr.bf16.vlgmr.msra.gmra.mxu1 %v5532_v13  ;;  %v5588_v11 = vld [vmem:[%s5798_s29 + $0x168] sm:$0xff]   ;;  %v5614_v13 = vld [vmem:[%s6716_s1 + $0x1b8] sm:$0xff]  }
  0x2d   : > { %5113 = vmatpush3.bf16.msra.mxu1 %v5533_v10  ;;  %5161 = vmatpush3.bf16.msra.mxu0 %v5534_v12  ;;  %v5587_v10 = vld [vmem:[%s5798_s29 + $0x48] sm:$0xff]   ;;  %v5613_v12 = vld [vmem:[%s6716_s1 + $0x178] sm:$0xff]  }
  0x2e   : > { %5114 = vmatprep.subr.bf16.mxu1 %v5535_v14  ;;  %5162 = vmatprep.subr.bf16.mxu0 %v5536_v15 }
  0x2f   : > { %5084 = vmatprep.mubr.bf16.mxu0 %v5537_v16  ;;  %5100 = vmatprep.mubr.bf16.mxu1 %v5538_v17  ;;  %v5593_v16 = vld [vmem:[%s5798_s29 + $0x58] sm:$0xff]  }
  0x30   : > { %v5594_v17 = vld [vmem:[%s5798_s29 + $0x178] sm:$0xff]  }
  0x31   : > { %5115 = vmatpush3.bf16.msra.mxu1 %v5535_v14  ;;  %5163 = vmatpush3.bf16.msra.mxu0 %v5536_v15  ;;  %v5591_v14 = vld [vmem:[%s5798_s29 + $0x50] sm:$0xff]  }
  0x32   : > { %5116 = vmatprep.subr.bf16.mxu1 %v5541_v18  ;;  %5164 = vmatprep.subr.bf16.mxu0 %v5542_v20  ;;  %v5592_v15 = vld [vmem:[%s5798_s29 + $0x170] sm:$0xff]  }
  0x34   : > { %5085 = vmatmul.mubr.bf16.gmra.mxu0 %v5539_v19  ;;  %5101 = vmatmul.mubr.bf16.gmra.mxu1 %v5540_v21  ;;  %v5598_v19 = vld [vmem:[%s5798_s29 + $0x180] sm:$0xff]   ;;  %v5600_v21 = vld [vmem:[%s5798_s29 + $0x188] sm:$0xff]  }
  0x35   : > { %5117 = vmatpush3.bf16.msra.mxu1 %v5541_v18  ;;  %5165 = vmatpush3.bf16.msra.mxu0 %v5542_v20  ;;  %v5597_v18 = vld [vmem:[%s5798_s29 + $0x60] sm:$0xff]   ;;  %v5599_v20 = vld [vmem:[%s5798_s29 + $0x68] sm:$0xff]  }
  0x36   : > { %5118 = vmatprep.subr.bf16.mxu1 %v5543_v22  ;;  %5166 = vmatprep.subr.bf16.mxu0 %v5544_v23 }
  0x37   : > { %5088 = vmatprep.mubr.bf16.mxu0 %v5545_v24  ;;  %5104 = vmatprep.mubr.bf16.mxu1 %v5546_v25  ;;  %v5605_v24 = vld [vmem:[%s5798_s29 + $0x78] sm:$0xff]  }
  0x38   : > { %v5606_v25 = vld [vmem:[%s5798_s29 + $0x198] sm:$0xff]  }
  0x39   : > { %5119 = vmatpush3.bf16.msra.mxu1 %v5543_v22  ;;  %5167 = vmatpush3.bf16.msra.mxu0 %v5544_v23  ;;  %v5603_v22 = vld [vmem:[%s5798_s29 + $0x70] sm:$0xff]  }
  0x3a   : > { %5120 = vmatprep.subr.bf16.mxu1 %v5549_v26  ;;  %5168 = vmatprep.subr.bf16.mxu0 %v5550_v28  ;;  %v5604_v23 = vld [vmem:[%s5798_s29 + $0x190] sm:$0xff]  }
  0x3c   : > { %5089 = vmatmul.mubr.bf16.gmra.mxu0 %v5547_v27  ;;  %5105 = vmatmul.mubr.bf16.gmra.mxu1 %v5548_v29  ;;  %v5610_v27 = vld [vmem:[%s5798_s29 + $0x98] sm:$0xff]   ;;  %v5612_v29 = vld [vmem:[%s5798_s29 + $0xa0] sm:$0xff]  }
  0x3d   : > { %5121 = vmatpush3.bf16.msra.mxu1 %v5549_v26  ;;  %5169 = vmatpush3.bf16.msra.mxu0 %v5550_v28  ;;  %v5609_v26 = vld [vmem:[%s5798_s29 + $0x8] sm:$0xff]   ;;  %v5611_v28 = vld [vmem:[%s5798_s29 + $0x10] sm:$0xff]  }
  0x3e   : > { %5122 = vmatprep.subr.bf16.mxu1 %v5551_v30  ;;  %5170 = vmatprep.subr.bf16.mxu0 %v5552_v31 }
  0x3f   : > { %5092 = vmatprep.mubr.bf16.mxu0 %v5553_v32  ;;  %5108 = vmatprep.mubr.bf16.mxu1 %v5554_v33  ;;  %v5619_v32 = vld [vmem:[%s6716_s1 + $0x170] sm:$0xff]  }
  0x40   : > { %v5620_v33 = vld [vmem:[%s6716_s1 + $0x1b0] sm:$0xff]  }
  0x41   : > { %5123 = vmatpush3.bf16.msra.mxu1 %v5551_v30  ;;  %5171 = vmatpush3.bf16.msra.mxu0 %v5552_v31  ;;  %v5615_v30 = vld [vmem:[%s5798_s29 + $0x18] sm:$0xff]   ;;  %v5616_v31 = vld [vmem:[%s5798_s29 + $0xa8] sm:$0xff]  }
  0x42   : > { %5124 = vmatprep.subr.bf16.mxu1 %v5557_v34  ;;  %5172 = vmatprep.subr.bf16.mxu0 %v5558_v36 }
  0x44   : > { %5093 = vmatmul.mubr.bf16.gmra.mxu0 %v5555_v35  ;;  %5109 = vmatmul.mubr.bf16.gmra.mxu1 %v5556_v37  ;;  %v5617_v35 = vld [vmem:[%s5798_s29 + $0x20] sm:$0xff]   ;;  %v5618_v37 = vld [vmem:[%s5798_s29 + $0xb0] sm:$0xff]  }
  0x45   : > { %5125 = vmatpush3.bf16.msra.mxu1 %v5557_v34  ;;  %5173 = vmatpush3.bf16.msra.mxu0 %v5558_v36  ;;  %v5625_v34 = vld [vmem:[%s6716_s1 + $0x168] sm:$0xff]  }
  0x46   : > { %5126 = vmatprep.subr.bf16.mxu1 %v5559_v38  ;;  %5174 = vmatprep.subr.bf16.mxu0 %v5560_v39  ;;  %v5626_v36 = vld [vmem:[%s6716_s1 + $0x1a8] sm:$0xff]  }
  0x47   : > { %5128 = vmatprep.mubr.bf16.mxu1 %v5561_v40  ;;  %5176 = vmatprep.mubr.bf16.mxu0 %v5562_v41  ;;  %v5631_v40 = vld [vmem:[%s6716_s1 + $0x160] sm:$0xff]  }
  0x48   : > { %v5632_v41 = vld [vmem:[%s6716_s1 + $0x1a0] sm:$0xff]  }
  0x49   : > { %5127 = vmatpush3.bf16.msra.mxu1 %v5559_v38  ;;  %5175 = vmatpush3.bf16.msra.mxu0 %v5560_v39  ;;  %v5621_v38 = vld [vmem:[%s5798_s29 + $0x28] sm:$0xff]   ;;  %v5622_v39 = vld [vmem:[%s5798_s29 + $0xb8] sm:$0xff]  }
  0x4a   : > { %5208 = vmatprep.subr.bf16.mxu1 %v5565_v42  ;;  %5256 = vmatprep.subr.bf16.mxu0 %v5566_v44 }
  0x4c   : > { %5129 = vmatmul.mubr.bf16.vlgmr.msra.gmra.mxu1 %v5563_v43  ;;  %5177 = vmatmul.mubr.bf16.vlgmr.msra.gmra.mxu0 %v5564_v45  ;;  %v5624_v43 = vld [vmem:[%s5798_s29 + $0xc0] sm:$0xff]   ;;  %v5638_v45 = vld [vmem:[%s6716_s1 + $0x198] sm:$0xff]  }
  0x4d   : > { %5209 = vmatpush3.bf16.msra.mxu1 %v5565_v42  ;;  %5257 = vmatpush3.bf16.msra.mxu0 %v5566_v44  ;;  %v5623_v42 = vld [vmem:[%s5798_s29 + $0x30] sm:$0xff]   ;;  %v5637_v44 = vld [vmem:[%s6716_s1 + $0x158] sm:$0xff]  }
  0x4e   : > { %5132 = vmatprep.mubr.bf16.mxu1 %v5567_v46  ;;  %5180 = vmatprep.mubr.bf16.mxu0 %v5568_v47  ;;  %v5627_v46 = vld [vmem:[%s5798_s29 + $0x38] sm:$0xff]   ;;  %v5628_v47 = vld [vmem:[%s5798_s29 + $0xc8] sm:$0xff]  }
  0x4f   : > { %5210 = vmatprep.subr.bf16.mxu1 %v5571_v48  ;;  %5258 = vmatprep.subr.bf16.mxu0 %v5572_v49 }
  0x51   : > { %5211 = vmatpush3.bf16.msra.mxu1 %v5571_v48  ;;  %5259 = vmatpush3.bf16.msra.mxu0 %v5572_v49  ;;  %v5643_v48 = vld [vmem:[%s6716_s1 + $0x150] sm:$0xff]  }
  0x52   : > { %5212 = vmatprep.subr.bf16.mxu1 %v5577_v50  ;;  %5260 = vmatprep.subr.bf16.mxu0 %v5578_v52  ;;  %v5644_v49 = vld [vmem:[%s6716_s1 + $0x190] sm:$0xff]  }
  0x54   : > { %5133 = vmatmul.mubr.bf16.gmra.mxu1 %v5569_v51  ;;  %5181 = vmatmul.mubr.bf16.gmra.mxu0 %v5570_v53  ;;  %v5630_v51 = vld [vmem:[%s5798_s29 + $0xd0] sm:$0xff]   ;;  %v5650_v53 = vld [vmem:[%s6716_s1 + $0x188] sm:$0xff]  }
  0x55   : > { %5136 = vmatprep.mubr.bf16.mxu1 %v5573_v54  ;;  %5184 = vmatprep.mubr.bf16.mxu0 %v5574_v55  ;;  %v5633_v54 = vld [vmem:[%s5798_s29 + $0x48] sm:$0xff]   ;;  %v5634_v55 = vld [vmem:[%s5798_s29 + $0xd8] sm:$0xff]  }
  0x56   : > { %5213 = vmatpush3.bf16.msra.mxu1 %v5577_v50  ;;  %5261 = vmatpush3.bf16.msra.mxu0 %v5578_v52  ;;  %v5629_v50 = vld [vmem:[%s5798_s29 + $0x40] sm:$0xff]   ;;  %v5649_v52 = vld [vmem:[%s6716_s1 + $0x148] sm:$0xff]  }
  0x57   : > { %5214 = vmatprep.subr.bf16.mxu1 %v5583_v56  ;;  %5262 = vmatprep.subr.bf16.mxu0 %v5584_v57 }
  0x5a   : > { %5215 = vmatpush3.bf16.msra.mxu1 %v5583_v56  ;;  %5263 = vmatpush3.bf16.msra.mxu0 %v5584_v57  ;;  %v5655_v56 = vld [vmem:[%s6716_s1 + $0x140] sm:$0xff]  }
  0x5b   : > { %5216 = vmatprep.subr.bf16.mxu1 %v5589_v60  ;;  %5264 = vmatprep.subr.bf16.mxu0 %v5590_v61  ;;  %v5656_v57 = vld [vmem:[%s6716_s1 + $0x180] sm:$0xff]  }
  0x5c   : > { %5137 = vmatmul.mubr.bf16.gmra.mxu1 %v5575_v58  ;;  %5185 = vmatmul.mubr.bf16.gmra.mxu0 %v5576_v59  ;;  %v5635_v58 = vld [vmem:[%s5798_s29 + $0x50] sm:$0xff]   ;;  %v5636_v59 = vld [vmem:[%s5798_s29 + $0xe0] sm:$0xff]  }
  0x5d   : > { %5140 = vmatprep.mubr.bf16.mxu1 %v5579_v62  ;;  %5188 = vmatprep.mubr.bf16.mxu0 %v5580_v63  ;;  %v5639_v62 = vld [vmem:[%s5798_s29 + $0x58] sm:$0xff]   ;;  %v5640_v63 = vld [vmem:[%s5798_s29 + $0xe8] sm:$0xff]  }
  0x5e   : > { %5217 = vmatpush3.bf16.msra.mxu1 %v5589_v60  ;;  %5265 = vmatpush3.bf16.msra.mxu0 %v5590_v61  ;;  %v5661_v60 = vld [vmem:[%s6716_s1 + $0x1f8] sm:$0xff]  }
  0x5f   : > { %5218 = vmatprep.subr.bf16.mxu1 %v5595_v0  ;;  %5266 = vmatprep.subr.bf16.mxu0 %v5596_v1  ;;  %v5662_v61 = vld [vmem:[%s6716_s1 + $0x238] sm:$0xff]  }
  0x62   : > { %5219 = vmatpush3.bf16.msra.mxu1 %v5595_v0  ;;  %5267 = vmatpush3.bf16.msra.mxu0 %v5596_v1  ;;  %v5641_v0 = vld [vmem:[%s5798_s29 + $0x60] sm:$0xff]   ;;  %v5642_v1 = vld [vmem:[%s5798_s29 + $0xf0] sm:$0xff]  }
  0x63   : > { %5220 = vmatprep.subr.bf16.mxu1 %v5601_v4  ;;  %5268 = vmatprep.subr.bf16.mxu0 %v5602_v5 }
  0x64   : > { %5141 = vmatmul.mubr.bf16.gmra.mxu1 %v5581_v2  ;;  %5189 = vmatmul.mubr.bf16.gmra.mxu0 %v5582_v3  ;;  %v5645_v2 = vld [vmem:[%s5798_s29 + $0x68] sm:$0xff]   ;;  %v5646_v3 = vld [vmem:[%s5798_s29 + $0xf8] sm:$0xff]  }
  0x65   : > { %5144 = vmatprep.mubr.bf16.mxu1 %v5585_v6  ;;  %5192 = vmatprep.mubr.bf16.mxu0 %v5586_v7  ;;  %v5651_v6 = vld [vmem:[%s5798_s29 + $0x78] sm:$0xff]   ;;  %v5652_v7 = vld [vmem:[%s5798_s29 + $0x108] sm:$0xff]  }
  0x66   : > { %5221 = vmatpush3.bf16.msra.mxu1 %v5601_v4  ;;  %5269 = vmatpush3.bf16.msra.mxu0 %v5602_v5  ;;  %v5647_v4 = vld [vmem:[%s5798_s29 + $0x70] sm:$0xff]   ;;  %v5648_v5 = vld [vmem:[%s5798_s29 + $0x100] sm:$0xff]  }
  0x67   : > { %5222 = vmatprep.subr.bf16.mxu1 %v5607_v8  ;;  %5270 = vmatprep.subr.bf16.mxu0 %v5608_v9 }
  0x6a   : > { %5223 = vmatpush3.bf16.msra.mxu1 %v5607_v8  ;;  %5271 = vmatpush3.bf16.msra.mxu0 %v5608_v9  ;;  %v5653_v8 = vld [vmem:[%s5798_s29 + $0x80] sm:$0xff]   ;;  %v5654_v9 = vld [vmem:[%s5798_s29 + $0x110] sm:$0xff]  }
  0x6b   : > { %5304 = vmatprep.subr.bf16.mxu1 %v5613_v12  ;;  %5352 = vmatprep.subr.bf16.mxu0 %v5614_v13 }
  0x6c   : > { %5145 = vmatmul.mubr.bf16.gmra.mxu1 %v5587_v10  ;;  %5193 = vmatmul.mubr.bf16.gmra.mxu0 %v5588_v11  ;;  %v5657_v10 = vld [vmem:[%s5798_s29 + $0x128] sm:$0xff]   ;;  %v5658_v11 = vld [vmem:[%s5798_s29 + $0x10] sm:$0xff]  }
  0x6d   : > { %5148 = vmatprep.mubr.bf16.mxu1 %v5591_v14  ;;  %5196 = vmatprep.mubr.bf16.mxu0 %v5592_v15  ;;  %v5663_v14 = vld [vmem:[%s5798_s29 + $0x138] sm:$0xff]   ;;  %v5664_v15 = vld [vmem:[%s5798_s29 + $0x20] sm:$0xff]  }
  0x74   : > { %5149 = vmatmul.mubr.bf16.gmra.mxu1 %v5593_v16  ;;  %5197 = vmatmul.mubr.bf16.gmra.mxu0 %v5594_v17  ;;  %v5667_v16 = vld [vmem:[%s6716_s1 + $0x1f0] sm:$0xff]  }
  0x75   : > { %5152 = vmatprep.mubr.bf16.mxu1 %v5597_v18  ;;  %5200 = vmatprep.mubr.bf16.mxu0 %v5598_v19  ;;  %v5668_v17 = vld [vmem:[%s6716_s1 + $0x230] sm:$0xff]   ;;  %v5673_v18 = vld [vmem:[%s6716_s1 + $0x1e8] sm:$0xff]   ;;  %v5665_v19 = vld [vmem:[%s5798_s29 + $0x140] sm:$0xff]  }
  0x7c   : > { %5153 = vmatmul.mubr.bf16.gmra.mxu1 %v5599_v20  ;;  %5201 = vmatmul.mubr.bf16.gmra.mxu0 %v5600_v21  ;;  %v5674_v20 = vld [vmem:[%s6716_s1 + $0x228] sm:$0xff]  }
  0x7d   : > { %5156 = vmatprep.mubr.bf16.mxu1 %v5603_v22  ;;  %5204 = vmatprep.mubr.bf16.mxu0 %v5604_v23  ;;  %v5666_v21 = vld [vmem:[%s5798_s29 + $0x28] sm:$0xff]   ;;  %v5670_v23 = vld [vmem:[%s5798_s29 + $0x30] sm:$0xff]  }
  0x7e   : > { %v5669_v22 = vld [vmem:[%s5798_s29 + $0x148] sm:$0xff]  }
  0x84   : > { %5157 = vmatmul.mubr.bf16.gmra.mxu1 %v5605_v24  ;;  %5205 = vmatmul.mubr.bf16.gmra.mxu0 %v5606_v25  ;;  %v5679_v24 = vld [vmem:[%s6716_s1 + $0x1e0] sm:$0xff]  }
  0x85   : > { %5224 = vmatprep.mubr.bf16.mxu1 %v5609_v26  ;;  %5272 = vmatprep.mubr.bf16.mxu0 %v5610_v27  ;;  %v5680_v25 = vld [vmem:[%s6716_s1 + $0x220] sm:$0xff]   ;;  %v5671_v26 = vld [vmem:[%s5798_s29 + $0x150] sm:$0xff]   ;;  %v5672_v27 = vld [vmem:[%s5798_s29 + $0x38] sm:$0xff]  }
  0x8c   : > { %5225 = vmatmul.mubr.bf16.vlgmr.msra.gmra.mxu1 %v5611_v28  ;;  %5273 = vmatmul.mubr.bf16.vlgmr.msra.gmra.mxu0 %v5612_v29  ;;  %v5685_v28 = vld [vmem:[%s6716_s1 + $0x1d8] sm:$0xff]  }
  0x8d   : > { %5305 = vmatpush3.bf16.msra.mxu1 %v5613_v12  ;;  %5353 = vmatpush3.bf16.msra.mxu0 %v5614_v13  ;;  %v5659_v12 = vld [vmem:[%s5798_s29 + $0x130] sm:$0xff]   ;;  %v5660_v13 = vld [vmem:[%s5798_s29 + $0x18] sm:$0xff]  }
  0x8e   : > { %5228 = vmatprep.mubr.bf16.mxu1 %v5615_v30  ;;  %5276 = vmatprep.mubr.bf16.mxu0 %v5616_v31  ;;  %v5686_v29 = vld [vmem:[%s6716_s1 + $0x218] sm:$0xff]   ;;  %v5676_v31 = vld [vmem:[%s5798_s29 + $0x40] sm:$0xff]  }
  0x8f   : > { %5306 = vmatprep.subr.bf16.mxu1 %v5619_v32  ;;  %5354 = vmatprep.subr.bf16.mxu0 %v5620_v33  ;;  %v5675_v30 = vld [vmem:[%s5798_s29 + $0x158] sm:$0xff]  }
  0x91   : > { %5307 = vmatpush3.bf16.msra.mxu1 %v5619_v32  ;;  %5355 = vmatpush3.bf16.msra.mxu0 %v5620_v33  ;;  %v5691_v32 = vld [vmem:[%s6716_s1 + $0x1d0] sm:$0xff]  }
  0x92   : > { %5308 = vmatprep.subr.bf16.mxu1 %v5625_v34  ;;  %5356 = vmatprep.subr.bf16.mxu0 %v5626_v36  ;;  %v5692_v33 = vld [vmem:[%s6716_s1 + $0x210] sm:$0xff]  }
  0x94   : > { %5229 = vmatmul.mubr.bf16.gmra.mxu1 %v5617_v35  ;;  %5277 = vmatmul.mubr.bf16.gmra.mxu0 %v5618_v37  ;;  %v5678_v35 = vld [vmem:[%s5798_s29 + $0x48] sm:$0xff]  }
  0x95   : > { %5232 = vmatprep.mubr.bf16.mxu1 %v5621_v38  ;;  %5280 = vmatprep.mubr.bf16.mxu0 %v5622_v39  ;;  %v5698_v37 = vld [vmem:[%s6716_s1 + $0x208] sm:$0xff]   ;;  %v5682_v39 = vld [vmem:[%s5798_s29 + $0x50] sm:$0xff]  }
  0x96   : > { %5309 = vmatpush3.bf16.msra.mxu1 %v5625_v34  ;;  %5357 = vmatpush3.bf16.msra.mxu0 %v5626_v36  ;;  %v5677_v34 = vld [vmem:[%s5798_s29 + $0x160] sm:$0xff]   ;;  %v5697_v36 = vld [vmem:[%s6716_s1 + $0x1c8] sm:$0xff]  }
  0x97   : > { %5310 = vmatprep.subr.bf16.mxu1 %v5631_v40  ;;  %5358 = vmatprep.subr.bf16.mxu0 %v5632_v41  ;;  %v5681_v38 = vld [vmem:[%s5798_s29 + $0x168] sm:$0xff]  }
  0x9a   : > { %5311 = vmatpush3.bf16.msra.mxu1 %v5631_v40  ;;  %5359 = vmatpush3.bf16.msra.mxu0 %v5632_v41  ;;  %v5703_v40 = vld [vmem:[%s6716_s1 + $0x1c0] sm:$0xff]  }
  0x9b   : > { %5312 = vmatprep.subr.bf16.mxu1 %v5637_v44  ;;  %5360 = vmatprep.subr.bf16.mxu0 %v5638_v45  ;;  %v5704_v41 = vld [vmem:[%s6716_s1 + $0x200] sm:$0xff]  }
  0x9c   : > { %5233 = vmatmul.mubr.bf16.gmra.mxu1 %v5623_v42  ;;  %5281 = vmatmul.mubr.bf16.gmra.mxu0 %v5624_v43  ;;  %v5683_v42 = vld [vmem:[%s5798_s29 + $0x170] sm:$0xff]   ;;  %v5684_v43 = vld [vmem:[%s5798_s29 + $0x58] sm:$0xff]  }
  0x9d   : > { %5236 = vmatprep.mubr.bf16.mxu1 %v5627_v46  ;;  %5284 = vmatprep.mubr.bf16.mxu0 %v5628_v47 }
  0x9e   : > { %5313 = vmatpush3.bf16.msra.mxu1 %v5637_v44  ;;  %5361 = vmatpush3.bf16.msra.mxu0 %v5638_v45  ;;  %v5687_v44 = vld [vmem:[%s5798_s29 + $0x178] sm:$0xff]   ;;  %v5688_v45 = vld [vmem:[%s5798_s29 + $0x60] sm:$0xff]  }
  0x9f   : > { %5314 = vmatprep.subr.bf16.mxu1 %v5643_v48  ;;  %5362 = vmatprep.subr.bf16.mxu0 %v5644_v49 }
  0xa2   : > { %5315 = vmatpush3.bf16.msra.mxu1 %v5643_v48  ;;  %5363 = vmatpush3.bf16.msra.mxu0 %v5644_v49 }
  0xa3   : > { %5316 = vmatprep.subr.bf16.mxu1 %v5649_v52  ;;  %5364 = vmatprep.subr.bf16.mxu0 %v5650_v53 }
  0xa4   : > { %5237 = vmatmul.mubr.bf16.gmra.mxu1 %v5629_v50  ;;  %5285 = vmatmul.mubr.bf16.gmra.mxu0 %v5630_v51 }
  0xa5   : > { %5240 = vmatprep.mubr.bf16.mxu1 %v5633_v54  ;;  %5288 = vmatprep.mubr.bf16.mxu0 %v5634_v55  ;;  %v5693_v54 = vld [vmem:[%s5798_s29 + $0x188] sm:$0xff]   ;;  %v5694_v55 = vld [vmem:[%s5798_s29 + $0x70] sm:$0xff]  }
  0xa6   : > { %5317 = vmatpush3.bf16.msra.mxu1 %v5649_v52  ;;  %5365 = vmatpush3.bf16.msra.mxu0 %v5650_v53  ;;  %v5689_v52 = vld [vmem:[%s5798_s29 + $0x180] sm:$0xff]   ;;  %v5690_v53 = vld [vmem:[%s5798_s29 + $0x68] sm:$0xff]  }
  0xa7   : > { %5318 = vmatprep.subr.bf16.mxu1 %v5655_v56  ;;  %5366 = vmatprep.subr.bf16.mxu0 %v5656_v57 }
  0xaa   : > { %5319 = vmatpush3.bf16.msra.mxu1 %v5655_v56  ;;  %5367 = vmatpush3.bf16.msra.mxu0 %v5656_v57 }
  0xab   : > { %5400 = vmatprep.subr.bf16.mxu1 %v5661_v60  ;;  %5448 = vmatprep.subr.bf16.mxu0 %v5662_v61 }
  0xac   : > { %5241 = vmatmul.mubr.bf16.gmra.mxu1 %v5635_v58  ;;  %5289 = vmatmul.mubr.bf16.gmra.mxu0 %v5636_v59 }
  0xad   : > { %5244 = vmatprep.mubr.bf16.mxu1 %v5639_v62  ;;  %5292 = vmatprep.mubr.bf16.mxu0 %v5640_v63 }
  0xb4   : > { %5245 = vmatmul.mubr.bf16.gmra.mxu1 %v5641_v0  ;;  %5293 = vmatmul.mubr.bf16.gmra.mxu0 %v5642_v1  ;;  %v5695_v0 = vld [vmem:[%s5798_s29 + $0x190] sm:$0xff]   ;;  %v5696_v1 = vld [vmem:[%s5798_s29 + $0x78] sm:$0xff]  }
  0xb5   : > { %5248 = vmatprep.mubr.bf16.mxu1 %v5645_v2  ;;  %5296 = vmatprep.mubr.bf16.mxu0 %v5646_v3  ;;  %v5699_v2 = vld [vmem:[%s5798_s29 + $0x198] sm:$0xff]   ;;  %v5700_v3 = vld [vmem:[%s5798_s29 + $0x80] sm:$0xff]  }
  0xbc   : > { %5249 = vmatmul.mubr.bf16.gmra.mxu1 %v5647_v4  ;;  %5297 = vmatmul.mubr.bf16.gmra.mxu0 %v5648_v5 }
  0xbd   : > { %5252 = vmatprep.mubr.bf16.mxu1 %v5651_v6  ;;  %5300 = vmatprep.mubr.bf16.mxu0 %v5652_v7 }
  0xc4   : > { %5253 = vmatmul.mubr.bf16.gmra.mxu1 %v5653_v8  ;;  %5301 = vmatmul.mubr.bf16.gmra.mxu0 %v5654_v9 }
  0xc5   : > { %5320 = vmatprep.mubr.bf16.mxu1 %v5657_v10  ;;  %5368 = vmatprep.mubr.bf16.mxu0 %v5658_v11 }
  0xcc   : > { %5321 = vmatmul.mubr.bf16.vlgmr.msra.gmra.mxu1 %v5659_v12  ;;  %5369 = vmatmul.mubr.bf16.vlgmr.msra.gmra.mxu0 %v5660_v13  ;;  %v5701_v12 = vld [vmem:[%s5798_s29 + $0x1a0] sm:$0xff]   ;;  %v5702_v13 = vld [vmem:[%s5798_s29 + $0x88] sm:$0xff]  }
  0xcd   : > { %5401 = vmatpush3.bf16.msra.mxu1 %v5661_v60  ;;  %5449 = vmatpush3.bf16.msra.mxu0 %v5662_v61 }
  0xce   : > { %5324 = vmatprep.mubr.bf16.mxu1 %v5663_v14  ;;  %5372 = vmatprep.mubr.bf16.mxu0 %v5664_v15  ;;  %v5705_v14 = vld [vmem:[%s5798_s29 + $0xa0] sm:$0xff]   ;;  %v5706_v15 = vld [vmem:[%s5798_s29 + $0x130] sm:$0xff]  }
  0xcf   : > { %5402 = vmatprep.subr.bf16.mxu1 %v5667_v16  ;;  %5450 = vmatprep.subr.bf16.mxu0 %v5668_v17 }
  0xd1   : > { %5403 = vmatpush3.bf16.msra.mxu1 %v5667_v16  ;;  %5451 = vmatpush3.bf16.msra.mxu0 %v5668_v17 }
  0xd2   : > { %5404 = vmatprep.subr.bf16.mxu1 %v5673_v18  ;;  %5452 = vmatprep.subr.bf16.mxu0 %v5674_v20 }
  0xd4   : > { %5325 = vmatmul.mubr.bf16.gmra.mxu1 %v5665_v19  ;;  %5373 = vmatmul.mubr.bf16.gmra.mxu0 %v5666_v21 }
  0xd5   : > { %5328 = vmatprep.mubr.bf16.mxu1 %v5669_v22  ;;  %5376 = vmatprep.mubr.bf16.mxu0 %v5670_v23 }
  0xd6   : > { %5405 = vmatpush3.bf16.msra.mxu1 %v5673_v18  ;;  %5453 = vmatpush3.bf16.msra.mxu0 %v5674_v20 }
  0xd7   : > { %5406 = vmatprep.subr.bf16.mxu1 %v5679_v24  ;;  %5454 = vmatprep.subr.bf16.mxu0 %v5680_v25 }
  0xda   : > { %5407 = vmatpush3.bf16.msra.mxu1 %v5679_v24  ;;  %5455 = vmatpush3.bf16.msra.mxu0 %v5680_v25  ;;  %v5707_v24 = vld [vmem:[%s5798_s29 + $0xa8] sm:$0xff]   ;;  %v5708_v25 = vld [vmem:[%s5798_s29 + $0x138] sm:$0xff]  }
  0xdb   : > { %5408 = vmatprep.subr.bf16.mxu1 %v5685_v28  ;;  %5456 = vmatprep.subr.bf16.mxu0 %v5686_v29 }
  0xdc   : > { %5329 = vmatmul.mubr.bf16.gmra.mxu1 %v5671_v26  ;;  %5377 = vmatmul.mubr.bf16.gmra.mxu0 %v5672_v27  ;;  %v5709_v26 = vld [vmem:[%s5798_s29 + $0xb0] sm:$0xff]   ;;  %v5710_v27 = vld [vmem:[%s5798_s29 + $0x140] sm:$0xff]  }
  0xdd   : > { %5332 = vmatprep.mubr.bf16.mxu1 %v5675_v30  ;;  %5380 = vmatprep.mubr.bf16.mxu0 %v5676_v31 }
  0xde   : > { %5409 = vmatpush3.bf16.msra.mxu1 %v5685_v28  ;;  %5457 = vmatpush3.bf16.msra.mxu0 %v5686_v29 }
  0xdf   : > { %5410 = vmatprep.subr.bf16.mxu1 %v5691_v32  ;;  %5458 = vmatprep.subr.bf16.mxu0 %v5692_v33 }
  0xe2   : > { %5411 = vmatpush3.bf16.msra.mxu1 %v5691_v32  ;;  %5459 = vmatpush3.bf16.msra.mxu0 %v5692_v33 }
  0xe3   : > { %5412 = vmatprep.subr.bf16.mxu1 %v5697_v36  ;;  %5460 = vmatprep.subr.bf16.mxu0 %v5698_v37 }
  0xe4   : > { %5333 = vmatmul.mubr.bf16.gmra.mxu1 %v5677_v34  ;;  %5381 = vmatmul.mubr.bf16.gmra.mxu0 %v5678_v35 }
  0xe5   : > { %5336 = vmatprep.mubr.bf16.mxu1 %v5681_v38  ;;  %5384 = vmatprep.mubr.bf16.mxu0 %v5682_v39  ;;  %v5711_v39 = vld [vmem:[%s5798_s29 + $0xb8] sm:$0xff]  }
  0xe6   : > { %5413 = vmatpush3.bf16.msra.mxu1 %v5697_v36  ;;  %5461 = vmatpush3.bf16.msra.mxu0 %v5698_v37 }
  0xe7   : > { %5414 = vmatprep.subr.bf16.mxu1 %v5703_v40  ;;  %5462 = vmatprep.subr.bf16.mxu0 %v5704_v41 }
  0xea   : > { %5415 = vmatpush3.bf16.msra.mxu1 %v5703_v40  ;;  %5463 = vmatpush3.bf16.msra.mxu0 %v5704_v41  ;;  %v5712_v40 = vld [vmem:[%s5798_s29 + $0x148] sm:$0xff]  }
  0xec   : > { %v6109_v46 = vpop.f32.mrf.mxu0  ;;  %v6111_v47 = vpop.f32.mrf.mxu1  ;;  %5337 = vmatmul.mubr.bf16.gmra.mxu1 %v5683_v42  ;;  %5385 = vmatmul.mubr.bf16.gmra.mxu0 %v5684_v43  ;;  %v5713_v43 = vld [vmem:[%s5798_s29 + $0xc0] sm:$0xff]  }
  0xed   : > { %5340 = vmatprep.mubr.bf16.mxu1 %v5687_v44  ;;  %5388 = vmatprep.mubr.bf16.mxu0 %v5688_v45  ;;  %v5714_v44 = vld [vmem:[%s5798_s29 + $0x150] sm:$0xff]  }
  0xee   : > { %v6113_v48 = vpop.f32.mrf.mxu0  ;;  %v6115_v49 = vpop.f32.mrf.mxu1 }
  0xf0   : > { %v6117_v50 = vpop.f32.mrf.mxu0  ;;  %v6119_v51 = vpop.f32.mrf.mxu1 }
  0xf2   : > { %v6125_v56 = vpop.f32.mrf.mxu0  ;;  %v6127_v57 = vpop.f32.mrf.mxu1 }
  0xf4   : > { %v6129_v58 = vpop.f32.mrf.mxu0  ;;  %v6131_v59 = vpop.f32.mrf.mxu1  ;;  %5341 = vmatmul.mubr.bf16.gmra.mxu1 %v5689_v52  ;;  %5389 = vmatmul.mubr.bf16.gmra.mxu0 %v5690_v53 }
  0xf5   : > { %5344 = vmatprep.mubr.bf16.mxu1 %v5693_v54  ;;  %5392 = vmatprep.mubr.bf16.mxu0 %v5694_v55 }
  0xf6   : > { %v6133_v60 = vpop.f32.mrf.mxu0  ;;  %v6135_v61 = vpop.f32.mrf.mxu1 }
  0xf8   : > { %v6137_v62 = vpop.f32.mrf.mxu0  ;;  %v6139_v63 = vpop.f32.mrf.mxu1 }
  0xfa   : > { %v6145_v4 = vpop.f32.mrf.mxu0  ;;  %v6147_v5 = vpop.f32.mrf.mxu1 }
  0xfc   : > { %v6149_v6 = vpop.f32.mrf.mxu0  ;;  %v6151_v7 = vpop.f32.mrf.mxu1  ;;  %5345 = vmatmul.mubr.bf16.gmra.mxu1 %v5695_v0  ;;  %5393 = vmatmul.mubr.bf16.gmra.mxu0 %v5696_v1 }
  0xfd   : > { %5348 = vmatprep.mubr.bf16.mxu1 %v5699_v2  ;;  %5396 = vmatprep.mubr.bf16.mxu0 %v5700_v3 }
  0xfe   : > { %v6153_v8 = vpop.f32.mrf.mxu0  ;;  %v6155_v9 = vpop.f32.mrf.mxu1 }
 0x100   : > { %v6157_v10 = vpop.f32.mrf.mxu0  ;;  %v6159_v11 = vpop.f32.mrf.mxu1 }
 0x102   : > { %v6165_v16 = vpop.f32.mrf.mxu0  ;;  %v6167_v17 = vpop.f32.mrf.mxu1 }
 0x104   : > { %v6169_v18 = vpop.f32.mrf.mxu0  ;;  %v6171_v19 = vpop.f32.mrf.mxu1  ;;  %5349 = vmatmul.mubr.bf16.gmra.mxu1 %v5701_v12  ;;  %5397 = vmatmul.mubr.bf16.gmra.mxu0 %v5702_v13  ;;  %v5715_v13 = vld [vmem:[%s5798_s29 + $0xc8] sm:$0xff]  }
 0x105   : > { %5416 = vmatprep.mubr.bf16.mxu1 %v5705_v14  ;;  %5464 = vmatprep.mubr.bf16.mxu0 %v5706_v15  ;;  %v5716_v14 = vld [vmem:[%s5798_s29 + $0x158] sm:$0xff]  }
 0x106   : > { %v6173_v20 = vpop.f32.mrf.mxu0  ;;  %v6175_v21 = vpop.f32.mrf.mxu1 }
 0x108   : > { %v6177_v22 = vpop.f32.mrf.mxu0  ;;  %v6179_v23 = vpop.f32.mrf.mxu1 }
 0x10a   : > { %v6185_v28 = vpop.f32.mrf.mxu0  ;;  %v6187_v29 = vpop.f32.mrf.mxu1 }
 0x10c   : > { %v5130_v30 = vpop.f32.mrf.mxu1  ;;  %v5178_v31 = vpop.f32.mrf.mxu0  ;;  %5417 = vmatmul.mubr.bf16.vlgmr.msra.gmra.mxu1 %v5707_v24  ;;  %5465 = vmatmul.mubr.bf16.vlgmr.msra.gmra.mxu0 %v5708_v25  ;;  %v5717_v25 = vld [vmem:[%s5798_s29 + $0xd0] sm:$0xff]  }
 0x10d   : > { %v836_v32 = vadd.f32 %v5130_v30, %v6109_v46  ;;  %5420 = vmatprep.mubr.bf16.mxu1 %v5709_v26  ;;  %5468 = vmatprep.mubr.bf16.mxu0 %v5710_v27  ;;  %v5718_v26 = vld [vmem:[%s5798_s29 + $0x160] sm:$0xff]  }
 0x10e   : > { %v827_v33 = vpop.f32.mrf.mxu1  ;;  %v1182_v34 = vpop.f32.mrf.mxu0 }
 0x10f   : > { %v6190_v35 = vadd.f32 %v5178_v31, %v836_v32  ;;  %v828_v36 = vadd.f32 %v827_v33, %v6113_v48 }
 0x110   : > { %v5131_v37 = vpop.f32.mrf.mxu1  ;;  %v5179_v38 = vpop.f32.mrf.mxu0 }
 0x111   : > { %v6195_v41 = vadd.f32 %v1182_v34, %v828_v36  ;;  %v839_v42 = vadd.f32 %v5131_v37, %v6117_v50 }
 0x112   : > { %v830_v45 = vpop.f32.mrf.mxu1  ;;  %v1185_v46 = vpop.f32.mrf.mxu0 }
 0x113   : > { %v6200_v52 = vadd.f32 %v5179_v38, %v839_v42  ;;  %v831_v53 = vadd.f32 %v830_v45, %v6125_v56  ;;  %v5720_v42 = vld [vmem:[%s5798_s29 + $0x168] sm:$0xff]   ;;  %v5721_v45 = vld [vmem:[%s5798_s29 + $0xe0] sm:$0xff]  }
 0x114   : > { %v5134_v54 = vpop.f32.mrf.mxu1  ;;  %v5182_v48 = vpop.f32.mrf.mxu0  ;;  %5421 = vmatmul.mubr.bf16.gmra.mxu1 %v5711_v39  ;;  %5469 = vmatmul.mubr.bf16.gmra.mxu0 %v5712_v40  ;;  %v5719_v40 = vld [vmem:[%s5798_s29 + $0xd8] sm:$0xff]  }
 0x115   : > { %v6203_v55 = vadd.f32 %v1185_v46, %v831_v53  ;;  %v852_v50 = vadd.f32 %v5134_v54, %v6129_v58  ;;  %5424 = vmatprep.mubr.bf16.mxu1 %v5713_v43  ;;  %5472 = vmatprep.mubr.bf16.mxu0 %v5714_v44  ;;  %v5722_v46 = vld [vmem:[%s5798_s29 + $0x170] sm:$0xff]  }
 0x116   : > { %v843_v0 = vpop.f32.mrf.mxu1  ;;  %v1198_v1 = vpop.f32.mrf.mxu0 }
 0x117   : > { %v6206_v2 = vadd.f32 %v5182_v48, %v852_v50  ;;  %v844_v3 = vadd.f32 %v843_v0, %v6133_v60 }
 0x118   : > { %v5135_v56 = vpop.f32.mrf.mxu1  ;;  %v5183_v12 = vpop.f32.mrf.mxu0 }
 0x119   : > { %v6211_v15 = vadd.f32 %v1198_v1, %v844_v3  ;;  %v855_v24 = vadd.f32 %v5135_v56, %v6137_v62 }
 0x11a   : > { %v846_v27 = vpop.f32.mrf.mxu1  ;;  %v1201_v58 = vpop.f32.mrf.mxu0 }
 0x11b   : > { %v6216_v30 = vadd.f32 %v5183_v12, %v855_v24  ;;  %v847_v31 = vadd.f32 %v846_v27, %v6145_v4  ;;  %v5724_v24 = vld [vmem:[%s5798_s29 + $0x178] sm:$0xff]   ;;  %v5725_v27 = vld [vmem:[%s5798_s29 + $0xf0] sm:$0xff]  }
 0x11c   : > { %v5138_v32 = vpop.f32.mrf.mxu1  ;;  %v5186_v60 = vpop.f32.mrf.mxu0  ;;  %5425 = vmatmul.mubr.bf16.gmra.mxu1 %v5715_v13  ;;  %5473 = vmatmul.mubr.bf16.gmra.mxu0 %v5716_v14  ;;  %v5723_v14 = vld [vmem:[%s5798_s29 + $0xe8] sm:$0xff]  }
 0x11d   : > { %v6219_v33 = vadd.f32 %v1201_v58, %v847_v31  ;;  %v868_v62 = vadd.f32 %v5138_v32, %v6149_v6  ;;  %5428 = vmatprep.mubr.bf16.mxu1 %v5717_v25  ;;  %5476 = vmatprep.mubr.bf16.mxu0 %v5718_v26  ;;  %v5726_v58 = vld [vmem:[%s5798_s29 + $0x180] sm:$0xff]  }
 0x11e   : > { %v859_v34 = vpop.f32.mrf.mxu1  ;;  %v1214_v36 = vpop.f32.mrf.mxu0 }
 0x11f   : > { %v6222_v37 = vadd.f32 %v5186_v60, %v868_v62  ;;  %v860_v38 = vadd.f32 %v859_v34, %v6153_v8 }
 0x120   : > { %v5139_v4 = vpop.f32.mrf.mxu1  ;;  %v5187_v39 = vpop.f32.mrf.mxu0 }
 0x121   : > { %v6227_v43 = vadd.f32 %v1214_v36, %v860_v38  ;;  %v871_v44 = vadd.f32 %v5139_v4, %v6157_v10 }
 0x122   : > { %v862_v53 = vpop.f32.mrf.mxu1  ;;  %v1217_v6 = vpop.f32.mrf.mxu0 }
 0x123   : > { %v6232_v54 = vadd.f32 %v5187_v39, %v871_v44  ;;  %v863_v48 = vadd.f32 %v862_v53, %v6165_v16  ;;  %v5728_v44 = vld [vmem:[%s5798_s29 + $0x188] sm:$0xff]   ;;  %v5729_v53 = vld [vmem:[%s5798_s29 + $0x100] sm:$0xff]  }
 0x124   : > { %v5142_v50 = vpop.f32.mrf.mxu1  ;;  %v5190_v8 = vpop.f32.mrf.mxu0  ;;  %5429 = vmatmul.mubr.bf16.gmra.mxu1 %v5719_v40  ;;  %5477 = vmatmul.mubr.bf16.gmra.mxu0 %v5720_v42  ;;  %v5727_v42 = vld [vmem:[%s5798_s29 + $0xf8] sm:$0xff]  }
 0x125   : > { %v6235_v0 = vadd.f32 %v1217_v6, %v863_v48  ;;  %v884_v10 = vadd.f32 %v5142_v50, %v6169_v18  ;;  %5432 = vmatprep.mubr.bf16.mxu1 %v5721_v45  ;;  %5480 = vmatprep.mubr.bf16.mxu0 %v5722_v46  ;;  %v5730_v6 = vld [vmem:[%s5798_s29 + $0x190] sm:$0xff]  }
 0x126   : > { %v875_v1 = vpop.f32.mrf.mxu1  ;;  %v1230_v3 = vpop.f32.mrf.mxu0 }
 0x127   : > { %v6238_v56 = vadd.f32 %v5190_v8, %v884_v10  ;;  %v876_v12 = vadd.f32 %v875_v1, %v6173_v20 }
 0x128   : > { %v5143_v16 = vpop.f32.mrf.mxu1  ;;  %v5191_v13 = vpop.f32.mrf.mxu0 }
 0x129   : > { %v6243_v25 = vadd.f32 %v1230_v3, %v876_v12  ;;  %v887_v26 = vadd.f32 %v5143_v16, %v6177_v22 }
 0x12a   : > { %v878_v31 = vpop.f32.mrf.mxu1  ;;  %v1233_v18 = vpop.f32.mrf.mxu0 }
 0x12b   : > { %v6248_v32 = vadd.f32 %v5191_v13, %v887_v26  ;;  %v879_v60 = vadd.f32 %v878_v31, %v6185_v28  ;;  %v5732_v26 = vld [vmem:[%s5798_s29 + $0x198] sm:$0xff]   ;;  %v5733_v31 = vld [vmem:[%s5798_s29 + $0x110] sm:$0xff]  }
 0x12c   : > { %v5146_v62 = vpop.f32.mrf.mxu1  ;;  %v5194_v20 = vpop.f32.mrf.mxu0  ;;  %5433 = vmatmul.mubr.bf16.gmra.mxu1 %v5723_v14  ;;  %5481 = vmatmul.mubr.bf16.gmra.mxu0 %v5724_v24  ;;  %v5731_v24 = vld [vmem:[%s5798_s29 + $0x108] sm:$0xff]  }
 0x12d   : > { %v6251_v34 = vadd.f32 %v1233_v18, %v879_v60  ;;  %v900_v22 = vadd.f32 %v5146_v62, %v6111_v47  ;;  %5436 = vmatprep.mubr.bf16.mxu1 %v5725_v27  ;;  %5484 = vmatprep.mubr.bf16.mxu0 %v5726_v58  ;;  %v5734_v18 = vld [vmem:[%s5798_s29 + $0x1a0] sm:$0xff]  }
 0x12e   : > { %v891_v36 = vpop.f32.mrf.mxu1  ;;  %v1246_v38 = vpop.f32.mrf.mxu0 }
 0x12f   : > { %v6254_v4 = vadd.f32 %v5194_v20, %v900_v22  ;;  %v892_v39 = vadd.f32 %v891_v36, %v6115_v49 }
 0x130   : > { %v5147_v28 = vpop.f32.mrf.mxu1  ;;  %v5195_v40 = vpop.f32.mrf.mxu0 }
 0x131   : > { %v6259_v45 = vadd.f32 %v1246_v38, %v892_v39  ;;  %v903_v46 = vadd.f32 %v5147_v28, %v6119_v51 }
 0x132   : > { %v894_v48 = vpop.f32.mrf.mxu1  ;;  %v1249_v47 = vpop.f32.mrf.mxu0 }
 0x133   : > { %v6264_v50 = vadd.f32 %v5195_v40, %v903_v46  ;;  %v895_v8 = vadd.f32 %v894_v48, %v6127_v57  ;;  %v5736_v46 = vld [vmem:[%s5798_s29 + $0x1a8] sm:$0xff]  }
 0x134   : > { %v5150_v10 = vpop.f32.mrf.mxu1  ;;  %v5198_v49 = vpop.f32.mrf.mxu0  ;;  %5437 = vmatmul.mubr.bf16.gmra.mxu1 %v5727_v42  ;;  %5485 = vmatmul.mubr.bf16.gmra.mxu0 %v5728_v44 }
 0x135   : > { %v6267_v1 = vadd.f32 %v1249_v47, %v895_v8  ;;  %v916_v51 = vadd.f32 %v5150_v10, %v6131_v59  ;;  %5440 = vmatprep.mubr.bf16.mxu1 %v5729_v53  ;;  %5488 = vmatprep.mubr.bf16.mxu0 %v5730_v6 }
 0x136   : > { %v907_v3 = vpop.f32.mrf.mxu1  ;;  %v1262_v12 = vpop.f32.mrf.mxu0 }
 0x137   : > { %v6270_v16 = vadd.f32 %v5198_v49, %v916_v51  ;;  %v908_v13 = vadd.f32 %v907_v3, %v6135_v61 }
 0x138   : > { %v5151_v57 = vpop.f32.mrf.mxu1  ;;  %v5199_v14 = vpop.f32.mrf.mxu0 }
 0x139   : > { %v6275_v27 = vadd.f32 %v1262_v12, %v908_v13  ;;  %v919_v58 = vadd.f32 %v5151_v57, %v6139_v63 }
 0x13a   : > { %v910_v60 = vpop.f32.mrf.mxu1  ;;  %v1265_v59 = vpop.f32.mrf.mxu0 }
 0x13b   : > { %v6280_v62 = vadd.f32 %v5199_v14, %v919_v58  ;;  %v911_v20 = vadd.f32 %v910_v60, %v6147_v5  ;;  %v5735_v5 = vld [vmem:[%s5798_s29 + $0x118] sm:$0xff]   ;;  %s4640_s29 = sshll.u32 %s6758_s19, 7 }
 0x13c   : > { %v5154_v22 = vpop.f32.mrf.mxu1  ;;  %v5202_v61 = vpop.f32.mrf.mxu0  ;;  %5441 = vmatmul.mubr.bf16.gmra.mxu1 %v5731_v24  ;;  %5489 = vmatmul.mubr.bf16.gmra.mxu0 %v5732_v26  ;;  %s6515_s13 = scalar_lea.vmem %s6719_s4, %s4640_s29  ;;  %s6570_s22 = scalar_lea.vmem %s6720_s5, %s4640_s29 }
 0x13d   : > { %v6283_v36 = vadd.f32 %v1265_v59, %v911_v20  ;;  %v932_v38 = vadd.f32 %v5154_v22, %v6151_v7  ;;  %5444 = vmatprep.mubr.bf16.mxu1 %v5733_v31  ;;  %5492 = vmatprep.mubr.bf16.mxu0 %v5734_v18 }
 0x13e   : > { %v923_v63 = vpop.f32.mrf.mxu1  ;;  %v1278_v39 = vpop.f32.mrf.mxu0 }
 0x13f   : > { %v6286_v28 = vadd.f32 %v5202_v61, %v932_v38  ;;  %v924_v40 = vadd.f32 %v923_v63, %v6155_v9 }
 0x140   : > { %v5155_v42 = vpop.f32.mrf.mxu1  ;;  %v5203_v44 = vpop.f32.mrf.mxu0 }
 0x141   : > { %v6291_v53 = vadd.f32 %v1278_v39, %v924_v40  ;;  %v935_v6 = vadd.f32 %v5155_v42, %v6159_v11 }
 0x142   : > { %v926_v48 = vpop.f32.mrf.mxu1  ;;  %v1281_v47 = vpop.f32.mrf.mxu0 }
 0x143   : > { %v6294_v8 = vadd.f32 %v5203_v44, %v935_v6  ;;  %v927_v7 = vadd.f32 %v926_v48, %v6167_v17 }
 0x144   : > { %v5158_v10 = vpop.f32.mrf.mxu1  ;;  %v5206_v49 = vpop.f32.mrf.mxu0  ;;  %5445 = vmatmul.mubr.bf16.gmra.mxu1 %v5735_v5  ;;  %5493 = vmatmul.mubr.bf16.gmra.mxu0 %v5736_v46 }
 0x145   : > { %v6297_v51 = vadd.f32 %v1281_v47, %v927_v7  ;;  %v948_v9 = vadd.f32 %v5158_v10, %v6171_v19 }
 0x146   : > { %v939_v3 = vpop.f32.mrf.mxu1  ;;  %v1294_v12 = vpop.f32.mrf.mxu0 }
 0x147   : > { %v6300_v13 = vadd.f32 %v5206_v49, %v948_v9  ;;  %v940_v11 = vadd.f32 %v939_v3, %v6175_v21 }
 0x148   : > { %v5159_v57 = vpop.f32.mrf.mxu1  ;;  %v5207_v14 = vpop.f32.mrf.mxu0 }
 0x149   : > { %v6303_v24 = vadd.f32 %v1294_v12, %v940_v11  ;;  %v951_v17 = vadd.f32 %v5159_v57, %v6179_v23 }
 0x14a   : > { %v942_v26 = vpop.f32.mrf.mxu1  ;;  %v1297_v58 = vpop.f32.mrf.mxu0 }
 0x14b   : > { %v6306_v31 = vadd.f32 %v5207_v14, %v951_v17  ;;  %v943_v18 = vadd.f32 %v942_v26, %v6187_v29 }
 0x14c   : > { %v5226_v60 = vpop.f32.mrf.mxu1  ;;  %v5274_v19 = vpop.f32.mrf.mxu0 }
 0x14d   : > { %v6309_v59 = vadd.f32 %v1297_v58, %v943_v18  ;;  %v1697_v20 = vadd.f32 %v5226_v60, %v6190_v35 }
 0x14e   : > { %v1568_v22 = vpop.f32.mrf.mxu1  ;;  %v1954_v21 = vpop.f32.mrf.mxu0 }
 0x14f   : > { %v6312_v61 = vadd.f32 %v5274_v19, %v1697_v20  ;;  %v1695_v38 = vadd.f32 %v1568_v22, %v6195_v41 }
 0x150   : > { %v5227_v63 = vpop.f32.mrf.mxu1  ;;  %v5275_v23 = vpop.f32.mrf.mxu0 }
 0x151   : > { %v6315_v39 = vadd.f32 %v1954_v21, %v1695_v38  ;;  %v1698_v40 = vadd.f32 %v5227_v63, %v6200_v52 }
 0x152   : > { %v1571_v42 = vpop.f32.mrf.mxu1  ;;  %v1957_v29 = vpop.f32.mrf.mxu0 }
 0x153   : > { %v6318_v44 = vadd.f32 %v5275_v23, %v1698_v40  ;;  %v1696_v5 = vadd.f32 %v1571_v42, %v6203_v55 }
 0x154   : > { %v5230_v46 = vpop.f32.mrf.mxu1  ;;  %v5278_v35 = vpop.f32.mrf.mxu0 }
 0x155   : > { %v6321_v6 = vadd.f32 %v1957_v29, %v1696_v5  ;;  %v1701_v48 = vadd.f32 %v5230_v46, %v6206_v2 }
 0x156   : > { %v1584_v47 = vpop.f32.mrf.mxu1  ;;  %v1970_v41 = vpop.f32.mrf.mxu0 }
 0x157   : > { %v6324_v7 = vadd.f32 %v5278_v35, %v1701_v48  ;;  %v1699_v10 = vadd.f32 %v1584_v47, %v6211_v15 }
 0x158   : > { %v5231_v49 = vpop.f32.mrf.mxu1  ;;  %v5279_v52 = vpop.f32.mrf.mxu0 }
 0x159   : > { %v6327_v9 = vadd.f32 %v1970_v41, %v1699_v10  ;;  %v1702_v3 = vadd.f32 %v5231_v49, %v6216_v30 }
 0x15a   : > { %v1587_v12 = vpop.f32.mrf.mxu1  ;;  %v1973_v55 = vpop.f32.mrf.mxu0 }
 0x15b   : > { %v6330_v11 = vadd.f32 %v5279_v52, %v1702_v3  ;;  %v1700_v57 = vadd.f32 %v1587_v12, %v6219_v33 }
 0x15c   : > { %v5234_v14 = vpop.f32.mrf.mxu1  ;;  %v5282_v2 = vpop.f32.mrf.mxu0 }
 0x15d   : > { %v6333_v17 = vadd.f32 %v1973_v55, %v1700_v57  ;;  %v1705_v26 = vadd.f32 %v5234_v14, %v6222_v37 }
 0x15e   : > { %v1600_v58 = vpop.f32.mrf.mxu1  ;;  %v1986_v15 = vpop.f32.mrf.mxu0 }
 0x15f   : > { %v6336_v18 = vadd.f32 %v5282_v2, %v1705_v26  ;;  %v1703_v60 = vadd.f32 %v1600_v58, %v6227_v43 }
 0x160   : > { %v5235_v19 = vpop.f32.mrf.mxu1  ;;  %v5283_v30 = vpop.f32.mrf.mxu0 }
 0x161   : > { %v6339_v20 = vadd.f32 %v1986_v15, %v1703_v60  ;;  %v1706_v22 = vadd.f32 %v5235_v19, %v6232_v54 }
 0x162   : > { %v1603_v21 = vpop.f32.mrf.mxu1  ;;  %v1989_v33 = vpop.f32.mrf.mxu0 }
 0x163   : > { %v6342_v38 = vadd.f32 %v5283_v30, %v1706_v22  ;;  %v1704_v63 = vadd.f32 %v1603_v21, %v6235_v0 }
 0x164   : > { %v5238_v23 = vpop.f32.mrf.mxu1  ;;  %v5286_v37 = vpop.f32.mrf.mxu0 }
 0x165   : > { %v6345_v40 = vadd.f32 %v1989_v33, %v1704_v63  ;;  %v1709_v42 = vadd.f32 %v5238_v23, %v6238_v56 }
 0x166   : > { %v1616_v29 = vpop.f32.mrf.mxu1  ;;  %v2002_v43 = vpop.f32.mrf.mxu0 }
 0x167   : > { %v6348_v5 = vadd.f32 %v5286_v37, %v1709_v42  ;;  %v1707_v46 = vadd.f32 %v1616_v29, %v6243_v25 }
 0x168   : > { %v5239_v35 = vpop.f32.mrf.mxu1  ;;  %v5287_v54 = vpop.f32.mrf.mxu0 }
 0x169   : > { %v6351_v48 = vadd.f32 %v2002_v43, %v1707_v46  ;;  %v1710_v47 = vadd.f32 %v5239_v35, %v6248_v32 }
 0x16a   : > { %v1619_v41 = vpop.f32.mrf.mxu1  ;;  %v2005_v0 = vpop.f32.mrf.mxu0 }
 0x16b   : > { %v6354_v10 = vadd.f32 %v5287_v54, %v1710_v47  ;;  %v1708_v49 = vadd.f32 %v1619_v41, %v6251_v34 }
 0x16c   : > { %v5242_v52 = vpop.f32.mrf.mxu1  ;;  %v5290_v56 = vpop.f32.mrf.mxu0 }
 0x16d   : > { %v6357_v3 = vadd.f32 %v2005_v0, %v1708_v49  ;;  %v1713_v12 = vadd.f32 %v5242_v52, %v6254_v4 }
 0x16e   : > { %v1632_v55 = vpop.f32.mrf.mxu1  ;;  %v2018_v25 = vpop.f32.mrf.mxu0 }
 0x16f   : > { %v6360_v57 = vadd.f32 %v5290_v56, %v1713_v12  ;;  %v1711_v14 = vadd.f32 %v1632_v55, %v6259_v45 }
 0x170   : > { %v5243_v2 = vpop.f32.mrf.mxu1  ;;  %v5291_v32 = vpop.f32.mrf.mxu0 }
 0x171   : > { %v6363_v26 = vadd.f32 %v2018_v25, %v1711_v14  ;;  %v1714_v58 = vadd.f32 %v5243_v2, %v6264_v50 }
 0x172   : > { %v1635_v15 = vpop.f32.mrf.mxu1  ;;  %v2021_v34 = vpop.f32.mrf.mxu0 }
 0x173   : > { %v6366_v60 = vadd.f32 %v5291_v32, %v1714_v58  ;;  %v1712_v19 = vadd.f32 %v1635_v15, %v6267_v1 }
 0x174   : > { %v5246_v30 = vpop.f32.mrf.mxu1  ;;  %v5294_v4 = vpop.f32.mrf.mxu0 }
 0x175   : > { %v6369_v22 = vadd.f32 %v2021_v34, %v1712_v19  ;;  %v1717_v21 = vadd.f32 %v5246_v30, %v6270_v16 }
 0x176   : > { %v1648_v33 = vpop.f32.mrf.mxu1  ;;  %v2034_v45 = vpop.f32.mrf.mxu0 }
 0x177   : > { %v6372_v63 = vadd.f32 %v5294_v4, %v1717_v21  ;;  %v1715_v23 = vadd.f32 %v1648_v33, %v6275_v27 }
 0x178   : > { %v5247_v37 = vpop.f32.mrf.mxu1  ;;  %v5295_v50 = vpop.f32.mrf.mxu0 }
 0x179   : > { %v6375_v42 = vadd.f32 %v2034_v45, %v1715_v23  ;;  %v1718_v29 = vadd.f32 %v5247_v37, %v6280_v62 }
 0x17a   : > { %v1651_v43 = vpop.f32.mrf.mxu1  ;;  %v2037_v1 = vpop.f32.mrf.mxu0 }
 0x17b   : > { %v6378_v46 = vadd.f32 %v5295_v50, %v1718_v29  ;;  %v1716_v35 = vadd.f32 %v1651_v43, %v6283_v36 }
 0x17c   : > { %v5250_v54 = vpop.f32.mrf.mxu1  ;;  %v5298_v16 = vpop.f32.mrf.mxu0 }
 0x17d   : > { %v6381_v47 = vadd.f32 %v2037_v1, %v1716_v35  ;;  %v1721_v41 = vadd.f32 %v5250_v54, %v6286_v28 }
 0x17e   : > { %v1664_v0 = vpop.f32.mrf.mxu1  ;;  %v2050_v27 = vpop.f32.mrf.mxu0 }
 0x17f   : > { %v6384_v49 = vadd.f32 %v5298_v16, %v1721_v41  ;;  %v1719_v52 = vadd.f32 %v1664_v0, %v6291_v53 }
 0x180   : > { %v5251_v56 = vpop.f32.mrf.mxu1  ;;  %v5299_v62 = vpop.f32.mrf.mxu0 }
 0x181   : > { %v6387_v12 = vadd.f32 %v2050_v27, %v1719_v52  ;;  %v1722_v55 = vadd.f32 %v5251_v56, %v6294_v8 }
 0x182   : > { %v1667_v25 = vpop.f32.mrf.mxu1  ;;  %v2053_v36 = vpop.f32.mrf.mxu0 }
 0x183   : > { %v6390_v14 = vadd.f32 %v5299_v62, %v1722_v55  ;;  %v1720_v2 = vadd.f32 %v1667_v25, %v6297_v51 }
 0x184   : > { %v5254_v32 = vpop.f32.mrf.mxu1  ;;  %v5302_v28 = vpop.f32.mrf.mxu0 }
 0x185   : > { %6721 = vst [vmem:[#allocation2_spill] sm:$0xff] %v6390_v14  ;;  %v6393_v58 = vadd.f32 %v2053_v36, %v1720_v2  ;;  %v1725_v15 = vadd.f32 %v5254_v32, %v6300_v13 }
 0x186   : > { %v1680_v34 = vpop.f32.mrf.mxu1  ;;  %v2066_v53 = vpop.f32.mrf.mxu0 }
 0x187   : > { %6722 = vst [vmem:[#allocation3_spill] sm:$0xff] %v6393_v58  ;;  %v6396_v19 = vadd.f32 %v5302_v28, %v1725_v15  ;;  %v1723_v30 = vadd.f32 %v1680_v34, %v6303_v24 }
 0x188   : > { %v5255_v4 = vpop.f32.mrf.mxu1  ;;  %v5303_v8 = vpop.f32.mrf.mxu0 }
 0x189   : > { %v6399_v21 = vadd.f32 %v2066_v53, %v1723_v30  ;;  %v1726_v33 = vadd.f32 %v5255_v4, %v6306_v31 }
 0x18a   : > { %v1683_v45 = vpop.f32.mrf.mxu1  ;;  %v2069_v51 = vpop.f32.mrf.mxu0 }
 0x18b   : > { %v6402_v23 = vadd.f32 %v5303_v8, %v1726_v33  ;;  %v1724_v37 = vadd.f32 %v1683_v45, %v6309_v59 }
 0x18c   : > { %v5322_v50 = vpop.f32.mrf.mxu1  ;;  %v5370_v13 = vpop.f32.mrf.mxu0 }
 0x18d   : > { %6723 = vst [vmem:[#allocation4_spill] sm:$0xff] %v6402_v23  ;;  %v6405_v29 = vadd.f32 %v2069_v51, %v1724_v37  ;;  %v2469_v43 = vadd.f32 %v5322_v50, %v6312_v61 }
 0x18e   : > { %v2340_v1 = vpop.f32.mrf.mxu1  ;;  %v2726_v24 = vpop.f32.mrf.mxu0 }
 0x18f   : > { %6724 = vst [vmem:[#allocation5_spill] sm:$0xff] %v6405_v29  ;;  %v6408_v35 = vadd.f32 %v5370_v13, %v2469_v43  ;;  %v2467_v54 = vadd.f32 %v2340_v1, %v6315_v39 }
 0x190   : > { %v6411_v16 = vpop.f32.mrf.mxu1  ;;  %v6413_v31 = vpop.f32.mrf.mxu0 }
 0x191   : > { %v6415_v41 = vadd.f32 %v2726_v24, %v2467_v54 }
 0x192   : > { %v6417_v0 = vpop.f32.mrf.mxu1  ;;  %v6419_v59 = vpop.f32.mrf.mxu0 }
 0x194   : > { %v5326_v27 = vpop.f32.mrf.mxu1  ;;  %v5374_v52 = vpop.f32.mrf.mxu0 }
 0x195   : > { %v2473_v61 = vadd.f32 %v5326_v27, %v6324_v7 }
 0x196   : > { %v2356_v56 = vpop.f32.mrf.mxu1  ;;  %v2742_v62 = vpop.f32.mrf.mxu0 }
 0x197   : > { %v6422_v55 = vadd.f32 %v5374_v52, %v2473_v61  ;;  %v2471_v39 = vadd.f32 %v2356_v56, %v6327_v9 }
 0x198   : > { %v6425_v25 = vpop.f32.mrf.mxu1  ;;  %v6427_v36 = vpop.f32.mrf.mxu0 }
 0x199   : > { %v6429_v2 = vadd.f32 %v2742_v62, %v2471_v39 }
 0x19a   : > { %v6431_v32 = vpop.f32.mrf.mxu1  ;;  %v6433_v28 = vpop.f32.mrf.mxu0 }
 0x19c   : > { %v5330_v15 = vpop.f32.mrf.mxu1  ;;  %v5378_v34 = vpop.f32.mrf.mxu0 }
 0x19d   : > { %v2477_v7 = vadd.f32 %v5330_v15, %v6336_v18 }
 0x19e   : > { %v2372_v53 = vpop.f32.mrf.mxu1  ;;  %v2758_v30 = vpop.f32.mrf.mxu0 }
 0x19f   : > { %v6436_v4 = vadd.f32 %v5378_v34, %v2477_v7  ;;  %v2475_v9 = vadd.f32 %v2372_v53, %v6339_v20 }
 0x1a0   : > { %v6439_v8 = vpop.f32.mrf.mxu1  ;;  %v6441_v33 = vpop.f32.mrf.mxu0 }
 0x1a1   : > { %v6443_v45 = vadd.f32 %v2758_v30, %v2475_v9 }
 0x1a2   : > { %v6445_v51 = vpop.f32.mrf.mxu1  ;;  %v6447_v37 = vpop.f32.mrf.mxu0 }
 0x1a4   : > { %v5334_v50 = vpop.f32.mrf.mxu1  ;;  %v5382_v13 = vpop.f32.mrf.mxu0 }
 0x1a5   : > { %v2481_v18 = vadd.f32 %v5334_v50, %v6348_v5 }
 0x1a6   : > { %v2388_v43 = vpop.f32.mrf.mxu1  ;;  %v2774_v1 = vpop.f32.mrf.mxu0 }
 0x1a7   : > { %v6450_v24 = vadd.f32 %v5382_v13, %v2481_v18  ;;  %v2479_v20 = vadd.f32 %v2388_v43, %v6351_v48 }
 0x1a8   : > { %v6453_v54 = vpop.f32.mrf.mxu1  ;;  %v6455_v27 = vpop.f32.mrf.mxu0 }
 0x1a9   : > { %v6457_v52 = vadd.f32 %v2774_v1, %v2479_v20 }
 0x1aa   : > { %v6459_v61 = vpop.f32.mrf.mxu1  ;;  %v6461_v56 = vpop.f32.mrf.mxu0 }
 0x1ac   : > { %v5338_v62 = vpop.f32.mrf.mxu1  ;;  %v5386_v39 = vpop.f32.mrf.mxu0 }
 0x1ad   : > { %v2485_v5 = vadd.f32 %v5338_v62, %v6360_v57 }
 0x1ae   : > { %v2404_v15 = vpop.f32.mrf.mxu1  ;;  %v2790_v34 = vpop.f32.mrf.mxu0 }
 0x1af   : > { %v6464_v7 = vadd.f32 %v5386_v39, %v2485_v5  ;;  %v2483_v48 = vadd.f32 %v2404_v15, %v6363_v26 }
 0x1b0   : > { %v6467_v53 = vpop.f32.mrf.mxu1  ;;  %v6469_v30 = vpop.f32.mrf.mxu0 }
 0x1b1   : > { %v6471_v9 = vadd.f32 %v2790_v34, %v2483_v48 }
 0x1b2   : > { %v6473_v50 = vpop.f32.mrf.mxu1  ;;  %v6475_v13 = vpop.f32.mrf.mxu0 }
 0x1b4   : > { %v5342_v18 = vpop.f32.mrf.mxu1  ;;  %v5390_v43 = vpop.f32.mrf.mxu0 }
 0x1b5   : > { %v2489_v57 = vadd.f32 %v5342_v18, %v6372_v63 }
 0x1b6   : > { %v2420_v1 = vpop.f32.mrf.mxu1  ;;  %v2806_v20 = vpop.f32.mrf.mxu0 }
 0x1b7   : > { %v6478_v62 = vadd.f32 %v5390_v43, %v2489_v57  ;;  %v2487_v26 = vadd.f32 %v2420_v1, %v6375_v42 }
 0x1b8   : > { %v6481_v39 = vpop.f32.mrf.mxu1  ;;  %v6483_v5 = vpop.f32.mrf.mxu0 }
 0x1b9   : > { %v6485_v15 = vadd.f32 %v2806_v20, %v2487_v26 }
 0x1ba   : > { %v6487_v34 = vpop.f32.mrf.mxu1  ;;  %v6489_v48 = vpop.f32.mrf.mxu0 }
 0x1bb   : > { %6725 = vst [vmem:[#allocation6_spill] sm:$0xff] %v6485_v15  ;;  %6726 = vst [vmem:[#allocation7_spill] sm:$0xff] %v6489_v48 }
 0x1bc   : > { %v5346_v29 = vpop.f32.mrf.mxu1  ;;  %v5394_v23 = vpop.f32.mrf.mxu0 }
 0x1bd   : > { %v2493_v63 = vadd.f32 %v5346_v29, %v6384_v49 }
 0x1be   : > { %v2436_v18 = vpop.f32.mrf.mxu1  ;;  %v2822_v43 = vpop.f32.mrf.mxu0 }
 0x1bf   : > { %v6492_v57 = vadd.f32 %v5394_v23, %v2493_v63  ;;  %v2491_v42 = vadd.f32 %v2436_v18, %v6387_v12 }
 0x1c0   : > { %v6495_v1 = vpop.f32.mrf.mxu1  ;;  %v6497_v20 = vpop.f32.mrf.mxu0 }
 0x1c1   : > { %6727 = vst [vmem:[#allocation8_spill] sm:$0xff] %v6492_v57  ;;  %6728 = vst [vmem:[#allocation9_spill] sm:$0xff] %v6495_v1  ;;  %v6499_v26 = vadd.f32 %v2822_v43, %v2491_v42  ;;  %v4819_v1 = vld [vmem:[%s6515_s13 + $0x10] sm:$0xff]  }
 0x1c2   : > { %6729 = vst [vmem:[#allocation10_spill] sm:$0xff] %v6497_v20  ;;  %v6501_v58 = vpop.f32.mrf.mxu1  ;;  %v6503_v14 = vpop.f32.mrf.mxu0 }
 0x1c3   : > { %6730 = vst [vmem:[#allocation11_spill] sm:$0xff] %v6499_v26  ;;  %6731 = vst [vmem:[#allocation12_spill] sm:$0xff] %v6501_v58 }
 0x1c4   : > { %6732 = vst [vmem:[#allocation13_spill] sm:$0xff] %v6503_v14  ;;  %v5350_v48 = vpop.f32.mrf.mxu1  ;;  %v5398_v15 = vpop.f32.mrf.mxu0  ;;  %v2468_v14 = vadd.f32 %v6417_v0, %v6321_v6  ;;  %v6540_v6 = vld [vmem:[%s6717_s2] ss:$0 sm:$0xff] }
 0x1c5   : > { %v2497_v49 = vadd.f32 %v5350_v48, %v6396_v19  ;;  %v4818_v48 = vld [vmem:[%s6515_s13 + $0x8] sm:$0xff]  }
 0x1c6   : > { %v2452_v29 = vpop.f32.mrf.mxu1  ;;  %v2838_v23 = vpop.f32.mrf.mxu0  ;;  %v4680_v26 = vunpack.c.l.bf16 %v4818_v48  ;;  %v2854_v20 = vadd.f32 %v6419_v59, %v2468_v14 }
 0x1c7   : > { %v6507_v63 = vadd.f32 %v5398_v15, %v2497_v49  ;;  %v2495_v12 = vadd.f32 %v2452_v29, %v6399_v21  ;;  %v2470_v21 = vadd.f32 %v6411_v16, %v6318_v44  ;;  %v4681_v16 = vunpack.c.h.bf16 %v4818_v48 }
 0x1c8   : > { %v6517_v18 = vpop.f32.mrf.mxu1  ;;  %v6519_v43 = vpop.f32.mrf.mxu0 }
 0x1c9   : > { %6733 = vst [vmem:[#allocation14_spill] sm:$0xff] %v6507_v63  ;;  %6734 = vst [vmem:[#allocation15_spill] sm:$0xff] %v6517_v18  ;;  %v6521_v42 = vadd.f32 %v2838_v23, %v2495_v12  ;;  %v4675_v63 = vld [vmem:[%s6515_s13] sm:$0xff]   ;;  %v2856_v12 = vadd.f32 %v6413_v31, %v2470_v21  ;;  %v4820_v21 = vld [vmem:[%s6515_s13 + $0x18] sm:$0xff]  }
 0x1ca   : > { %6735 = vst [vmem:[#allocation16_spill] sm:$0xff] %v6519_v43  ;;  %v6523_v19 = vpop.f32.mrf.mxu1  ;;  %v6525_v15 = vpop.f32.mrf.mxu0 }
 0x1cb   : > { %6736 = vst [vmem:[#allocation17_spill] sm:$0xff] %v6521_v42  ;;  %6737 = vst [vmem:[#allocation18_spill] sm:$0xff] %v6523_v19  ;;  %v4676_v19 = vunpack.c.l.bf16 %v4675_v63 }
 0x1cc   : > { %6738 = vst [vmem:[#allocation19_spill] sm:$0xff] %v6525_v15  ;;  %v5418_v49 = vpop.f32.mrf.mxu1  ;;  %v5466_v29 = vpop.f32.mrf.mxu0 }
 0x1cd   : > { %v3241_v18 = vadd.f32 %v5418_v49, %v6408_v35 }
 0x1ce   : > { %v3112_v43 = vpop.f32.mrf.mxu1  ;;  %v3498_v23 = vpop.f32.mrf.mxu0 }
 0x1cf   : > { %v3627_v42 = vadd.f32 %v5466_v29, %v3241_v18  ;;  %v3239_v15 = vadd.f32 %v3112_v43, %v6415_v41  ;;  %v4677_v18 = vunpack.c.h.bf16 %v4675_v63  ;;  %v2474_v41 = vadd.f32 %v6425_v25, %v6330_v11 }
 0x1d0   : > { %v5419_v58 = vpop.f32.mrf.mxu1  ;;  %v5467_v44 = vpop.f32.mrf.mxu0  ;;  %v4688_v63 = vunpack.c.l.bf16 %v4820_v21 }
 0x1d1   : > { %v3723_v57 = vadd.f32 %v4680_v26, %v3627_v42  ;;  %v3625_v35 = vadd.f32 %v3498_v23, %v3239_v15  ;;  %v3242_v0 = vadd.f32 %v5419_v58, %v2856_v12  ;;  %v6550_v42 = vld [vmem:[%s6718_s3] ss:$0 sm:$0xff]  ;;  %v2472_v23 = vadd.f32 %v6431_v32, %v6333_v17 }
 0x1d2   : > { %v3115_v49 = vpop.f32.mrf.mxu1  ;;  %v3501_v31 = vpop.f32.mrf.mxu0  ;;  %v2860_v12 = vadd.f32 %v6427_v36, %v2474_v41 }
 0x1d3   : > { %v3721_v43 = vadd.f32 %v4676_v19, %v3625_v35  ;;  %v3628_v29 = vadd.f32 %v5467_v44, %v3242_v0  ;;  %v3240_v48 = vadd.f32 %v3115_v49, %v2854_v20  ;;  %v3762_v14 = vmul.f32 %v6540_v6, %v3723_v57 }
 0x1d4   : > { %v5422_v59 = vpop.f32.mrf.mxu1  ;;  %v5470_v26 = vpop.f32.mrf.mxu0  ;;  %v4684_v57 = vunpack.c.l.bf16 %v4819_v1  ;;  %v2858_v36 = vadd.f32 %v6433_v28, %v2472_v23  ;;  %v4685_v23 = vunpack.c.h.bf16 %v4819_v1 }
 0x1d5   : > { %v3724_v58 = vadd.f32 %v4681_v16, %v3628_v29  ;;  %v3626_v15 = vadd.f32 %v3501_v31, %v3240_v48  ;;  %v3760_v11 = vmul.f32 %v6540_v6, %v3721_v43  ;;  %v3245_v25 = vadd.f32 %v5422_v59, %v6422_v55  ;;  %v4822_v59 = vld [vmem:[%s6515_s13 + $0x28] sm:$0xff]  }
 0x1d6   : > { %v3128_v20 = vpop.f32.mrf.mxu1  ;;  %v3514_v19 = vpop.f32.mrf.mxu0  ;;  %v3801_v0 = vadd.f32 %v6550_v42, %v3762_v14  ;;  %v4689_v31 = vunpack.c.h.bf16 %v4820_v21 }
 0x1d7   : > { %v3763_v44 = vmul.f32 %v6540_v6, %v3724_v58  ;;  %v3722_v35 = vadd.f32 %v4677_v18, %v3626_v15  ;;  %v3243_v16 = vadd.f32 %v3128_v20, %v6429_v2  ;;  %v3631_v49 = vadd.f32 %v5470_v26, %v3245_v25 }
 0x1d8   : > { %v5423_v17 = vpop.f32.mrf.mxu1  ;;  %v5471_v32 = vpop.f32.mrf.mxu0  ;;  %v2478_v18 = vadd.f32 %v6439_v8, %v6342_v38  ;;  %v3799_v2 = vadd.f32 %v6550_v42, %v3760_v11 }
 0x1d9   : > { %v3802_v55 = vadd.f32 %v6550_v42, %v3763_v44  ;;  %v3761_v43 = vmul.f32 %v6540_v6, %v3722_v35  ;;  %v3629_v29 = vadd.f32 %v3514_v19, %v3243_v16  ;;  %v3246_v48 = vadd.f32 %v5423_v17, %v2860_v12  ;;  %v4821_v44 = vld [vmem:[%s6515_s13 + $0x20] sm:$0xff]  }
 0x1da   : > { %v3727_v21 = vadd.f32 %v4688_v63, %v3631_v49  ;;  %v3131_v41 = vpop.f32.mrf.mxu1  ;;  %v3517_v14 = vpop.f32.mrf.mxu0  ;;  %v4696_v12 = vunpack.c.l.bf16 %v4822_v59  ;;  %v2864_v35 = vadd.f32 %v6441_v33, %v2478_v18 }
 0x1db   : > { %v4746_v26 = vpack.c.bf16 %v3802_v55, %v3801_v0  ;;  %v3800_v28 = vadd.f32 %v6550_v42, %v3761_v43  ;;  %v3725_v58 = vadd.f32 %v4684_v57, %v3629_v29  ;;  %v3632_v15 = vadd.f32 %v5471_v32, %v3246_v48 }
 0x1dc   : > { %v3766_v38 = vmul.f32 %v6540_v6, %v3727_v21  ;;  %v3244_v8 = vadd.f32 %v3131_v41, %v2858_v36  ;;  %v5426_v25 = vpop.f32.mrf.mxu1  ;;  %v5474_v20 = vpop.f32.mrf.mxu0  ;;  %v2476_v57 = vadd.f32 %v6445_v51, %v6345_v40  ;;  %v4692_v43 = vunpack.c.l.bf16 %v4821_v44 }
 0x1dd   : > { %4833 = vst [vmem:[%s6570_s22 + $0x8] sm:$0xff] %v4746_v26   ;;  %v4741_v19 = vpack.c.bf16 %v3800_v28, %v3799_v2  ;;  %v3728_v11 = vadd.f32 %v4689_v31, %v3632_v15  ;;  %v3249_v63 = vadd.f32 %v5426_v25, %v6436_v4  ;;  %v3764_v1 = vmul.f32 %v6540_v6, %v3725_v58  ;;  %v4824_v26 = vld [vmem:[%s6515_s13 + $0x38] sm:$0xff]  }
 0x1de   : > { %v3630_v16 = vadd.f32 %v3517_v14, %v3244_v8  ;;  %v3144_v0 = vpop.f32.mrf.mxu1  ;;  %v3530_v49 = vpop.f32.mrf.mxu0  ;;  %v3805_v4 = vadd.f32 %v6550_v42, %v3766_v38  ;;  %v4697_v40 = vunpack.c.h.bf16 %v4822_v59  ;;  %v2862_v2 = vadd.f32 %v6447_v37, %v2476_v57  ;;  %v6595_v38 = vld [vmem:[%s6515_s13 + $0x30] sm:$0xff]  }
 0x1df   : > { %4742 = vst [vmem:[%s6570_s22] sm:$0xff] %v4741_v19   ;;  %v3767_v17 = vmul.f32 %v6540_v6, %v3728_v11  ;;  %v3635_v32 = vadd.f32 %v5474_v20, %v3249_v63  ;;  %v3247_v31 = vadd.f32 %v3144_v0, %v6443_v45  ;;  %v4693_v14 = vunpack.c.h.bf16 %v4821_v44 }
 0x1e0   : > { %v3726_v55 = vadd.f32 %v4685_v23, %v3630_v16  ;;  %v5427_v33 = vpop.f32.mrf.mxu1  ;;  %v5475_v29 = vpop.f32.mrf.mxu0  ;;  %v2482_v28 = vadd.f32 %v6453_v54, %v6354_v10  ;;  %v3803_v58 = vadd.f32 %v6550_v42, %v3764_v1  ;;  %v4704_v10 = vunpack.c.l.bf16 %v4824_v26 }
 0x1e1   : > { %v3806_v51 = vadd.f32 %v6550_v42, %v3767_v17  ;;  %v3731_v48 = vadd.f32 %v4696_v12, %v3635_v32  ;;  %v3633_v36 = vadd.f32 %v3530_v49, %v3247_v31  ;;  %v3250_v18 = vadd.f32 %v5427_v33, %v2864_v35 }
 0x1e2   : > { %v3765_v21 = vmul.f32 %v6540_v6, %v3726_v55  ;;  %v3147_v45 = vpop.f32.mrf.mxu1  ;;  %v3533_v41 = vpop.f32.mrf.mxu0  ;;  %v2480_v54 = vadd.f32 %v6459_v61, %v6357_v3  ;;  %v4700_v16 = vunpack.c.l.bf16 %v6595_v38  ;;  %v2868_v0 = vadd.f32 %v6455_v27, %v2482_v28 }
 0x1e3   : > { %v4756_v59 = vpack.c.bf16 %v3806_v51, %v3805_v4  ;;  %v3636_v15 = vadd.f32 %v5475_v29, %v3250_v18  ;;  %v3770_v37 = vmul.f32 %v6540_v6, %v3731_v48  ;;  %v3729_v23 = vadd.f32 %v4692_v43, %v3633_v36  ;;  %v4826_v36 = vld [vmem:[%s6515_s13 + $0x48] sm:$0xff]  }
 0x1e4   : > { %v3804_v8 = vadd.f32 %v6550_v42, %v3765_v21  ;;  %v3248_v25 = vadd.f32 %v3147_v45, %v2862_v2  ;;  %v5430_v20 = vpop.f32.mrf.mxu1  ;;  %v5478_v19 = vpop.f32.mrf.mxu0  ;;  %v4705_v4 = vunpack.c.h.bf16 %v4824_v26  ;;  %v2866_v29 = vadd.f32 %v6461_v56, %v2480_v54 }
 0x1e5   : > { %4835 = vst [vmem:[%s6570_s22 + $0x18] sm:$0xff] %v4756_v59   ;;  %v3732_v11 = vadd.f32 %v4697_v40, %v3636_v15  ;;  %v3253_v63 = vadd.f32 %v5430_v20, %v6450_v24  ;;  %v3809_v24 = vadd.f32 %v6550_v42, %v3770_v37  ;;  %v3768_v32 = vmul.f32 %v6540_v6, %v3729_v23  ;;  %v4825_v15 = vld [vmem:[%s6515_s13 + $0x40] sm:$0xff]  }
 0x1e6   : > { %v4751_v12 = vpack.c.bf16 %v3804_v8, %v3803_v58  ;;  %v3634_v44 = vadd.f32 %v3533_v41, %v3248_v25  ;;  %v3160_v35 = vpop.f32.mrf.mxu1  ;;  %v3546_v57 = vpop.f32.mrf.mxu0  ;;  %v4701_v45 = vunpack.c.h.bf16 %v6595_v38  ;;  %v4712_v59 = vunpack.c.l.bf16 %v4826_v36 }
 0x1e7   : > { %v3771_v49 = vmul.f32 %v6540_v6, %v3732_v11  ;;  %v3639_v1 = vadd.f32 %v5478_v19, %v3253_v63  ;;  %v3251_v17 = vadd.f32 %v3160_v35, %v6457_v52  ;;  %v2486_v52 = vadd.f32 %v6467_v53, %v6366_v60 }
 0x1e8   : > { %4834 = vst [vmem:[%s6570_s22 + $0x10] sm:$0xff] %v4751_v12   ;;  %v3730_v3 = vadd.f32 %v4693_v14, %v3634_v44  ;;  %v5431_v61 = vpop.f32.mrf.mxu1  ;;  %v5479_v31 = vpop.f32.mrf.mxu0  ;;  %v3807_v41 = vadd.f32 %v6550_v42, %v3768_v32  ;;  %v2484_v38 = vadd.f32 %v6473_v50, %v6369_v22  ;;  %v4713_v22 = vunpack.c.h.bf16 %v4826_v36 }
 0x1e9   : > { %v3810_v55 = vadd.f32 %v6550_v42, %v3771_v49  ;;  %v3735_v43 = vadd.f32 %v4704_v10, %v3639_v1  ;;  %v3637_v33 = vadd.f32 %v3546_v57, %v3251_v17  ;;  %v3254_v27 = vadd.f32 %v5431_v61, %v2868_v0 }
 0x1ea   : > { %v3769_v40 = vmul.f32 %v6540_v6, %v3730_v3  ;;  %v3163_v51 = vpop.f32.mrf.mxu1  ;;  %v3549_v48 = vpop.f32.mrf.mxu0  ;;  %v2872_v8 = vadd.f32 %v6469_v30, %v2486_v52  ;;  %v4708_v30 = vunpack.c.l.bf16 %v4825_v15  ;;  %v2870_v0 = vadd.f32 %v6475_v13, %v2484_v38  ;;  %v6741_v38 = vld [vmem:[#allocation2_spill] sm:$0xff] }
 0x1eb   : > { %v4766_v18 = vpack.c.bf16 %v3810_v55, %v3809_v24  ;;  %v3733_v2 = vadd.f32 %v4700_v16, %v3637_v33  ;;  %v3640_v21 = vadd.f32 %v5479_v31, %v3254_v27  ;;  %v3774_v56 = vmul.f32 %v6540_v6, %v3735_v43  ;;  %v4828_v24 = vld [vmem:[%s6515_s13 + $0x58] sm:$0xff]  }
 0x1ec   : > { %v3808_v14 = vadd.f32 %v6550_v42, %v3769_v40  ;;  %v3252_v26 = vadd.f32 %v3163_v51, %v2866_v29  ;;  %v5434_v28 = vpop.f32.mrf.mxu1  ;;  %v5482_v60 = vpop.f32.mrf.mxu0  ;;  %v4709_v17 = vunpack.c.h.bf16 %v4825_v15  ;;  %v2490_v32 = vadd.f32 %v6481_v39, %v6378_v46  ;;  %v6740_v15 = vld [vmem:[#allocation7_spill] sm:$0xff] }
 0x1ed   : > { %4837 = vst [vmem:[%s6570_s22 + $0x28] sm:$0xff] %v4766_v18   ;;  %v3736_v53 = vadd.f32 %v4705_v4, %v3640_v21  ;;  %v3257_v58 = vadd.f32 %v5434_v28, %v6464_v7  ;;  %v3772_v19 = vmul.f32 %v6540_v6, %v3733_v2  ;;  %v3813_v7 = vadd.f32 %v6550_v42, %v3774_v56  ;;  %v6639_v4 = vld [vmem:[%s6515_s13 + $0x50] sm:$0xff]  }
 0x1ee   : > { %v4761_v37 = vpack.c.bf16 %v3808_v14, %v3807_v41  ;;  %v3638_v23 = vadd.f32 %v3549_v48, %v3252_v26  ;;  %v3176_v25 = vpop.f32.mrf.mxu1  ;;  %v3562_v20 = vpop.f32.mrf.mxu0  ;;  %v4720_v46 = vunpack.c.l.bf16 %v4828_v24  ;;  %v2488_v39 = vadd.f32 %v6487_v34, %v6381_v47  ;;  %v6739_v14 = vld [vmem:[#allocation6_spill] sm:$0xff] }
 0x1ef   : > { %v3775_v11 = vmul.f32 %v6540_v6, %v3736_v53  ;;  %v3643_v63 = vadd.f32 %v5482_v60, %v3257_v58  ;;  %v3255_v10 = vadd.f32 %v3176_v25, %v6471_v9  ;;  %v3811_v3 = vadd.f32 %v6550_v42, %v3772_v19 }
 0x1f0   : > { %4836 = vst [vmem:[%s6570_s22 + $0x20] sm:$0xff] %v4761_v37   ;;  %v3734_v54 = vadd.f32 %v4701_v45, %v3638_v23  ;;  %v5435_v12 = vpop.f32.mrf.mxu1  ;;  %v5483_v44 = vpop.f32.mrf.mxu0  ;;  %v4716_v2 = vunpack.c.l.bf16 %v6639_v4  ;;  %v2876_v21 = vadd.f32 %v6483_v5, %v2490_v32  ;;  %v4721_v60 = vunpack.c.h.bf16 %v4828_v24  ;;  %v6742_v37 = vld [vmem:[#allocation9_spill] sm:$0xff]  ;;  %v6745_v24 = vld [vmem:[#allocation3_spill] sm:$0xff]  ;;  %v6746_v32 = vld [vmem:[#allocation12_spill] sm:$0xff] }
 0x1f1   : > { %v3814_v50 = vadd.f32 %v6550_v42, %v3775_v11  ;;  %v3739_v35 = vadd.f32 %v4712_v59, %v3643_v63  ;;  %v3641_v57 = vadd.f32 %v3562_v20, %v3255_v10  ;;  %v3258_v16 = vadd.f32 %v5435_v12, %v2872_v8  ;;  %v4830_v11 = vld [vmem:[%s6515_s13 + $0x68] sm:$0xff]  }
 0x1f2   : > { %v3773_v49 = vmul.f32 %v6540_v6, %v3734_v54  ;;  %v3179_v9 = vpop.f32.mrf.mxu1  ;;  %v3565_v1 = vpop.f32.mrf.mxu0  ;;  %v2874_v8 = vadd.f32 %v6740_v15, %v2488_v39  ;;  %v2494_v23 = vadd.f32 %v6742_v37, %v6741_v38  ;;  %v4717_v54 = vunpack.c.h.bf16 %v6639_v4 }
 0x1f3   : > { %v4776_v61 = vpack.c.bf16 %v3814_v50, %v3813_v7  ;;  %v3644_v31 = vadd.f32 %v5483_v44, %v3258_v16  ;;  %v3778_v13 = vmul.f32 %v6540_v6, %v3739_v35  ;;  %v3737_v43 = vadd.f32 %v4708_v30, %v3641_v57  ;;  %v6743_v16 = vld [vmem:[#allocation8_spill] sm:$0xff] }
 0x1f4   : > { %v3812_v55 = vadd.f32 %v6550_v42, %v3773_v49  ;;  %v3256_v33 = vadd.f32 %v3179_v9, %v2870_v0  ;;  %v5438_v27 = vpop.f32.mrf.mxu1  ;;  %v5486_v29 = vpop.f32.mrf.mxu0  ;;  %v4728_v49 = vunpack.c.l.bf16 %v4830_v11  ;;  %v4829_v9 = vld [vmem:[%s6515_s13 + $0x60] sm:$0xff]  }
 0x1f5   : > { %4839 = vst [vmem:[%s6570_s22 + $0x38] sm:$0xff] %v4776_v61   ;;  %v3740_v52 = vadd.f32 %v4713_v22, %v3644_v31  ;;  %v3261_v40 = vadd.f32 %v5438_v27, %v6478_v62  ;;  %v3817_v62 = vadd.f32 %v6550_v42, %v3778_v13  ;;  %v3776_v26 = vmul.f32 %v6540_v6, %v3737_v43  ;;  %v6747_v27 = vld [vmem:[#allocation11_spill] sm:$0xff] }
 0x1f6   : > { %v4771_v51 = vpack.c.bf16 %v3812_v55, %v3811_v3  ;;  %v3642_v48 = vadd.f32 %v3565_v1, %v3256_v33  ;;  %v3192_v36 = vpop.f32.mrf.mxu1  ;;  %v3578_v18 = vpop.f32.mrf.mxu0  ;;  %v6744_v1 = vld [vmem:[#allocation10_spill] sm:$0xff]  ;;  %v2492_v3 = vadd.f32 %v6746_v32, %v6745_v24 }
 0x1f7   : > { %v3779_v45 = vmul.f32 %v6540_v6, %v3740_v52  ;;  %v3647_v41 = vadd.f32 %v5486_v29, %v3261_v40  ;;  %v3259_v56 = vadd.f32 %v3192_v36, %v6739_v14  ;;  %v3815_v30 = vadd.f32 %v6550_v42, %v3776_v26 }
 0x1f8   : > { %4838 = vst [vmem:[%s6570_s22 + $0x30] sm:$0xff] %v4771_v51   ;;  %v3738_v47 = vadd.f32 %v4709_v17, %v3642_v48  ;;  %v5439_v34 = vpop.f32.mrf.mxu1  ;;  %v5487_v28 = vpop.f32.mrf.mxu0  ;;  %v2880_v17 = vadd.f32 %v6744_v1, %v2494_v23  ;;  %v4729_v48 = vunpack.c.h.bf16 %v4830_v11  ;;  %v4725_v26 = vunpack.c.h.bf16 %v4829_v9 }
 0x1f9   : > { %v3818_v53 = vadd.f32 %v6550_v42, %v3779_v45  ;;  %v3743_v58 = vadd.f32 %v4720_v46, %v3647_v41  ;;  %v3645_v59 = vadd.f32 %v3578_v18, %v3259_v56  ;;  %v3262_v5 = vadd.f32 %v5439_v34, %v2876_v21  ;;  %v6748_v45 = vld [vmem:[#allocation13_spill] sm:$0xff]  ;;  %v6749_v34 = vld [vmem:[#allocation4_spill] sm:$0xff] }
 0x1fa   : > { %v3777_v25 = vmul.f32 %v6540_v6, %v3738_v47  ;;  %v3195_v20 = vpop.f32.mrf.mxu1  ;;  %v3581_v19 = vpop.f32.mrf.mxu0  ;;  %v4724_v46 = vunpack.c.l.bf16 %v4829_v9  ;;  %v2878_v41 = vadd.f32 %v6748_v45, %v2492_v3  ;;  %v4832_v47 = vld [vmem:[%s6515_s13 + $0x78] sm:$0xff]  }
 0x1fb   : > { %v4786_v63 = vpack.c.bf16 %v3818_v53, %v3817_v62  ;;  %v3741_v10 = vadd.f32 %v4716_v2, %v3645_v59  ;;  %v3648_v7 = vadd.f32 %v5487_v28, %v3262_v5  ;;  %v3782_v44 = vmul.f32 %v6540_v6, %v3743_v58  ;;  %v6750_v28 = vld [vmem:[#allocation15_spill] sm:$0xff] }
 0x1fc   : > { %v3816_v12 = vadd.f32 %v6550_v42, %v3777_v25  ;;  %v3260_v22 = vadd.f32 %v3195_v20, %v2874_v8  ;;  %v5442_v50 = vpop.f32.mrf.mxu1  ;;  %v5490_v35 = vpop.f32.mrf.mxu0  ;;  %v4831_v5 = vld [vmem:[%s6515_s13 + $0x70] sm:$0xff]   ;;  %v4737_v3 = vunpack.c.h.bf16 %v4832_v47 }
 0x1fd   : > { %4841 = vst [vmem:[%s6570_s22 + $0x48] sm:$0xff] %v4786_v63   ;;  %v3744_v57 = vadd.f32 %v4721_v60, %v3648_v7  ;;  %v3265_v0 = vadd.f32 %v5442_v50, %v6743_v16  ;;  %v3780_v13 = vmul.f32 %v6540_v6, %v3741_v10  ;;  %v3821_v52 = vadd.f32 %v6550_v42, %v3782_v44  ;;  %v6752_v10 = vld [vmem:[#allocation5_spill] sm:$0xff]  ;;  %v6753_v7 = vld [vmem:[#allocation18_spill] sm:$0xff] }
 0x1fe   : > { %v4781_v61 = vpack.c.bf16 %v3816_v12, %v3815_v30  ;;  %v3646_v31 = vadd.f32 %v3581_v19, %v3260_v22  ;;  %v3208_v4 = vpop.f32.mrf.mxu1  ;;  %v3594_v55 = vpop.f32.mrf.mxu0  ;;  %v2498_v60 = vadd.f32 %v6750_v28, %v6749_v34  ;;  %v6751_v19 = vld [vmem:[#allocation14_spill] sm:$0xff]  ;;  %v4736_v63 = vunpack.c.l.bf16 %v4832_v47 }
 0x1ff   : > { %v3783_v43 = vmul.f32 %v6540_v6, %v3744_v57  ;;  %v3651_v33 = vadd.f32 %v5490_v35, %v3265_v0  ;;  %v3263_v29 = vadd.f32 %v3208_v4, %v6747_v27  ;;  %v3819_v53 = vadd.f32 %v6550_v42, %v3780_v13  ;;  %v6754_v35 = vld [vmem:[#allocation16_spill] sm:$0xff] }
 0x200   : > { %4840 = vst [vmem:[%s6570_s22 + $0x40] sm:$0xff] %v4781_v61   ;;  %v3742_v40 = vadd.f32 %v4717_v54, %v3646_v31  ;;  %v5443_v39 = vpop.f32.mrf.mxu1  ;;  %v5491_v51 = vpop.f32.mrf.mxu0  ;;  %v2496_v54 = vadd.f32 %v6753_v7, %v6752_v10  ;;  %v4732_v50 = vunpack.c.l.bf16 %v4831_v5  ;;  %v2884_v57 = vadd.f32 %v6754_v35, %v2498_v60 }
 0x201   : > { %v3822_v36 = vadd.f32 %v6550_v42, %v3783_v43  ;;  %v3747_v18 = vadd.f32 %v4728_v49, %v3651_v33  ;;  %v3649_v2 = vadd.f32 %v3594_v55, %v3263_v29  ;;  %v3266_v21 = vadd.f32 %v5443_v39, %v2880_v17  ;;  %v6755_v49 = vld [vmem:[#allocation17_spill] sm:$0xff]  ;;  %v6756_v43 = vld [vmem:[#allocation19_spill] sm:$0xff] }
 0x202   : > { %v3781_v14 = vmul.f32 %v6540_v6, %v3742_v40  ;;  %v3211_v56 = vpop.f32.mrf.mxu1  ;;  %v3597_v62 = vpop.f32.mrf.mxu0  ;;  %v2882_v33 = vadd.f32 %v6756_v43, %v2496_v54 }
 0x203   : > { %v4796_v58 = vpack.c.bf16 %v3822_v36, %v3821_v52  ;;  %v3652_v59 = vadd.f32 %v5491_v51, %v3266_v21  ;;  %v3786_v8 = vmul.f32 %v6540_v6, %v3747_v18  ;;  %v3745_v38 = vadd.f32 %v4724_v46, %v3649_v2 }
 0x204   : > { %v3820_v15 = vadd.f32 %v6550_v42, %v3781_v14  ;;  %v3264_v37 = vadd.f32 %v3211_v56, %v2878_v41  ;;  %v5446_v23 = vpop.f32.mrf.mxu1  ;;  %v5494_v25 = vpop.f32.mrf.mxu0  ;;  %v4733_v46 = vunpack.c.h.bf16 %v4831_v5 }
 0x205   : > { %4843 = vst [vmem:[%s6570_s22 + $0x58] sm:$0xff] %v4796_v58   ;;  %v3748_v20 = vadd.f32 %v4729_v48, %v3652_v59  ;;  %v3269_v11 = vadd.f32 %v5446_v23, %v6751_v19  ;;  %v3825_v1 = vadd.f32 %v6550_v42, %v3786_v8  ;;  %v3784_v17 = vmul.f32 %v6540_v6, %v3745_v38 }
 0x206   : > { %v4791_v30 = vpack.c.bf16 %v3820_v15, %v3819_v53  ;;  %v3650_v12 = vadd.f32 %v3597_v62, %v3264_v37  ;;  %v3224_v44 = vpop.f32.mrf.mxu1  ;;  %v3610_v22 = vpop.f32.mrf.mxu0 }
 0x207   : > { %v3787_v16 = vmul.f32 %v6540_v6, %v3748_v20  ;;  %v3655_v0 = vadd.f32 %v5494_v25, %v3269_v11  ;;  %v3267_v9 = vadd.f32 %v3224_v44, %v6755_v49  ;;  %v3823_v39 = vadd.f32 %v6550_v42, %v3784_v17 }
 0x208   : > { %4842 = vst [vmem:[%s6570_s22 + $0x50] sm:$0xff] %v4791_v30   ;;  %v3746_v24 = vadd.f32 %v4725_v26, %v3650_v12  ;;  %v5447_v32 = vpop.f32.mrf.mxu1  ;;  %v5495_v13 = vpop.f32.mrf.mxu0 }
 0x209   : > { %v3826_v61 = vadd.f32 %v6550_v42, %v3787_v16  ;;  %v3751_v31 = vadd.f32 %v4736_v63, %v3655_v0  ;;  %v3653_v4 = vadd.f32 %v3610_v22, %v3267_v9  ;;  %v3270_v55 = vadd.f32 %v5447_v32, %v2884_v57 }
 0x20a   : > { %v3785_v27 = vmul.f32 %v6540_v6, %v3746_v24  ;;  %v3227_v29 = vpop.f32.mrf.mxu1  ;;  %v3613_v21 = vpop.f32.mrf.mxu0 }
 0x20b   : > { %v4806_v52 = vpack.c.bf16 %v3826_v61, %v3825_v1  ;;  %v3656_v40 = vadd.f32 %v5495_v13, %v3270_v55  ;;  %v3749_v48 = vadd.f32 %v4732_v50, %v3653_v4  ;;  %v3268_v36 = vadd.f32 %v3227_v29, %v2882_v33 }
 0x20c   : > { %v3824_v51 = vadd.f32 %v6550_v42, %v3785_v27  ;;  %v3790_v18 = vmul.f32 %v6540_v6, %v3751_v31 }
 0x20d   : > { %4845 = vst [vmem:[%s6570_s22 + $0x68] sm:$0xff] %v4806_v52   ;;  %v3752_v2 = vadd.f32 %v4737_v3, %v3656_v40  ;;  %v3654_v41 = vadd.f32 %v3613_v21, %v3268_v36  ;;  %v3788_v56 = vmul.f32 %v6540_v6, %v3749_v48 }
 0x20e   : > { %v4801_v45 = vpack.c.bf16 %v3824_v51, %v3823_v39  ;;  %v3829_v26 = vadd.f32 %v6550_v42, %v3790_v18 }
 0x20f   : > { %v3791_v14 = vmul.f32 %v6540_v6, %v3752_v2  ;;  %v3750_v62 = vadd.f32 %v4733_v46, %v3654_v41  ;;  %v3827_v60 = vadd.f32 %v6550_v42, %v3788_v56 }
 0x210   : > { %4844 = vst [vmem:[%s6570_s22 + $0x60] sm:$0xff] %v4801_v45  }
 0x211   : > { %v3830_v47 = vadd.f32 %v6550_v42, %v3791_v14  ;;  %v3789_v34 = vmul.f32 %v6540_v6, %v3750_v62 }
 0x213   : > { %v4816_v28 = vpack.c.bf16 %v3830_v47, %v3829_v26  ;;  %v3828_v53 = vadd.f32 %v6550_v42, %v3789_v34 }
 0x215   : > { %4847 = vst [vmem:[%s6570_s22 + $0x78] sm:$0xff] %v4816_v28   ;;  %v4811_v58 = vpack.c.bf16 %v3828_v53, %v3827_v60 }
 0x217   : > { %4846 = vst [vmem:[%s6570_s22 + $0x70] sm:$0xff] %v4811_v58  }
 0x218 PF: > { %s15_s18 = sadd.s32 1, %s5743_s18  }
 0x219   : > { %p12_p4 = scmp.ge.s32.totalorder %s15_s18, 4  }
 0x21b   :  { %14 = sbr.rel (!%p12_p4) target bundleno = 1 (0x1), region = 83 }

// kernel: _lambda_.33
= control target key start
LH: loop header
LB: loop body
LE: loop exit
PB: predicated region body
PF: predicated region fallthrough
CT: control target
= control target key end

     0   :  { %s455_s0 = inlined_call_operand.vmem [shape: bf16[128,128], index: 0, kind: input, shape index: {}]   ;;  %s456_s1 = inlined_call_operand.vmem [shape: f32[1,128], index: 1, kind: input, shape index: {}]   ;;  %s457_s2 = inlined_call_operand.vmem [shape: f32[1,128], index: 2, kind: input, shape index: {}]   ;;  %s458_s3 = inlined_call_operand.vmem [shape: bf16[128,128], index: 3, kind: output, shape index: {}]  }
   0x1   :  { %v259_v0 = vld [vmem:[%s455_s0] sm:$0xff]   ;;  %v330_v4 = vld [vmem:[%s455_s0 + $0x8] sm:$0xff]   ;;  %v331_v5 = vld [vmem:[%s455_s0 + $0x10] sm:$0xff]  }
   0x2   :  { %v370_v1 = vld [vmem:[%s456_s1] ss:$0 sm:$0xff]  ;;  %v260_v2 = vunpack.c.l.bf16 %v259_v0  ;;  %v261_v3 = vunpack.c.h.bf16 %v259_v0  ;;  %v332_v6 = vld [vmem:[%s455_s0 + $0x18] sm:$0xff]   ;;  %v264_v8 = vunpack.c.l.bf16 %v330_v4  ;;  %v265_v9 = vunpack.c.h.bf16 %v330_v4  ;;  %v334_v35 = vld [vmem:[%s455_s0 + $0x28] sm:$0xff]  }
   0x3   :  { %v384_v7 = vld [vmem:[%s457_s2] ss:$0 sm:$0xff]  ;;  %v268_v10 = vunpack.c.l.bf16 %v331_v5  ;;  %v269_v11 = vunpack.c.h.bf16 %v331_v5  ;;  %v272_v14 = vunpack.c.l.bf16 %v332_v6  ;;  %v273_v15 = vunpack.c.h.bf16 %v332_v6  ;;  %v335_v48 = vld [vmem:[%s455_s0 + $0x30] sm:$0xff]   ;;  %v336_v4 = vld [vmem:[%s455_s0 + $0x38] sm:$0xff]  }
   0x4   :  { %v53_v12 = vmul.f32 %v260_v2, %v370_v1  ;;  %v54_v13 = vmul.f32 %v261_v3, %v370_v1  ;;  %v55_v16 = vmul.f32 %v264_v8, %v370_v1  ;;  %v56_v17 = vmul.f32 %v265_v9, %v370_v1  ;;  %v333_v34 = vld [vmem:[%s455_s0 + $0x20] sm:$0xff]  }
   0x5   :  { %v57_v18 = vmul.f32 %v268_v10, %v370_v1  ;;  %v58_v19 = vmul.f32 %v269_v11, %v370_v1  ;;  %v59_v22 = vmul.f32 %v272_v14, %v370_v1  ;;  %v60_v23 = vmul.f32 %v273_v15, %v370_v1 }
   0x6   :  { %v76_v20 = vadd.f32 %v384_v7, %v53_v12  ;;  %v77_v21 = vadd.f32 %v384_v7, %v54_v13  ;;  %v78_v24 = vadd.f32 %v384_v7, %v55_v16  ;;  %v79_v25 = vadd.f32 %v384_v7, %v56_v17 }
   0x7   :  { %v80_v26 = vadd.f32 %v384_v7, %v57_v18  ;;  %v81_v27 = vadd.f32 %v384_v7, %v58_v19  ;;  %v82_v42 = vadd.f32 %v384_v7, %v59_v22  ;;  %v83_v43 = vadd.f32 %v384_v7, %v60_v23 }
   0x8   :  { %vm92_vm0 = vcmp.ge.f32.partialorder %v76_v20, 0.0  ;;  %vm93_vm1 = vcmp.ge.f32.partialorder %v77_v21, 0.0  ;;  %v108_v28 = vmul.f32 0.1, %v76_v20  ;;  %v109_v29 = vmul.f32 0.1, %v77_v21 }
   0x9   :  { %vm94_vm2 = vcmp.ge.f32.partialorder %v78_v24, 0.0  ;;  %vm95_vm3 = vcmp.ge.f32.partialorder %v79_v25, 0.0  ;;  %v110_v30 = vmul.f32 0.1, %v78_v24  ;;  %v111_v31 = vmul.f32 0.1, %v79_v25 }
   0xa   :  { %v124_v32 = vsel %vm92_vm0, %v76_v20, %v108_v28  ;;  %v125_v33 = vsel %vm93_vm1, %v77_v21, %v109_v29  ;;  %vm96_vm4 = vcmp.ge.f32.partialorder %v80_v26, 0.0  ;;  %vm97_vm5 = vcmp.ge.f32.partialorder %v81_v27, 0.0 }
   0xb   :  { %v293_v36 = vpack.c.bf16 %v125_v33, %v124_v32  ;;  %v126_v37 = vsel %vm94_vm2, %v78_v24, %v110_v30  ;;  %v127_v38 = vsel %vm95_vm3, %v79_v25, %v111_v31  ;;  %v112_v39 = vmul.f32 0.1, %v80_v26 }
   0xc   :  { %v298_v40 = vpack.c.bf16 %v127_v38, %v126_v37  ;;  %v113_v41 = vmul.f32 0.1, %v81_v27  ;;  %v276_v45 = vunpack.c.l.bf16 %v333_v34  ;;  %v277_v46 = vunpack.c.h.bf16 %v333_v34 }
   0xd   :  { %294 = vst [vmem:[%s458_s3] sm:$0xff] %v293_v36   ;;  %v128_v44 = vsel %vm96_vm4, %v80_v26, %v112_v39  ;;  %v280_v47 = vunpack.c.l.bf16 %v334_v35  ;;  %vm98_vm6 = vcmp.ge.f32.partialorder %v82_v42, 0.0  ;;  %vm99_vm7 = vcmp.ge.f32.partialorder %v83_v43, 0.0 }
   0xe   :  { %337 = vst [vmem:[%s458_s3 + $0x8] sm:$0xff] %v298_v40   ;;  %v129_v49 = vsel %vm97_vm5, %v81_v27, %v113_v41  ;;  %v114_v50 = vmul.f32 0.1, %v82_v42  ;;  %v115_v52 = vmul.f32 0.1, %v83_v43  ;;  %v61_v53 = vmul.f32 %v276_v45, %v370_v1 }
   0xf   :  { %v303_v51 = vpack.c.bf16 %v129_v49, %v128_v44  ;;  %v62_v54 = vmul.f32 %v277_v46, %v370_v1  ;;  %v281_v56 = vunpack.c.h.bf16 %v334_v35  ;;  %v63_v57 = vmul.f32 %v280_v47, %v370_v1 }
  0x10   :  { %v130_v55 = vsel %vm98_vm6, %v82_v42, %v114_v50  ;;  %v284_v58 = vunpack.c.l.bf16 %v335_v48  ;;  %v131_v59 = vsel %vm99_vm7, %v83_v43, %v115_v52  ;;  %v84_v60 = vadd.f32 %v384_v7, %v61_v53 }
  0x11   :  { %338 = vst [vmem:[%s458_s3 + $0x10] sm:$0xff] %v303_v51   ;;  %v85_v61 = vadd.f32 %v384_v7, %v62_v54  ;;  %v285_v62 = vunpack.c.h.bf16 %v335_v48  ;;  %v308_v63 = vpack.c.bf16 %v131_v59, %v130_v55  ;;  %v64_v0 = vmul.f32 %v281_v56, %v370_v1 }
  0x12   :  { %v86_v2 = vadd.f32 %v384_v7, %v63_v57  ;;  %v65_v3 = vmul.f32 %v284_v58, %v370_v1  ;;  %vm100_vm8 = vcmp.ge.f32.partialorder %v84_v60, 0.0  ;;  %v116_v5 = vmul.f32 0.1, %v84_v60 }
  0x13   :  { %vm101_vm9 = vcmp.ge.f32.partialorder %v85_v61, 0.0  ;;  %v117_v6 = vmul.f32 0.1, %v85_v61  ;;  %339 = vst [vmem:[%s458_s3 + $0x18] sm:$0xff] %v308_v63   ;;  %v87_v8 = vadd.f32 %v384_v7, %v64_v0  ;;  %v66_v10 = vmul.f32 %v285_v62, %v370_v1 }
  0x14   :  { %vm102_vm10 = vcmp.ge.f32.partialorder %v86_v2, 0.0  ;;  %v118_v9 = vmul.f32 0.1, %v86_v2  ;;  %v132_v11 = vsel %vm100_vm8, %v84_v60, %v116_v5  ;;  %v88_v13 = vadd.f32 %v384_v7, %v65_v3 }
  0x15   :  { %v133_v12 = vsel %vm101_vm9, %v85_v61, %v117_v6  ;;  %v288_v14 = vunpack.c.l.bf16 %v336_v4  ;;  %vm103_vm11 = vcmp.ge.f32.partialorder %v87_v8, 0.0  ;;  %v119_v16 = vmul.f32 0.1, %v87_v8 }
  0x16   :  { %v313_v15 = vpack.c.bf16 %v133_v12, %v132_v11  ;;  %v134_v17 = vsel %vm102_vm10, %v86_v2, %v118_v9  ;;  %v89_v18 = vadd.f32 %v384_v7, %v66_v10  ;;  %vm104_vm12 = vcmp.ge.f32.partialorder %v88_v13, 0.0 }
  0x17   :  { %v120_v19 = vmul.f32 0.1, %v88_v13  ;;  %v289_v20 = vunpack.c.h.bf16 %v336_v4  ;;  %v135_v21 = vsel %vm103_vm11, %v87_v8, %v119_v16  ;;  %v67_v22 = vmul.f32 %v288_v14, %v370_v1 }
  0x18   :  { %340 = vst [vmem:[%s458_s3 + $0x20] sm:$0xff] %v313_v15   ;;  %v318_v23 = vpack.c.bf16 %v135_v21, %v134_v17  ;;  %vm105_vm13 = vcmp.ge.f32.partialorder %v89_v18, 0.0  ;;  %v121_v24 = vmul.f32 0.1, %v89_v18 }
  0x19   :  { %v136_v25 = vsel %vm104_vm12, %v88_v13, %v120_v19  ;;  %v68_v26 = vmul.f32 %v289_v20, %v370_v1  ;;  %v90_v27 = vadd.f32 %v384_v7, %v67_v22 }
  0x1a   :  { %341 = vst [vmem:[%s458_s3 + $0x28] sm:$0xff] %v318_v23   ;;  %v137_v28 = vsel %vm105_vm13, %v89_v18, %v121_v24 }
  0x1b   :  { %v323_v29 = vpack.c.bf16 %v137_v28, %v136_v25  ;;  %v91_v30 = vadd.f32 %v384_v7, %v68_v26  ;;  %vm106_vm14 = vcmp.ge.f32.partialorder %v90_v27, 0.0  ;;  %v122_v31 = vmul.f32 0.1, %v90_v27 }
  0x1d   :  { %342 = vst [vmem:[%s458_s3 + $0x30] sm:$0xff] %v323_v29   ;;  %vm107_vm15 = vcmp.ge.f32.partialorder %v91_v30, 0.0  ;;  %v123_v32 = vmul.f32 0.1, %v91_v30  ;;  %v138_v33 = vsel %vm106_vm14, %v90_v27, %v122_v31 }
  0x1f   :  { %v139_v1 = vsel %vm107_vm15, %v91_v30, %v123_v32 }
  0x20   :  { %v328_v34 = vpack.c.bf16 %v139_v1, %v138_v33 }
  0x22   :  { %343 = vst [vmem:[%s458_s3 + $0x38] sm:$0xff] %v328_v34  }

// kernel: _lambda_.32
= control target key start
LH: loop header
LB: loop body
LE: loop exit
PB: predicated region body
PF: predicated region fallthrough
CT: control target
= control target key end

     0   :  { %s2775_s18 = smov 0   ;;  %s3087_s0 = inlined_call_operand.vmem [shape: bf16[2,3,80,128], index: 0, kind: input, shape index: {}]   ;;  %s3088_s1 = inlined_call_operand.vmem [shape: bf16[9,128,128], index: 1, kind: input, shape index: {}]   ;;  %s3089_s2 = inlined_call_operand.vmem [shape: f32[1,128], index: 2, kind: input, shape index: {}]   ;;  %s3090_s3 = inlined_call_operand.vmem [shape: f32[1,128], index: 3, kind: input, shape index: {}]   ;;  %s3091_s4 = inlined_call_operand.vmem [shape: bf16[2,64,128], index: 4, kind: input, shape index: {}]   ;;  %s3092_s5 = inlined_call_operand.vmem [shape: bf16[2,64,128], index: 5, kind: output, shape index: {}]  }
   0x1 LB: > { %s1922_s19 = sadd.s32 4294967295, %s2743_s18   ;;  %p1926_p0 = scmp.ge.s32.totalorder %s2743_s18, 1  ;;  %s2743_s18 = sphi %s2775_s18, %s15_s18  }
   0x2   : > { %p197_p1 = scmp.lt.s32.totalorder %s2743_s18, 3 }
   0x4   : > { %p198_p2 = pnand %p1926_p0, %p197_p1 }
   0x6   : > { %201 = sbr.rel (%p198_p2) target bundleno = 383 (0x17f), region = 40 }
   0xb   : > { %v2629_v0 = vld [vmem:[%s3088_s1 + $0x78] sm:$0xff]   ;;  %p230_p3 = scmp.lt.s32.totalorder %s1922_s19, 1  ;;  %v2631_v2 = vld [vmem:[%s3088_s1 + $0x70] sm:$0xff]   ;;  %v2633_v4 = vld [vmem:[%s3088_s1 + $0x68] sm:$0xff]  }
   0xc   : > { %v2630_v1 = vld [vmem:[%s3088_s1 + $0x38] sm:$0xff]   ;;  %2388 = vmatprep.subr.bf16.mxu0 %v2629_v0  ;;  %v2632_v3 = vld [vmem:[%s3088_s1 + $0x30] sm:$0xff]   ;;  %v2634_v5 = vld [vmem:[%s3088_s1 + $0x28] sm:$0xff]  }
   0xd   : > { %2412 = vmatprep.subr.bf16.mxu1 %v2630_v1  ;;  %2389 = vmatpush3.bf16.msra.mxu0 %v2629_v0  ;;  %s3108_s19 = smov (!%p230_p3, %s1922_s19), 1  ;;  %v2635_v6 = vld [vmem:[%s3088_s1 + $0x60] sm:$0xff]   ;;  %v2637_v8 = vld [vmem:[%s3088_s1 + $0x58] sm:$0xff]   ;;  %v2639_v10 = vld [vmem:[%s3088_s1 + $0x50] sm:$0xff]  }
   0xe   : > { %2413 = vmatpush3.bf16.msra.mxu1 %v2630_v1  ;;  %2390 = vmatprep.subr.bf16.mxu0 %v2631_v2  ;;  %v2636_v7 = vld [vmem:[%s3088_s1 + $0x20] sm:$0xff]   ;;  %s2620_s11 = smul.u32 120, %s3108_s19  ;;  %v2638_v9 = vld [vmem:[%s3088_s1 + $0x18] sm:$0xff]   ;;  %v2640_v11 = vld [vmem:[%s3088_s1 + $0x10] sm:$0xff]  }
   0xf   : > { %2414 = vmatprep.subr.bf16.mxu1 %v2632_v3  ;;  %v2641_v14 = vld [vmem:[%s3088_s1 + $0x48] sm:$0xff]   ;;  %v2643_v16 = vld [vmem:[%s3088_s1 + $0x40] sm:$0xff]   ;;  %v2649_v19 = vld [vmem:[%s3088_s1 + $0xb8] sm:$0xff]  }
  0x10   : > { %s2819_s20 = scalar_lea.vmem %s3087_s0, %s2620_s11  ;;  %v2642_v15 = vld [vmem:[%s3088_s1 + $0x8] sm:$0xff]   ;;  %v2644_v17 = vld [vmem:[%s3088_s1] sm:$0xff]   ;;  %v2650_v20 = vld [vmem:[%s3088_s1 + $0xf8] sm:$0xff]  }
  0x11   : > { %2391 = vmatpush3.bf16.msra.mxu0 %v2631_v2  ;;  %v2645_v12 = vld [vmem:[%s2819_s20 + $0x28] sm:$0xff]   ;;  %v2646_v13 = vld [vmem:[%s2819_s20] sm:$0xff]   ;;  %v2647_v18 = vld [vmem:[%s2819_s20 + $0x30] sm:$0xff]  }
  0x12   : > { %2415 = vmatpush3.bf16.msra.mxu1 %v2632_v3  ;;  %2392 = vmatprep.subr.bf16.mxu0 %v2633_v4  ;;  %v2648_v21 = vld [vmem:[%s2819_s20 + $0x8] sm:$0xff]   ;;  %v2651_v22 = vld [vmem:[%s3088_s1 + $0xb0] sm:$0xff]   ;;  %v2659_v24 = vld [vmem:[%s2819_s20 + $0x38] sm:$0xff]  }
  0x13   : > { %2416 = vmatprep.subr.bf16.mxu1 %v2634_v5  ;;  %2404 = vmatprep.mubr.bf16.mxu0 %v2645_v12  ;;  %v2652_v23 = vld [vmem:[%s3088_s1 + $0xf0] sm:$0xff]   ;;  %v2653_v26 = vld [vmem:[%s3088_s1 + $0xa8] sm:$0xff]   ;;  %v2655_v28 = vld [vmem:[%s3088_s1 + $0xa0] sm:$0xff]  }
  0x14   : > { %2428 = vmatprep.mubr.bf16.mxu1 %v2646_v13  ;;  %v2660_v25 = vld [vmem:[%s2819_s20 + $0x10] sm:$0xff]   ;;  %v2654_v27 = vld [vmem:[%s3088_s1 + $0xe8] sm:$0xff]   ;;  %v2661_v29 = vld [vmem:[%s2819_s20 + $0x40] sm:$0xff]  }
  0x15   : > { %2393 = vmatpush3.bf16.msra.mxu0 %v2633_v4  ;;  %v2662_v30 = vld [vmem:[%s2819_s20 + $0x18] sm:$0xff]   ;;  %v2656_v31 = vld [vmem:[%s3088_s1 + $0xe0] sm:$0xff]   ;;  %v2669_v32 = vld [vmem:[%s2819_s20 + $0x50] sm:$0xff]  }
  0x16   : > { %2417 = vmatpush3.bf16.msra.mxu1 %v2634_v5  ;;  %2394 = vmatprep.subr.bf16.mxu0 %v2635_v6  ;;  %v2670_v33 = vld [vmem:[%s2819_s20 + $0x4] sm:$0xff]   ;;  %v2657_v34 = vld [vmem:[%s3088_s1 + $0x98] sm:$0xff]   ;;  %v2663_v36 = vld [vmem:[%s3088_s1 + $0x90] sm:$0xff]  }
  0x17   : > { %2418 = vmatprep.subr.bf16.mxu1 %v2636_v7  ;;  %v2658_v35 = vld [vmem:[%s3088_s1 + $0xd8] sm:$0xff]   ;;  %v2664_v37 = vld [vmem:[%s3088_s1 + $0xd0] sm:$0xff]   ;;  %v2665_v38 = vld [vmem:[%s3088_s1 + $0x88] sm:$0xff]  }
  0x18   : > { %v2666_v39 = vld [vmem:[%s3088_s1 + $0xc8] sm:$0xff]   ;;  %v2667_v40 = vld [vmem:[%s3088_s1 + $0x80] sm:$0xff]   ;;  %v2671_v42 = vld [vmem:[%s2819_s20 + $0x58] sm:$0xff]  }
  0x19   : > { %2395 = vmatpush3.bf16.msra.mxu0 %v2635_v6  ;;  %v2668_v41 = vld [vmem:[%s3088_s1 + $0xc0] sm:$0xff]   ;;  %v2673_v43 = vld [vmem:[%s3088_s1 + $0x138] sm:$0xff]   ;;  %v2672_v45 = vld [vmem:[%s2819_s20 + $0xc] sm:$0xff]  }
  0x1a   : > { %2419 = vmatpush3.bf16.msra.mxu1 %v2636_v7  ;;  %2396 = vmatprep.subr.bf16.mxu0 %v2637_v8  ;;  %v2674_v44 = vld [vmem:[%s3088_s1 + $0x178] sm:$0xff]   ;;  %v2675_v46 = vld [vmem:[%s3088_s1 + $0x130] sm:$0xff]   ;;  %v2677_v48 = vld [vmem:[%s2819_s20 + $0x60] sm:$0xff]  }
  0x1b   : > { %2420 = vmatprep.subr.bf16.mxu1 %v2638_v9  ;;  %v2676_v47 = vld [vmem:[%s3088_s1 + $0x170] sm:$0xff]   ;;  %v2678_v50 = vld [vmem:[%s2819_s20 + $0x68] sm:$0xff]   ;;  %v2682_v53 = vld [vmem:[%s2819_s20 + $0x1c] sm:$0xff]  }
  0x1c   : > { %v2681_v49 = vld [vmem:[%s2819_s20 + $0x14] sm:$0xff]   ;;  %v2679_v51 = vld [vmem:[%s3088_s1 + $0x128] sm:$0xff]   ;;  %v2683_v54 = vld [vmem:[%s3088_s1 + $0x120] sm:$0xff]  }
  0x1d   : > { %2397 = vmatpush3.bf16.msra.mxu0 %v2637_v8  ;;  %v2680_v52 = vld [vmem:[%s3088_s1 + $0x168] sm:$0xff]   ;;  %v2684_v55 = vld [vmem:[%s3088_s1 + $0x160] sm:$0xff]   ;;  %v2694_v57 = vld [vmem:[%s2819_s20 + $0x54] sm:$0xff]  }
  0x1e   : > { %2421 = vmatpush3.bf16.msra.mxu1 %v2638_v9  ;;  %2398 = vmatprep.subr.bf16.mxu0 %v2639_v10  ;;  %v2693_v56 = vld [vmem:[%s2819_s20 + $0x2c] sm:$0xff]   ;;  %v2685_v58 = vld [vmem:[%s3088_s1 + $0x118] sm:$0xff]   ;;  %v2691_v0 = vld [vmem:[%s3088_s1 + $0x100] sm:$0xff]  }
  0x1f   : > { %2422 = vmatprep.subr.bf16.mxu1 %v2640_v11  ;;  %v2686_v59 = vld [vmem:[%s3088_s1 + $0x158] sm:$0xff]   ;;  %v2687_v60 = vld [vmem:[%s3088_s1 + $0x110] sm:$0xff]   ;;  %v2689_v62 = vld [vmem:[%s3088_s1 + $0x108] sm:$0xff]  }
  0x20   : > { %v2688_v61 = vld [vmem:[%s3088_s1 + $0x150] sm:$0xff]   ;;  %v2690_v63 = vld [vmem:[%s3088_s1 + $0x148] sm:$0xff]   ;;  %v2692_v1 = vld [vmem:[%s3088_s1 + $0x140] sm:$0xff]  }
  0x21   : > { %2399 = vmatpush3.bf16.msra.mxu0 %v2639_v10  ;;  %v2695_v2 = vld [vmem:[%s2819_s20 + $0x34] sm:$0xff]   ;;  %v2696_v5 = vld [vmem:[%s2819_s20 + $0x5c] sm:$0xff]   ;;  %v2705_v9 = vld [vmem:[%s2819_s20 + $0x64] sm:$0xff]  }
  0x22   : > { %2423 = vmatpush3.bf16.msra.mxu1 %v2640_v11  ;;  %2400 = vmatprep.subr.bf16.mxu0 %v2641_v14  ;;  %v2697_v3 = vld [vmem:[%s3088_s1 + $0x1b8] sm:$0xff]   ;;  %v2699_v6 = vld [vmem:[%s3088_s1 + $0x1b0] sm:$0xff]   ;;  %v2702_v10 = vld [vmem:[%s2819_s20 + $0x44] sm:$0xff]  }
  0x23   : > { %2424 = vmatprep.subr.bf16.mxu1 %v2642_v15  ;;  %v2698_v4 = vld [vmem:[%s3088_s1 + $0x1f8] sm:$0xff]   ;;  %v2700_v7 = vld [vmem:[%s3088_s1 + $0x1f0] sm:$0xff]   ;;  %v2703_v11 = vld [vmem:[%s3088_s1 + $0x1a8] sm:$0xff]  }
  0x24   : > { %v2701_v8 = vld [vmem:[%s2819_s20 + $0x3c] sm:$0xff]   ;;  %v2704_v12 = vld [vmem:[%s3088_s1 + $0x1e8] sm:$0xff]  }
  0x25   : > { %2401 = vmatpush3.bf16.msra.mxu0 %v2641_v14  ;;  %v2706_v13 = vld [vmem:[%s2819_s20 + $0x6c] sm:$0xff]   ;;  %v2707_v14 = vld [vmem:[%s3088_s1 + $0x1a0] sm:$0xff]  }
  0x26   : > { %2425 = vmatpush3.bf16.msra.mxu1 %v2642_v15  ;;  %2402 = vmatprep.subr.bf16.mxu0 %v2643_v16  ;;  %v2708_v15 = vld [vmem:[%s3088_s1 + $0x1e0] sm:$0xff]  }
  0x27   : > { %2426 = vmatprep.subr.bf16.mxu1 %v2644_v17 }
  0x29   : > { %2403 = vmatpush3.bf16.msra.mxu0 %v2643_v16  ;;  %v2717_v16 = vld [vmem:[%s2819_s20 + $0x8] sm:$0xff]  }
  0x2a   : > { %2427 = vmatpush3.bf16.msra.mxu1 %v2644_v17  ;;  %2436 = vmatprep.subr.bf16.mxu0 %v2649_v19  ;;  %v2718_v17 = vld [vmem:[%s2819_s20 + $0x30] sm:$0xff]  }
  0x2b   : > { %2460 = vmatprep.subr.bf16.mxu1 %v2650_v20 }
  0x2c   : > { %2405 = vmatmul.mubr.bf16.vlgmr.msra.gmra.mxu0 %v2647_v18  ;;  %v2709_v18 = vld [vmem:[%s3088_s1 + $0x198] sm:$0xff]  }
  0x2d   : > { %2429 = vmatmul.mubr.bf16.vlgmr.msra.gmra.mxu1 %v2648_v21  ;;  %2437 = vmatpush3.bf16.msra.mxu0 %v2649_v19  ;;  %v2710_v19 = vld [vmem:[%s3088_s1 + $0x1d8] sm:$0xff]   ;;  %v2712_v21 = vld [vmem:[%s3088_s1 + $0x1d0] sm:$0xff]  }
  0x2e   : > { %2461 = vmatpush3.bf16.msra.mxu1 %v2650_v20  ;;  %2438 = vmatprep.subr.bf16.mxu0 %v2651_v22  ;;  %v2711_v20 = vld [vmem:[%s3088_s1 + $0x190] sm:$0xff]  }
  0x2f   : > { %2462 = vmatprep.subr.bf16.mxu1 %v2652_v23  ;;  %2408 = vmatprep.mubr.bf16.mxu0 %v2659_v24  ;;  %v2715_v24 = vld [vmem:[%s3088_s1 + $0x180] sm:$0xff]  }
  0x30   : > { %2432 = vmatprep.mubr.bf16.mxu1 %v2660_v25  ;;  %v2716_v25 = vld [vmem:[%s3088_s1 + $0x1c0] sm:$0xff]  }
  0x31   : > { %2439 = vmatpush3.bf16.msra.mxu0 %v2651_v22  ;;  %v2713_v22 = vld [vmem:[%s3088_s1 + $0x188] sm:$0xff]  }
  0x32   : > { %2463 = vmatpush3.bf16.msra.mxu1 %v2652_v23  ;;  %2440 = vmatprep.subr.bf16.mxu0 %v2653_v26  ;;  %v2714_v23 = vld [vmem:[%s3088_s1 + $0x1c8] sm:$0xff]  }
  0x33   : > { %2464 = vmatprep.subr.bf16.mxu1 %v2654_v27 }
  0x34   : > { %2409 = vmatmul.mubr.bf16.gmra.mxu0 %v2661_v29  ;;  %v2722_v29 = vld [vmem:[%s3088_s1 + $0x230] sm:$0xff]  }
  0x35   : > { %2441 = vmatpush3.bf16.msra.mxu0 %v2653_v26  ;;  %2433 = vmatmul.mubr.bf16.gmra.mxu1 %v2662_v30  ;;  %v2721_v26 = vld [vmem:[%s3088_s1 + $0x238] sm:$0xff]  }
  0x36   : > { %2465 = vmatpush3.bf16.msra.mxu1 %v2654_v27  ;;  %2442 = vmatprep.subr.bf16.mxu0 %v2655_v28  ;;  %v2719_v27 = vld [vmem:[%s2819_s20 + $0x10] sm:$0xff]   ;;  %v2723_v30 = vld [vmem:[%s2819_s20 + $0x18] sm:$0xff]  }
  0x37   : > { %2466 = vmatprep.subr.bf16.mxu1 %v2656_v31  ;;  %2452 = vmatprep.mubr.bf16.mxu0 %v2669_v32  ;;  %v2725_v32 = vld [vmem:[%s3088_s1 + $0x228] sm:$0xff]  }
  0x38   : > { %2476 = vmatprep.mubr.bf16.mxu1 %v2670_v33  ;;  %v2724_v33 = vld [vmem:[%s2819_s20 + $0x20] sm:$0xff]  }
  0x39   : > { %2443 = vmatpush3.bf16.msra.mxu0 %v2655_v28  ;;  %v2720_v28 = vld [vmem:[%s2819_s20 + $0x38] sm:$0xff]  }
  0x3a   : > { %2467 = vmatpush3.bf16.msra.mxu1 %v2656_v31  ;;  %2444 = vmatprep.subr.bf16.mxu0 %v2657_v34  ;;  %v2726_v31 = vld [vmem:[%s2819_s20 + $0x40] sm:$0xff]  }
  0x3b   : > { %2468 = vmatprep.subr.bf16.mxu1 %v2658_v35 }
  0x3d   : > { %2445 = vmatpush3.bf16.msra.mxu0 %v2657_v34  ;;  %v2727_v34 = vld [vmem:[%s2819_s20 + $0x48] sm:$0xff]  }
  0x3e   : > { %2469 = vmatpush3.bf16.msra.mxu1 %v2658_v35  ;;  %2446 = vmatprep.subr.bf16.mxu0 %v2663_v36  ;;  %v2728_v35 = vld [vmem:[%s3088_s1 + $0x220] sm:$0xff]  }
  0x3f   : > { %2470 = vmatprep.subr.bf16.mxu1 %v2664_v37 }
  0x41   : > { %2447 = vmatpush3.bf16.msra.mxu0 %v2663_v36  ;;  %v2733_v36 = vld [vmem:[%s2819_s20 + $0x58] sm:$0xff]  }
  0x42   : > { %2471 = vmatpush3.bf16.msra.mxu1 %v2664_v37  ;;  %2448 = vmatprep.subr.bf16.mxu0 %v2665_v38  ;;  %v2734_v37 = vld [vmem:[%s2819_s20 + $0x68] sm:$0xff]  }
  0x43   : > { %2472 = vmatprep.subr.bf16.mxu1 %v2666_v39 }
  0x45   : > { %2449 = vmatpush3.bf16.msra.mxu0 %v2665_v38  ;;  %v2729_v38 = vld [vmem:[%s3088_s1 + $0x218] sm:$0xff]  }
  0x46   : > { %2473 = vmatpush3.bf16.msra.mxu1 %v2666_v39  ;;  %2450 = vmatprep.subr.bf16.mxu0 %v2667_v40  ;;  %v2730_v39 = vld [vmem:[%s3088_s1 + $0x210] sm:$0xff]  }
  0x47   : > { %2474 = vmatprep.subr.bf16.mxu1 %v2668_v41 }
  0x49   : > { %2451 = vmatpush3.bf16.msra.mxu0 %v2667_v40  ;;  %v2731_v40 = vld [vmem:[%s3088_s1 + $0x208] sm:$0xff]  }
  0x4a   : > { %2475 = vmatpush3.bf16.msra.mxu1 %v2668_v41  ;;  %2484 = vmatprep.subr.bf16.mxu0 %v2673_v43  ;;  %v2732_v41 = vld [vmem:[%s3088_s1 + $0x200] sm:$0xff]  }
  0x4b   : > { %2508 = vmatprep.subr.bf16.mxu1 %v2674_v44 }
  0x4c   : > { %2453 = vmatmul.mubr.bf16.vlgmr.msra.gmra.mxu0 %v2671_v42  ;;  %v2735_v42 = vld [vmem:[%s2819_s20 + $0x60] sm:$0xff]  }
  0x4d   : > { %2477 = vmatmul.mubr.bf16.vlgmr.msra.gmra.mxu1 %v2672_v45  ;;  %2485 = vmatpush3.bf16.msra.mxu0 %v2673_v43  ;;  %v2736_v43 = vld [vmem:[%s2819_s20 + $0x70] sm:$0xff]   ;;  %s2228_s20 = sshll.u32 %s3108_s19, 5 }
  0x4e   : > { %2509 = vmatpush3.bf16.msra.mxu1 %v2674_v44  ;;  %2486 = vmatprep.subr.bf16.mxu0 %v2675_v46  ;;  %s239_s12 = scalar_lea.vmem %s3091_s4, %s2228_s20  ;;  %s244_s22 = scalar_lea.vmem %s3092_s5, %s2228_s20 }
  0x4f   : > { %2510 = vmatprep.subr.bf16.mxu1 %v2676_v47  ;;  %2456 = vmatprep.mubr.bf16.mxu0 %v2677_v48 }
  0x50   : > { %2480 = vmatprep.mubr.bf16.mxu1 %v2681_v49 }
  0x51   : > { %2487 = vmatpush3.bf16.msra.mxu0 %v2675_v46 }
  0x52   : > { %2511 = vmatpush3.bf16.msra.mxu1 %v2676_v47  ;;  %2488 = vmatprep.subr.bf16.mxu0 %v2679_v51 }
  0x53   : > { %2512 = vmatprep.subr.bf16.mxu1 %v2680_v52 }
  0x54   : > { %2457 = vmatmul.mubr.bf16.gmra.mxu0 %v2678_v50 }
  0x55   : > { %2489 = vmatpush3.bf16.msra.mxu0 %v2679_v51  ;;  %2481 = vmatmul.mubr.bf16.gmra.mxu1 %v2682_v53 }
  0x56   : > { %2513 = vmatpush3.bf16.msra.mxu1 %v2680_v52  ;;  %2490 = vmatprep.subr.bf16.mxu0 %v2683_v54 }
  0x57   : > { %2514 = vmatprep.subr.bf16.mxu1 %v2684_v55  ;;  %2500 = vmatprep.mubr.bf16.mxu0 %v2693_v56 }
  0x58   : > { %2524 = vmatprep.mubr.bf16.mxu1 %v2694_v57 }
  0x59   : > { %2491 = vmatpush3.bf16.msra.mxu0 %v2683_v54 }
  0x5a   : > { %2515 = vmatpush3.bf16.msra.mxu1 %v2684_v55  ;;  %2492 = vmatprep.subr.bf16.mxu0 %v2685_v58 }
  0x5b   : > { %2516 = vmatprep.subr.bf16.mxu1 %v2686_v59 }
  0x5d   : > { %2493 = vmatpush3.bf16.msra.mxu0 %v2685_v58 }
  0x5e   : > { %2517 = vmatpush3.bf16.msra.mxu1 %v2686_v59  ;;  %2494 = vmatprep.subr.bf16.mxu0 %v2687_v60 }
  0x5f   : > { %2518 = vmatprep.subr.bf16.mxu1 %v2688_v61 }
  0x61   : > { %2495 = vmatpush3.bf16.msra.mxu0 %v2687_v60 }
  0x62   : > { %2519 = vmatpush3.bf16.msra.mxu1 %v2688_v61  ;;  %2496 = vmatprep.subr.bf16.mxu0 %v2689_v62 }
  0x63   : > { %2520 = vmatprep.subr.bf16.mxu1 %v2690_v63 }
  0x65   : > { %2497 = vmatpush3.bf16.msra.mxu0 %v2689_v62 }
  0x66   : > { %2521 = vmatpush3.bf16.msra.mxu1 %v2690_v63  ;;  %2498 = vmatprep.subr.bf16.mxu0 %v2691_v0 }
  0x67   : > { %2522 = vmatprep.subr.bf16.mxu1 %v2692_v1 }
  0x69   : > { %2499 = vmatpush3.bf16.msra.mxu0 %v2691_v0 }
  0x6a   : > { %2523 = vmatpush3.bf16.msra.mxu1 %v2692_v1  ;;  %2532 = vmatprep.subr.bf16.mxu0 %v2697_v3 }
  0x6b   : > { %2556 = vmatprep.subr.bf16.mxu1 %v2698_v4 }
  0x6c   : > { %2501 = vmatmul.mubr.bf16.vlgmr.msra.gmra.mxu0 %v2695_v2 }
  0x6d   : > { %2525 = vmatmul.mubr.bf16.vlgmr.msra.gmra.mxu1 %v2696_v5  ;;  %2533 = vmatpush3.bf16.msra.mxu0 %v2697_v3 }
  0x6e   : > { %2557 = vmatpush3.bf16.msra.mxu1 %v2698_v4  ;;  %2534 = vmatprep.subr.bf16.mxu0 %v2699_v6 }
  0x6f   : > { %2558 = vmatprep.subr.bf16.mxu1 %v2700_v7  ;;  %2504 = vmatprep.mubr.bf16.mxu0 %v2701_v8 }
  0x70   : > { %2528 = vmatprep.mubr.bf16.mxu1 %v2705_v9 }
  0x71   : > { %2535 = vmatpush3.bf16.msra.mxu0 %v2699_v6 }
  0x72   : > { %2559 = vmatpush3.bf16.msra.mxu1 %v2700_v7  ;;  %2536 = vmatprep.subr.bf16.mxu0 %v2703_v11 }
  0x73   : > { %2560 = vmatprep.subr.bf16.mxu1 %v2704_v12 }
  0x74   : > { %2505 = vmatmul.mubr.bf16.gmra.mxu0 %v2702_v10 }
  0x75   : > { %2537 = vmatpush3.bf16.msra.mxu0 %v2703_v11  ;;  %2529 = vmatmul.mubr.bf16.gmra.mxu1 %v2706_v13 }
  0x76   : > { %2561 = vmatpush3.bf16.msra.mxu1 %v2704_v12  ;;  %2538 = vmatprep.subr.bf16.mxu0 %v2707_v14 }
  0x77   : > { %2562 = vmatprep.subr.bf16.mxu1 %v2708_v15  ;;  %2548 = vmatprep.mubr.bf16.mxu0 %v2717_v16 }
  0x78   : > { %2572 = vmatprep.mubr.bf16.mxu1 %v2718_v17 }
  0x79   : > { %2539 = vmatpush3.bf16.msra.mxu0 %v2707_v14 }
  0x7a   : > { %2563 = vmatpush3.bf16.msra.mxu1 %v2708_v15  ;;  %2540 = vmatprep.subr.bf16.mxu0 %v2709_v18 }
  0x7b   : > { %2564 = vmatprep.subr.bf16.mxu1 %v2710_v19 }
  0x7d   : > { %2541 = vmatpush3.bf16.msra.mxu0 %v2709_v18 }
  0x7e   : > { %2565 = vmatpush3.bf16.msra.mxu1 %v2710_v19  ;;  %2542 = vmatprep.subr.bf16.mxu0 %v2711_v20 }
  0x7f   : > { %2566 = vmatprep.subr.bf16.mxu1 %v2712_v21 }
  0x81   : > { %2543 = vmatpush3.bf16.msra.mxu0 %v2711_v20 }
  0x82   : > { %2567 = vmatpush3.bf16.msra.mxu1 %v2712_v21  ;;  %2544 = vmatprep.subr.bf16.mxu0 %v2713_v22 }
  0x83   : > { %2568 = vmatprep.subr.bf16.mxu1 %v2714_v23 }
  0x85   : > { %2545 = vmatpush3.bf16.msra.mxu0 %v2713_v22 }
  0x86   : > { %2569 = vmatpush3.bf16.msra.mxu1 %v2714_v23  ;;  %2546 = vmatprep.subr.bf16.mxu0 %v2715_v24 }
  0x87   : > { %2570 = vmatprep.subr.bf16.mxu1 %v2716_v25 }
  0x89   : > { %2547 = vmatpush3.bf16.msra.mxu0 %v2715_v24 }
  0x8a   : > { %2571 = vmatpush3.bf16.msra.mxu1 %v2716_v25  ;;  %2580 = vmatprep.subr.bf16.mxu0 %v2721_v26 }
  0x8b   : > { %2604 = vmatprep.subr.bf16.mxu1 %v2721_v26 }
  0x8c   : > { %2549 = vmatmul.mubr.bf16.vlgmr.msra.gmra.mxu0 %v2719_v27 }
  0x8d   : > { %2573 = vmatmul.mubr.bf16.vlgmr.msra.gmra.mxu1 %v2720_v28  ;;  %2581 = vmatpush3.bf16.msra.mxu0 %v2721_v26 }
  0x8e   : > { %2612 = vmatpush3.bf16.msra.mxu1 %v2721_v26  ;;  %2582 = vmatprep.subr.bf16.mxu0 %v2722_v29 }
  0x8f   : > { %2605 = vmatprep.subr.bf16.mxu1 %v2722_v29  ;;  %2552 = vmatprep.mubr.bf16.mxu0 %v2723_v30 }
  0x90   : > { %2576 = vmatprep.mubr.bf16.mxu1 %v2726_v31 }
  0x91   : > { %2583 = vmatpush3.bf16.msra.mxu0 %v2722_v29 }
  0x92   : > { %2613 = vmatpush3.bf16.msra.mxu1 %v2722_v29  ;;  %2584 = vmatprep.subr.bf16.mxu0 %v2725_v32 }
  0x93   : > { %2606 = vmatprep.subr.bf16.mxu1 %v2725_v32 }
  0x94   : > { %2553 = vmatmul.mubr.bf16.gmra.mxu0 %v2724_v33 }
  0x95   : > { %2585 = vmatpush3.bf16.msra.mxu0 %v2725_v32  ;;  %2577 = vmatmul.mubr.bf16.gmra.mxu1 %v2727_v34 }
  0x96   : > { %2614 = vmatpush3.bf16.msra.mxu1 %v2725_v32  ;;  %2586 = vmatprep.subr.bf16.mxu0 %v2728_v35 }
  0x97   : > { %2607 = vmatprep.subr.bf16.mxu1 %v2728_v35  ;;  %2596 = vmatprep.mubr.bf16.mxu0 %v2733_v36 }
  0x98   : > { %2600 = vmatprep.mubr.bf16.mxu1 %v2734_v37 }
  0x99   : > { %2587 = vmatpush3.bf16.msra.mxu0 %v2728_v35 }
  0x9a   : > { %2615 = vmatpush3.bf16.msra.mxu1 %v2728_v35  ;;  %2588 = vmatprep.subr.bf16.mxu0 %v2729_v38 }
  0x9b   : > { %2608 = vmatprep.subr.bf16.mxu1 %v2729_v38 }
  0x9d   : > { %2589 = vmatpush3.bf16.msra.mxu0 %v2729_v38 }
  0x9e   : > { %2616 = vmatpush3.bf16.msra.mxu1 %v2729_v38  ;;  %2590 = vmatprep.subr.bf16.mxu0 %v2730_v39 }
  0x9f   : > { %2609 = vmatprep.subr.bf16.mxu1 %v2730_v39 }
  0xa1   : > { %2591 = vmatpush3.bf16.msra.mxu0 %v2730_v39 }
  0xa2   : > { %2617 = vmatpush3.bf16.msra.mxu1 %v2730_v39  ;;  %2592 = vmatprep.subr.bf16.mxu0 %v2731_v40 }
  0xa3   : > { %2610 = vmatprep.subr.bf16.mxu1 %v2731_v40 }
  0xa5   : > { %2593 = vmatpush3.bf16.msra.mxu0 %v2731_v40 }
  0xa6   : > { %2618 = vmatpush3.bf16.msra.mxu1 %v2731_v40  ;;  %2594 = vmatprep.subr.bf16.mxu0 %v2732_v41 }
  0xa7   : > { %2611 = vmatprep.subr.bf16.mxu1 %v2732_v41 }
  0xa9   : > { %2595 = vmatpush3.bf16.msra.mxu0 %v2732_v41 }
  0xaa   : > { %2619 = vmatpush3.bf16.msra.mxu1 %v2732_v41 }
  0xac   : > { %2597 = vmatmul.mubr.bf16.vlgmr.msra.gmra.mxu0 %v2735_v42 }
  0xad   : > { %2601 = vmatmul.mubr.bf16.vlgmr.msra.gmra.mxu1 %v2736_v43 }
  0xec   : > { %v2406_v44 = vpop.f32.mrf.mxu0 }
  0xed   : > { %v2430_v46 = vpop.f32.mrf.mxu1 }
  0xee   : > { %v402_v45 = vpop.f32.mrf.mxu0  ;;  %v548_v33 = vadd.f32 %v2430_v46, %v2406_v44 }
  0xef   : > { %v539_v48 = vpop.f32.mrf.mxu1 }
  0xf0   : > { %v2407_v47 = vpop.f32.mrf.mxu0  ;;  %v540_v37 = vadd.f32 %v539_v48, %v402_v45 }
  0xf1   : > { %v2431_v51 = vpop.f32.mrf.mxu1 }
  0xf2   : > { %v405_v49 = vpop.f32.mrf.mxu0  ;;  %v551_v41 = vadd.f32 %v2431_v51, %v2407_v47 }
  0xf3   : > { %v542_v53 = vpop.f32.mrf.mxu1 }
  0xf4   : > { %v2410_v50 = vpop.f32.mrf.mxu0 }
  0xf5   : > { %v2434_v54 = vpop.f32.mrf.mxu1 }
  0xf6   : > { %v418_v52 = vpop.f32.mrf.mxu0  ;;  %v564_v35 = vadd.f32 %v2434_v54, %v2410_v50 }
  0xf7   : > { %v555_v56 = vpop.f32.mrf.mxu1 }
  0xf8   : > { %v2411_v55 = vpop.f32.mrf.mxu0  ;;  %v556_v39 = vadd.f32 %v555_v56, %v418_v52 }
  0xf9   : > { %v2435_v59 = vpop.f32.mrf.mxu1 }
  0xfa   : > { %v421_v57 = vpop.f32.mrf.mxu0 }
  0xfb   : > { %v558_v61 = vpop.f32.mrf.mxu1 }
 0x10c   : > { %v2454_v58 = vpop.f32.mrf.mxu0 }
 0x10d   : > { %v2478_v62 = vpop.f32.mrf.mxu1  ;;  %v735_v38 = vadd.f32 %v2454_v58, %v548_v33 }
 0x10e   : > { %v702_v60 = vpop.f32.mrf.mxu0 }
 0x10f   : > { %v872_v0 = vpop.f32.mrf.mxu1  ;;  %v733_v42 = vadd.f32 %v702_v60, %v540_v37 }
 0x110   : > { %v2455_v63 = vpop.f32.mrf.mxu0 }
 0x111   : > { %v2479_v2 = vpop.f32.mrf.mxu1  ;;  %v736_v44 = vadd.f32 %v2455_v63, %v551_v41 }
 0x112   : > { %v705_v1 = vpop.f32.mrf.mxu0 }
 0x113   : > { %v3043_v4 = vpop.f32.mrf.mxu1 }
 0x114   : > { %v2458_v3 = vpop.f32.mrf.mxu0  ;;  %3093 = vst [vmem:[#allocation2_spill] sm:$0xff] %v3043_v4  ;;  %v905_v4 = vadd.f32 %v2478_v62, %v735_v38 }
 0x115   : > { %v2482_v6 = vpop.f32.mrf.mxu1  ;;  %v739_v40 = vadd.f32 %v2458_v3, %v564_v35 }
 0x116   : > { %v718_v5 = vpop.f32.mrf.mxu0 }
 0x117   : > { %v888_v8 = vpop.f32.mrf.mxu1  ;;  %v909_v50 = vadd.f32 %v2482_v6, %v739_v40 }
 0x118   : > { %v2459_v7 = vpop.f32.mrf.mxu0 }
 0x119   : > { %v2483_v10 = vpop.f32.mrf.mxu1 }
 0x11a   : > { %v721_v9 = vpop.f32.mrf.mxu0 }
 0x11b   : > { %v891_v12 = vpop.f32.mrf.mxu1 }
 0x12c   : > { %v2502_v11 = vpop.f32.mrf.mxu0 }
 0x12d   : > { %v2526_v14 = vpop.f32.mrf.mxu1  ;;  %v1075_v48 = vadd.f32 %v2502_v11, %v905_v4 }
 0x12e   : > { %v1042_v13 = vpop.f32.mrf.mxu0 }
 0x12f   : > { %v1212_v16 = vpop.f32.mrf.mxu1  ;;  %v1245_v63 = vadd.f32 %v2526_v14, %v1075_v48 }
 0x130   : > { %v2503_v15 = vpop.f32.mrf.mxu0 }
 0x131   : > { %v3045_v18 = vpop.f32.mrf.mxu1 }
 0x132   : > { %v1045_v17 = vpop.f32.mrf.mxu0  ;;  %3094 = vst [vmem:[#allocation3_spill] sm:$0xff] %v3045_v18 }
 0x133   : > { %v3047_v20 = vpop.f32.mrf.mxu1 }
 0x134   : > { %v2506_v19 = vpop.f32.mrf.mxu0  ;;  %3095 = vst [vmem:[#allocation4_spill] sm:$0xff] %v3047_v20  ;;  %v737_v20 = vadd.f32 %v718_v5, %v556_v39 }
 0x135   : > { %v2530_v21 = vpop.f32.mrf.mxu1  ;;  %v1079_v51 = vadd.f32 %v2506_v19, %v909_v50 }
 0x136   : > { %v1058_v22 = vpop.f32.mrf.mxu0  ;;  %v907_v52 = vadd.f32 %v888_v8, %v737_v20 }
 0x137   : > { %v1228_v23 = vpop.f32.mrf.mxu1 }
 0x138   : > { %v2507_v24 = vpop.f32.mrf.mxu0 }
 0x139   : > { %v2531_v25 = vpop.f32.mrf.mxu1  ;;  %v3101_v11 = vld [vmem:[#allocation3_spill] sm:$0xff] }
 0x13a   : > { %v1061_v26 = vpop.f32.mrf.mxu0 }
 0x13b   : > { %v3049_v28 = vpop.f32.mrf.mxu1 }
 0x13c   : > { %3096 = vst [vmem:[#allocation5_spill] sm:$0xff] %v3049_v28  ;;  %v567_v28 = vadd.f32 %v2435_v59, %v2411_v55  ;;  %v906_v55 = vadd.f32 %v2479_v2, %v736_v44 }
 0x13e   : > { %v740_v54 = vadd.f32 %v2459_v7, %v567_v28  ;;  %v2239_v28 = vld [vmem:[%s239_s12] sm:$0xff]  }
 0x13f   : > { %v2240_v40 = vunpack.c.l.bf16 %v2239_v28 }
 0x140   : > { %v910_v60 = vadd.f32 %v2483_v10, %v740_v54  ;;  %v2274_v10 = vld [vmem:[%s239_s12 + $0x8] sm:$0xff]  }
 0x143   : > { %v3103_v33 = vld [vmem:[#allocation5_spill] sm:$0xff] }
 0x14c   : > { %v2550_v27 = vpop.f32.mrf.mxu0 }
 0x14d   : > { %v2574_v29 = vpop.f32.mrf.mxu1  ;;  %v1415_v2 = vadd.f32 %v2550_v27, %v1245_v63  ;;  %v2275_v27 = vld [vmem:[%s239_s12 + $0x10] sm:$0xff]   ;;  %v2241_v63 = vunpack.c.h.bf16 %v2239_v28 }
 0x14e   : > { %v1382_v30 = vpop.f32.mrf.mxu0  ;;  %v2248_v44 = vunpack.c.l.bf16 %v2275_v27 }
 0x14f   : > { %v3051_v31 = vpop.f32.mrf.mxu1 }
 0x150   : > { %3097 = vst [vmem:[#allocation6_spill] sm:$0xff] %v3051_v31  ;;  %v2551_v32 = vpop.f32.mrf.mxu0  ;;  %v543_v31 = vadd.f32 %v542_v53, %v405_v49  ;;  %v1077_v49 = vadd.f32 %v1058_v22, %v907_v52  ;;  %v3100_v53 = vld [vmem:[#allocation2_spill] sm:$0xff]  ;;  %v2245_v52 = vunpack.c.h.bf16 %v2274_v10 }
 0x151   : > { %v3053_v34 = vpop.f32.mrf.mxu1 }
 0x152   : > { %3098 = vst [vmem:[#allocation7_spill] sm:$0xff] %v3053_v34  ;;  %v3055_v36 = vpop.f32.mrf.mxu0  ;;  %v559_v34 = vadd.f32 %v558_v61, %v421_v57  ;;  %v734_v45 = vadd.f32 %v705_v1, %v543_v31  ;;  %v1076_v57 = vadd.f32 %v2503_v15, %v906_v55  ;;  %v1080_v1 = vadd.f32 %v2507_v24, %v910_v60  ;;  %v2276_v15 = vld [vmem:[%s239_s12 + $0x18] sm:$0xff]  }
 0x153   : > { %3099 = vst [vmem:[#allocation8_spill] sm:$0xff] %v3055_v36  ;;  %v3057_v43 = vpop.f32.mrf.mxu1  ;;  %v903_v36 = vadd.f32 %v872_v0, %v733_v42  ;;  %v1249_v0 = vadd.f32 %v2530_v21, %v1079_v51  ;;  %v1247_v7 = vadd.f32 %v1228_v23, %v1077_v49  ;;  %v1585_v24 = vadd.f32 %v2574_v29, %v1415_v2  ;;  %v2216_v51 = vld [vmem:[%s3089_s2] ss:$0 sm:$0xff] }
 0x154   : > { %v2554_v18 = vpop.f32.mrf.mxu0  ;;  %v738_v47 = vadd.f32 %v721_v9, %v559_v34  ;;  %v904_v62 = vadd.f32 %v3100_v53, %v734_v45  ;;  %v1250_v19 = vadd.f32 %v2531_v25, %v1080_v1  ;;  %v2252_v35 = vunpack.c.l.bf16 %v2276_v15 }
 0x155   : > { %v2578_v46 = vpop.f32.mrf.mxu1  ;;  %v1073_v58 = vadd.f32 %v1042_v13, %v903_v36  ;;  %v1419_v9 = vadd.f32 %v2554_v18, %v1249_v0  ;;  %v1246_v13 = vadd.f32 %v3101_v11, %v1076_v57  ;;  %v2253_v60 = vunpack.c.h.bf16 %v2276_v15 }
 0x156   : > { %v1398_v56 = vpop.f32.mrf.mxu0  ;;  %v908_v61 = vadd.f32 %v891_v12, %v738_v47  ;;  %v1074_v5 = vadd.f32 %v1045_v17, %v904_v62  ;;  %v3102_v12 = vld [vmem:[#allocation4_spill] sm:$0xff]  ;;  %v2244_v17 = vunpack.c.l.bf16 %v2274_v10 }
 0x157   : > { %v1568_v59 = vpop.f32.mrf.mxu1  ;;  %v1243_v4 = vadd.f32 %v1212_v16, %v1073_v58  ;;  %v1417_v20 = vadd.f32 %v1398_v56, %v1247_v7  ;;  %v1416_v31 = vadd.f32 %v2551_v32, %v1246_v13  ;;  %v3104_v36 = vld [vmem:[#allocation6_spill] sm:$0xff]  ;;  %v2217_v7 = vld [vmem:[%s3090_s3] ss:$0 sm:$0xff] }
 0x158   : > { %v2555_v3 = vpop.f32.mrf.mxu0  ;;  %v1078_v8 = vadd.f32 %v1061_v26, %v908_v61  ;;  %v1244_v21 = vadd.f32 %v3102_v12, %v1074_v5  ;;  %v1589_v26 = vadd.f32 %v2578_v46, %v1419_v9 }
 0x159   : > { %v2579_v6 = vpop.f32.mrf.mxu1  ;;  %v1413_v14 = vadd.f32 %v1382_v30, %v1243_v4  ;;  %v1420_v18 = vadd.f32 %v2555_v3, %v1250_v19  ;;  %v1587_v41 = vadd.f32 %v1568_v59, %v1417_v20  ;;  %v3106_v50 = vld [vmem:[#allocation7_spill] sm:$0xff]  ;;  %v2249_v3 = vunpack.c.h.bf16 %v2275_v27 }
 0x15a   : > { %v1401_v22 = vpop.f32.mrf.mxu0  ;;  %v1248_v23 = vadd.f32 %v3103_v33, %v1078_v8  ;;  %v3105_v37 = vld [vmem:[#allocation8_spill] sm:$0xff]  ;;  %v1586_v54 = vadd.f32 %v3106_v50, %v1416_v31 }
 0x15b   : > { %v1571_v16 = vpop.f32.mrf.mxu1  ;;  %v1583_v30 = vadd.f32 %v3104_v36, %v1413_v14  ;;  %v1414_v25 = vadd.f32 %v3105_v37, %v1244_v21  ;;  %v1590_v47 = vadd.f32 %v2579_v6, %v1420_v18 }
 0x15c   : > { %v1418_v42 = vadd.f32 %v1401_v22, %v1248_v23 }
 0x15d   : > { %v1584_v59 = vadd.f32 %v3057_v43, %v1414_v25 }
 0x15e   : > { %v1588_v57 = vadd.f32 %v1571_v16, %v1418_v42 }
 0x16c   : > { %v2598_v34 = vpop.f32.mrf.mxu0 }
 0x16d   : > { %v1755_v38 = vadd.f32 %v2598_v34, %v1585_v24  ;;  %v2602_v39 = vpop.f32.mrf.mxu1 }
 0x16e   : > { %v1759_v29 = vadd.f32 %v2602_v39, %v1589_v26  ;;  %v1722_v32 = vpop.f32.mrf.mxu0 }
 0x16f   : > { %v1779_v45 = vadd.f32 %v2244_v17, %v1755_v38  ;;  %v1753_v48 = vadd.f32 %v1722_v32, %v1583_v30  ;;  %v1738_v46 = vpop.f32.mrf.mxu1 }
 0x170   : > { %v1783_v56 = vadd.f32 %v2252_v35, %v1759_v29  ;;  %v1757_v55 = vadd.f32 %v1738_v46, %v1587_v41  ;;  %v2599_v58 = vpop.f32.mrf.mxu0 }
 0x171   : > { %v1777_v49 = vadd.f32 %v2240_v40, %v1753_v48  ;;  %v1756_v53 = vadd.f32 %v2599_v58, %v1586_v54  ;;  %v2603_v62 = vpop.f32.mrf.mxu1  ;;  %v1794_v4 = vmul.f32 %v2216_v51, %v1779_v45 }
 0x172   : > { %v1781_v61 = vadd.f32 %v2248_v44, %v1757_v55  ;;  %v1760_v0 = vadd.f32 %v2603_v62, %v1590_v47  ;;  %v1725_v1 = vpop.f32.mrf.mxu0  ;;  %v1798_v8 = vmul.f32 %v2216_v51, %v1783_v56 }
 0x173   : > { %v1780_v5 = vadd.f32 %v2245_v52, %v1756_v53  ;;  %v1754_v2 = vadd.f32 %v1725_v1, %v1584_v59  ;;  %v1741_v6 = vpop.f32.mrf.mxu1  ;;  %v1792_v10 = vmul.f32 %v2216_v51, %v1777_v49  ;;  %v1809_v20 = vadd.f32 %v2217_v7, %v1794_v4 }
 0x174   : > { %v1784_v43 = vadd.f32 %v2253_v60, %v1760_v0  ;;  %v1758_v9 = vadd.f32 %v1741_v6, %v1588_v57  ;;  %v1796_v14 = vmul.f32 %v2216_v51, %v1781_v61  ;;  %v1813_v12 = vadd.f32 %v2217_v7, %v1798_v8 }
 0x175   : > { %v1795_v11 = vmul.f32 %v2216_v51, %v1780_v5  ;;  %v1778_v13 = vadd.f32 %v2241_v63, %v1754_v2  ;;  %v1807_v31 = vadd.f32 %v2217_v7, %v1792_v10 }
 0x176   : > { %v1799_v15 = vmul.f32 %v2216_v51, %v1784_v43  ;;  %v1782_v19 = vadd.f32 %v2249_v3, %v1758_v9  ;;  %v1811_v27 = vadd.f32 %v2217_v7, %v1796_v14 }
 0x177   : > { %v1810_v22 = vadd.f32 %v2217_v7, %v1795_v11  ;;  %v1793_v28 = vmul.f32 %v2216_v51, %v1778_v13 }
 0x178   : > { %v1814_v21 = vadd.f32 %v2217_v7, %v1799_v15  ;;  %v1797_v24 = vmul.f32 %v2216_v51, %v1782_v19 }
 0x179   : > { %v2262_v16 = vpack.c.bf16 %v1810_v22, %v1809_v20  ;;  %v1808_v17 = vadd.f32 %v2217_v7, %v1793_v28 }
 0x17a   : > { %v2272_v33 = vpack.c.bf16 %v1814_v21, %v1813_v12  ;;  %v1812_v23 = vadd.f32 %v2217_v7, %v1797_v24 }
 0x17b   : > { %2277 = vst [vmem:[%s244_s22 + $0x8] sm:$0xff] %v2262_v16   ;;  %v2257_v26 = vpack.c.bf16 %v1808_v17, %v1807_v31 }
 0x17c   : > { %2279 = vst [vmem:[%s244_s22 + $0x18] sm:$0xff] %v2272_v33   ;;  %v2267_v18 = vpack.c.bf16 %v1812_v23, %v1811_v27 }
 0x17d   : > { %2258 = vst [vmem:[%s244_s22] sm:$0xff] %v2257_v26  }
 0x17e   : > { %2278 = vst [vmem:[%s244_s22 + $0x10] sm:$0xff] %v2267_v18  }
 0x17f PF: > { %s15_s18 = sadd.s32 1, %s2743_s18  }
 0x180   : > { %p12_p4 = scmp.ge.s32.totalorder %s15_s18, 4  }
 0x182   :  { %14 = sbr.rel (!%p12_p4) target bundleno = 1 (0x1), region = 83 }

// kernel: _lambda_.40
= control target key start
LH: loop header
LB: loop body
LE: loop exit
PB: predicated region body
PF: predicated region fallthrough
CT: control target
= control target key end

     0   :  { %s148_s0 = inlined_call_operand.vmem [shape: bf16[32,128], index: 0, kind: input, shape index: {}]   ;;  %s149_s1 = inlined_call_operand.vmem [shape: f32[1,128], index: 1, kind: input, shape index: {}]   ;;  %s150_s2 = inlined_call_operand.vmem [shape: f32[1,128], index: 2, kind: input, shape index: {}]   ;;  %s151_s3 = inlined_call_operand.vmem [shape: bf16[32,128], index: 3, kind: output, shape index: {}]  }
   0x1   :  { %v91_v0 = vld [vmem:[%s148_s0] sm:$0xff]   ;;  %v108_v4 = vld [vmem:[%s148_s0 + $0x8] sm:$0xff]  }
   0x2   :  { %v80_v1 = vld [vmem:[%s149_s1] ss:$0 sm:$0xff]  ;;  %v92_v2 = vunpack.c.l.bf16 %v91_v0  ;;  %v93_v3 = vunpack.c.h.bf16 %v91_v0  ;;  %v96_v6 = vunpack.c.l.bf16 %v108_v4  ;;  %v97_v7 = vunpack.c.h.bf16 %v108_v4 }
   0x3   :  { %v81_v5 = vld [vmem:[%s150_s2] ss:$0 sm:$0xff] }
   0x4   :  { %v29_v8 = vmul.f32 %v92_v2, %v80_v1  ;;  %v30_v9 = vmul.f32 %v93_v3, %v80_v1  ;;  %v31_v10 = vmul.f32 %v96_v6, %v80_v1  ;;  %v32_v11 = vmul.f32 %v97_v7, %v80_v1 }
   0x6   :  { %v40_v12 = vadd.f32 %v81_v5, %v29_v8  ;;  %v41_v13 = vadd.f32 %v81_v5, %v30_v9  ;;  %v42_v14 = vadd.f32 %v81_v5, %v31_v10  ;;  %v43_v15 = vadd.f32 %v81_v5, %v32_v11 }
   0x8   :  { %vm44_vm0 = vcmp.ge.f32.partialorder %v40_v12, 0.0  ;;  %vm45_vm1 = vcmp.ge.f32.partialorder %v41_v13, 0.0  ;;  %v48_v16 = vmul.f32 0.1, %v40_v12  ;;  %v49_v17 = vmul.f32 0.1, %v41_v13 }
   0x9   :  { %vm46_vm2 = vcmp.ge.f32.partialorder %v42_v14, 0.0  ;;  %vm47_vm3 = vcmp.ge.f32.partialorder %v43_v15, 0.0  ;;  %v50_v18 = vmul.f32 0.1, %v42_v14  ;;  %v51_v19 = vmul.f32 0.1, %v43_v15 }
   0xa   :  { %v52_v20 = vsel %vm44_vm0, %v40_v12, %v48_v16  ;;  %v53_v21 = vsel %vm45_vm1, %v41_v13, %v49_v17 }
   0xb   :  { %v101_v22 = vpack.c.bf16 %v53_v21, %v52_v20  ;;  %v54_v23 = vsel %vm46_vm2, %v42_v14, %v50_v18  ;;  %v55_v24 = vsel %vm47_vm3, %v43_v15, %v51_v19 }
   0xc   :  { %v106_v25 = vpack.c.bf16 %v55_v24, %v54_v23 }
   0xd   :  { %102 = vst [vmem:[%s151_s3] sm:$0xff] %v101_v22  }
   0xe   :  { %109 = vst [vmem:[%s151_s3 + $0x8] sm:$0xff] %v106_v25  }

// kernel: _lambda_.34
= control target key start
LH: loop header
LB: loop body
LE: loop exit
PB: predicated region body
PF: predicated region fallthrough
CT: control target
= control target key end

     0   :  { %s2689_s15 = smov 0   ;;  %s3003_s0 = inlined_call_operand.vmem [shape: bf16[2,3,80,128], index: 0, kind: input, shape index: {}]   ;;  %s3004_s1 = inlined_call_operand.vmem [shape: bf16[9,128,128], index: 1, kind: input, shape index: {}]   ;;  %s3005_s2 = inlined_call_operand.vmem [shape: f32[1,128], index: 2, kind: input, shape index: {}]   ;;  %s3006_s3 = inlined_call_operand.vmem [shape: f32[1,128], index: 3, kind: input, shape index: {}]   ;;  %s3007_s4 = inlined_call_operand.vmem [shape: bf16[2,64,128], index: 4, kind: output, shape index: {}]  }
   0x1 LB: > { %s1863_s16 = sadd.s32 4294967295, %s2662_s15   ;;  %p1867_p0 = scmp.ge.s32.totalorder %s2662_s15, 1  ;;  %s2662_s15 = sphi %s2689_s15, %s14_s15  }
   0x2   : > { %p162_p1 = scmp.lt.s32.totalorder %s2662_s15, 3 }
   0x4   : > { %p163_p2 = pnand %p1867_p0, %p162_p1 }
   0x6   : > { %166 = sbr.rel (%p163_p2) target bundleno = 385 (0x181), region = 36 }
   0xb   : > { %v2548_v0 = vld [vmem:[%s3004_s1 + $0x78] sm:$0xff]   ;;  %p188_p3 = scmp.lt.s32.totalorder %s1863_s16, 1  ;;  %v2550_v2 = vld [vmem:[%s3004_s1 + $0x70] sm:$0xff]   ;;  %v2552_v4 = vld [vmem:[%s3004_s1 + $0x68] sm:$0xff]  }
   0xc   : > { %v2549_v1 = vld [vmem:[%s3004_s1 + $0x38] sm:$0xff]   ;;  %2307 = vmatprep.subr.bf16.mxu0 %v2548_v0  ;;  %v2551_v3 = vld [vmem:[%s3004_s1 + $0x30] sm:$0xff]   ;;  %v2553_v5 = vld [vmem:[%s3004_s1 + $0x28] sm:$0xff]  }
   0xd   : > { %2331 = vmatprep.subr.bf16.mxu1 %v2549_v1  ;;  %2308 = vmatpush3.bf16.msra.mxu0 %v2548_v0  ;;  %s3023_s16 = smov (!%p188_p3, %s1863_s16), 1  ;;  %v2554_v6 = vld [vmem:[%s3004_s1 + $0x60] sm:$0xff]   ;;  %v2556_v8 = vld [vmem:[%s3004_s1 + $0x58] sm:$0xff]   ;;  %v2558_v10 = vld [vmem:[%s3004_s1 + $0x50] sm:$0xff]  }
   0xe   : > { %2332 = vmatpush3.bf16.msra.mxu1 %v2549_v1  ;;  %2309 = vmatprep.subr.bf16.mxu0 %v2550_v2  ;;  %v2555_v7 = vld [vmem:[%s3004_s1 + $0x20] sm:$0xff]   ;;  %s2539_s7 = smul.u32 120, %s3023_s16  ;;  %v2557_v9 = vld [vmem:[%s3004_s1 + $0x18] sm:$0xff]   ;;  %v2559_v11 = vld [vmem:[%s3004_s1 + $0x10] sm:$0xff]   ;;  %s2167_s29 = sshll.u32 %s3023_s16, 5 }
   0xf   : > { %2333 = vmatprep.subr.bf16.mxu1 %v2551_v3  ;;  %v2560_v14 = vld [vmem:[%s3004_s1 + $0x48] sm:$0xff]   ;;  %v2562_v16 = vld [vmem:[%s3004_s1 + $0x40] sm:$0xff]   ;;  %v2568_v19 = vld [vmem:[%s3004_s1 + $0xb8] sm:$0xff]   ;;  %s197_s6 = scalar_lea.vmem %s3007_s4, %s2167_s29 }
  0x10   : > { %s2733_s14 = scalar_lea.vmem %s3003_s0, %s2539_s7  ;;  %v2561_v15 = vld [vmem:[%s3004_s1 + $0x8] sm:$0xff]   ;;  %v2563_v17 = vld [vmem:[%s3004_s1] sm:$0xff]   ;;  %v2569_v20 = vld [vmem:[%s3004_s1 + $0xf8] sm:$0xff]  }
  0x11   : > { %2310 = vmatpush3.bf16.msra.mxu0 %v2550_v2  ;;  %v2564_v12 = vld [vmem:[%s2733_s14 + $0x28] sm:$0xff]   ;;  %v2565_v13 = vld [vmem:[%s2733_s14] sm:$0xff]   ;;  %v2566_v18 = vld [vmem:[%s2733_s14 + $0x30] sm:$0xff]  }
  0x12   : > { %2334 = vmatpush3.bf16.msra.mxu1 %v2551_v3  ;;  %2311 = vmatprep.subr.bf16.mxu0 %v2552_v4  ;;  %v2567_v21 = vld [vmem:[%s2733_s14 + $0x8] sm:$0xff]   ;;  %v2570_v22 = vld [vmem:[%s3004_s1 + $0xb0] sm:$0xff]   ;;  %v2578_v24 = vld [vmem:[%s2733_s14 + $0x38] sm:$0xff]  }
  0x13   : > { %2335 = vmatprep.subr.bf16.mxu1 %v2553_v5  ;;  %2323 = vmatprep.mubr.bf16.mxu0 %v2564_v12  ;;  %v2571_v23 = vld [vmem:[%s3004_s1 + $0xf0] sm:$0xff]   ;;  %v2572_v26 = vld [vmem:[%s3004_s1 + $0xa8] sm:$0xff]   ;;  %v2574_v28 = vld [vmem:[%s3004_s1 + $0xa0] sm:$0xff]  }
  0x14   : > { %2347 = vmatprep.mubr.bf16.mxu1 %v2565_v13  ;;  %v2579_v25 = vld [vmem:[%s2733_s14 + $0x10] sm:$0xff]   ;;  %v2573_v27 = vld [vmem:[%s3004_s1 + $0xe8] sm:$0xff]   ;;  %v2580_v29 = vld [vmem:[%s2733_s14 + $0x40] sm:$0xff]  }
  0x15   : > { %2312 = vmatpush3.bf16.msra.mxu0 %v2552_v4  ;;  %v2581_v30 = vld [vmem:[%s2733_s14 + $0x18] sm:$0xff]   ;;  %v2575_v31 = vld [vmem:[%s3004_s1 + $0xe0] sm:$0xff]   ;;  %v2588_v32 = vld [vmem:[%s2733_s14 + $0x50] sm:$0xff]  }
  0x16   : > { %2336 = vmatpush3.bf16.msra.mxu1 %v2553_v5  ;;  %2313 = vmatprep.subr.bf16.mxu0 %v2554_v6  ;;  %v2589_v33 = vld [vmem:[%s2733_s14 + $0x4] sm:$0xff]   ;;  %v2576_v34 = vld [vmem:[%s3004_s1 + $0x98] sm:$0xff]   ;;  %v2582_v36 = vld [vmem:[%s3004_s1 + $0x90] sm:$0xff]  }
  0x17   : > { %2337 = vmatprep.subr.bf16.mxu1 %v2555_v7  ;;  %v2577_v35 = vld [vmem:[%s3004_s1 + $0xd8] sm:$0xff]   ;;  %v2583_v37 = vld [vmem:[%s3004_s1 + $0xd0] sm:$0xff]   ;;  %v2584_v38 = vld [vmem:[%s3004_s1 + $0x88] sm:$0xff]  }
  0x18   : > { %v2585_v39 = vld [vmem:[%s3004_s1 + $0xc8] sm:$0xff]   ;;  %v2586_v40 = vld [vmem:[%s3004_s1 + $0x80] sm:$0xff]   ;;  %v2590_v42 = vld [vmem:[%s2733_s14 + $0x58] sm:$0xff]  }
  0x19   : > { %2314 = vmatpush3.bf16.msra.mxu0 %v2554_v6  ;;  %v2587_v41 = vld [vmem:[%s3004_s1 + $0xc0] sm:$0xff]   ;;  %v2592_v43 = vld [vmem:[%s3004_s1 + $0x138] sm:$0xff]   ;;  %v2591_v45 = vld [vmem:[%s2733_s14 + $0xc] sm:$0xff]  }
  0x1a   : > { %2338 = vmatpush3.bf16.msra.mxu1 %v2555_v7  ;;  %2315 = vmatprep.subr.bf16.mxu0 %v2556_v8  ;;  %v2593_v44 = vld [vmem:[%s3004_s1 + $0x178] sm:$0xff]   ;;  %v2594_v46 = vld [vmem:[%s3004_s1 + $0x130] sm:$0xff]   ;;  %v2596_v48 = vld [vmem:[%s2733_s14 + $0x60] sm:$0xff]  }
  0x1b   : > { %2339 = vmatprep.subr.bf16.mxu1 %v2557_v9  ;;  %v2595_v47 = vld [vmem:[%s3004_s1 + $0x170] sm:$0xff]   ;;  %v2597_v50 = vld [vmem:[%s2733_s14 + $0x68] sm:$0xff]   ;;  %v2601_v53 = vld [vmem:[%s2733_s14 + $0x1c] sm:$0xff]  }
  0x1c   : > { %v2600_v49 = vld [vmem:[%s2733_s14 + $0x14] sm:$0xff]   ;;  %v2598_v51 = vld [vmem:[%s3004_s1 + $0x128] sm:$0xff]   ;;  %v2602_v54 = vld [vmem:[%s3004_s1 + $0x120] sm:$0xff]  }
  0x1d   : > { %2316 = vmatpush3.bf16.msra.mxu0 %v2556_v8  ;;  %v2599_v52 = vld [vmem:[%s3004_s1 + $0x168] sm:$0xff]   ;;  %v2603_v55 = vld [vmem:[%s3004_s1 + $0x160] sm:$0xff]   ;;  %v2613_v57 = vld [vmem:[%s2733_s14 + $0x54] sm:$0xff]  }
  0x1e   : > { %2340 = vmatpush3.bf16.msra.mxu1 %v2557_v9  ;;  %2317 = vmatprep.subr.bf16.mxu0 %v2558_v10  ;;  %v2612_v56 = vld [vmem:[%s2733_s14 + $0x2c] sm:$0xff]   ;;  %v2604_v58 = vld [vmem:[%s3004_s1 + $0x118] sm:$0xff]   ;;  %v2610_v0 = vld [vmem:[%s3004_s1 + $0x100] sm:$0xff]  }
  0x1f   : > { %2341 = vmatprep.subr.bf16.mxu1 %v2559_v11  ;;  %v2605_v59 = vld [vmem:[%s3004_s1 + $0x158] sm:$0xff]   ;;  %v2606_v60 = vld [vmem:[%s3004_s1 + $0x110] sm:$0xff]   ;;  %v2608_v62 = vld [vmem:[%s3004_s1 + $0x108] sm:$0xff]  }
  0x20   : > { %v2607_v61 = vld [vmem:[%s3004_s1 + $0x150] sm:$0xff]   ;;  %v2609_v63 = vld [vmem:[%s3004_s1 + $0x148] sm:$0xff]   ;;  %v2611_v1 = vld [vmem:[%s3004_s1 + $0x140] sm:$0xff]  }
  0x21   : > { %2318 = vmatpush3.bf16.msra.mxu0 %v2558_v10  ;;  %v2614_v2 = vld [vmem:[%s2733_s14 + $0x34] sm:$0xff]   ;;  %v2615_v5 = vld [vmem:[%s2733_s14 + $0x5c] sm:$0xff]   ;;  %v2624_v9 = vld [vmem:[%s2733_s14 + $0x64] sm:$0xff]  }
  0x22   : > { %2342 = vmatpush3.bf16.msra.mxu1 %v2559_v11  ;;  %2319 = vmatprep.subr.bf16.mxu0 %v2560_v14  ;;  %v2616_v3 = vld [vmem:[%s3004_s1 + $0x1b8] sm:$0xff]   ;;  %v2618_v6 = vld [vmem:[%s3004_s1 + $0x1b0] sm:$0xff]   ;;  %v2621_v10 = vld [vmem:[%s2733_s14 + $0x44] sm:$0xff]  }
  0x23   : > { %2343 = vmatprep.subr.bf16.mxu1 %v2561_v15  ;;  %v2617_v4 = vld [vmem:[%s3004_s1 + $0x1f8] sm:$0xff]   ;;  %v2619_v7 = vld [vmem:[%s3004_s1 + $0x1f0] sm:$0xff]   ;;  %v2622_v11 = vld [vmem:[%s3004_s1 + $0x1a8] sm:$0xff]  }
  0x24   : > { %v2620_v8 = vld [vmem:[%s2733_s14 + $0x3c] sm:$0xff]   ;;  %v2623_v12 = vld [vmem:[%s3004_s1 + $0x1e8] sm:$0xff]  }
  0x25   : > { %2320 = vmatpush3.bf16.msra.mxu0 %v2560_v14  ;;  %v2625_v13 = vld [vmem:[%s2733_s14 + $0x6c] sm:$0xff]   ;;  %v2626_v14 = vld [vmem:[%s3004_s1 + $0x1a0] sm:$0xff]  }
  0x26   : > { %2344 = vmatpush3.bf16.msra.mxu1 %v2561_v15  ;;  %2321 = vmatprep.subr.bf16.mxu0 %v2562_v16  ;;  %v2627_v15 = vld [vmem:[%s3004_s1 + $0x1e0] sm:$0xff]  }
  0x27   : > { %2345 = vmatprep.subr.bf16.mxu1 %v2563_v17 }
  0x29   : > { %2322 = vmatpush3.bf16.msra.mxu0 %v2562_v16  ;;  %v2636_v16 = vld [vmem:[%s2733_s14 + $0x8] sm:$0xff]  }
  0x2a   : > { %2346 = vmatpush3.bf16.msra.mxu1 %v2563_v17  ;;  %2355 = vmatprep.subr.bf16.mxu0 %v2568_v19  ;;  %v2637_v17 = vld [vmem:[%s2733_s14 + $0x30] sm:$0xff]  }
  0x2b   : > { %2379 = vmatprep.subr.bf16.mxu1 %v2569_v20 }
  0x2c   : > { %2324 = vmatmul.mubr.bf16.vlgmr.msra.gmra.mxu0 %v2566_v18  ;;  %v2628_v18 = vld [vmem:[%s3004_s1 + $0x198] sm:$0xff]  }
  0x2d   : > { %2348 = vmatmul.mubr.bf16.vlgmr.msra.gmra.mxu1 %v2567_v21  ;;  %2356 = vmatpush3.bf16.msra.mxu0 %v2568_v19  ;;  %v2629_v19 = vld [vmem:[%s3004_s1 + $0x1d8] sm:$0xff]   ;;  %v2631_v21 = vld [vmem:[%s3004_s1 + $0x1d0] sm:$0xff]  }
  0x2e   : > { %2380 = vmatpush3.bf16.msra.mxu1 %v2569_v20  ;;  %2357 = vmatprep.subr.bf16.mxu0 %v2570_v22  ;;  %v2630_v20 = vld [vmem:[%s3004_s1 + $0x190] sm:$0xff]  }
  0x2f   : > { %2381 = vmatprep.subr.bf16.mxu1 %v2571_v23  ;;  %2327 = vmatprep.mubr.bf16.mxu0 %v2578_v24  ;;  %v2634_v24 = vld [vmem:[%s3004_s1 + $0x180] sm:$0xff]  }
  0x30   : > { %2351 = vmatprep.mubr.bf16.mxu1 %v2579_v25  ;;  %v2635_v25 = vld [vmem:[%s3004_s1 + $0x1c0] sm:$0xff]  }
  0x31   : > { %2358 = vmatpush3.bf16.msra.mxu0 %v2570_v22  ;;  %v2632_v22 = vld [vmem:[%s3004_s1 + $0x188] sm:$0xff]  }
  0x32   : > { %2382 = vmatpush3.bf16.msra.mxu1 %v2571_v23  ;;  %2359 = vmatprep.subr.bf16.mxu0 %v2572_v26  ;;  %v2633_v23 = vld [vmem:[%s3004_s1 + $0x1c8] sm:$0xff]  }
  0x33   : > { %2383 = vmatprep.subr.bf16.mxu1 %v2573_v27 }
  0x34   : > { %2328 = vmatmul.mubr.bf16.gmra.mxu0 %v2580_v29  ;;  %v2641_v29 = vld [vmem:[%s3004_s1 + $0x230] sm:$0xff]  }
  0x35   : > { %2360 = vmatpush3.bf16.msra.mxu0 %v2572_v26  ;;  %2352 = vmatmul.mubr.bf16.gmra.mxu1 %v2581_v30  ;;  %v2640_v26 = vld [vmem:[%s3004_s1 + $0x238] sm:$0xff]  }
  0x36   : > { %2384 = vmatpush3.bf16.msra.mxu1 %v2573_v27  ;;  %2361 = vmatprep.subr.bf16.mxu0 %v2574_v28  ;;  %v2638_v27 = vld [vmem:[%s2733_s14 + $0x10] sm:$0xff]   ;;  %v2642_v30 = vld [vmem:[%s2733_s14 + $0x18] sm:$0xff]  }
  0x37   : > { %2385 = vmatprep.subr.bf16.mxu1 %v2575_v31  ;;  %2371 = vmatprep.mubr.bf16.mxu0 %v2588_v32  ;;  %v2644_v32 = vld [vmem:[%s3004_s1 + $0x228] sm:$0xff]  }
  0x38   : > { %2395 = vmatprep.mubr.bf16.mxu1 %v2589_v33  ;;  %v2643_v33 = vld [vmem:[%s2733_s14 + $0x20] sm:$0xff]  }
  0x39   : > { %2362 = vmatpush3.bf16.msra.mxu0 %v2574_v28  ;;  %v2639_v28 = vld [vmem:[%s2733_s14 + $0x38] sm:$0xff]  }
  0x3a   : > { %2386 = vmatpush3.bf16.msra.mxu1 %v2575_v31  ;;  %2363 = vmatprep.subr.bf16.mxu0 %v2576_v34  ;;  %v2645_v31 = vld [vmem:[%s2733_s14 + $0x40] sm:$0xff]  }
  0x3b   : > { %2387 = vmatprep.subr.bf16.mxu1 %v2577_v35 }
  0x3d   : > { %2364 = vmatpush3.bf16.msra.mxu0 %v2576_v34  ;;  %v2646_v34 = vld [vmem:[%s2733_s14 + $0x48] sm:$0xff]  }
  0x3e   : > { %2388 = vmatpush3.bf16.msra.mxu1 %v2577_v35  ;;  %2365 = vmatprep.subr.bf16.mxu0 %v2582_v36  ;;  %v2647_v35 = vld [vmem:[%s3004_s1 + $0x220] sm:$0xff]  }
  0x3f   : > { %2389 = vmatprep.subr.bf16.mxu1 %v2583_v37 }
  0x41   : > { %2366 = vmatpush3.bf16.msra.mxu0 %v2582_v36  ;;  %v2652_v36 = vld [vmem:[%s2733_s14 + $0x58] sm:$0xff]  }
  0x42   : > { %2390 = vmatpush3.bf16.msra.mxu1 %v2583_v37  ;;  %2367 = vmatprep.subr.bf16.mxu0 %v2584_v38  ;;  %v2653_v37 = vld [vmem:[%s2733_s14 + $0x68] sm:$0xff]  }
  0x43   : > { %2391 = vmatprep.subr.bf16.mxu1 %v2585_v39 }
  0x45   : > { %2368 = vmatpush3.bf16.msra.mxu0 %v2584_v38  ;;  %v2648_v38 = vld [vmem:[%s3004_s1 + $0x218] sm:$0xff]  }
  0x46   : > { %2392 = vmatpush3.bf16.msra.mxu1 %v2585_v39  ;;  %2369 = vmatprep.subr.bf16.mxu0 %v2586_v40  ;;  %v2649_v39 = vld [vmem:[%s3004_s1 + $0x210] sm:$0xff]  }
  0x47   : > { %2393 = vmatprep.subr.bf16.mxu1 %v2587_v41 }
  0x49   : > { %2370 = vmatpush3.bf16.msra.mxu0 %v2586_v40  ;;  %v2650_v40 = vld [vmem:[%s3004_s1 + $0x208] sm:$0xff]  }
  0x4a   : > { %2394 = vmatpush3.bf16.msra.mxu1 %v2587_v41  ;;  %2403 = vmatprep.subr.bf16.mxu0 %v2592_v43  ;;  %v2651_v41 = vld [vmem:[%s3004_s1 + $0x200] sm:$0xff]  }
  0x4b   : > { %2427 = vmatprep.subr.bf16.mxu1 %v2593_v44 }
  0x4c   : > { %2372 = vmatmul.mubr.bf16.vlgmr.msra.gmra.mxu0 %v2590_v42  ;;  %v2654_v42 = vld [vmem:[%s2733_s14 + $0x60] sm:$0xff]  }
  0x4d   : > { %2396 = vmatmul.mubr.bf16.vlgmr.msra.gmra.mxu1 %v2591_v45  ;;  %2404 = vmatpush3.bf16.msra.mxu0 %v2592_v43  ;;  %v2655_v43 = vld [vmem:[%s2733_s14 + $0x70] sm:$0xff]  }
  0x4e   : > { %2428 = vmatpush3.bf16.msra.mxu1 %v2593_v44  ;;  %2405 = vmatprep.subr.bf16.mxu0 %v2594_v46 }
  0x4f   : > { %2429 = vmatprep.subr.bf16.mxu1 %v2595_v47  ;;  %2375 = vmatprep.mubr.bf16.mxu0 %v2596_v48 }
  0x50   : > { %2399 = vmatprep.mubr.bf16.mxu1 %v2600_v49 }
  0x51   : > { %2406 = vmatpush3.bf16.msra.mxu0 %v2594_v46 }
  0x52   : > { %2430 = vmatpush3.bf16.msra.mxu1 %v2595_v47  ;;  %2407 = vmatprep.subr.bf16.mxu0 %v2598_v51 }
  0x53   : > { %2431 = vmatprep.subr.bf16.mxu1 %v2599_v52 }
  0x54   : > { %2376 = vmatmul.mubr.bf16.gmra.mxu0 %v2597_v50 }
  0x55   : > { %2408 = vmatpush3.bf16.msra.mxu0 %v2598_v51  ;;  %2400 = vmatmul.mubr.bf16.gmra.mxu1 %v2601_v53 }
  0x56   : > { %2432 = vmatpush3.bf16.msra.mxu1 %v2599_v52  ;;  %2409 = vmatprep.subr.bf16.mxu0 %v2602_v54 }
  0x57   : > { %2433 = vmatprep.subr.bf16.mxu1 %v2603_v55  ;;  %2419 = vmatprep.mubr.bf16.mxu0 %v2612_v56 }
  0x58   : > { %2443 = vmatprep.mubr.bf16.mxu1 %v2613_v57 }
  0x59   : > { %2410 = vmatpush3.bf16.msra.mxu0 %v2602_v54 }
  0x5a   : > { %2434 = vmatpush3.bf16.msra.mxu1 %v2603_v55  ;;  %2411 = vmatprep.subr.bf16.mxu0 %v2604_v58 }
  0x5b   : > { %2435 = vmatprep.subr.bf16.mxu1 %v2605_v59 }
  0x5d   : > { %2412 = vmatpush3.bf16.msra.mxu0 %v2604_v58 }
  0x5e   : > { %2436 = vmatpush3.bf16.msra.mxu1 %v2605_v59  ;;  %2413 = vmatprep.subr.bf16.mxu0 %v2606_v60 }
  0x5f   : > { %2437 = vmatprep.subr.bf16.mxu1 %v2607_v61 }
  0x61   : > { %2414 = vmatpush3.bf16.msra.mxu0 %v2606_v60 }
  0x62   : > { %2438 = vmatpush3.bf16.msra.mxu1 %v2607_v61  ;;  %2415 = vmatprep.subr.bf16.mxu0 %v2608_v62 }
  0x63   : > { %2439 = vmatprep.subr.bf16.mxu1 %v2609_v63 }
  0x65   : > { %2416 = vmatpush3.bf16.msra.mxu0 %v2608_v62 }
  0x66   : > { %2440 = vmatpush3.bf16.msra.mxu1 %v2609_v63  ;;  %2417 = vmatprep.subr.bf16.mxu0 %v2610_v0 }
  0x67   : > { %2441 = vmatprep.subr.bf16.mxu1 %v2611_v1 }
  0x69   : > { %2418 = vmatpush3.bf16.msra.mxu0 %v2610_v0 }
  0x6a   : > { %2442 = vmatpush3.bf16.msra.mxu1 %v2611_v1  ;;  %2451 = vmatprep.subr.bf16.mxu0 %v2616_v3 }
  0x6b   : > { %2475 = vmatprep.subr.bf16.mxu1 %v2617_v4 }
  0x6c   : > { %2420 = vmatmul.mubr.bf16.vlgmr.msra.gmra.mxu0 %v2614_v2 }
  0x6d   : > { %2444 = vmatmul.mubr.bf16.vlgmr.msra.gmra.mxu1 %v2615_v5  ;;  %2452 = vmatpush3.bf16.msra.mxu0 %v2616_v3 }
  0x6e   : > { %2476 = vmatpush3.bf16.msra.mxu1 %v2617_v4  ;;  %2453 = vmatprep.subr.bf16.mxu0 %v2618_v6 }
  0x6f   : > { %2477 = vmatprep.subr.bf16.mxu1 %v2619_v7  ;;  %2423 = vmatprep.mubr.bf16.mxu0 %v2620_v8 }
  0x70   : > { %2447 = vmatprep.mubr.bf16.mxu1 %v2624_v9 }
  0x71   : > { %2454 = vmatpush3.bf16.msra.mxu0 %v2618_v6 }
  0x72   : > { %2478 = vmatpush3.bf16.msra.mxu1 %v2619_v7  ;;  %2455 = vmatprep.subr.bf16.mxu0 %v2622_v11 }
  0x73   : > { %2479 = vmatprep.subr.bf16.mxu1 %v2623_v12 }
  0x74   : > { %2424 = vmatmul.mubr.bf16.gmra.mxu0 %v2621_v10 }
  0x75   : > { %2456 = vmatpush3.bf16.msra.mxu0 %v2622_v11  ;;  %2448 = vmatmul.mubr.bf16.gmra.mxu1 %v2625_v13 }
  0x76   : > { %2480 = vmatpush3.bf16.msra.mxu1 %v2623_v12  ;;  %2457 = vmatprep.subr.bf16.mxu0 %v2626_v14 }
  0x77   : > { %2481 = vmatprep.subr.bf16.mxu1 %v2627_v15  ;;  %2467 = vmatprep.mubr.bf16.mxu0 %v2636_v16 }
  0x78   : > { %2491 = vmatprep.mubr.bf16.mxu1 %v2637_v17 }
  0x79   : > { %2458 = vmatpush3.bf16.msra.mxu0 %v2626_v14 }
  0x7a   : > { %2482 = vmatpush3.bf16.msra.mxu1 %v2627_v15  ;;  %2459 = vmatprep.subr.bf16.mxu0 %v2628_v18 }
  0x7b   : > { %2483 = vmatprep.subr.bf16.mxu1 %v2629_v19 }
  0x7d   : > { %2460 = vmatpush3.bf16.msra.mxu0 %v2628_v18 }
  0x7e   : > { %2484 = vmatpush3.bf16.msra.mxu1 %v2629_v19  ;;  %2461 = vmatprep.subr.bf16.mxu0 %v2630_v20 }
  0x7f   : > { %2485 = vmatprep.subr.bf16.mxu1 %v2631_v21 }
  0x81   : > { %2462 = vmatpush3.bf16.msra.mxu0 %v2630_v20 }
  0x82   : > { %2486 = vmatpush3.bf16.msra.mxu1 %v2631_v21  ;;  %2463 = vmatprep.subr.bf16.mxu0 %v2632_v22 }
  0x83   : > { %2487 = vmatprep.subr.bf16.mxu1 %v2633_v23 }
  0x85   : > { %2464 = vmatpush3.bf16.msra.mxu0 %v2632_v22 }
  0x86   : > { %2488 = vmatpush3.bf16.msra.mxu1 %v2633_v23  ;;  %2465 = vmatprep.subr.bf16.mxu0 %v2634_v24 }
  0x87   : > { %2489 = vmatprep.subr.bf16.mxu1 %v2635_v25 }
  0x89   : > { %2466 = vmatpush3.bf16.msra.mxu0 %v2634_v24 }
  0x8a   : > { %2490 = vmatpush3.bf16.msra.mxu1 %v2635_v25  ;;  %2499 = vmatprep.subr.bf16.mxu0 %v2640_v26 }
  0x8b   : > { %2523 = vmatprep.subr.bf16.mxu1 %v2640_v26 }
  0x8c   : > { %2468 = vmatmul.mubr.bf16.vlgmr.msra.gmra.mxu0 %v2638_v27 }
  0x8d   : > { %2492 = vmatmul.mubr.bf16.vlgmr.msra.gmra.mxu1 %v2639_v28  ;;  %2500 = vmatpush3.bf16.msra.mxu0 %v2640_v26 }
  0x8e   : > { %2531 = vmatpush3.bf16.msra.mxu1 %v2640_v26  ;;  %2501 = vmatprep.subr.bf16.mxu0 %v2641_v29 }
  0x8f   : > { %2524 = vmatprep.subr.bf16.mxu1 %v2641_v29  ;;  %2471 = vmatprep.mubr.bf16.mxu0 %v2642_v30 }
  0x90   : > { %2495 = vmatprep.mubr.bf16.mxu1 %v2645_v31 }
  0x91   : > { %2502 = vmatpush3.bf16.msra.mxu0 %v2641_v29 }
  0x92   : > { %2532 = vmatpush3.bf16.msra.mxu1 %v2641_v29  ;;  %2503 = vmatprep.subr.bf16.mxu0 %v2644_v32 }
  0x93   : > { %2525 = vmatprep.subr.bf16.mxu1 %v2644_v32 }
  0x94   : > { %2472 = vmatmul.mubr.bf16.gmra.mxu0 %v2643_v33 }
  0x95   : > { %2504 = vmatpush3.bf16.msra.mxu0 %v2644_v32  ;;  %2496 = vmatmul.mubr.bf16.gmra.mxu1 %v2646_v34 }
  0x96   : > { %2533 = vmatpush3.bf16.msra.mxu1 %v2644_v32  ;;  %2505 = vmatprep.subr.bf16.mxu0 %v2647_v35 }
  0x97   : > { %2526 = vmatprep.subr.bf16.mxu1 %v2647_v35  ;;  %2515 = vmatprep.mubr.bf16.mxu0 %v2652_v36 }
  0x98   : > { %2519 = vmatprep.mubr.bf16.mxu1 %v2653_v37 }
  0x99   : > { %2506 = vmatpush3.bf16.msra.mxu0 %v2647_v35 }
  0x9a   : > { %2534 = vmatpush3.bf16.msra.mxu1 %v2647_v35  ;;  %2507 = vmatprep.subr.bf16.mxu0 %v2648_v38 }
  0x9b   : > { %2527 = vmatprep.subr.bf16.mxu1 %v2648_v38 }
  0x9d   : > { %2508 = vmatpush3.bf16.msra.mxu0 %v2648_v38 }
  0x9e   : > { %2535 = vmatpush3.bf16.msra.mxu1 %v2648_v38  ;;  %2509 = vmatprep.subr.bf16.mxu0 %v2649_v39 }
  0x9f   : > { %2528 = vmatprep.subr.bf16.mxu1 %v2649_v39 }
  0xa1   : > { %2510 = vmatpush3.bf16.msra.mxu0 %v2649_v39 }
  0xa2   : > { %2536 = vmatpush3.bf16.msra.mxu1 %v2649_v39  ;;  %2511 = vmatprep.subr.bf16.mxu0 %v2650_v40 }
  0xa3   : > { %2529 = vmatprep.subr.bf16.mxu1 %v2650_v40 }
  0xa5   : > { %2512 = vmatpush3.bf16.msra.mxu0 %v2650_v40 }
  0xa6   : > { %2537 = vmatpush3.bf16.msra.mxu1 %v2650_v40  ;;  %2513 = vmatprep.subr.bf16.mxu0 %v2651_v41 }
  0xa7   : > { %2530 = vmatprep.subr.bf16.mxu1 %v2651_v41 }
  0xa9   : > { %2514 = vmatpush3.bf16.msra.mxu0 %v2651_v41 }
  0xaa   : > { %2538 = vmatpush3.bf16.msra.mxu1 %v2651_v41 }
  0xac   : > { %2516 = vmatmul.mubr.bf16.vlgmr.msra.gmra.mxu0 %v2654_v42 }
  0xad   : > { %2520 = vmatmul.mubr.bf16.vlgmr.msra.gmra.mxu1 %v2655_v43 }
  0xec   : > { %v2325_v44 = vpop.f32.mrf.mxu0 }
  0xed   : > { %v2349_v46 = vpop.f32.mrf.mxu1 }
  0xee   : > { %v355_v45 = vpop.f32.mrf.mxu0  ;;  %v501_v33 = vadd.f32 %v2349_v46, %v2325_v44 }
  0xef   : > { %v492_v48 = vpop.f32.mrf.mxu1 }
  0xf0   : > { %v2326_v47 = vpop.f32.mrf.mxu0  ;;  %v493_v37 = vadd.f32 %v492_v48, %v355_v45 }
  0xf1   : > { %v2350_v51 = vpop.f32.mrf.mxu1 }
  0xf2   : > { %v2957_v49 = vpop.f32.mrf.mxu0  ;;  %v504_v41 = vadd.f32 %v2350_v51, %v2326_v47 }
  0xf3   : > { %v2959_v53 = vpop.f32.mrf.mxu1 }
  0xf4   : > { %v2329_v50 = vpop.f32.mrf.mxu0  ;;  %v496_v45 = vadd.f32 %v2959_v53, %v2957_v49 }
  0xf5   : > { %v2353_v54 = vpop.f32.mrf.mxu1 }
  0xf6   : > { %v371_v52 = vpop.f32.mrf.mxu0  ;;  %v517_v35 = vadd.f32 %v2353_v54, %v2329_v50 }
  0xf7   : > { %v508_v56 = vpop.f32.mrf.mxu1 }
  0xf8   : > { %v2330_v55 = vpop.f32.mrf.mxu0  ;;  %v509_v39 = vadd.f32 %v508_v56, %v371_v52 }
  0xf9   : > { %v2354_v59 = vpop.f32.mrf.mxu1 }
  0xfa   : > { %v2961_v57 = vpop.f32.mrf.mxu0 }
  0xfb   : > { %3008 = vst [vmem:[#allocation2_spill] sm:$0xff] %v2961_v57  ;;  %v511_v61 = vpop.f32.mrf.mxu1 }
 0x102   : > { %v3015_v47 = vld [vmem:[#allocation2_spill] sm:$0xff] }
 0x103   : > { %v512_v51 = vadd.f32 %v511_v61, %v3015_v47 }
 0x10c   : > { %v2373_v58 = vpop.f32.mrf.mxu0 }
 0x10d   : > { %v2397_v62 = vpop.f32.mrf.mxu1  ;;  %v688_v38 = vadd.f32 %v2373_v58, %v501_v33 }
 0x10e   : > { %v655_v60 = vpop.f32.mrf.mxu0 }
 0x10f   : > { %v825_v0 = vpop.f32.mrf.mxu1  ;;  %v686_v42 = vadd.f32 %v655_v60, %v493_v37 }
 0x110   : > { %v2374_v63 = vpop.f32.mrf.mxu0 }
 0x111   : > { %v2398_v2 = vpop.f32.mrf.mxu1 }
 0x112   : > { %v658_v1 = vpop.f32.mrf.mxu0 }
 0x113   : > { %v2963_v4 = vpop.f32.mrf.mxu1 }
 0x114   : > { %v2377_v3 = vpop.f32.mrf.mxu0  ;;  %3009 = vst [vmem:[#allocation3_spill] sm:$0xff] %v2963_v4  ;;  %v689_v4 = vadd.f32 %v2374_v63, %v504_v41 }
 0x115   : > { %v2401_v6 = vpop.f32.mrf.mxu1  ;;  %v692_v40 = vadd.f32 %v2377_v3, %v517_v35 }
 0x116   : > { %v671_v5 = vpop.f32.mrf.mxu0  ;;  %v859_v56 = vadd.f32 %v2398_v2, %v689_v4 }
 0x117   : > { %v841_v8 = vpop.f32.mrf.mxu1  ;;  %v862_v44 = vadd.f32 %v2401_v6, %v692_v40 }
 0x118   : > { %v2378_v7 = vpop.f32.mrf.mxu0 }
 0x119   : > { %v2402_v10 = vpop.f32.mrf.mxu1 }
 0x11a   : > { %v674_v9 = vpop.f32.mrf.mxu0 }
 0x11b   : > { %v2965_v12 = vpop.f32.mrf.mxu1  ;;  %v691_v63 = vadd.f32 %v674_v9, %v512_v51  ;;  %v3016_v53 = vld [vmem:[#allocation3_spill] sm:$0xff] }
 0x11c   : > { %3010 = vst [vmem:[#allocation4_spill] sm:$0xff] %v2965_v12  ;;  %v858_v12 = vadd.f32 %v2397_v62, %v688_v38 }
 0x123   : > { %v3017_v61 = vld [vmem:[#allocation4_spill] sm:$0xff] }
 0x124   : > { %v861_v2 = vadd.f32 %v3017_v61, %v691_v63 }
 0x12c   : > { %v2421_v11 = vpop.f32.mrf.mxu0 }
 0x12d   : > { %v2445_v14 = vpop.f32.mrf.mxu1  ;;  %v1028_v50 = vadd.f32 %v2421_v11, %v858_v12 }
 0x12e   : > { %v995_v13 = vpop.f32.mrf.mxu0 }
 0x12f   : > { %v1165_v16 = vpop.f32.mrf.mxu1  ;;  %v1198_v3 = vadd.f32 %v2445_v14, %v1028_v50 }
 0x130   : > { %v2422_v15 = vpop.f32.mrf.mxu0 }
 0x131   : > { %v2446_v18 = vpop.f32.mrf.mxu1 }
 0x132   : > { %v2967_v17 = vpop.f32.mrf.mxu0 }
 0x133   : > { %3011 = vst [vmem:[#allocation5_spill] sm:$0xff] %v2967_v17  ;;  %v2969_v20 = vpop.f32.mrf.mxu1 }
 0x134   : > { %v2425_v19 = vpop.f32.mrf.mxu0  ;;  %3012 = vst [vmem:[#allocation6_spill] sm:$0xff] %v2969_v20  ;;  %v520_v20 = vadd.f32 %v2354_v59, %v2330_v55  ;;  %v687_v59 = vadd.f32 %v658_v1, %v496_v45 }
 0x135   : > { %v2449_v21 = vpop.f32.mrf.mxu1  ;;  %v1032_v52 = vadd.f32 %v2425_v19, %v862_v44 }
 0x136   : > { %v1011_v22 = vpop.f32.mrf.mxu0  ;;  %v693_v46 = vadd.f32 %v2378_v7, %v520_v20 }
 0x137   : > { %v1181_v23 = vpop.f32.mrf.mxu1  ;;  %v1202_v6 = vadd.f32 %v2449_v21, %v1032_v52 }
 0x138   : > { %v2426_v24 = vpop.f32.mrf.mxu0  ;;  %v863_v60 = vadd.f32 %v2402_v10, %v693_v46 }
 0x139   : > { %v2450_v25 = vpop.f32.mrf.mxu1 }
 0x13a   : > { %v1014_v26 = vpop.f32.mrf.mxu0  ;;  %v3018_v1 = vld [vmem:[#allocation5_spill] sm:$0xff] }
 0x13b   : > { %v2971_v28 = vpop.f32.mrf.mxu1 }
 0x13c   : > { %3013 = vst [vmem:[#allocation7_spill] sm:$0xff] %v2971_v28  ;;  %v690_v28 = vadd.f32 %v671_v5, %v509_v39  ;;  %v1029_v5 = vadd.f32 %v2422_v15, %v859_v56  ;;  %v1031_v15 = vadd.f32 %v1014_v26, %v861_v2 }
 0x13e   : > { %v860_v48 = vadd.f32 %v841_v8, %v690_v28  ;;  %v857_v8 = vadd.f32 %v3016_v53, %v687_v59  ;;  %v1199_v4 = vadd.f32 %v2446_v18, %v1029_v5 }
 0x140   : > { %v1030_v62 = vadd.f32 %v1011_v22, %v860_v48  ;;  %v1027_v10 = vadd.f32 %v3018_v1, %v857_v8 }
 0x142   : > { %v1200_v19 = vadd.f32 %v1181_v23, %v1030_v62 }
 0x14c   : > { %v2469_v27 = vpop.f32.mrf.mxu0 }
 0x14d   : > { %v2493_v29 = vpop.f32.mrf.mxu1  ;;  %v1368_v12 = vadd.f32 %v2469_v27, %v1198_v3 }
 0x14e   : > { %v1335_v30 = vpop.f32.mrf.mxu0 }
 0x14f   : > { %v1505_v31 = vpop.f32.mrf.mxu1  ;;  %v1538_v21 = vadd.f32 %v2493_v29, %v1368_v12 }
 0x150   : > { %v2470_v32 = vpop.f32.mrf.mxu0 }
 0x151   : > { %v2973_v34 = vpop.f32.mrf.mxu1 }
 0x152   : > { %3014 = vst [vmem:[#allocation8_spill] sm:$0xff] %v2973_v34  ;;  %v2975_v36 = vpop.f32.mrf.mxu0  ;;  %v856_v34 = vadd.f32 %v825_v0, %v686_v42  ;;  %v1033_v0 = vadd.f32 %v2426_v24, %v863_v60  ;;  %v1369_v24 = vadd.f32 %v2470_v32, %v1199_v4  ;;  %v3020_v32 = vld [vmem:[#allocation7_spill] sm:$0xff] }
 0x153   : > { %v2977_v43 = vpop.f32.mrf.mxu1 }
 0x154   : > { %v2473_v17 = vpop.f32.mrf.mxu0  ;;  %v1026_v58 = vadd.f32 %v995_v13, %v856_v34  ;;  %v1203_v22 = vadd.f32 %v2450_v25, %v1033_v0  ;;  %v2156_v25 = vld [vmem:[%s3006_s3] ss:$0 sm:$0xff] }
 0x155   : > { %v2497_v57 = vpop.f32.mrf.mxu1  ;;  %v1372_v20 = vadd.f32 %v2473_v17, %v1202_v6  ;;  %v2155_v17 = vld [vmem:[%s3005_s2] ss:$0 sm:$0xff] }
 0x156   : > { %v1351_v54 = vpop.f32.mrf.mxu0  ;;  %v1196_v11 = vadd.f32 %v1165_v16, %v1026_v58 }
 0x157   : > { %v1521_v55 = vpop.f32.mrf.mxu1  ;;  %v1370_v9 = vadd.f32 %v1351_v54, %v1200_v19  ;;  %v1542_v16 = vadd.f32 %v2497_v57, %v1372_v20  ;;  %v1201_v57 = vadd.f32 %v3020_v32, %v1031_v15 }
 0x158   : > { %v2474_v7 = vpop.f32.mrf.mxu0  ;;  %v1366_v13 = vadd.f32 %v1335_v30, %v1196_v11  ;;  %v3019_v30 = vld [vmem:[#allocation6_spill] sm:$0xff] }
 0x159   : > { %v2498_v49 = vpop.f32.mrf.mxu1  ;;  %v1373_v27 = vadd.f32 %v2474_v7, %v1203_v22  ;;  %v1197_v35 = vadd.f32 %v3019_v30, %v1027_v10  ;;  %v1540_v37 = vadd.f32 %v1521_v55, %v1370_v9  ;;  %v3021_v38 = vld [vmem:[#allocation8_spill] sm:$0xff] }
 0x15a   : > { %v1354_v14 = vpop.f32.mrf.mxu0  ;;  %v1536_v23 = vadd.f32 %v1505_v31, %v1366_v13  ;;  %v1539_v39 = vadd.f32 %v3021_v38, %v1369_v24 }
 0x15b   : > { %v1524_v28 = vpop.f32.mrf.mxu1  ;;  %v1543_v44 = vadd.f32 %v2498_v49, %v1373_v27  ;;  %v1367_v45 = vadd.f32 %v2975_v36, %v1197_v35  ;;  %v1371_v48 = vadd.f32 %v1354_v14, %v1201_v57 }
 0x15d   : > { %v1537_v63 = vadd.f32 %v2977_v43, %v1367_v45  ;;  %v1541_v3 = vadd.f32 %v1524_v28, %v1371_v48 }
 0x16c   : > { %v2517_v33 = vpop.f32.mrf.mxu0 }
 0x16d   : > { %v1708_v34 = vadd.f32 %v2517_v33, %v1538_v21  ;;  %v2521_v18 = vpop.f32.mrf.mxu1 }
 0x16e   : > { %v1712_v26 = vadd.f32 %v2521_v18, %v1542_v16  ;;  %v1675_v29 = vpop.f32.mrf.mxu0 }
 0x16f   : > { %v1723_v40 = vmul.f32 %v2155_v17, %v1708_v34  ;;  %v1706_v41 = vadd.f32 %v1675_v29, %v1536_v23  ;;  %v1691_v42 = vpop.f32.mrf.mxu1 }
 0x170   : > { %v1727_v31 = vmul.f32 %v2155_v17, %v1712_v26  ;;  %v1710_v46 = vadd.f32 %v1691_v42, %v1540_v37  ;;  %v2518_v50 = vpop.f32.mrf.mxu0 }
 0x171   : > { %v1738_v52 = vadd.f32 %v2156_v25, %v1723_v40  ;;  %v1709_v54 = vadd.f32 %v2518_v50, %v1539_v39  ;;  %v2522_v47 = vpop.f32.mrf.mxu1  ;;  %v1721_v56 = vmul.f32 %v2155_v17, %v1706_v41 }
 0x172   : > { %v1742_v51 = vadd.f32 %v2156_v25, %v1727_v31  ;;  %v1713_v58 = vadd.f32 %v2522_v47, %v1543_v44  ;;  %v1725_v59 = vmul.f32 %v2155_v17, %v1710_v46  ;;  %v1678_v62 = vpop.f32.mrf.mxu0 }
 0x173   : > { %v1724_v55 = vmul.f32 %v2155_v17, %v1709_v54  ;;  %v1754_v5 = vmul.f32 0.1, %v1738_v52  ;;  %v1694_v0 = vpop.f32.mrf.mxu1  ;;  %vm1746_vm0 = vcmp.ge.f32.partialorder %v1738_v52, 0.0  ;;  %v1736_v7 = vadd.f32 %v2156_v25, %v1721_v56 }
 0x174   : > { %v1728_v60 = vmul.f32 %v2155_v17, %v1713_v58  ;;  %v1758_v36 = vmul.f32 0.1, %v1742_v51  ;;  %vm1750_vm1 = vcmp.ge.f32.partialorder %v1742_v51, 0.0  ;;  %v1707_v49 = vadd.f32 %v1678_v62, %v1537_v63 }
 0x175   : > { %v1739_v6 = vadd.f32 %v2156_v25, %v1724_v55  ;;  %v1740_v53 = vadd.f32 %v2156_v25, %v1725_v59  ;;  %v1711_v19 = vadd.f32 %v1694_v0, %v1541_v3  ;;  %v1762_v20 = vsel %vm1746_vm0, %v1738_v52, %v1754_v5 }
 0x176   : > { %v1743_v11 = vadd.f32 %v2156_v25, %v1728_v60  ;;  %v1722_v61 = vmul.f32 %v2155_v17, %v1707_v49  ;;  %v1766_v2 = vsel %vm1750_vm1, %v1742_v51, %v1758_v36  ;;  %v1752_v10 = vmul.f32 0.1, %v1736_v7 }
 0x177   : > { %vm1747_vm2 = vcmp.ge.f32.partialorder %v1739_v6, 0.0  ;;  %v1755_v12 = vmul.f32 0.1, %v1739_v6  ;;  %v1726_v1 = vmul.f32 %v2155_v17, %v1711_v19  ;;  %vm1744_vm4 = vcmp.ge.f32.partialorder %v1736_v7, 0.0 }
 0x178   : > { %vm1751_vm3 = vcmp.ge.f32.partialorder %v1743_v11, 0.0  ;;  %v1759_v8 = vmul.f32 0.1, %v1743_v11  ;;  %v1737_v9 = vadd.f32 %v2156_v25, %v1722_v61  ;;  %v1756_v14 = vmul.f32 0.1, %v1740_v53 }
 0x179   : > { %v1763_v43 = vsel %vm1747_vm2, %v1739_v6, %v1755_v12  ;;  %v1741_v15 = vadd.f32 %v2156_v25, %v1726_v1  ;;  %vm1748_vm5 = vcmp.ge.f32.partialorder %v1740_v53, 0.0  ;;  %v1760_v28 = vsel %vm1744_vm4, %v1736_v7, %v1752_v10 }
 0x17a   : > { %v2184_v4 = vpack.c.bf16 %v1763_v43, %v1762_v20  ;;  %v1767_v13 = vsel %vm1751_vm3, %v1743_v11, %v1759_v8  ;;  %vm1745_vm6 = vcmp.ge.f32.partialorder %v1737_v9, 0.0  ;;  %v1753_v21 = vmul.f32 0.1, %v1737_v9 }
 0x17b   : > { %v2194_v22 = vpack.c.bf16 %v1767_v13, %v1766_v2  ;;  %vm1749_vm7 = vcmp.ge.f32.partialorder %v1741_v15, 0.0  ;;  %v1757_v24 = vmul.f32 0.1, %v1741_v15  ;;  %v1764_v27 = vsel %vm1748_vm5, %v1740_v53, %v1756_v14 }
 0x17c   : > { %2196 = vst [vmem:[%s197_s6 + $0x8] sm:$0xff] %v2184_v4   ;;  %v1761_v16 = vsel %vm1745_vm6, %v1737_v9, %v1753_v21 }
 0x17d   : > { %2198 = vst [vmem:[%s197_s6 + $0x18] sm:$0xff] %v2194_v22   ;;  %v2179_v33 = vpack.c.bf16 %v1761_v16, %v1760_v28  ;;  %v1765_v23 = vsel %vm1749_vm7, %v1741_v15, %v1757_v24 }
 0x17e   : > { %v2189_v34 = vpack.c.bf16 %v1765_v23, %v1764_v27 }
 0x17f   : > { %2180 = vst [vmem:[%s197_s6] sm:$0xff] %v2179_v33  }
 0x180   : > { %2197 = vst [vmem:[%s197_s6 + $0x10] sm:$0xff] %v2189_v34  }
 0x181 PF: > { %s14_s15 = sadd.s32 1, %s2662_s15  }
 0x182   : > { %p11_p4 = scmp.ge.s32.totalorder %s14_s15, 4  }
 0x184   :  { %13 = sbr.rel (!%p11_p4) target bundleno = 1 (0x1), region = 76 }

// kernel: _lambda_.38
= control target key start
LH: loop header
LB: loop body
LE: loop exit
PB: predicated region body
PF: predicated region fallthrough
CT: control target
= control target key end

     0   :  { %s312_s1 = inlined_call_operand.vmem [shape: bf16[128,128], index: 1, kind: input, shape index: {}]   ;;  %s313_s0 = inlined_call_operand.vmem [shape: bf16[32,128], index: 0, kind: input, shape index: {}]   ;;  %s314_s2 = inlined_call_operand.vmem [shape: bf16[32,128], index: 2, kind: output, shape index: {}]  }
   0x1   :  { %v251_v0 = vld [vmem:[%s312_s1 + $0x38] sm:$0xff]   ;;  %v252_v1 = vld [vmem:[%s312_s1 + $0x30] sm:$0xff]   ;;  %v253_v2 = vld [vmem:[%s312_s1 + $0x28] sm:$0xff]  }
   0x2   :  { %231 = vmatprep.subr.bf16.mxu0 %v251_v0  ;;  %v254_v3 = vld [vmem:[%s312_s1 + $0x20] sm:$0xff]   ;;  %v255_v5 = vld [vmem:[%s312_s1 + $0x18] sm:$0xff]   ;;  %v256_v6 = vld [vmem:[%s312_s1 + $0x10] sm:$0xff]  }
   0x3   :  { %232 = vmatpush3.bf16.msra.mxu0 %v251_v0  ;;  %v259_v4 = vld [vmem:[%s313_s0] sm:$0xff]   ;;  %v257_v7 = vld [vmem:[%s312_s1 + $0x8] sm:$0xff]  }
   0x4   :  { %233 = vmatprep.subr.bf16.mxu0 %v252_v1  ;;  %247 = vmatprep.mubr.bf16.mxu0 %v259_v4  ;;  %v258_v8 = vld [vmem:[%s312_s1] sm:$0xff]   ;;  %v260_v9 = vld [vmem:[%s313_s0 + $0x8] sm:$0xff]  }
   0x7   :  { %234 = vmatpush3.bf16.msra.mxu0 %v252_v1 }
   0x8   :  { %235 = vmatprep.subr.bf16.mxu0 %v253_v2 }
   0xb   :  { %236 = vmatpush3.bf16.msra.mxu0 %v253_v2 }
   0xc   :  { %237 = vmatprep.subr.bf16.mxu0 %v254_v3 }
   0xf   :  { %238 = vmatpush3.bf16.msra.mxu0 %v254_v3 }
  0x10   :  { %239 = vmatprep.subr.bf16.mxu0 %v255_v5 }
  0x13   :  { %240 = vmatpush3.bf16.msra.mxu0 %v255_v5 }
  0x14   :  { %241 = vmatprep.subr.bf16.mxu0 %v256_v6 }
  0x17   :  { %242 = vmatpush3.bf16.msra.mxu0 %v256_v6 }
  0x18   :  { %243 = vmatprep.subr.bf16.mxu0 %v257_v7 }
  0x1b   :  { %244 = vmatpush3.bf16.msra.mxu0 %v257_v7 }
  0x1c   :  { %245 = vmatprep.subr.bf16.mxu0 %v258_v8 }
  0x1f   :  { %246 = vmatpush3.bf16.msra.mxu0 %v258_v8 }
  0x22   :  { %248 = vmatmul.mubr.bf16.vlgmr.msra.gmra.mxu0 %v260_v9 }
  0xe2   :  { %v249_v10 = vpop.f32.mrf.mxu0 }
  0xe4   :  { %v138_v11 = vpop.f32.mrf.mxu0 }
  0xe6   :  { %v250_v12 = vpop.f32.mrf.mxu0 }
  0xe7   :  { %v218_v13 = vpack.c.bf16 %v250_v12, %v249_v10 }
  0xe8   :  { %v141_v14 = vpop.f32.mrf.mxu0 }
  0xe9   :  { %220 = vst [vmem:[%s314_s2 + $0x8] sm:$0xff] %v218_v13   ;;  %v213_v15 = vpack.c.bf16 %v141_v14, %v138_v11 }
  0xeb   :  { %214 = vst [vmem:[%s314_s2] sm:$0xff] %v213_v15  }

// kernel: _lambda_.39
= control target key start
LH: loop header
LB: loop body
LE: loop exit
PB: predicated region body
PF: predicated region fallthrough
CT: control target
= control target key end

     0   :  { %s2050_s18 = smov 0   ;;  %s2430_s0 = inlined_call_operand.vmem [shape: bf16[2,3,24,128], index: 0, kind: input, shape index: {}]   ;;  %s2431_s1 = inlined_call_operand.vmem [shape: bf16[9,128,128], index: 1, kind: input, shape index: {}]   ;;  %s2432_s2 = inlined_call_operand.vmem [shape: f32[1,128], index: 2, kind: input, shape index: {}]   ;;  %s2433_s3 = inlined_call_operand.vmem [shape: f32[1,128], index: 3, kind: input, shape index: {}]   ;;  %s2434_s4 = inlined_call_operand.vmem [shape: bf16[2,16,128], index: 4, kind: input, shape index: {}]   ;;  %s2435_s5 = inlined_call_operand.vmem [shape: bf16[2,16,128], index: 5, kind: output, shape index: {}]  }
   0x1 LB: > { %s1401_s19 = sadd.s32 4294967295, %s2016_s18   ;;  %p1405_p0 = scmp.ge.s32.totalorder %s2016_s18, 1  ;;  %s2016_s18 = sphi %s2050_s18, %s15_s18  }
   0x2   : > { %p197_p1 = scmp.lt.s32.totalorder %s2016_s18, 3 }
   0x4   : > { %p198_p2 = pnand %p1405_p0, %p197_p1 }
   0x5   : > { %p230_p3 = scmp.lt.s32.totalorder (!%p198_p2), %s1401_s19, 1 }
   0x6   : > { %201 = sbr.rel (%p198_p2) target bundleno = 380 (0x17c), region = 40 }
   0xb   : > { %v1926_v0 = vld [vmem:[%s2431_s1 + $0x78] sm:$0xff]   ;;  %v2018_v1 = vmov 0.0   ;;  %v1928_v3 = vld [vmem:[%s2431_s1 + $0x70] sm:$0xff]   ;;  %vm2019_vm0 = vmmov 0   ;;  %v1930_v5 = vld [vmem:[%s2431_s1 + $0x68] sm:$0xff]   ;;  %s2437_s19 = smov (!%p230_p3, %s1401_s19), 1 }
   0xc   : > { %1735 = vmatprep.subr.bf16.mxu0 %v2018_v1  ;;  %1755 = vmatprep.subr.bf16.mxu1 %v2018_v1  ;;  %v1927_v2 = vld [vmem:[%s2431_s1 + $0x38] sm:$0xff]   ;;  %v1929_v4 = vld [vmem:[%s2431_s1 + $0x30] sm:$0xff]   ;;  %v1931_v6 = vld [vmem:[%s2431_s1 + $0x28] sm:$0xff]   ;;  %s1915_s11 = smul.u32 36, %s2437_s19  ;;  %vm619_vm1 = vcmask 1045504   ;;  %s1641_s9 = sshll.u32 %s2437_s19, 3 }
   0xd   : > { %1736 = vmatpush3.bf16.msra.mxu0 %v1926_v0  ;;  %1751 = vmatprep.mubr.msk.bf16.mxu0 %vm2019_vm0, %v2018_v1  ;;  %v1932_v7 = vld [vmem:[%s2431_s1 + $0x60] sm:$0xff]   ;;  %v1934_v9 = vld [vmem:[%s2431_s1 + $0x58] sm:$0xff]   ;;  %v1936_v11 = vld [vmem:[%s2431_s1 + $0x50] sm:$0xff]   ;;  %s239_s12 = scalar_lea.vmem %s2434_s4, %s1641_s9  ;;  %s244_s21 = scalar_lea.vmem %s2435_s5, %s1641_s9 }
   0xe   : > { %1756 = vmatpush3.bf16.msra.mxu1 %v1927_v2  ;;  %1737 = vmatprep.subr.bf16.mxu0 %v2018_v1  ;;  %v1933_v8 = vld [vmem:[%s2431_s1 + $0x20] sm:$0xff]   ;;  %v1935_v10 = vld [vmem:[%s2431_s1 + $0x18] sm:$0xff]   ;;  %s2107_s20 = scalar_lea.vmem %s2430_s0, %s1915_s11  ;;  %v1937_v12 = vld [vmem:[%s2431_s1 + $0x10] sm:$0xff]  }
   0xf   : > { %1757 = vmatprep.subr.bf16.mxu1 %v2018_v1  ;;  %1771 = vmatprep.mubr.msk.bf16.mxu1 %vm2019_vm0, %v2018_v1  ;;  %v1938_v13 = vld [vmem:[%s2431_s1 + $0x48] sm:$0xff]   ;;  %v1940_v15 = vld [vmem:[%s2431_s1 + $0x40] sm:$0xff]   ;;  %v1944_v19 = vld [vmem:[%s2431_s1 + $0xb8] sm:$0xff]  }
  0x10   : > { %v1939_v14 = vld [vmem:[%s2431_s1 + $0x8] sm:$0xff]   ;;  %v1941_v16 = vld [vmem:[%s2431_s1] sm:$0xff]   ;;  %v1945_v20 = vld [vmem:[%s2431_s1 + $0xf8] sm:$0xff]  }
  0x11   : > { %1738 = vmatpush3.bf16.msra.mxu0 %v1928_v3  ;;  %v1942_v17 = vld [vmem:[%s2107_s20 + $0xc] sm:$0xff]   ;;  %v1943_v18 = vld [vmem:[%s2107_s20] sm:$0xff]   ;;  %v1952_v27 = vld [vmem:[%s2431_s1 + $0x98] sm:$0xff]  }
  0x12   : > { %1758 = vmatpush3.bf16.msra.mxu1 %v1929_v4  ;;  %1739 = vmatprep.subr.bf16.mxu0 %v2018_v1  ;;  %v1946_v21 = vld [vmem:[%s2431_s1 + $0xb0] sm:$0xff]   ;;  %v1948_v23 = vld [vmem:[%s2431_s1 + $0xa8] sm:$0xff]   ;;  %v1950_v25 = vld [vmem:[%s2431_s1 + $0xa0] sm:$0xff]  }
  0x13   : > { %1759 = vmatprep.subr.bf16.mxu1 %v2018_v1  ;;  %v1947_v22 = vld [vmem:[%s2431_s1 + $0xf0] sm:$0xff]   ;;  %v1949_v24 = vld [vmem:[%s2431_s1 + $0xe8] sm:$0xff]   ;;  %v1951_v26 = vld [vmem:[%s2431_s1 + $0xe0] sm:$0xff]  }
  0x14   : > { %v1953_v28 = vld [vmem:[%s2431_s1 + $0xd8] sm:$0xff]   ;;  %v1954_v29 = vld [vmem:[%s2431_s1 + $0x90] sm:$0xff]   ;;  %v591_v31 = vld [vmem:[%s2107_s20] sm:$0xc] }
  0x15   : > { %1740 = vmatpush3.bf16.msra.mxu0 %v1930_v5  ;;  %v1955_v30 = vld [vmem:[%s2431_s1 + $0xd0] sm:$0xff]   ;;  %v2189_v32 = vld [vmem:[%s2107_s20 + $0x4] sm:$0xf]  ;;  %v1963_v33 = vld [vmem:[%s2107_s20 + $0x8] ss:$0 sps:$4 sm:$0x33]  }
  0x16   : > { %1760 = vmatpush3.bf16.msra.mxu1 %v1931_v6  ;;  %1741 = vmatprep.subr.bf16.mxu0 %v2018_v1  ;;  %v1956_v34 = vld [vmem:[%s2431_s1 + $0x88] sm:$0xff]   ;;  %v1490_v35 = vcombine.low %v591_v31, %v2189_v32  ;;  %v1958_v37 = vld [vmem:[%s2431_s1 + $0x80] sm:$0xff]   ;;  %v621_v40 = vrot.slane %v1963_v33, 2  ;;  %v1960_v41 = vld [vmem:[%s2107_s20 + $0x18] sm:$0xff]  }
  0x17   : > { %1761 = vmatprep.subr.bf16.mxu1 %v2018_v1  ;;  %v1957_v36 = vld [vmem:[%s2431_s1 + $0xc8] sm:$0xff]   ;;  %v1959_v38 = vld [vmem:[%s2431_s1 + $0xc0] sm:$0xff]   ;;  %v1961_v42 = vld [vmem:[%s2431_s1 + $0x138] sm:$0xff]  }
  0x18   : > { %v620_v39 = vrot.slane %v1490_v35, 2  ;;  %v1964_v44 = vld [vmem:[%s2431_s1 + $0x178] sm:$0xff]   ;;  %v1965_v45 = vld [vmem:[%s2431_s1 + $0x130] sm:$0xff]   ;;  %v1967_v47 = vld [vmem:[%s2431_s1 + $0x128] sm:$0xff]  }
  0x19   : > { %1742 = vmatpush3.bf16.msra.mxu0 %v1932_v7  ;;  %v1966_v46 = vld [vmem:[%s2431_s1 + $0x170] sm:$0xff]   ;;  %v1968_v48 = vld [vmem:[%s2431_s1 + $0x168] sm:$0xff]   ;;  %v1969_v51 = vld [vmem:[%s2431_s1 + $0x120] sm:$0xff]  }
  0x1a   : > { %1762 = vmatpush3.bf16.msra.mxu1 %v1933_v8  ;;  %1743 = vmatprep.subr.bf16.mxu0 %v2018_v1  ;;  %v622_v43 = vsel %vm619_vm1, %v620_v39, %v621_v40  ;;  %v2240_v49 = vld [vmem:[%s2107_s20 + $0x8] sm:$0xf]  ;;  %v1970_v52 = vld [vmem:[%s2431_s1 + $0x160] sm:$0xff]   ;;  %v1971_v53 = vld [vmem:[%s2431_s1 + $0x118] sm:$0xff]  }
  0x1b   : > { %1763 = vmatprep.subr.bf16.mxu1 %v2018_v1  ;;  %v1574_v50 = vcombine.low %v2189_v32, %v2240_v49  ;;  %v1972_v54 = vld [vmem:[%s2431_s1 + $0x158] sm:$0xff]   ;;  %v2265_v56 = vld [vmem:[%s2107_s20 + $0x20] sm:$0xf]  ;;  %v1973_v58 = vld [vmem:[%s2431_s1 + $0x110] sm:$0xff]  }
  0x1c   : > { %v2262_v55 = vld [vmem:[%s2107_s20 + $0x1c] sm:$0xf]  ;;  %v1974_v59 = vld [vmem:[%s2431_s1 + $0x150] sm:$0xff]   ;;  %v1500_v60 = vld [vmem:[%s2107_s20 + $0xc] sm:$0xc] }
  0x1d   : > { %1744 = vmatpush3.bf16.msra.mxu0 %v1934_v9  ;;  %v1626_v57 = vcombine.low %v2262_v55, %v2265_v56  ;;  %v2278_v61 = vld [vmem:[%s2107_s20 + $0x10] sm:$0xf]  ;;  %v1529_v62 = vld [vmem:[%s2107_s20 + $0x18] sm:$0xc]  ;;  %v1975_v63 = vld [vmem:[%s2431_s1 + $0x108] sm:$0xff]  }
  0x1e   : > { %1764 = vmatpush3.bf16.msra.mxu1 %v1935_v10  ;;  %1745 = vmatprep.subr.bf16.mxu0 %v2018_v1  ;;  %v1519_v0 = vcombine.low %v1500_v60, %v2278_v61  ;;  %v1980_v2 = vld [vmem:[%s2107_s20 + $0x14] ss:$0 sps:$4 sm:$0x33]   ;;  %v1976_v3 = vld [vmem:[%s2431_s1 + $0x148] sm:$0xff]   ;;  %v1548_v4 = vcombine.low %v1529_v62, %v2262_v55  ;;  %v1977_v6 = vld [vmem:[%s2431_s1 + $0x100] sm:$0xff]  }
  0x1f   : > { %1765 = vmatprep.subr.bf16.mxu1 %v2018_v1  ;;  %v1983_v5 = vld [vmem:[%s2107_s20 + $0x20] ss:$0 sps:$4 sm:$0x33]   ;;  %v744_v8 = vrot.slane %v1980_v2, 2  ;;  %v2000_v31 = vld [vmem:[%s2431_s1 + $0x238] sm:$0xff]   ;;  %v2003_v35 = vld [vmem:[%s2431_s1 + $0x228] sm:$0xff]  }
  0x20   : > { %v743_v7 = vrot.slane %v1519_v0, 2  ;;  %v1978_v9 = vld [vmem:[%s2431_s1 + $0x140] sm:$0xff]   ;;  %v866_v10 = vrot.slane %v1548_v4, 2 }
  0x21   : > { %1746 = vmatpush3.bf16.msra.mxu0 %v1936_v11  ;;  %v867_v11 = vrot.slane %v1983_v5, 2  ;;  %v2004_v32 = vld [vmem:[%s2431_s1 + $0x220] sm:$0xff]  }
  0x22   : > { %1766 = vmatpush3.bf16.msra.mxu1 %v1937_v12  ;;  %1747 = vmatprep.subr.bf16.mxu0 %v2018_v1  ;;  %v745_v12 = vsel %vm619_vm1, %v743_v7, %v744_v8  ;;  %v2008_v39 = vld [vmem:[%s2431_s1 + $0x200] sm:$0xff]  }
  0x23   : > { %1767 = vmatprep.subr.bf16.mxu1 %v2018_v1 }
  0x25   : > { %1748 = vmatpush3.bf16.msra.mxu0 %v1938_v13  ;;  %v1981_v13 = vld [vmem:[%s2431_s1 + $0x1b8] sm:$0xff]  }
  0x26   : > { %1768 = vmatpush3.bf16.msra.mxu1 %v1939_v14  ;;  %1749 = vmatprep.subr.bf16.mxu0 %v2018_v1  ;;  %v868_v14 = vsel %vm619_vm1, %v866_v10, %v867_v11 }
  0x27   : > { %1769 = vmatprep.subr.bf16.mxu1 %v2018_v1 }
  0x29   : > { %1750 = vmatpush3.bf16.msra.mxu0 %v1940_v15  ;;  %v1984_v15 = vld [vmem:[%s2431_s1 + $0x1f8] sm:$0xff]  }
  0x2a   : > { %1770 = vmatpush3.bf16.msra.mxu1 %v1941_v16  ;;  %1775 = vmatprep.subr.bf16.mxu0 %v2018_v1  ;;  %v1985_v16 = vld [vmem:[%s2431_s1 + $0x1b0] sm:$0xff]  }
  0x2b   : > { %1795 = vmatprep.subr.bf16.mxu1 %v2018_v1 }
  0x2c   : > { %1752 = vmatmul.mubr.bf16.vlgmr.msra.gmra.mxu0 %v1942_v17  ;;  %v1986_v17 = vld [vmem:[%s2431_s1 + $0x1f0] sm:$0xff]  }
  0x2d   : > { %1772 = vmatmul.mubr.bf16.vlgmr.msra.gmra.mxu1 %v1943_v18  ;;  %1776 = vmatpush3.bf16.msra.mxu0 %v1944_v19  ;;  %v1987_v18 = vld [vmem:[%s2431_s1 + $0x1a8] sm:$0xff]  }
  0x2e   : > { %1796 = vmatpush3.bf16.msra.mxu1 %v1945_v20  ;;  %1777 = vmatprep.subr.bf16.mxu0 %v2018_v1  ;;  %v1988_v19 = vld [vmem:[%s2431_s1 + $0x1e8] sm:$0xff]   ;;  %v1989_v20 = vld [vmem:[%s2431_s1 + $0x1a0] sm:$0xff]  }
  0x2f   : > { %1797 = vmatprep.subr.bf16.mxu1 %v2018_v1  ;;  %1791 = vmatprep.mubr.msk.bf16.mxu0 %vm2019_vm0, %v2018_v1 }
  0x30   : > { %1811 = vmatprep.mubr.msk.bf16.mxu1 %vm2019_vm0, %v2018_v1 }
  0x31   : > { %1778 = vmatpush3.bf16.msra.mxu0 %v1946_v21  ;;  %v1990_v21 = vld [vmem:[%s2431_s1 + $0x1e0] sm:$0xff]  }
  0x32   : > { %1798 = vmatpush3.bf16.msra.mxu1 %v1947_v22  ;;  %1779 = vmatprep.subr.bf16.mxu0 %v2018_v1  ;;  %v1991_v22 = vld [vmem:[%s2431_s1 + $0x198] sm:$0xff]  }
  0x33   : > { %1799 = vmatprep.subr.bf16.mxu1 %v2018_v1 }
  0x35   : > { %1780 = vmatpush3.bf16.msra.mxu0 %v1948_v23  ;;  %v1992_v23 = vld [vmem:[%s2431_s1 + $0x1d8] sm:$0xff]  }
  0x36   : > { %1800 = vmatpush3.bf16.msra.mxu1 %v1949_v24  ;;  %1781 = vmatprep.subr.bf16.mxu0 %v2018_v1  ;;  %v1993_v24 = vld [vmem:[%s2431_s1 + $0x190] sm:$0xff]  }
  0x37   : > { %1801 = vmatprep.subr.bf16.mxu1 %v2018_v1 }
  0x39   : > { %1782 = vmatpush3.bf16.msra.mxu0 %v1950_v25  ;;  %v1994_v25 = vld [vmem:[%s2431_s1 + $0x1d0] sm:$0xff]  }
  0x3a   : > { %1802 = vmatpush3.bf16.msra.mxu1 %v1951_v26  ;;  %1783 = vmatprep.subr.bf16.mxu0 %v2018_v1  ;;  %v1995_v26 = vld [vmem:[%s2431_s1 + $0x188] sm:$0xff]  }
  0x3b   : > { %1803 = vmatprep.subr.bf16.mxu1 %v2018_v1 }
  0x3d   : > { %1784 = vmatpush3.bf16.msra.mxu0 %v1952_v27  ;;  %v1996_v27 = vld [vmem:[%s2431_s1 + $0x1c8] sm:$0xff]  }
  0x3e   : > { %1804 = vmatpush3.bf16.msra.mxu1 %v1953_v28  ;;  %1785 = vmatprep.subr.bf16.mxu0 %v2018_v1  ;;  %v1997_v28 = vld [vmem:[%s2431_s1 + $0x180] sm:$0xff]  }
  0x3f   : > { %1805 = vmatprep.subr.bf16.mxu1 %v2018_v1 }
  0x41   : > { %1786 = vmatpush3.bf16.msra.mxu0 %v1954_v29  ;;  %v1998_v29 = vld [vmem:[%s2431_s1 + $0x1c0] sm:$0xff]  }
  0x42   : > { %1806 = vmatpush3.bf16.msra.mxu1 %v1955_v30  ;;  %1787 = vmatprep.subr.bf16.mxu0 %v2018_v1  ;;  %v1583_v30 = vld [vmem:[%s2107_s20 + $0x14] sm:$0xf] }
  0x43   : > { %1807 = vmatprep.subr.bf16.mxu1 %v2018_v1  ;;  %v1600_v33 = vcombine.low %v2278_v61, %v1583_v30 }
  0x45   : > { %1788 = vmatpush3.bf16.msra.mxu0 %v1956_v34  ;;  %v2002_v34 = vld [vmem:[%s2431_s1 + $0x230] sm:$0xff]  }
  0x46   : > { %1808 = vmatpush3.bf16.msra.mxu1 %v1957_v36  ;;  %1789 = vmatprep.subr.bf16.mxu0 %v2018_v1  ;;  %v2005_v36 = vld [vmem:[%s2431_s1 + $0x218] sm:$0xff]  }
  0x47   : > { %1809 = vmatprep.subr.bf16.mxu1 %v2018_v1 }
  0x49   : > { %1790 = vmatpush3.bf16.msra.mxu0 %v1958_v37  ;;  %v2006_v37 = vld [vmem:[%s2431_s1 + $0x210] sm:$0xff]  }
  0x4a   : > { %1810 = vmatpush3.bf16.msra.mxu1 %v1959_v38  ;;  %1815 = vmatprep.subr.bf16.mxu0 %v2018_v1  ;;  %v2007_v38 = vld [vmem:[%s2431_s1 + $0x208] sm:$0xff]  }
  0x4b   : > { %1835 = vmatprep.subr.bf16.mxu1 %v2018_v1 }
  0x4c   : > { %1792 = vmatmul.mubr.bf16.vlgmr.msra.gmra.mxu0 %v1960_v41 }
  0x4d   : > { %1816 = vmatpush3.bf16.msra.mxu0 %v1961_v42  ;;  %1812 = vmatmul.mubr.bf16.vlgmr.msra.gmra.mxu1 %v622_v43 }
  0x4e   : > { %1836 = vmatpush3.bf16.msra.mxu1 %v1964_v44  ;;  %1817 = vmatprep.subr.bf16.mxu0 %v2018_v1 }
  0x4f   : > { %1837 = vmatprep.subr.bf16.mxu1 %v2018_v1  ;;  %1831 = vmatprep.mubr.msk.bf16.mxu0 %vm2019_vm0, %v2018_v1 }
  0x50   : > { %1851 = vmatprep.mubr.msk.bf16.mxu1 %vm2019_vm0, %v2018_v1 }
  0x51   : > { %1818 = vmatpush3.bf16.msra.mxu0 %v1965_v45 }
  0x52   : > { %1838 = vmatpush3.bf16.msra.mxu1 %v1966_v46  ;;  %1819 = vmatprep.subr.bf16.mxu0 %v2018_v1 }
  0x53   : > { %1839 = vmatprep.subr.bf16.mxu1 %v2018_v1 }
  0x55   : > { %1820 = vmatpush3.bf16.msra.mxu0 %v1967_v47 }
  0x56   : > { %1840 = vmatpush3.bf16.msra.mxu1 %v1968_v48  ;;  %1821 = vmatprep.subr.bf16.mxu0 %v2018_v1 }
  0x57   : > { %1841 = vmatprep.subr.bf16.mxu1 %v2018_v1 }
  0x59   : > { %1822 = vmatpush3.bf16.msra.mxu0 %v1969_v51 }
  0x5a   : > { %1842 = vmatpush3.bf16.msra.mxu1 %v1970_v52  ;;  %1823 = vmatprep.subr.bf16.mxu0 %v2018_v1 }
  0x5b   : > { %1843 = vmatprep.subr.bf16.mxu1 %v2018_v1 }
  0x5d   : > { %1824 = vmatpush3.bf16.msra.mxu0 %v1971_v53 }
  0x5e   : > { %1844 = vmatpush3.bf16.msra.mxu1 %v1972_v54  ;;  %1825 = vmatprep.subr.bf16.mxu0 %v2018_v1 }
  0x5f   : > { %1845 = vmatprep.subr.bf16.mxu1 %v2018_v1 }
  0x61   : > { %1826 = vmatpush3.bf16.msra.mxu0 %v1973_v58 }
  0x62   : > { %1846 = vmatpush3.bf16.msra.mxu1 %v1974_v59  ;;  %1827 = vmatprep.subr.bf16.mxu0 %v2018_v1 }
  0x63   : > { %1847 = vmatprep.subr.bf16.mxu1 %v2018_v1 }
  0x65   : > { %1828 = vmatpush3.bf16.msra.mxu0 %v1975_v63 }
  0x66   : > { %1848 = vmatpush3.bf16.msra.mxu1 %v1976_v3  ;;  %1829 = vmatprep.subr.bf16.mxu0 %v2018_v1 }
  0x67   : > { %1849 = vmatprep.subr.bf16.mxu1 %v2018_v1 }
  0x69   : > { %1830 = vmatpush3.bf16.msra.mxu0 %v1977_v6 }
  0x6a   : > { %1850 = vmatpush3.bf16.msra.mxu1 %v1978_v9  ;;  %1855 = vmatprep.subr.bf16.mxu0 %v2018_v1 }
  0x6b   : > { %1875 = vmatprep.subr.bf16.mxu1 %v2018_v1 }
  0x6c   : > { %1832 = vmatmul.mubr.bf16.vlgmr.msra.gmra.mxu0 %v745_v12 }
  0x6d   : > { %1856 = vmatpush3.bf16.msra.mxu0 %v1981_v13  ;;  %1852 = vmatmul.mubr.bf16.vlgmr.msra.gmra.mxu1 %v868_v14 }
  0x6e   : > { %1876 = vmatpush3.bf16.msra.mxu1 %v1984_v15  ;;  %1857 = vmatprep.subr.bf16.mxu0 %v2018_v1 }
  0x6f   : > { %1877 = vmatprep.subr.bf16.mxu1 %v2018_v1  ;;  %1871 = vmatprep.mubr.msk.bf16.mxu0 %vm2019_vm0, %v2018_v1 }
  0x70   : > { %1891 = vmatprep.mubr.msk.bf16.mxu1 %vm2019_vm0, %v2018_v1 }
  0x71   : > { %1858 = vmatpush3.bf16.msra.mxu0 %v1985_v16 }
  0x72   : > { %1878 = vmatpush3.bf16.msra.mxu1 %v1986_v17  ;;  %1859 = vmatprep.subr.bf16.mxu0 %v2018_v1 }
  0x73   : > { %1879 = vmatprep.subr.bf16.mxu1 %v2018_v1 }
  0x75   : > { %1860 = vmatpush3.bf16.msra.mxu0 %v1987_v18  ;;  %v1646_v18 = vld [vmem:[%s239_s12] sm:$0xff]  }
  0x76   : > { %1880 = vmatpush3.bf16.msra.mxu1 %v1988_v19  ;;  %1861 = vmatprep.subr.bf16.mxu0 %v2018_v1 }
  0x77   : > { %1881 = vmatprep.subr.bf16.mxu1 %v2018_v1 }
  0x79   : > { %1862 = vmatpush3.bf16.msra.mxu0 %v1989_v20 }
  0x7a   : > { %1882 = vmatpush3.bf16.msra.mxu1 %v1990_v21  ;;  %1863 = vmatprep.subr.bf16.mxu0 %v2018_v1 }
  0x7b   : > { %1883 = vmatprep.subr.bf16.mxu1 %v2018_v1 }
  0x7d   : > { %1864 = vmatpush3.bf16.msra.mxu0 %v1991_v22  ;;  %v1647_v22 = vunpack.c.l.bf16 %v1646_v18 }
  0x7e   : > { %1884 = vmatpush3.bf16.msra.mxu1 %v1992_v23  ;;  %1865 = vmatprep.subr.bf16.mxu0 %v2018_v1 }
  0x7f   : > { %1885 = vmatprep.subr.bf16.mxu1 %v2018_v1 }
  0x81   : > { %1866 = vmatpush3.bf16.msra.mxu0 %v1993_v24 }
  0x82   : > { %1886 = vmatpush3.bf16.msra.mxu1 %v1994_v25  ;;  %1867 = vmatprep.subr.bf16.mxu0 %v2018_v1 }
  0x83   : > { %1887 = vmatprep.subr.bf16.mxu1 %v2018_v1 }
  0x85   : > { %1868 = vmatpush3.bf16.msra.mxu0 %v1995_v26 }
  0x86   : > { %1888 = vmatpush3.bf16.msra.mxu1 %v1996_v27  ;;  %1869 = vmatprep.subr.bf16.mxu0 %v2018_v1 }
  0x87   : > { %1889 = vmatprep.subr.bf16.mxu1 %v2018_v1 }
  0x89   : > { %1870 = vmatpush3.bf16.msra.mxu0 %v1997_v28  ;;  %v1648_v28 = vunpack.c.h.bf16 %v1646_v18 }
  0x8a   : > { %1890 = vmatpush3.bf16.msra.mxu1 %v1998_v29  ;;  %1895 = vmatprep.subr.bf16.mxu0 %v2018_v1  ;;  %v1635_v29 = vld [vmem:[%s2432_s2] ss:$0 sm:$0xff] }
  0x8c   : > { %1872 = vmatmul.mubr.bf16.vlgmr.msra.gmra.mxu0 %v1574_v50 }
  0x8d   : > { %1896 = vmatpush3.bf16.msra.mxu0 %v2000_v31  ;;  %1892 = vmatmul.mubr.bf16.vlgmr.msra.gmra.mxu1 %v1600_v33 }
  0x8e   : > { %1897 = vmatprep.subr.bf16.mxu0 %v2018_v1  ;;  %1911 = vmatprep.mubr.msk.bf16.mxu0 %vm2019_vm0, %v2018_v1 }
  0x91   : > { %1898 = vmatpush3.bf16.msra.mxu0 %v2002_v34 }
  0x92   : > { %1899 = vmatprep.subr.bf16.mxu0 %v2018_v1 }
  0x95   : > { %1900 = vmatpush3.bf16.msra.mxu0 %v2003_v35 }
  0x96   : > { %1901 = vmatprep.subr.bf16.mxu0 %v2018_v1 }
  0x99   : > { %1902 = vmatpush3.bf16.msra.mxu0 %v2004_v32  ;;  %v1636_v32 = vld [vmem:[%s2433_s3] ss:$0 sm:$0xff] }
  0x9a   : > { %1903 = vmatprep.subr.bf16.mxu0 %v2018_v1 }
  0x9d   : > { %1904 = vmatpush3.bf16.msra.mxu0 %v2005_v36 }
  0x9e   : > { %1905 = vmatprep.subr.bf16.mxu0 %v2018_v1 }
  0xa1   : > { %1906 = vmatpush3.bf16.msra.mxu0 %v2006_v37 }
  0xa2   : > { %1907 = vmatprep.subr.bf16.mxu0 %v2018_v1 }
  0xa5   : > { %1908 = vmatpush3.bf16.msra.mxu0 %v2007_v38 }
  0xa6   : > { %1909 = vmatprep.subr.bf16.mxu0 %v2018_v1 }
  0xa9   : > { %1910 = vmatpush3.bf16.msra.mxu0 %v2008_v39 }
  0xac   : > { %1912 = vmatmul.mubr.bf16.vlgmr.msra.gmra.mxu0 %v1626_v57 }
  0xec   : > { %v372_v40 = vpop.f32.mrf.mxu0 }
  0xed   : > { %v467_v41 = vpop.f32.mrf.mxu1 }
  0xee   : > { %v468_v42 = vadd.f32 %v467_v41, %v372_v40  ;;  %v1753_v43 = vpop.f32.mrf.mxu0 }
  0xef   : > { %v1773_v44 = vpop.f32.mrf.mxu1 }
  0xf0   : > { %v375_v45 = vpop.f32.mrf.mxu0 }
  0xf1   : > { %v470_v46 = vpop.f32.mrf.mxu1 }
  0xf2   : > { %v471_v47 = vadd.f32 %v470_v46, %v375_v45  ;;  %v1754_v48 = vpop.f32.mrf.mxu0 }
  0xf3   : > { %v1774_v49 = vpop.f32.mrf.mxu1 }
 0x10c   : > { %v582_v50 = vpop.f32.mrf.mxu0 }
 0x10d   : > { %v589_v51 = vadd.f32 %v582_v50, %v468_v42  ;;  %v706_v52 = vpop.f32.mrf.mxu1 }
 0x10e   : > { %v1793_v53 = vpop.f32.mrf.mxu0 }
 0x10f   : > { %v713_v1 = vadd.f32 %v706_v52, %v589_v51  ;;  %v1813_v54 = vpop.f32.mrf.mxu1 }
 0x110   : > { %v585_v58 = vpop.f32.mrf.mxu0 }
 0x111   : > { %v590_v59 = vadd.f32 %v585_v58, %v471_v47  ;;  %v709_v55 = vpop.f32.mrf.mxu1 }
 0x112   : > { %v1794_v56 = vpop.f32.mrf.mxu0 }
 0x113   : > { %v714_v57 = vadd.f32 %v709_v55, %v590_v59  ;;  %v1814_v60 = vpop.f32.mrf.mxu1 }
 0x12c   : > { %v829_v61 = vpop.f32.mrf.mxu0 }
 0x12d   : > { %v952_v62 = vpop.f32.mrf.mxu1  ;;  %v836_v14 = vadd.f32 %v829_v61, %v713_v1 }
 0x12e   : > { %v1833_v63 = vpop.f32.mrf.mxu0 }
 0x12f   : > { %v1853_v0 = vpop.f32.mrf.mxu1  ;;  %v959_v15 = vadd.f32 %v952_v62, %v836_v14 }
 0x130   : > { %v832_v2 = vpop.f32.mrf.mxu0 }
 0x131   : > { %v955_v3 = vpop.f32.mrf.mxu1  ;;  %v837_v16 = vadd.f32 %v832_v2, %v714_v57 }
 0x132   : > { %v1834_v4 = vpop.f32.mrf.mxu0 }
 0x133   : > { %v1854_v5 = vpop.f32.mrf.mxu1  ;;  %v960_v19 = vadd.f32 %v955_v3, %v837_v16 }
 0x14c   : > { %v1065_v6 = vpop.f32.mrf.mxu0 }
 0x14d   : > { %v1178_v7 = vpop.f32.mrf.mxu1  ;;  %v1072_v17 = vadd.f32 %v1065_v6, %v959_v15 }
 0x14e   : > { %v1873_v8 = vpop.f32.mrf.mxu0 }
 0x14f   : > { %v1893_v9 = vpop.f32.mrf.mxu1  ;;  %v1185_v20 = vadd.f32 %v1178_v7, %v1072_v17 }
 0x150   : > { %v1068_v10 = vpop.f32.mrf.mxu0 }
 0x151   : > { %v1181_v11 = vpop.f32.mrf.mxu1  ;;  %v1073_v21 = vadd.f32 %v1068_v10, %v960_v19 }
 0x152   : > { %v1874_v12 = vpop.f32.mrf.mxu0 }
 0x153   : > { %v1894_v13 = vpop.f32.mrf.mxu1  ;;  %v1186_v26 = vadd.f32 %v1181_v11, %v1073_v21 }
 0x16c   : > { %v1291_v23 = vpop.f32.mrf.mxu0 }
 0x16d   : > { %v1298_v24 = vadd.f32 %v1291_v23, %v1185_v20 }
 0x16e   : > { %v1913_v25 = vpop.f32.mrf.mxu0 }
 0x16f   : > { %v1304_v27 = vadd.f32 %v1647_v22, %v1298_v24 }
 0x170   : > { %v1294_v30 = vpop.f32.mrf.mxu0 }
 0x171   : > { %v1299_v31 = vadd.f32 %v1294_v30, %v1186_v26  ;;  %v1313_v34 = vmul.f32 %v1635_v29, %v1304_v27 }
 0x172   : > { %v1914_v33 = vpop.f32.mrf.mxu0 }
 0x173   : > { %v1305_v35 = vadd.f32 %v1648_v28, %v1299_v31  ;;  %v1322_v37 = vadd.f32 %v1636_v32, %v1313_v34 }
 0x175   : > { %v1314_v36 = vmul.f32 %v1635_v29, %v1305_v35 }
 0x177   : > { %v1323_v38 = vadd.f32 %v1636_v32, %v1314_v36 }
 0x179   : > { %v1652_v39 = vpack.c.bf16 %v1323_v38, %v1322_v37 }
 0x17b   : > { %1653 = vst [vmem:[%s244_s21] sm:$0xff] %v1652_v39  }
 0x17c PF: > { %s15_s18 = sadd.s32 1, %s2016_s18  }
 0x17d   : > { %p12_p4 = scmp.ge.s32.totalorder %s15_s18, 4  }
 0x17f   :  { %14 = sbr.rel (!%p12_p4) target bundleno = 1 (0x1), region = 83 }

// kernel: _lambda_.41
= control target key start
LH: loop header
LB: loop body
LE: loop exit
PB: predicated region body
PF: predicated region fallthrough
CT: control target
= control target key end

     0   :  { %s1979_s15 = smov 0   ;;  %s2356_s0 = inlined_call_operand.vmem [shape: bf16[2,3,24,128], index: 0, kind: input, shape index: {}]   ;;  %s2357_s1 = inlined_call_operand.vmem [shape: bf16[9,128,128], index: 1, kind: input, shape index: {}]   ;;  %s2358_s2 = inlined_call_operand.vmem [shape: f32[1,128], index: 2, kind: input, shape index: {}]   ;;  %s2359_s3 = inlined_call_operand.vmem [shape: f32[1,128], index: 3, kind: input, shape index: {}]   ;;  %s2360_s4 = inlined_call_operand.vmem [shape: bf16[2,16,128], index: 4, kind: output, shape index: {}]  }
   0x1 LB: > { %s1342_s16 = sadd.s32 4294967295, %s1950_s15   ;;  %p1346_p0 = scmp.ge.s32.totalorder %s1950_s15, 1  ;;  %s1950_s15 = sphi %s1979_s15, %s14_s15  }
   0x2   : > { %p162_p1 = scmp.lt.s32.totalorder %s1950_s15, 3 }
   0x4   : > { %p163_p2 = pnand %p1346_p0, %p162_p1 }
   0x5   : > { %p188_p3 = scmp.lt.s32.totalorder (!%p163_p2), %s1342_s16, 1 }
   0x6   : > { %166 = sbr.rel (%p163_p2) target bundleno = 381 (0x17d), region = 36 }
   0xb   : > { %v1860_v0 = vld [vmem:[%s2357_s1 + $0x78] sm:$0xff]   ;;  %v1952_v1 = vmov 0.0   ;;  %v1862_v3 = vld [vmem:[%s2357_s1 + $0x70] sm:$0xff]   ;;  %vm1953_vm0 = vmmov 0   ;;  %v1864_v5 = vld [vmem:[%s2357_s1 + $0x68] sm:$0xff]   ;;  %s2362_s16 = smov (!%p188_p3, %s1342_s16), 1 }
   0xc   : > { %1669 = vmatprep.subr.bf16.mxu0 %v1952_v1  ;;  %1689 = vmatprep.subr.bf16.mxu1 %v1952_v1  ;;  %v1861_v2 = vld [vmem:[%s2357_s1 + $0x38] sm:$0xff]   ;;  %v1863_v4 = vld [vmem:[%s2357_s1 + $0x30] sm:$0xff]   ;;  %v1865_v6 = vld [vmem:[%s2357_s1 + $0x28] sm:$0xff]   ;;  %s1849_s7 = smul.u32 36, %s2362_s16  ;;  %vm572_vm1 = vcmask 1045504   ;;  %s1580_s29 = sshll.u32 %s2362_s16, 3 }
   0xd   : > { %1670 = vmatpush3.bf16.msra.mxu0 %v1860_v0  ;;  %1685 = vmatprep.mubr.msk.bf16.mxu0 %vm1953_vm0, %v1952_v1  ;;  %v1866_v7 = vld [vmem:[%s2357_s1 + $0x60] sm:$0xff]   ;;  %v1868_v9 = vld [vmem:[%s2357_s1 + $0x58] sm:$0xff]   ;;  %v1870_v11 = vld [vmem:[%s2357_s1 + $0x50] sm:$0xff]   ;;  %s197_s6 = scalar_lea.vmem %s2360_s4, %s1580_s29 }
   0xe   : > { %1690 = vmatpush3.bf16.msra.mxu1 %v1861_v2  ;;  %1671 = vmatprep.subr.bf16.mxu0 %v1952_v1  ;;  %v1867_v8 = vld [vmem:[%s2357_s1 + $0x20] sm:$0xff]   ;;  %v1869_v10 = vld [vmem:[%s2357_s1 + $0x18] sm:$0xff]   ;;  %s2036_s14 = scalar_lea.vmem %s2356_s0, %s1849_s7  ;;  %v1871_v12 = vld [vmem:[%s2357_s1 + $0x10] sm:$0xff]  }
   0xf   : > { %1691 = vmatprep.subr.bf16.mxu1 %v1952_v1  ;;  %1705 = vmatprep.mubr.msk.bf16.mxu1 %vm1953_vm0, %v1952_v1  ;;  %v1872_v13 = vld [vmem:[%s2357_s1 + $0x48] sm:$0xff]   ;;  %v1874_v15 = vld [vmem:[%s2357_s1 + $0x40] sm:$0xff]   ;;  %v1878_v19 = vld [vmem:[%s2357_s1 + $0xb8] sm:$0xff]  }
  0x10   : > { %v1873_v14 = vld [vmem:[%s2357_s1 + $0x8] sm:$0xff]   ;;  %v1875_v16 = vld [vmem:[%s2357_s1] sm:$0xff]   ;;  %v1879_v20 = vld [vmem:[%s2357_s1 + $0xf8] sm:$0xff]  }
  0x11   : > { %1672 = vmatpush3.bf16.msra.mxu0 %v1862_v3  ;;  %v1876_v17 = vld [vmem:[%s2036_s14 + $0xc] sm:$0xff]   ;;  %v1877_v18 = vld [vmem:[%s2036_s14] sm:$0xff]   ;;  %v1886_v27 = vld [vmem:[%s2357_s1 + $0x98] sm:$0xff]  }
  0x12   : > { %1692 = vmatpush3.bf16.msra.mxu1 %v1863_v4  ;;  %1673 = vmatprep.subr.bf16.mxu0 %v1952_v1  ;;  %v1880_v21 = vld [vmem:[%s2357_s1 + $0xb0] sm:$0xff]   ;;  %v1882_v23 = vld [vmem:[%s2357_s1 + $0xa8] sm:$0xff]   ;;  %v1884_v25 = vld [vmem:[%s2357_s1 + $0xa0] sm:$0xff]  }
  0x13   : > { %1693 = vmatprep.subr.bf16.mxu1 %v1952_v1  ;;  %v1881_v22 = vld [vmem:[%s2357_s1 + $0xf0] sm:$0xff]   ;;  %v1883_v24 = vld [vmem:[%s2357_s1 + $0xe8] sm:$0xff]   ;;  %v1885_v26 = vld [vmem:[%s2357_s1 + $0xe0] sm:$0xff]  }
  0x14   : > { %v1887_v28 = vld [vmem:[%s2357_s1 + $0xd8] sm:$0xff]   ;;  %v1888_v29 = vld [vmem:[%s2357_s1 + $0x90] sm:$0xff]   ;;  %v544_v31 = vld [vmem:[%s2036_s14] sm:$0xc] }
  0x15   : > { %1674 = vmatpush3.bf16.msra.mxu0 %v1864_v5  ;;  %v1889_v30 = vld [vmem:[%s2357_s1 + $0xd0] sm:$0xff]   ;;  %v2118_v32 = vld [vmem:[%s2036_s14 + $0x4] sm:$0xf]  ;;  %v1897_v33 = vld [vmem:[%s2036_s14 + $0x8] ss:$0 sps:$4 sm:$0x33]  }
  0x16   : > { %1694 = vmatpush3.bf16.msra.mxu1 %v1865_v6  ;;  %1675 = vmatprep.subr.bf16.mxu0 %v1952_v1  ;;  %v1890_v34 = vld [vmem:[%s2357_s1 + $0x88] sm:$0xff]   ;;  %v1429_v35 = vcombine.low %v544_v31, %v2118_v32  ;;  %v1892_v37 = vld [vmem:[%s2357_s1 + $0x80] sm:$0xff]   ;;  %v574_v40 = vrot.slane %v1897_v33, 2  ;;  %v1894_v41 = vld [vmem:[%s2036_s14 + $0x18] sm:$0xff]  }
  0x17   : > { %1695 = vmatprep.subr.bf16.mxu1 %v1952_v1  ;;  %v1891_v36 = vld [vmem:[%s2357_s1 + $0xc8] sm:$0xff]   ;;  %v1893_v38 = vld [vmem:[%s2357_s1 + $0xc0] sm:$0xff]   ;;  %v1895_v42 = vld [vmem:[%s2357_s1 + $0x138] sm:$0xff]  }
  0x18   : > { %v573_v39 = vrot.slane %v1429_v35, 2  ;;  %v1898_v44 = vld [vmem:[%s2357_s1 + $0x178] sm:$0xff]   ;;  %v1899_v45 = vld [vmem:[%s2357_s1 + $0x130] sm:$0xff]   ;;  %v1901_v47 = vld [vmem:[%s2357_s1 + $0x128] sm:$0xff]  }
  0x19   : > { %1676 = vmatpush3.bf16.msra.mxu0 %v1866_v7  ;;  %v1900_v46 = vld [vmem:[%s2357_s1 + $0x170] sm:$0xff]   ;;  %v1902_v48 = vld [vmem:[%s2357_s1 + $0x168] sm:$0xff]   ;;  %v1903_v51 = vld [vmem:[%s2357_s1 + $0x120] sm:$0xff]  }
  0x1a   : > { %1696 = vmatpush3.bf16.msra.mxu1 %v1867_v8  ;;  %1677 = vmatprep.subr.bf16.mxu0 %v1952_v1  ;;  %v575_v43 = vsel %vm572_vm1, %v573_v39, %v574_v40  ;;  %v2169_v49 = vld [vmem:[%s2036_s14 + $0x8] sm:$0xf]  ;;  %v1904_v52 = vld [vmem:[%s2357_s1 + $0x160] sm:$0xff]   ;;  %v1905_v53 = vld [vmem:[%s2357_s1 + $0x118] sm:$0xff]  }
  0x1b   : > { %1697 = vmatprep.subr.bf16.mxu1 %v1952_v1  ;;  %v1513_v50 = vcombine.low %v2118_v32, %v2169_v49  ;;  %v1906_v54 = vld [vmem:[%s2357_s1 + $0x158] sm:$0xff]   ;;  %v2194_v56 = vld [vmem:[%s2036_s14 + $0x20] sm:$0xf]  ;;  %v1907_v58 = vld [vmem:[%s2357_s1 + $0x110] sm:$0xff]  }
  0x1c   : > { %v2191_v55 = vld [vmem:[%s2036_s14 + $0x1c] sm:$0xf]  ;;  %v1908_v59 = vld [vmem:[%s2357_s1 + $0x150] sm:$0xff]   ;;  %v1439_v60 = vld [vmem:[%s2036_s14 + $0xc] sm:$0xc] }
  0x1d   : > { %1678 = vmatpush3.bf16.msra.mxu0 %v1868_v9  ;;  %v1565_v57 = vcombine.low %v2191_v55, %v2194_v56  ;;  %v2207_v61 = vld [vmem:[%s2036_s14 + $0x10] sm:$0xf]  ;;  %v1468_v62 = vld [vmem:[%s2036_s14 + $0x18] sm:$0xc]  ;;  %v1909_v63 = vld [vmem:[%s2357_s1 + $0x108] sm:$0xff]  }
  0x1e   : > { %1698 = vmatpush3.bf16.msra.mxu1 %v1869_v10  ;;  %1679 = vmatprep.subr.bf16.mxu0 %v1952_v1  ;;  %v1458_v0 = vcombine.low %v1439_v60, %v2207_v61  ;;  %v1914_v2 = vld [vmem:[%s2036_s14 + $0x14] ss:$0 sps:$4 sm:$0x33]   ;;  %v1910_v3 = vld [vmem:[%s2357_s1 + $0x148] sm:$0xff]   ;;  %v1487_v4 = vcombine.low %v1468_v62, %v2191_v55  ;;  %v1911_v6 = vld [vmem:[%s2357_s1 + $0x100] sm:$0xff]  }
  0x1f   : > { %1699 = vmatprep.subr.bf16.mxu1 %v1952_v1  ;;  %v1917_v5 = vld [vmem:[%s2036_s14 + $0x20] ss:$0 sps:$4 sm:$0x33]   ;;  %v697_v8 = vrot.slane %v1914_v2, 2  ;;  %v1934_v31 = vld [vmem:[%s2357_s1 + $0x238] sm:$0xff]   ;;  %v1937_v35 = vld [vmem:[%s2357_s1 + $0x228] sm:$0xff]  }
  0x20   : > { %v696_v7 = vrot.slane %v1458_v0, 2  ;;  %v1912_v9 = vld [vmem:[%s2357_s1 + $0x140] sm:$0xff]   ;;  %v819_v10 = vrot.slane %v1487_v4, 2 }
  0x21   : > { %1680 = vmatpush3.bf16.msra.mxu0 %v1870_v11  ;;  %v820_v11 = vrot.slane %v1917_v5, 2  ;;  %v1938_v32 = vld [vmem:[%s2357_s1 + $0x220] sm:$0xff]  }
  0x22   : > { %1700 = vmatpush3.bf16.msra.mxu1 %v1871_v12  ;;  %1681 = vmatprep.subr.bf16.mxu0 %v1952_v1  ;;  %v698_v12 = vsel %vm572_vm1, %v696_v7, %v697_v8  ;;  %v1942_v39 = vld [vmem:[%s2357_s1 + $0x200] sm:$0xff]  }
  0x23   : > { %1701 = vmatprep.subr.bf16.mxu1 %v1952_v1 }
  0x25   : > { %1682 = vmatpush3.bf16.msra.mxu0 %v1872_v13  ;;  %v1915_v13 = vld [vmem:[%s2357_s1 + $0x1b8] sm:$0xff]  }
  0x26   : > { %1702 = vmatpush3.bf16.msra.mxu1 %v1873_v14  ;;  %1683 = vmatprep.subr.bf16.mxu0 %v1952_v1  ;;  %v821_v14 = vsel %vm572_vm1, %v819_v10, %v820_v11 }
  0x27   : > { %1703 = vmatprep.subr.bf16.mxu1 %v1952_v1 }
  0x29   : > { %1684 = vmatpush3.bf16.msra.mxu0 %v1874_v15  ;;  %v1918_v15 = vld [vmem:[%s2357_s1 + $0x1f8] sm:$0xff]  }
  0x2a   : > { %1704 = vmatpush3.bf16.msra.mxu1 %v1875_v16  ;;  %1709 = vmatprep.subr.bf16.mxu0 %v1952_v1  ;;  %v1919_v16 = vld [vmem:[%s2357_s1 + $0x1b0] sm:$0xff]  }
  0x2b   : > { %1729 = vmatprep.subr.bf16.mxu1 %v1952_v1 }
  0x2c   : > { %1686 = vmatmul.mubr.bf16.vlgmr.msra.gmra.mxu0 %v1876_v17  ;;  %v1920_v17 = vld [vmem:[%s2357_s1 + $0x1f0] sm:$0xff]  }
  0x2d   : > { %1706 = vmatmul.mubr.bf16.vlgmr.msra.gmra.mxu1 %v1877_v18  ;;  %1710 = vmatpush3.bf16.msra.mxu0 %v1878_v19  ;;  %v1921_v18 = vld [vmem:[%s2357_s1 + $0x1a8] sm:$0xff]  }
  0x2e   : > { %1730 = vmatpush3.bf16.msra.mxu1 %v1879_v20  ;;  %1711 = vmatprep.subr.bf16.mxu0 %v1952_v1  ;;  %v1922_v19 = vld [vmem:[%s2357_s1 + $0x1e8] sm:$0xff]   ;;  %v1923_v20 = vld [vmem:[%s2357_s1 + $0x1a0] sm:$0xff]  }
  0x2f   : > { %1731 = vmatprep.subr.bf16.mxu1 %v1952_v1  ;;  %1725 = vmatprep.mubr.msk.bf16.mxu0 %vm1953_vm0, %v1952_v1 }
  0x30   : > { %1745 = vmatprep.mubr.msk.bf16.mxu1 %vm1953_vm0, %v1952_v1 }
  0x31   : > { %1712 = vmatpush3.bf16.msra.mxu0 %v1880_v21  ;;  %v1924_v21 = vld [vmem:[%s2357_s1 + $0x1e0] sm:$0xff]  }
  0x32   : > { %1732 = vmatpush3.bf16.msra.mxu1 %v1881_v22  ;;  %1713 = vmatprep.subr.bf16.mxu0 %v1952_v1  ;;  %v1925_v22 = vld [vmem:[%s2357_s1 + $0x198] sm:$0xff]  }
  0x33   : > { %1733 = vmatprep.subr.bf16.mxu1 %v1952_v1 }
  0x35   : > { %1714 = vmatpush3.bf16.msra.mxu0 %v1882_v23  ;;  %v1926_v23 = vld [vmem:[%s2357_s1 + $0x1d8] sm:$0xff]  }
  0x36   : > { %1734 = vmatpush3.bf16.msra.mxu1 %v1883_v24  ;;  %1715 = vmatprep.subr.bf16.mxu0 %v1952_v1  ;;  %v1927_v24 = vld [vmem:[%s2357_s1 + $0x190] sm:$0xff]  }
  0x37   : > { %1735 = vmatprep.subr.bf16.mxu1 %v1952_v1 }
  0x39   : > { %1716 = vmatpush3.bf16.msra.mxu0 %v1884_v25  ;;  %v1928_v25 = vld [vmem:[%s2357_s1 + $0x1d0] sm:$0xff]  }
  0x3a   : > { %1736 = vmatpush3.bf16.msra.mxu1 %v1885_v26  ;;  %1717 = vmatprep.subr.bf16.mxu0 %v1952_v1  ;;  %v1929_v26 = vld [vmem:[%s2357_s1 + $0x188] sm:$0xff]  }
  0x3b   : > { %1737 = vmatprep.subr.bf16.mxu1 %v1952_v1 }
  0x3d   : > { %1718 = vmatpush3.bf16.msra.mxu0 %v1886_v27  ;;  %v1930_v27 = vld [vmem:[%s2357_s1 + $0x1c8] sm:$0xff]  }
  0x3e   : > { %1738 = vmatpush3.bf16.msra.mxu1 %v1887_v28  ;;  %1719 = vmatprep.subr.bf16.mxu0 %v1952_v1  ;;  %v1931_v28 = vld [vmem:[%s2357_s1 + $0x180] sm:$0xff]  }
  0x3f   : > { %1739 = vmatprep.subr.bf16.mxu1 %v1952_v1 }
  0x41   : > { %1720 = vmatpush3.bf16.msra.mxu0 %v1888_v29  ;;  %v1932_v29 = vld [vmem:[%s2357_s1 + $0x1c0] sm:$0xff]  }
  0x42   : > { %1740 = vmatpush3.bf16.msra.mxu1 %v1889_v30  ;;  %1721 = vmatprep.subr.bf16.mxu0 %v1952_v1  ;;  %v1522_v30 = vld [vmem:[%s2036_s14 + $0x14] sm:$0xf] }
  0x43   : > { %1741 = vmatprep.subr.bf16.mxu1 %v1952_v1  ;;  %v1539_v33 = vcombine.low %v2207_v61, %v1522_v30 }
  0x45   : > { %1722 = vmatpush3.bf16.msra.mxu0 %v1890_v34  ;;  %v1936_v34 = vld [vmem:[%s2357_s1 + $0x230] sm:$0xff]  }
  0x46   : > { %1742 = vmatpush3.bf16.msra.mxu1 %v1891_v36  ;;  %1723 = vmatprep.subr.bf16.mxu0 %v1952_v1  ;;  %v1939_v36 = vld [vmem:[%s2357_s1 + $0x218] sm:$0xff]  }
  0x47   : > { %1743 = vmatprep.subr.bf16.mxu1 %v1952_v1 }
  0x49   : > { %1724 = vmatpush3.bf16.msra.mxu0 %v1892_v37  ;;  %v1940_v37 = vld [vmem:[%s2357_s1 + $0x210] sm:$0xff]  }
  0x4a   : > { %1744 = vmatpush3.bf16.msra.mxu1 %v1893_v38  ;;  %1749 = vmatprep.subr.bf16.mxu0 %v1952_v1  ;;  %v1941_v38 = vld [vmem:[%s2357_s1 + $0x208] sm:$0xff]  }
  0x4b   : > { %1769 = vmatprep.subr.bf16.mxu1 %v1952_v1 }
  0x4c   : > { %1726 = vmatmul.mubr.bf16.vlgmr.msra.gmra.mxu0 %v1894_v41 }
  0x4d   : > { %1750 = vmatpush3.bf16.msra.mxu0 %v1895_v42  ;;  %1746 = vmatmul.mubr.bf16.vlgmr.msra.gmra.mxu1 %v575_v43 }
  0x4e   : > { %1770 = vmatpush3.bf16.msra.mxu1 %v1898_v44  ;;  %1751 = vmatprep.subr.bf16.mxu0 %v1952_v1 }
  0x4f   : > { %1771 = vmatprep.subr.bf16.mxu1 %v1952_v1  ;;  %1765 = vmatprep.mubr.msk.bf16.mxu0 %vm1953_vm0, %v1952_v1 }
  0x50   : > { %1785 = vmatprep.mubr.msk.bf16.mxu1 %vm1953_vm0, %v1952_v1 }
  0x51   : > { %1752 = vmatpush3.bf16.msra.mxu0 %v1899_v45 }
  0x52   : > { %1772 = vmatpush3.bf16.msra.mxu1 %v1900_v46  ;;  %1753 = vmatprep.subr.bf16.mxu0 %v1952_v1 }
  0x53   : > { %1773 = vmatprep.subr.bf16.mxu1 %v1952_v1 }
  0x55   : > { %1754 = vmatpush3.bf16.msra.mxu0 %v1901_v47 }
  0x56   : > { %1774 = vmatpush3.bf16.msra.mxu1 %v1902_v48  ;;  %1755 = vmatprep.subr.bf16.mxu0 %v1952_v1 }
  0x57   : > { %1775 = vmatprep.subr.bf16.mxu1 %v1952_v1 }
  0x59   : > { %1756 = vmatpush3.bf16.msra.mxu0 %v1903_v51 }
  0x5a   : > { %1776 = vmatpush3.bf16.msra.mxu1 %v1904_v52  ;;  %1757 = vmatprep.subr.bf16.mxu0 %v1952_v1 }
  0x5b   : > { %1777 = vmatprep.subr.bf16.mxu1 %v1952_v1 }
  0x5d   : > { %1758 = vmatpush3.bf16.msra.mxu0 %v1905_v53 }
  0x5e   : > { %1778 = vmatpush3.bf16.msra.mxu1 %v1906_v54  ;;  %1759 = vmatprep.subr.bf16.mxu0 %v1952_v1 }
  0x5f   : > { %1779 = vmatprep.subr.bf16.mxu1 %v1952_v1 }
  0x61   : > { %1760 = vmatpush3.bf16.msra.mxu0 %v1907_v58 }
  0x62   : > { %1780 = vmatpush3.bf16.msra.mxu1 %v1908_v59  ;;  %1761 = vmatprep.subr.bf16.mxu0 %v1952_v1 }
  0x63   : > { %1781 = vmatprep.subr.bf16.mxu1 %v1952_v1 }
  0x65   : > { %1762 = vmatpush3.bf16.msra.mxu0 %v1909_v63 }
  0x66   : > { %1782 = vmatpush3.bf16.msra.mxu1 %v1910_v3  ;;  %1763 = vmatprep.subr.bf16.mxu0 %v1952_v1 }
  0x67   : > { %1783 = vmatprep.subr.bf16.mxu1 %v1952_v1 }
  0x69   : > { %1764 = vmatpush3.bf16.msra.mxu0 %v1911_v6 }
  0x6a   : > { %1784 = vmatpush3.bf16.msra.mxu1 %v1912_v9  ;;  %1789 = vmatprep.subr.bf16.mxu0 %v1952_v1 }
  0x6b   : > { %1809 = vmatprep.subr.bf16.mxu1 %v1952_v1 }
  0x6c   : > { %1766 = vmatmul.mubr.bf16.vlgmr.msra.gmra.mxu0 %v698_v12 }
  0x6d   : > { %1790 = vmatpush3.bf16.msra.mxu0 %v1915_v13  ;;  %1786 = vmatmul.mubr.bf16.vlgmr.msra.gmra.mxu1 %v821_v14 }
  0x6e   : > { %1810 = vmatpush3.bf16.msra.mxu1 %v1918_v15  ;;  %1791 = vmatprep.subr.bf16.mxu0 %v1952_v1 }
  0x6f   : > { %1811 = vmatprep.subr.bf16.mxu1 %v1952_v1  ;;  %1805 = vmatprep.mubr.msk.bf16.mxu0 %vm1953_vm0, %v1952_v1 }
  0x70   : > { %1825 = vmatprep.mubr.msk.bf16.mxu1 %vm1953_vm0, %v1952_v1 }
  0x71   : > { %1792 = vmatpush3.bf16.msra.mxu0 %v1919_v16 }
  0x72   : > { %1812 = vmatpush3.bf16.msra.mxu1 %v1920_v17  ;;  %1793 = vmatprep.subr.bf16.mxu0 %v1952_v1 }
  0x73   : > { %1813 = vmatprep.subr.bf16.mxu1 %v1952_v1 }
  0x75   : > { %1794 = vmatpush3.bf16.msra.mxu0 %v1921_v18 }
  0x76   : > { %1814 = vmatpush3.bf16.msra.mxu1 %v1922_v19  ;;  %1795 = vmatprep.subr.bf16.mxu0 %v1952_v1 }
  0x77   : > { %1815 = vmatprep.subr.bf16.mxu1 %v1952_v1 }
  0x79   : > { %1796 = vmatpush3.bf16.msra.mxu0 %v1923_v20 }
  0x7a   : > { %1816 = vmatpush3.bf16.msra.mxu1 %v1924_v21  ;;  %1797 = vmatprep.subr.bf16.mxu0 %v1952_v1 }
  0x7b   : > { %1817 = vmatprep.subr.bf16.mxu1 %v1952_v1 }
  0x7d   : > { %1798 = vmatpush3.bf16.msra.mxu0 %v1925_v22  ;;  %v1574_v22 = vld [vmem:[%s2358_s2] ss:$0 sm:$0xff] }
  0x7e   : > { %1818 = vmatpush3.bf16.msra.mxu1 %v1926_v23  ;;  %1799 = vmatprep.subr.bf16.mxu0 %v1952_v1 }
  0x7f   : > { %1819 = vmatprep.subr.bf16.mxu1 %v1952_v1 }
  0x81   : > { %1800 = vmatpush3.bf16.msra.mxu0 %v1927_v24  ;;  %v1575_v24 = vld [vmem:[%s2359_s3] ss:$0 sm:$0xff] }
  0x82   : > { %1820 = vmatpush3.bf16.msra.mxu1 %v1928_v25  ;;  %1801 = vmatprep.subr.bf16.mxu0 %v1952_v1 }
  0x83   : > { %1821 = vmatprep.subr.bf16.mxu1 %v1952_v1 }
  0x85   : > { %1802 = vmatpush3.bf16.msra.mxu0 %v1929_v26 }
  0x86   : > { %1822 = vmatpush3.bf16.msra.mxu1 %v1930_v27  ;;  %1803 = vmatprep.subr.bf16.mxu0 %v1952_v1 }
  0x87   : > { %1823 = vmatprep.subr.bf16.mxu1 %v1952_v1 }
  0x89   : > { %1804 = vmatpush3.bf16.msra.mxu0 %v1931_v28 }
  0x8a   : > { %1824 = vmatpush3.bf16.msra.mxu1 %v1932_v29  ;;  %1829 = vmatprep.subr.bf16.mxu0 %v1952_v1 }
  0x8c   : > { %1806 = vmatmul.mubr.bf16.vlgmr.msra.gmra.mxu0 %v1513_v50 }
  0x8d   : > { %1830 = vmatpush3.bf16.msra.mxu0 %v1934_v31  ;;  %1826 = vmatmul.mubr.bf16.vlgmr.msra.gmra.mxu1 %v1539_v33 }
  0x8e   : > { %1831 = vmatprep.subr.bf16.mxu0 %v1952_v1  ;;  %1845 = vmatprep.mubr.msk.bf16.mxu0 %vm1953_vm0, %v1952_v1 }
  0x91   : > { %1832 = vmatpush3.bf16.msra.mxu0 %v1936_v34 }
  0x92   : > { %1833 = vmatprep.subr.bf16.mxu0 %v1952_v1 }
  0x95   : > { %1834 = vmatpush3.bf16.msra.mxu0 %v1937_v35 }
  0x96   : > { %1835 = vmatprep.subr.bf16.mxu0 %v1952_v1 }
  0x99   : > { %1836 = vmatpush3.bf16.msra.mxu0 %v1938_v32 }
  0x9a   : > { %1837 = vmatprep.subr.bf16.mxu0 %v1952_v1 }
  0x9d   : > { %1838 = vmatpush3.bf16.msra.mxu0 %v1939_v36 }
  0x9e   : > { %1839 = vmatprep.subr.bf16.mxu0 %v1952_v1 }
  0xa1   : > { %1840 = vmatpush3.bf16.msra.mxu0 %v1940_v37 }
  0xa2   : > { %1841 = vmatprep.subr.bf16.mxu0 %v1952_v1 }
  0xa5   : > { %1842 = vmatpush3.bf16.msra.mxu0 %v1941_v38 }
  0xa6   : > { %1843 = vmatprep.subr.bf16.mxu0 %v1952_v1 }
  0xa9   : > { %1844 = vmatpush3.bf16.msra.mxu0 %v1942_v39 }
  0xac   : > { %1846 = vmatmul.mubr.bf16.vlgmr.msra.gmra.mxu0 %v1565_v57 }
  0xec   : > { %v325_v40 = vpop.f32.mrf.mxu0 }
  0xed   : > { %v420_v41 = vpop.f32.mrf.mxu1 }
  0xee   : > { %v421_v42 = vadd.f32 %v420_v41, %v325_v40  ;;  %v1687_v43 = vpop.f32.mrf.mxu0 }
  0xef   : > { %v1707_v44 = vpop.f32.mrf.mxu1 }
  0xf0   : > { %v328_v45 = vpop.f32.mrf.mxu0 }
  0xf1   : > { %v423_v46 = vpop.f32.mrf.mxu1 }
  0xf2   : > { %v424_v47 = vadd.f32 %v423_v46, %v328_v45  ;;  %v1688_v48 = vpop.f32.mrf.mxu0 }
  0xf3   : > { %v1708_v49 = vpop.f32.mrf.mxu1 }
 0x10c   : > { %v535_v50 = vpop.f32.mrf.mxu0 }
 0x10d   : > { %v542_v51 = vadd.f32 %v535_v50, %v421_v42  ;;  %v659_v52 = vpop.f32.mrf.mxu1 }
 0x10e   : > { %v1727_v53 = vpop.f32.mrf.mxu0 }
 0x10f   : > { %v666_v1 = vadd.f32 %v659_v52, %v542_v51  ;;  %v1747_v54 = vpop.f32.mrf.mxu1 }
 0x110   : > { %v538_v58 = vpop.f32.mrf.mxu0 }
 0x111   : > { %v543_v59 = vadd.f32 %v538_v58, %v424_v47  ;;  %v662_v55 = vpop.f32.mrf.mxu1 }
 0x112   : > { %v1728_v56 = vpop.f32.mrf.mxu0 }
 0x113   : > { %v667_v57 = vadd.f32 %v662_v55, %v543_v59  ;;  %v1748_v60 = vpop.f32.mrf.mxu1 }
 0x12c   : > { %v782_v61 = vpop.f32.mrf.mxu0 }
 0x12d   : > { %v905_v62 = vpop.f32.mrf.mxu1  ;;  %v789_v14 = vadd.f32 %v782_v61, %v666_v1 }
 0x12e   : > { %v1767_v63 = vpop.f32.mrf.mxu0 }
 0x12f   : > { %v1787_v0 = vpop.f32.mrf.mxu1  ;;  %v912_v15 = vadd.f32 %v905_v62, %v789_v14 }
 0x130   : > { %v785_v2 = vpop.f32.mrf.mxu0 }
 0x131   : > { %v908_v3 = vpop.f32.mrf.mxu1  ;;  %v790_v16 = vadd.f32 %v785_v2, %v667_v57 }
 0x132   : > { %v1768_v4 = vpop.f32.mrf.mxu0 }
 0x133   : > { %v1788_v5 = vpop.f32.mrf.mxu1  ;;  %v913_v18 = vadd.f32 %v908_v3, %v790_v16 }
 0x14c   : > { %v1018_v6 = vpop.f32.mrf.mxu0 }
 0x14d   : > { %v1131_v7 = vpop.f32.mrf.mxu1  ;;  %v1025_v17 = vadd.f32 %v1018_v6, %v912_v15 }
 0x14e   : > { %v1807_v8 = vpop.f32.mrf.mxu0 }
 0x14f   : > { %v1827_v9 = vpop.f32.mrf.mxu1  ;;  %v1138_v19 = vadd.f32 %v1131_v7, %v1025_v17 }
 0x150   : > { %v1021_v10 = vpop.f32.mrf.mxu0 }
 0x151   : > { %v1134_v11 = vpop.f32.mrf.mxu1  ;;  %v1026_v20 = vadd.f32 %v1021_v10, %v913_v18 }
 0x152   : > { %v1808_v12 = vpop.f32.mrf.mxu0 }
 0x153   : > { %v1828_v13 = vpop.f32.mrf.mxu1  ;;  %v1139_v26 = vadd.f32 %v1134_v11, %v1026_v20 }
 0x16c   : > { %v1244_v21 = vpop.f32.mrf.mxu0 }
 0x16d   : > { %v1251_v23 = vadd.f32 %v1244_v21, %v1138_v19 }
 0x16e   : > { %v1847_v25 = vpop.f32.mrf.mxu0 }
 0x16f   : > { %v1260_v27 = vmul.f32 %v1574_v22, %v1251_v23 }
 0x170   : > { %v1247_v28 = vpop.f32.mrf.mxu0 }
 0x171   : > { %v1269_v29 = vadd.f32 %v1575_v24, %v1260_v27  ;;  %v1252_v30 = vadd.f32 %v1247_v28, %v1139_v26 }
 0x172   : > { %v1848_v31 = vpop.f32.mrf.mxu0 }
 0x173   : > { %v1261_v33 = vmul.f32 %v1574_v22, %v1252_v30  ;;  %v1273_v34 = vmul.f32 0.1, %v1269_v29  ;;  %vm1271_vm2 = vcmp.ge.f32.partialorder %v1269_v29, 0.0 }
 0x175   : > { %v1270_v35 = vadd.f32 %v1575_v24, %v1261_v33  ;;  %v1275_v36 = vsel %vm1271_vm2, %v1269_v29, %v1273_v34 }
 0x177   : > { %vm1272_vm3 = vcmp.ge.f32.partialorder %v1270_v35, 0.0  ;;  %v1274_v32 = vmul.f32 0.1, %v1270_v35 }
 0x179   : > { %v1276_v37 = vsel %vm1272_vm3, %v1270_v35, %v1274_v32 }
 0x17a   : > { %v1586_v38 = vpack.c.bf16 %v1276_v37, %v1275_v36 }
 0x17c   : > { %1587 = vst [vmem:[%s197_s6] sm:$0xff] %v1586_v38  }
 0x17d PF: > { %s14_s15 = sadd.s32 1, %s1950_s15  }
 0x17e   : > { %p11_p4 = scmp.ge.s32.totalorder %s14_s15, 4  }
 0x180   :  { %13 = sbr.rel (!%p11_p4) target bundleno = 1 (0x1), region = 76 }

// kernel: _lambda_.43
= control target key start
LH: loop header
LB: loop body
LE: loop exit
PB: predicated region body
PF: predicated region fallthrough
CT: control target
= control target key end

     0   :  { %v239_v1 = vmov 0.0   ;;  %vm240_vm0 = vmmov 0   ;;  %s339_s0 = inlined_call_operand.vmem [shape: bf16[2,16,128], index: 0, kind: input, shape index: {}]   ;;  %s340_s1 = inlined_call_operand.vmem [shape: f32[128,128], index: 1, kind: input, shape index: {}]   ;;  %s341_s2 = inlined_call_operand.vmem [shape: f32[1,128], index: 2, kind: input, shape index: {}]   ;;  %s342_s3 = inlined_call_operand.hbm [shape: f32[2,128], index: 3, kind: output, shape index: {}]  }
   0x1   :  { %v54_v0 = vld [vmem:[%s340_s1 + $0x78] sm:$0xff]  ;;  %179 = vmatprep.subr.mxu0 %v239_v1  ;;  %v53_v2 = vld [vmem:[%s340_s1 + $0x70] sm:$0xff]  ;;  %211 = vmatprep.mubr.msk.f32.mxu0 %vm240_vm0, %v239_v1  ;;  %v52_v3 = vld [vmem:[%s340_s1 + $0x68] sm:$0xff] }
   0x2   :  { %180 = vmatpush3.msra.mxu0 %v54_v0  ;;  %v51_v4 = vld [vmem:[%s340_s1 + $0x60] sm:$0xff]  ;;  %v161_v6 = vld [vmem:[%s339_s0 + $0x8] sm:$0xff]  }
   0x3   :  { %181 = vmatprep.subr.mxu0 %v239_v1  ;;  %v154_v5 = vld [vmem:[%s339_s0] sm:$0xff]   ;;  %v159_v9 = vunpack.c.l.bf16 %v161_v6  ;;  %v160_v10 = vunpack.c.h.bf16 %v161_v6 }
   0x4   :  { %182 = vmatpush3.msra.mxu0 %v53_v2  ;;  %v155_v7 = vunpack.c.l.bf16 %v154_v5  ;;  %v156_v8 = vunpack.c.h.bf16 %v154_v5 }
   0x5   :  { %183 = vmatprep.subr.mxu0 %v239_v1 }
   0x6   :  { %184 = vmatpush3.msra.mxu0 %v52_v3 }
   0x7   :  { %8 = vsyncpa [#allocation3], 0  ;;  %185 = vmatprep.subr.mxu0 %v239_v1  ;;  %v50_v11 = vld [vmem:[%s340_s1 + $0x58] sm:$0xff]  ;;  %v23_v12 = vadd.f32 %v156_v8, %v155_v7  ;;  %v30_v13 = vadd.f32 %v160_v10, %v159_v9  ;;  %v49_v14 = vld [vmem:[%s340_s1 + $0x50] sm:$0xff]  ;;  %vm64_vm1 = vcmask 1041409   ;;  %s241_s22 = smov [#allocation2]  }
   0x8   :  { %186 = vmatpush3.msra.mxu0 %v51_v4  ;;  %v48_v17 = vld [vmem:[%s340_s1 + $0x48] sm:$0xff]  ;;  %v47_v20 = vld [vmem:[%s340_s1 + $0x40] sm:$0xff]  ;;  %v46_v23 = vld [vmem:[%s340_s1 + $0x38] sm:$0xff]  ;;  %s144_s23 = sshll.u32 %s241_s22, 4  ;;  %s145_s23 = int_to_ptr.vmem [resolvable:$true] %s144_s23 }
   0x9   :  { %187 = vmatprep.subr.mxu0 %v239_v1  ;;  %v24_v15 = vrot.slane %v23_v12, 4  ;;  %v31_v16 = vrot.slane %v30_v13, 4  ;;  %v45_v26 = vld [vmem:[%s340_s1 + $0x30] sm:$0xff]  ;;  %v44_v29 = vld [vmem:[%s340_s1 + $0x28] sm:$0xff]  ;;  %v43_v30 = vld [vmem:[%s340_s1 + $0x20] sm:$0xff]  ;;  %s217_s24 = scalar_lea.vmem %s145_s23, 32  ;;  %p222_p1 = scmp.lt.s32.totalorder %s145_s23, %s145_s23 }
   0xa   :  { %188 = vmatpush3.msra.mxu0 %v50_v11  ;;  %v42_v33 = vld [vmem:[%s340_s1 + $0x18] sm:$0xff]  ;;  %v41_v34 = vld [vmem:[%s340_s1 + $0x10] sm:$0xff]  ;;  %v40_v37 = vld [vmem:[%s340_s1 + $0x8] sm:$0xff]  ;;  %p218_p0 = scmp.ne.s32.totalorder %s145_s23, %s217_s24  ;;  %p223_p2 = scmp.lt.s32.totalorder %s217_s24, %s217_s24 }
   0xb   :  { %189 = vmatprep.subr.mxu0 %v239_v1  ;;  %v25_v18 = vadd.f32 %v24_v15, %v23_v12  ;;  %v32_v19 = vadd.f32 %v31_v16, %v30_v13  ;;  %v39_v38 = vld [vmem:[%s340_s1] sm:$0xff] }
   0xc   :  { %190 = vmatpush3.msra.mxu0 %v49_v14  ;;  %v152_v40 = vld [vmem:[%s341_s2] ss:$0 sm:$0xff]  ;;  %p224_p3 = por %p223_p2, %p222_p1 }
   0xd   :  { %191 = vmatprep.subr.mxu0 %v239_v1  ;;  %v26_v21 = vrot.slane %v25_v18, 2  ;;  %v33_v22 = vrot.slane %v32_v19, 2 }
   0xe   :  { %192 = vmatpush3.msra.mxu0 %v48_v17  ;;  %p225_p4 = pnand %p224_p3, %p218_p0 }
   0xf   :  { %193 = vmatprep.subr.mxu0 %v239_v1  ;;  %v27_v24 = vadd.f32 %v26_v21, %v25_v18  ;;  %v34_v25 = vadd.f32 %v33_v22, %v32_v19 }
  0x10   :  { %194 = vmatpush3.msra.mxu0 %v47_v20 }
  0x11   :  { %195 = vmatprep.subr.mxu0 %v239_v1  ;;  %v28_v27 = vrot.slane %v27_v24, 1  ;;  %v35_v28 = vrot.slane %v34_v25, 1 }
  0x12   :  { %196 = vmatpush3.msra.mxu0 %v46_v23 }
  0x13   :  { %197 = vmatprep.subr.mxu0 %v239_v1  ;;  %v29_v31 = vadd.f32 %v28_v27, %v27_v24  ;;  %v36_v32 = vadd.f32 %v35_v28, %v34_v25 }
  0x14   :  { %198 = vmatpush3.msra.mxu0 %v45_v26 }
  0x15   :  { %199 = vmatprep.subr.mxu0 %v239_v1  ;;  %v37_v35 = vmul.f32 0.0625, %v29_v31  ;;  %v38_v36 = vmul.f32 0.0625, %v36_v32 }
  0x16   :  { %200 = vmatpush3.msra.mxu0 %v44_v29 }
  0x17   :  { %201 = vmatprep.subr.mxu0 %v239_v1  ;;  %v65_v39 = vsel %vm64_vm1, %v38_v36, %v37_v35 }
  0x18   :  { %202 = vmatpush3.msra.mxu0 %v43_v30 }
  0x19   :  { %203 = vmatprep.subr.mxu0 %v239_v1 }
  0x1a   :  { %204 = vmatpush3.msra.mxu0 %v42_v33 }
  0x1b   :  { %205 = vmatprep.subr.mxu0 %v239_v1 }
  0x1c   :  { %206 = vmatpush3.msra.mxu0 %v41_v34 }
  0x1d   :  { %207 = vmatprep.subr.mxu0 %v239_v1 }
  0x1e   :  { %208 = vmatpush3.msra.mxu0 %v40_v37 }
  0x1f   :  { %209 = vmatprep.subr.mxu0 %v239_v1 }
  0x20   :  { %210 = vmatpush3.msra.mxu0 %v39_v38 }
  0x21   :  { %212 = vmatmul.mubr.f32.vlgmr.msra.gmra.mxu0 %v65_v39 }
  0xe1   :  { %v133_v41 = vpop.f32.mrf.mxu0 }
  0xe2   :  { %v134_v42 = vadd.f32 %v152_v40, %v133_v41 }
  0xe3   :  { %v213_v43 = vpop.f32.mrf.mxu0 }
  0xe4   :  { %137 = vst [vmem:[#allocation2] sm:$0x3] %v134_v42 }
  0xe5   :  { %228 = shalt.err (!%p225_p4)
}
  0xe6   :  { %147 = dma.vmem_to_hbm [thread:$0]  %s145_s23, 32, %s342_s3, [#allocation3]  }
  0xe7   :  { %237 = dma.done.wait [#allocation3], 32  }
  0xe8   :  { %238 = vsyncadd [#allocation3], 4294967264 }
  0xe9   :  { %151 = vsyncpa [#allocation3], 1 }

// kernel: _lambda_.42
= control target key start
LH: loop header
LB: loop body
LE: loop exit
PB: predicated region body
PF: predicated region fallthrough
CT: control target
= control target key end

     0   :  { %s2056_s18 = smov 0   ;;  %s2440_s0 = inlined_call_operand.vmem [shape: bf16[2,3,24,128], index: 0, kind: input, shape index: {}]   ;;  %s2441_s1 = inlined_call_operand.vmem [shape: bf16[9,128,128], index: 1, kind: input, shape index: {}]   ;;  %s2442_s2 = inlined_call_operand.vmem [shape: f32[1,128], index: 2, kind: input, shape index: {}]   ;;  %s2443_s3 = inlined_call_operand.vmem [shape: f32[1,128], index: 3, kind: input, shape index: {}]   ;;  %s2444_s4 = inlined_call_operand.vmem [shape: bf16[2,16,128], index: 4, kind: input, shape index: {}]   ;;  %s2445_s5 = inlined_call_operand.vmem [shape: bf16[2,16,128], index: 5, kind: output, shape index: {}]  }
   0x1 LB: > { %s1407_s19 = sadd.s32 4294967295, %s2022_s18   ;;  %p1411_p0 = scmp.ge.s32.totalorder %s2022_s18, 1  ;;  %s2022_s18 = sphi %s2056_s18, %s15_s18  }
   0x2   : > { %p197_p1 = scmp.lt.s32.totalorder %s2022_s18, 3 }
   0x4   : > { %p198_p2 = pnand %p1411_p0, %p197_p1 }
   0x5   : > { %p230_p3 = scmp.lt.s32.totalorder (!%p198_p2), %s1407_s19, 1 }
   0x6   : > { %201 = sbr.rel (%p198_p2) target bundleno = 383 (0x17f), region = 40 }
   0xb   : > { %v1932_v0 = vld [vmem:[%s2441_s1 + $0x78] sm:$0xff]   ;;  %v2024_v1 = vmov 0.0   ;;  %v1934_v3 = vld [vmem:[%s2441_s1 + $0x70] sm:$0xff]   ;;  %vm2025_vm0 = vmmov 0   ;;  %v1936_v5 = vld [vmem:[%s2441_s1 + $0x68] sm:$0xff]   ;;  %s2447_s19 = smov (!%p230_p3, %s1407_s19), 1 }
   0xc   : > { %1741 = vmatprep.subr.bf16.mxu0 %v2024_v1  ;;  %1761 = vmatprep.subr.bf16.mxu1 %v2024_v1  ;;  %v1933_v2 = vld [vmem:[%s2441_s1 + $0x38] sm:$0xff]   ;;  %v1935_v4 = vld [vmem:[%s2441_s1 + $0x30] sm:$0xff]   ;;  %v1937_v6 = vld [vmem:[%s2441_s1 + $0x28] sm:$0xff]   ;;  %s1921_s11 = smul.u32 36, %s2447_s19  ;;  %vm619_vm1 = vcmask 1045504   ;;  %s1647_s9 = sshll.u32 %s2447_s19, 3 }
   0xd   : > { %1742 = vmatpush3.bf16.msra.mxu0 %v1932_v0  ;;  %1757 = vmatprep.mubr.msk.bf16.mxu0 %vm2025_vm0, %v2024_v1  ;;  %v1938_v7 = vld [vmem:[%s2441_s1 + $0x60] sm:$0xff]   ;;  %v1940_v9 = vld [vmem:[%s2441_s1 + $0x58] sm:$0xff]   ;;  %v1942_v11 = vld [vmem:[%s2441_s1 + $0x50] sm:$0xff]   ;;  %s239_s12 = scalar_lea.vmem %s2444_s4, %s1647_s9 }
   0xe   : > { %1762 = vmatpush3.bf16.msra.mxu1 %v1933_v2  ;;  %1743 = vmatprep.subr.bf16.mxu0 %v2024_v1  ;;  %v1939_v8 = vld [vmem:[%s2441_s1 + $0x20] sm:$0xff]   ;;  %v1941_v10 = vld [vmem:[%s2441_s1 + $0x18] sm:$0xff]   ;;  %s2113_s20 = scalar_lea.vmem %s2440_s0, %s1921_s11  ;;  %v1943_v12 = vld [vmem:[%s2441_s1 + $0x10] sm:$0xff]  }
   0xf   : > { %1763 = vmatprep.subr.bf16.mxu1 %v2024_v1  ;;  %1777 = vmatprep.mubr.msk.bf16.mxu1 %vm2025_vm0, %v2024_v1  ;;  %v1944_v13 = vld [vmem:[%s2441_s1 + $0x48] sm:$0xff]   ;;  %v1946_v15 = vld [vmem:[%s2441_s1 + $0x40] sm:$0xff]   ;;  %v1950_v19 = vld [vmem:[%s2441_s1 + $0xb8] sm:$0xff]  }
  0x10   : > { %v1945_v14 = vld [vmem:[%s2441_s1 + $0x8] sm:$0xff]   ;;  %v1947_v16 = vld [vmem:[%s2441_s1] sm:$0xff]   ;;  %v1951_v20 = vld [vmem:[%s2441_s1 + $0xf8] sm:$0xff]  }
  0x11   : > { %1744 = vmatpush3.bf16.msra.mxu0 %v1934_v3  ;;  %v1948_v17 = vld [vmem:[%s2113_s20 + $0xc] sm:$0xff]   ;;  %v1949_v18 = vld [vmem:[%s2113_s20] sm:$0xff]   ;;  %v1958_v27 = vld [vmem:[%s2441_s1 + $0x98] sm:$0xff]  }
  0x12   : > { %1764 = vmatpush3.bf16.msra.mxu1 %v1935_v4  ;;  %1745 = vmatprep.subr.bf16.mxu0 %v2024_v1  ;;  %v1952_v21 = vld [vmem:[%s2441_s1 + $0xb0] sm:$0xff]   ;;  %v1954_v23 = vld [vmem:[%s2441_s1 + $0xa8] sm:$0xff]   ;;  %v1956_v25 = vld [vmem:[%s2441_s1 + $0xa0] sm:$0xff]  }
  0x13   : > { %1765 = vmatprep.subr.bf16.mxu1 %v2024_v1  ;;  %v1953_v22 = vld [vmem:[%s2441_s1 + $0xf0] sm:$0xff]   ;;  %v1955_v24 = vld [vmem:[%s2441_s1 + $0xe8] sm:$0xff]   ;;  %v1957_v26 = vld [vmem:[%s2441_s1 + $0xe0] sm:$0xff]  }
  0x14   : > { %v1959_v28 = vld [vmem:[%s2441_s1 + $0xd8] sm:$0xff]   ;;  %v1960_v29 = vld [vmem:[%s2441_s1 + $0x90] sm:$0xff]   ;;  %v591_v31 = vld [vmem:[%s2113_s20] sm:$0xc] }
  0x15   : > { %1746 = vmatpush3.bf16.msra.mxu0 %v1936_v5  ;;  %v1961_v30 = vld [vmem:[%s2441_s1 + $0xd0] sm:$0xff]   ;;  %v2195_v32 = vld [vmem:[%s2113_s20 + $0x4] sm:$0xf]  ;;  %v1969_v33 = vld [vmem:[%s2113_s20 + $0x8] ss:$0 sps:$4 sm:$0x33]  }
  0x16   : > { %1766 = vmatpush3.bf16.msra.mxu1 %v1937_v6  ;;  %1747 = vmatprep.subr.bf16.mxu0 %v2024_v1  ;;  %v1962_v34 = vld [vmem:[%s2441_s1 + $0x88] sm:$0xff]   ;;  %v1496_v35 = vcombine.low %v591_v31, %v2195_v32  ;;  %v1964_v37 = vld [vmem:[%s2441_s1 + $0x80] sm:$0xff]   ;;  %v621_v40 = vrot.slane %v1969_v33, 2  ;;  %v1966_v41 = vld [vmem:[%s2113_s20 + $0x18] sm:$0xff]  }
  0x17   : > { %1767 = vmatprep.subr.bf16.mxu1 %v2024_v1  ;;  %v1963_v36 = vld [vmem:[%s2441_s1 + $0xc8] sm:$0xff]   ;;  %v1965_v38 = vld [vmem:[%s2441_s1 + $0xc0] sm:$0xff]   ;;  %v1967_v42 = vld [vmem:[%s2441_s1 + $0x138] sm:$0xff]  }
  0x18   : > { %v620_v39 = vrot.slane %v1496_v35, 2  ;;  %v1970_v44 = vld [vmem:[%s2441_s1 + $0x178] sm:$0xff]   ;;  %v1971_v45 = vld [vmem:[%s2441_s1 + $0x130] sm:$0xff]   ;;  %v1973_v47 = vld [vmem:[%s2441_s1 + $0x128] sm:$0xff]  }
  0x19   : > { %1748 = vmatpush3.bf16.msra.mxu0 %v1938_v7  ;;  %v1972_v46 = vld [vmem:[%s2441_s1 + $0x170] sm:$0xff]   ;;  %v1974_v48 = vld [vmem:[%s2441_s1 + $0x168] sm:$0xff]   ;;  %v1975_v51 = vld [vmem:[%s2441_s1 + $0x120] sm:$0xff]  }
  0x1a   : > { %1768 = vmatpush3.bf16.msra.mxu1 %v1939_v8  ;;  %1749 = vmatprep.subr.bf16.mxu0 %v2024_v1  ;;  %v622_v43 = vsel %vm619_vm1, %v620_v39, %v621_v40  ;;  %v2246_v49 = vld [vmem:[%s2113_s20 + $0x8] sm:$0xf]  ;;  %v1976_v52 = vld [vmem:[%s2441_s1 + $0x160] sm:$0xff]   ;;  %v1977_v53 = vld [vmem:[%s2441_s1 + $0x118] sm:$0xff]  }
  0x1b   : > { %1769 = vmatprep.subr.bf16.mxu1 %v2024_v1  ;;  %v1580_v50 = vcombine.low %v2195_v32, %v2246_v49  ;;  %v1978_v54 = vld [vmem:[%s2441_s1 + $0x158] sm:$0xff]   ;;  %v2271_v56 = vld [vmem:[%s2113_s20 + $0x20] sm:$0xf]  ;;  %v1979_v58 = vld [vmem:[%s2441_s1 + $0x110] sm:$0xff]  }
  0x1c   : > { %v2268_v55 = vld [vmem:[%s2113_s20 + $0x1c] sm:$0xf]  ;;  %v1980_v59 = vld [vmem:[%s2441_s1 + $0x150] sm:$0xff]   ;;  %v1506_v60 = vld [vmem:[%s2113_s20 + $0xc] sm:$0xc] }
  0x1d   : > { %1750 = vmatpush3.bf16.msra.mxu0 %v1940_v9  ;;  %v1632_v57 = vcombine.low %v2268_v55, %v2271_v56  ;;  %v2284_v61 = vld [vmem:[%s2113_s20 + $0x10] sm:$0xf]  ;;  %v1535_v62 = vld [vmem:[%s2113_s20 + $0x18] sm:$0xc]  ;;  %v1981_v63 = vld [vmem:[%s2441_s1 + $0x108] sm:$0xff]  }
  0x1e   : > { %1770 = vmatpush3.bf16.msra.mxu1 %v1941_v10  ;;  %1751 = vmatprep.subr.bf16.mxu0 %v2024_v1  ;;  %v1525_v0 = vcombine.low %v1506_v60, %v2284_v61  ;;  %v1986_v2 = vld [vmem:[%s2113_s20 + $0x14] ss:$0 sps:$4 sm:$0x33]   ;;  %v1982_v3 = vld [vmem:[%s2441_s1 + $0x148] sm:$0xff]   ;;  %v1554_v4 = vcombine.low %v1535_v62, %v2268_v55  ;;  %v1983_v6 = vld [vmem:[%s2441_s1 + $0x100] sm:$0xff]  }
  0x1f   : > { %1771 = vmatprep.subr.bf16.mxu1 %v2024_v1  ;;  %v1989_v5 = vld [vmem:[%s2113_s20 + $0x20] ss:$0 sps:$4 sm:$0x33]   ;;  %v744_v8 = vrot.slane %v1986_v2, 2  ;;  %v2006_v31 = vld [vmem:[%s2441_s1 + $0x238] sm:$0xff]   ;;  %v2009_v35 = vld [vmem:[%s2441_s1 + $0x228] sm:$0xff]  }
  0x20   : > { %v743_v7 = vrot.slane %v1525_v0, 2  ;;  %v1984_v9 = vld [vmem:[%s2441_s1 + $0x140] sm:$0xff]   ;;  %v866_v10 = vrot.slane %v1554_v4, 2 }
  0x21   : > { %1752 = vmatpush3.bf16.msra.mxu0 %v1942_v11  ;;  %v867_v11 = vrot.slane %v1989_v5, 2  ;;  %v2010_v32 = vld [vmem:[%s2441_s1 + $0x220] sm:$0xff]  }
  0x22   : > { %1772 = vmatpush3.bf16.msra.mxu1 %v1943_v12  ;;  %1753 = vmatprep.subr.bf16.mxu0 %v2024_v1  ;;  %v745_v12 = vsel %vm619_vm1, %v743_v7, %v744_v8  ;;  %v2014_v39 = vld [vmem:[%s2441_s1 + $0x200] sm:$0xff]  }
  0x23   : > { %1773 = vmatprep.subr.bf16.mxu1 %v2024_v1 }
  0x25   : > { %1754 = vmatpush3.bf16.msra.mxu0 %v1944_v13  ;;  %v1987_v13 = vld [vmem:[%s2441_s1 + $0x1b8] sm:$0xff]  }
  0x26   : > { %1774 = vmatpush3.bf16.msra.mxu1 %v1945_v14  ;;  %1755 = vmatprep.subr.bf16.mxu0 %v2024_v1  ;;  %v868_v14 = vsel %vm619_vm1, %v866_v10, %v867_v11 }
  0x27   : > { %1775 = vmatprep.subr.bf16.mxu1 %v2024_v1 }
  0x29   : > { %1756 = vmatpush3.bf16.msra.mxu0 %v1946_v15  ;;  %v1990_v15 = vld [vmem:[%s2441_s1 + $0x1f8] sm:$0xff]  }
  0x2a   : > { %1776 = vmatpush3.bf16.msra.mxu1 %v1947_v16  ;;  %1781 = vmatprep.subr.bf16.mxu0 %v2024_v1  ;;  %v1991_v16 = vld [vmem:[%s2441_s1 + $0x1b0] sm:$0xff]  }
  0x2b   : > { %1801 = vmatprep.subr.bf16.mxu1 %v2024_v1 }
  0x2c   : > { %1758 = vmatmul.mubr.bf16.vlgmr.msra.gmra.mxu0 %v1948_v17  ;;  %v1992_v17 = vld [vmem:[%s2441_s1 + $0x1f0] sm:$0xff]  }
  0x2d   : > { %1778 = vmatmul.mubr.bf16.vlgmr.msra.gmra.mxu1 %v1949_v18  ;;  %1782 = vmatpush3.bf16.msra.mxu0 %v1950_v19  ;;  %v1993_v18 = vld [vmem:[%s2441_s1 + $0x1a8] sm:$0xff]  }
  0x2e   : > { %1802 = vmatpush3.bf16.msra.mxu1 %v1951_v20  ;;  %1783 = vmatprep.subr.bf16.mxu0 %v2024_v1  ;;  %v1994_v19 = vld [vmem:[%s2441_s1 + $0x1e8] sm:$0xff]   ;;  %v1995_v20 = vld [vmem:[%s2441_s1 + $0x1a0] sm:$0xff]  }
  0x2f   : > { %1803 = vmatprep.subr.bf16.mxu1 %v2024_v1  ;;  %1797 = vmatprep.mubr.msk.bf16.mxu0 %vm2025_vm0, %v2024_v1 }
  0x30   : > { %1817 = vmatprep.mubr.msk.bf16.mxu1 %vm2025_vm0, %v2024_v1 }
  0x31   : > { %1784 = vmatpush3.bf16.msra.mxu0 %v1952_v21  ;;  %v1996_v21 = vld [vmem:[%s2441_s1 + $0x1e0] sm:$0xff]  }
  0x32   : > { %1804 = vmatpush3.bf16.msra.mxu1 %v1953_v22  ;;  %1785 = vmatprep.subr.bf16.mxu0 %v2024_v1  ;;  %v1997_v22 = vld [vmem:[%s2441_s1 + $0x198] sm:$0xff]  }
  0x33   : > { %1805 = vmatprep.subr.bf16.mxu1 %v2024_v1 }
  0x35   : > { %1786 = vmatpush3.bf16.msra.mxu0 %v1954_v23  ;;  %v1998_v23 = vld [vmem:[%s2441_s1 + $0x1d8] sm:$0xff]  }
  0x36   : > { %1806 = vmatpush3.bf16.msra.mxu1 %v1955_v24  ;;  %1787 = vmatprep.subr.bf16.mxu0 %v2024_v1  ;;  %v1999_v24 = vld [vmem:[%s2441_s1 + $0x190] sm:$0xff]  }
  0x37   : > { %1807 = vmatprep.subr.bf16.mxu1 %v2024_v1 }
  0x39   : > { %1788 = vmatpush3.bf16.msra.mxu0 %v1956_v25  ;;  %v2000_v25 = vld [vmem:[%s2441_s1 + $0x1d0] sm:$0xff]  }
  0x3a   : > { %1808 = vmatpush3.bf16.msra.mxu1 %v1957_v26  ;;  %1789 = vmatprep.subr.bf16.mxu0 %v2024_v1  ;;  %v2001_v26 = vld [vmem:[%s2441_s1 + $0x188] sm:$0xff]  }
  0x3b   : > { %1809 = vmatprep.subr.bf16.mxu1 %v2024_v1 }
  0x3d   : > { %1790 = vmatpush3.bf16.msra.mxu0 %v1958_v27  ;;  %v2002_v27 = vld [vmem:[%s2441_s1 + $0x1c8] sm:$0xff]  }
  0x3e   : > { %1810 = vmatpush3.bf16.msra.mxu1 %v1959_v28  ;;  %1791 = vmatprep.subr.bf16.mxu0 %v2024_v1  ;;  %v2003_v28 = vld [vmem:[%s2441_s1 + $0x180] sm:$0xff]  }
  0x3f   : > { %1811 = vmatprep.subr.bf16.mxu1 %v2024_v1 }
  0x41   : > { %1792 = vmatpush3.bf16.msra.mxu0 %v1960_v29  ;;  %v2004_v29 = vld [vmem:[%s2441_s1 + $0x1c0] sm:$0xff]  }
  0x42   : > { %1812 = vmatpush3.bf16.msra.mxu1 %v1961_v30  ;;  %1793 = vmatprep.subr.bf16.mxu0 %v2024_v1  ;;  %v1589_v30 = vld [vmem:[%s2113_s20 + $0x14] sm:$0xf]  ;;  %s244_s20 = scalar_lea.vmem %s2445_s5, %s1647_s9 }
  0x43   : > { %1813 = vmatprep.subr.bf16.mxu1 %v2024_v1  ;;  %v1606_v33 = vcombine.low %v2284_v61, %v1589_v30  ;;  %v1642_v30 = vld [vmem:[%s2443_s3] ss:$0 sm:$0xff] }
  0x45   : > { %1794 = vmatpush3.bf16.msra.mxu0 %v1962_v34  ;;  %v2008_v34 = vld [vmem:[%s2441_s1 + $0x230] sm:$0xff]  }
  0x46   : > { %1814 = vmatpush3.bf16.msra.mxu1 %v1963_v36  ;;  %1795 = vmatprep.subr.bf16.mxu0 %v2024_v1  ;;  %v2011_v36 = vld [vmem:[%s2441_s1 + $0x218] sm:$0xff]  }
  0x47   : > { %1815 = vmatprep.subr.bf16.mxu1 %v2024_v1 }
  0x49   : > { %1796 = vmatpush3.bf16.msra.mxu0 %v1964_v37  ;;  %v2012_v37 = vld [vmem:[%s2441_s1 + $0x210] sm:$0xff]  }
  0x4a   : > { %1816 = vmatpush3.bf16.msra.mxu1 %v1965_v38  ;;  %1821 = vmatprep.subr.bf16.mxu0 %v2024_v1  ;;  %v2013_v38 = vld [vmem:[%s2441_s1 + $0x208] sm:$0xff]  }
  0x4b   : > { %1841 = vmatprep.subr.bf16.mxu1 %v2024_v1 }
  0x4c   : > { %1798 = vmatmul.mubr.bf16.vlgmr.msra.gmra.mxu0 %v1966_v41 }
  0x4d   : > { %1822 = vmatpush3.bf16.msra.mxu0 %v1967_v42  ;;  %1818 = vmatmul.mubr.bf16.vlgmr.msra.gmra.mxu1 %v622_v43 }
  0x4e   : > { %1842 = vmatpush3.bf16.msra.mxu1 %v1970_v44  ;;  %1823 = vmatprep.subr.bf16.mxu0 %v2024_v1 }
  0x4f   : > { %1843 = vmatprep.subr.bf16.mxu1 %v2024_v1  ;;  %1837 = vmatprep.mubr.msk.bf16.mxu0 %vm2025_vm0, %v2024_v1 }
  0x50   : > { %1857 = vmatprep.mubr.msk.bf16.mxu1 %vm2025_vm0, %v2024_v1 }
  0x51   : > { %1824 = vmatpush3.bf16.msra.mxu0 %v1971_v45 }
  0x52   : > { %1844 = vmatpush3.bf16.msra.mxu1 %v1972_v46  ;;  %1825 = vmatprep.subr.bf16.mxu0 %v2024_v1 }
  0x53   : > { %1845 = vmatprep.subr.bf16.mxu1 %v2024_v1 }
  0x55   : > { %1826 = vmatpush3.bf16.msra.mxu0 %v1973_v47 }
  0x56   : > { %1846 = vmatpush3.bf16.msra.mxu1 %v1974_v48  ;;  %1827 = vmatprep.subr.bf16.mxu0 %v2024_v1 }
  0x57   : > { %1847 = vmatprep.subr.bf16.mxu1 %v2024_v1 }
  0x59   : > { %1828 = vmatpush3.bf16.msra.mxu0 %v1975_v51 }
  0x5a   : > { %1848 = vmatpush3.bf16.msra.mxu1 %v1976_v52  ;;  %1829 = vmatprep.subr.bf16.mxu0 %v2024_v1 }
  0x5b   : > { %1849 = vmatprep.subr.bf16.mxu1 %v2024_v1 }
  0x5d   : > { %1830 = vmatpush3.bf16.msra.mxu0 %v1977_v53 }
  0x5e   : > { %1850 = vmatpush3.bf16.msra.mxu1 %v1978_v54  ;;  %1831 = vmatprep.subr.bf16.mxu0 %v2024_v1 }
  0x5f   : > { %1851 = vmatprep.subr.bf16.mxu1 %v2024_v1 }
  0x61   : > { %1832 = vmatpush3.bf16.msra.mxu0 %v1979_v58 }
  0x62   : > { %1852 = vmatpush3.bf16.msra.mxu1 %v1980_v59  ;;  %1833 = vmatprep.subr.bf16.mxu0 %v2024_v1 }
  0x63   : > { %1853 = vmatprep.subr.bf16.mxu1 %v2024_v1 }
  0x65   : > { %1834 = vmatpush3.bf16.msra.mxu0 %v1981_v63 }
  0x66   : > { %1854 = vmatpush3.bf16.msra.mxu1 %v1982_v3  ;;  %1835 = vmatprep.subr.bf16.mxu0 %v2024_v1 }
  0x67   : > { %1855 = vmatprep.subr.bf16.mxu1 %v2024_v1 }
  0x69   : > { %1836 = vmatpush3.bf16.msra.mxu0 %v1983_v6 }
  0x6a   : > { %1856 = vmatpush3.bf16.msra.mxu1 %v1984_v9  ;;  %1861 = vmatprep.subr.bf16.mxu0 %v2024_v1 }
  0x6b   : > { %1881 = vmatprep.subr.bf16.mxu1 %v2024_v1 }
  0x6c   : > { %1838 = vmatmul.mubr.bf16.vlgmr.msra.gmra.mxu0 %v745_v12 }
  0x6d   : > { %1862 = vmatpush3.bf16.msra.mxu0 %v1987_v13  ;;  %1858 = vmatmul.mubr.bf16.vlgmr.msra.gmra.mxu1 %v868_v14 }
  0x6e   : > { %1882 = vmatpush3.bf16.msra.mxu1 %v1990_v15  ;;  %1863 = vmatprep.subr.bf16.mxu0 %v2024_v1 }
  0x6f   : > { %1883 = vmatprep.subr.bf16.mxu1 %v2024_v1  ;;  %1877 = vmatprep.mubr.msk.bf16.mxu0 %vm2025_vm0, %v2024_v1 }
  0x70   : > { %1897 = vmatprep.mubr.msk.bf16.mxu1 %vm2025_vm0, %v2024_v1 }
  0x71   : > { %1864 = vmatpush3.bf16.msra.mxu0 %v1991_v16 }
  0x72   : > { %1884 = vmatpush3.bf16.msra.mxu1 %v1992_v17  ;;  %1865 = vmatprep.subr.bf16.mxu0 %v2024_v1 }
  0x73   : > { %1885 = vmatprep.subr.bf16.mxu1 %v2024_v1 }
  0x75   : > { %1866 = vmatpush3.bf16.msra.mxu0 %v1993_v18  ;;  %v1652_v18 = vld [vmem:[%s239_s12] sm:$0xff]  }
  0x76   : > { %1886 = vmatpush3.bf16.msra.mxu1 %v1994_v19  ;;  %1867 = vmatprep.subr.bf16.mxu0 %v2024_v1 }
  0x77   : > { %1887 = vmatprep.subr.bf16.mxu1 %v2024_v1 }
  0x79   : > { %1868 = vmatpush3.bf16.msra.mxu0 %v1995_v20 }
  0x7a   : > { %1888 = vmatpush3.bf16.msra.mxu1 %v1996_v21  ;;  %1869 = vmatprep.subr.bf16.mxu0 %v2024_v1 }
  0x7b   : > { %1889 = vmatprep.subr.bf16.mxu1 %v2024_v1 }
  0x7d   : > { %1870 = vmatpush3.bf16.msra.mxu0 %v1997_v22  ;;  %v1653_v22 = vunpack.c.l.bf16 %v1652_v18 }
  0x7e   : > { %1890 = vmatpush3.bf16.msra.mxu1 %v1998_v23  ;;  %1871 = vmatprep.subr.bf16.mxu0 %v2024_v1 }
  0x7f   : > { %1891 = vmatprep.subr.bf16.mxu1 %v2024_v1 }
  0x81   : > { %1872 = vmatpush3.bf16.msra.mxu0 %v1999_v24 }
  0x82   : > { %1892 = vmatpush3.bf16.msra.mxu1 %v2000_v25  ;;  %1873 = vmatprep.subr.bf16.mxu0 %v2024_v1  ;;  %v1641_v25 = vld [vmem:[%s2442_s2] ss:$0 sm:$0xff] }
  0x83   : > { %1893 = vmatprep.subr.bf16.mxu1 %v2024_v1 }
  0x85   : > { %1874 = vmatpush3.bf16.msra.mxu0 %v2001_v26 }
  0x86   : > { %1894 = vmatpush3.bf16.msra.mxu1 %v2002_v27  ;;  %1875 = vmatprep.subr.bf16.mxu0 %v2024_v1 }
  0x87   : > { %1895 = vmatprep.subr.bf16.mxu1 %v2024_v1 }
  0x89   : > { %1876 = vmatpush3.bf16.msra.mxu0 %v2003_v28 }
  0x8a   : > { %1896 = vmatpush3.bf16.msra.mxu1 %v2004_v29  ;;  %1901 = vmatprep.subr.bf16.mxu0 %v2024_v1  ;;  %v1654_v29 = vunpack.c.h.bf16 %v1652_v18 }
  0x8c   : > { %1878 = vmatmul.mubr.bf16.vlgmr.msra.gmra.mxu0 %v1580_v50 }
  0x8d   : > { %1902 = vmatpush3.bf16.msra.mxu0 %v2006_v31  ;;  %1898 = vmatmul.mubr.bf16.vlgmr.msra.gmra.mxu1 %v1606_v33 }
  0x8e   : > { %1903 = vmatprep.subr.bf16.mxu0 %v2024_v1  ;;  %1917 = vmatprep.mubr.msk.bf16.mxu0 %vm2025_vm0, %v2024_v1 }
  0x91   : > { %1904 = vmatpush3.bf16.msra.mxu0 %v2008_v34 }
  0x92   : > { %1905 = vmatprep.subr.bf16.mxu0 %v2024_v1 }
  0x95   : > { %1906 = vmatpush3.bf16.msra.mxu0 %v2009_v35 }
  0x96   : > { %1907 = vmatprep.subr.bf16.mxu0 %v2024_v1 }
  0x99   : > { %1908 = vmatpush3.bf16.msra.mxu0 %v2010_v32 }
  0x9a   : > { %1909 = vmatprep.subr.bf16.mxu0 %v2024_v1 }
  0x9d   : > { %1910 = vmatpush3.bf16.msra.mxu0 %v2011_v36 }
  0x9e   : > { %1911 = vmatprep.subr.bf16.mxu0 %v2024_v1 }
  0xa1   : > { %1912 = vmatpush3.bf16.msra.mxu0 %v2012_v37 }
  0xa2   : > { %1913 = vmatprep.subr.bf16.mxu0 %v2024_v1 }
  0xa5   : > { %1914 = vmatpush3.bf16.msra.mxu0 %v2013_v38 }
  0xa6   : > { %1915 = vmatprep.subr.bf16.mxu0 %v2024_v1 }
  0xa9   : > { %1916 = vmatpush3.bf16.msra.mxu0 %v2014_v39 }
  0xac   : > { %1918 = vmatmul.mubr.bf16.vlgmr.msra.gmra.mxu0 %v1632_v57 }
  0xec   : > { %v372_v40 = vpop.f32.mrf.mxu0 }
  0xed   : > { %v467_v41 = vpop.f32.mrf.mxu1 }
  0xee   : > { %v468_v42 = vadd.f32 %v467_v41, %v372_v40  ;;  %v1759_v43 = vpop.f32.mrf.mxu0 }
  0xef   : > { %v1779_v44 = vpop.f32.mrf.mxu1 }
  0xf0   : > { %v375_v45 = vpop.f32.mrf.mxu0 }
  0xf1   : > { %v470_v46 = vpop.f32.mrf.mxu1 }
  0xf2   : > { %v471_v47 = vadd.f32 %v470_v46, %v375_v45  ;;  %v1760_v48 = vpop.f32.mrf.mxu0 }
  0xf3   : > { %v1780_v49 = vpop.f32.mrf.mxu1 }
 0x10c   : > { %v582_v50 = vpop.f32.mrf.mxu0 }
 0x10d   : > { %v589_v51 = vadd.f32 %v582_v50, %v468_v42  ;;  %v706_v52 = vpop.f32.mrf.mxu1 }
 0x10e   : > { %v1799_v53 = vpop.f32.mrf.mxu0 }
 0x10f   : > { %v713_v1 = vadd.f32 %v706_v52, %v589_v51  ;;  %v1819_v54 = vpop.f32.mrf.mxu1 }
 0x110   : > { %v585_v58 = vpop.f32.mrf.mxu0 }
 0x111   : > { %v590_v59 = vadd.f32 %v585_v58, %v471_v47  ;;  %v709_v55 = vpop.f32.mrf.mxu1 }
 0x112   : > { %v1800_v56 = vpop.f32.mrf.mxu0 }
 0x113   : > { %v714_v57 = vadd.f32 %v709_v55, %v590_v59  ;;  %v1820_v60 = vpop.f32.mrf.mxu1 }
 0x12c   : > { %v829_v61 = vpop.f32.mrf.mxu0 }
 0x12d   : > { %v952_v62 = vpop.f32.mrf.mxu1  ;;  %v836_v14 = vadd.f32 %v829_v61, %v713_v1 }
 0x12e   : > { %v1839_v63 = vpop.f32.mrf.mxu0 }
 0x12f   : > { %v1859_v0 = vpop.f32.mrf.mxu1  ;;  %v959_v15 = vadd.f32 %v952_v62, %v836_v14 }
 0x130   : > { %v832_v2 = vpop.f32.mrf.mxu0 }
 0x131   : > { %v955_v3 = vpop.f32.mrf.mxu1  ;;  %v837_v16 = vadd.f32 %v832_v2, %v714_v57 }
 0x132   : > { %v1840_v4 = vpop.f32.mrf.mxu0 }
 0x133   : > { %v1860_v5 = vpop.f32.mrf.mxu1  ;;  %v960_v19 = vadd.f32 %v955_v3, %v837_v16 }
 0x14c   : > { %v1065_v6 = vpop.f32.mrf.mxu0 }
 0x14d   : > { %v1178_v7 = vpop.f32.mrf.mxu1  ;;  %v1072_v17 = vadd.f32 %v1065_v6, %v959_v15 }
 0x14e   : > { %v1879_v8 = vpop.f32.mrf.mxu0 }
 0x14f   : > { %v1899_v9 = vpop.f32.mrf.mxu1  ;;  %v1185_v20 = vadd.f32 %v1178_v7, %v1072_v17 }
 0x150   : > { %v1068_v10 = vpop.f32.mrf.mxu0 }
 0x151   : > { %v1181_v11 = vpop.f32.mrf.mxu1  ;;  %v1073_v21 = vadd.f32 %v1068_v10, %v960_v19 }
 0x152   : > { %v1880_v12 = vpop.f32.mrf.mxu0 }
 0x153   : > { %v1900_v13 = vpop.f32.mrf.mxu1  ;;  %v1186_v27 = vadd.f32 %v1181_v11, %v1073_v21 }
 0x16c   : > { %v1291_v23 = vpop.f32.mrf.mxu0 }
 0x16d   : > { %v1298_v24 = vadd.f32 %v1291_v23, %v1185_v20 }
 0x16e   : > { %v1919_v26 = vpop.f32.mrf.mxu0 }
 0x16f   : > { %v1304_v28 = vadd.f32 %v1653_v22, %v1298_v24 }
 0x170   : > { %v1294_v31 = vpop.f32.mrf.mxu0 }
 0x171   : > { %v1313_v33 = vmul.f32 %v1641_v25, %v1304_v28  ;;  %v1299_v34 = vadd.f32 %v1294_v31, %v1186_v27 }
 0x172   : > { %v1920_v35 = vpop.f32.mrf.mxu0 }
 0x173   : > { %v1322_v32 = vadd.f32 %v1642_v30, %v1313_v33  ;;  %v1305_v36 = vadd.f32 %v1654_v29, %v1299_v34 }
 0x175   : > { %v1314_v37 = vmul.f32 %v1641_v25, %v1305_v36  ;;  %v1326_v38 = vmul.f32 0.1, %v1322_v32  ;;  %vm1324_vm2 = vcmp.ge.f32.partialorder %v1322_v32, 0.0 }
 0x177   : > { %v1323_v39 = vadd.f32 %v1642_v30, %v1314_v37  ;;  %v1328_v41 = vsel %vm1324_vm2, %v1322_v32, %v1326_v38 }
 0x179   : > { %vm1325_vm3 = vcmp.ge.f32.partialorder %v1323_v39, 0.0  ;;  %v1327_v40 = vmul.f32 0.1, %v1323_v39 }
 0x17b   : > { %v1329_v42 = vsel %vm1325_vm3, %v1323_v39, %v1327_v40 }
 0x17c   : > { %v1658_v43 = vpack.c.bf16 %v1329_v42, %v1328_v41 }
 0x17e   : > { %1659 = vst [vmem:[%s244_s20] sm:$0xff] %v1658_v43  }
 0x17f PF: > { %s15_s18 = sadd.s32 1, %s2022_s18  }
 0x180   : > { %p12_p4 = scmp.ge.s32.totalorder %s15_s18, 4  }
 0x182   :  { %14 = sbr.rel (!%p12_p4) target bundleno = 1 (0x1), region = 83 }

</bundles_post_ra>
